<compile_context>
chip_gen: v7x
topology: tpu7x:2x2x1
jax: 0.10.0
libtpu: 0.0.40
codegen_flags: <defaults>
</compile_context>

<pallas_src>
import functools

import jax
import jax.numpy as jnp
from jax.experimental import pallas as pl
from jax.experimental.pallas import tpu as pltpu

BN_EPS = 1e-5
V_TH = 1.0        # IF neuron threshold
CNF = "ADD"       # SEW connect function
NUM_CLASSES = 196


def _round_up(x, m):
    return (x + m - 1) // m * m


def _pick_tile(total, unit, cap):
    """Largest t = unit*d with d | (total//unit) and t <= cap (total % unit == 0)."""
    n = total // unit
    best = 1
    for d in range(1, n + 1):
        if n % d == 0 and unit * d <= cap:
            best = d
    return unit * best


# ------------------------------------------------------------------
# Pallas kernels
# ------------------------------------------------------------------
def _fused_gemm_kernel(*refs, n_out, has_identity, emit_inter, apply_spike, cnf):
    """Tiled GEMM (f32 accum) with fused BN / spike / SEW epilogue.

    refs layout: a, b, scale, shift, [identity], out_0..out_{n_out-1}, acc_scratch
    """
    a_ref, b_ref, s_ref, c_ref = refs[0:4]
    idx = 4
    id_ref = None
    if has_identity:
        id_ref = refs[4]
        idx = 5
    out_refs = refs[idx:idx + n_out]
    acc_ref = refs[idx + n_out]

    @pl.when(pl.program_id(2) == 0)
    def _():
        acc_ref[...] = jnp.zeros_like(acc_ref)

    acc_ref[...] += jnp.dot(a_ref[...], b_ref[...],
                            preferred_element_type=jnp.float32)

    @pl.when(pl.program_id(2) == pl.num_programs(2) - 1)
    def _():
        conv = acc_ref[...]                          # raw conv output (f32)
        bn = conv * s_ref[...] + c_ref[...]          # eval-mode BatchNorm affine
        o = 0
        if emit_inter:
            out_refs[o][...] = conv.astype(out_refs[o].dtype)
            out_refs[o + 1][...] = bn.astype(out_refs[o + 1].dtype)
            o += 2
        if apply_spike:
            spk = (bn >= V_TH).astype(jnp.float32)   # IF neuron, compare in f32
            if emit_inter or not has_identity:
                out_refs[o][...] = spk.astype(out_refs[o].dtype)
                o += 1
            if has_identity:
                ident = id_ref[...].astype(jnp.float32)
                if cnf == "ADD":
                    res = ident + spk
                elif cnf == "AND":
                    res = ident * spk
                elif cnf == "IAND":
                    res = ident * (1.0 - spk)
                else:
                    raise NotImplementedError(cnf)
                out_refs[o][...] = res.astype(out_refs[o].dtype)
        else:
            out_refs[o][...] = bn.astype(out_refs[o].dtype)   # plain affine (fc)


def _maxpool_kernel(*refs):
    # refs: tap_0..tap_8, out  -> running max over taps (no 9x stacked buffer)
    o_ref = refs[-1]
    m = refs[0][...]
    for r in refs[1:-1]:
        m = jnp.maximum(m, r[...])
    o_ref[...] = m


def _avgpool_kernel(x_ref, o_ref):
    # x: [N, H*W, C] -> mean over spatial
    o_ref[...] = jnp.mean(x_ref[...], axis=1)


# ------------------------------------------------------------------
# Pallas wrappers
# ------------------------------------------------------------------
def pallas_fused_gemm(a, b, scale, shift, identity=None, emit_inter=False,
                      apply_spike=True, cnf=CNF, in_dtype=jnp.bfloat16,
                      out_dtype=jnp.float32):
    """a:[M,K] @ b:[K,N] with fused BN/spike/SEW epilogue.  Returns a list of
    [M,N] outputs (dtype=out_dtype) whose composition depends on the flags."""
    M, K = a.shape
    K2, N = b.shape
    assert K == K2

    # Adaptive tiling: small GEMMs use a single (full-dim) block, large ones use
    # divisor-picked tiles so no extra padding beyond the (8, 128) alignment.
    if M <= 256:
        Mp = _round_up(M, 8)
        TM = Mp
    else:
        Mp = _round_up(M, 128)
        TM = _pick_tile(Mp, 128, 512)
    Np = _round_up(N, 128)
    TN = _pick_tile(Np, 128, 256)
    Kp = _round_up(K, 128)
    TK = _pick_tile(Kp, 128, 768)

    a_p = jnp.pad(a.astype(in_dtype), ((0, Mp - M), (0, Kp - K)))
    b_p = jnp.pad(b.astype(in_dtype), ((0, Kp - K), (0, Np - N)))
    s_p = jnp.pad(scale.astype(jnp.float32).reshape(1, N), ((0, 0), (0, Np - N)))
    c_p = jnp.pad(shift.astype(jnp.float32).reshape(1, N), ((0, 0), (0, Np - N)))

    has_identity = identity is not None
    inputs = [a_p, b_p, s_p, c_p]
    in_specs = [
        pl.BlockSpec((TM, TK), lambda i, j, k: (i, k)),
        pl.BlockSpec((TK, TN), lambda i, j, k: (k, j)),
        pl.BlockSpec((1, TN), lambda i, j, k: (0, j)),
        pl.BlockSpec((1, TN), lambda i, j, k: (0, j)),
    ]
    if has_identity:
        # Keep identity in its native dtype (bf16 spikes are exact); cast in-kernel.
        id_p = jnp.pad(identity, ((0, Mp - M), (0, Np - N)))
        inputs.append(id_p)
        in_specs.append(pl.BlockSpec((TM, TN), lambda i, j, k: (i, j)))

    if apply_spike:
        n_out = ((2 if emit_inter else 0)
                 + (1 if (emit_inter or not has_identity) else 0)
                 + (1 if has_identity else 0))
    else:
        n_out = 1

    kernel = functools.partial(
        _fused_gemm_kernel, n_out=n_out, has_identity=has_identity,
        emit_inter=emit_inter, apply_spike=apply_spike, cnf=cnf)

    outs = pl.pallas_call(
        kernel,
        out_shape=[jax.ShapeDtypeStruct((Mp, Np), out_dtype)] * n_out,
        grid_spec=pltpu.PrefetchScalarGridSpec(
            num_scalar_prefetch=0,
            grid=(Mp // TM, Np // TN, Kp // TK),
            in_specs=in_specs,
            out_specs=[pl.BlockSpec((TM, TN), lambda i, j, k: (i, j))] * n_out,
            scratch_shapes=[pltpu.VMEM((TM, TN), jnp.float32)],
        ),
        compiler_params=pltpu.CompilerParams(
            dimension_semantics=("parallel", "parallel", "arbitrary")),
    )(*inputs)
    return [o[:M, :N] for o in outs]


def _extract_patches(x, kh, kw, stride, padding):
    """x: [N,H,W,C] -> bf16 patches [N,OH,OW, kh*kw*C] (tap-major, channel fastest)."""
    N, H, W, C = x.shape
    xp = jnp.pad(x.astype(jnp.bfloat16),
                 ((0, 0), (padding, padding), (padding, padding), (0, 0)))
    OH = (H + 2 * padding - kh) // stride + 1
    OW = (W + 2 * padding - kw) // stride + 1
    taps = []
    for i in range(kh):
        for j in range(kw):
            taps.append(xp[:, i:i + stride * (OH - 1) + 1:stride,
                           j:j + stride * (OW - 1) + 1:stride, :])
    return jnp.concatenate(taps, axis=-1), OH, OW


def conv_bn_spike(x, w_flat, bn, kh, kw, cout, stride, padding, *,
                  identity=None, emit_inter=False, apply_spike=True, cnf=CNF,
                  out_dtype=jnp.float32):
    """NHWC conv (bias-free) + BN + IF-spike (+ optional SEW) in one fused GEMM."""
    N = x.shape[0]
    patches, OH, OW = _extract_patches(x, kh, kw, stride, padding)
    a = patches.reshape(N * OH * OW, kh * kw * x.shape[-1])
    id_flat = None
    if identity is not None:
        id_flat = identity.reshape(N * OH * OW, cout)
    outs = pallas_fused_gemm(a, w_flat, bn["scale"], bn["shift"],
                             identity=id_flat, emit_inter=emit_inter,
                             apply_spike=apply_spike, cnf=cnf,
                             out_dtype=out_dtype)
    return [o.reshape(N, OH, OW, cout) for o in outs]


def maxpool2d(x, k=3, stride=2, padding=1):
    """MaxPool2d(3, 2, 1) via a lane-dense running-max Pallas kernel."""
    N, H, W, C = x.shape
    xp = jnp.pad(x, ((0, 0), (padding, padding), (padding, padding), (0, 0)),
                 constant_values=-jnp.inf)
    OH = (H + 2 * padding - k) // stride + 1
    OW = (W + 2 * padding - k) // stride + 1
    T = N * OH * OW * C
    LANE = 128
    rows = pl.cdiv(T, LANE)
    if rows <= 512:
        rows_p = _round_up(rows, 8)
        TR = rows_p
    else:
        rows_p = _round_up(rows, 512)
        TR = 512
    Tp = rows_p * LANE

    taps = []
    for i in range(k):
        for j in range(k):
            t = xp[:, i:i + stride * (OH - 1) + 1:stride,
                   j:j + stride * (OW - 1) + 1:stride, :].reshape(-1)
            t = jnp.pad(t, (0, Tp - T), constant_values=-jnp.inf)
            taps.append(t.reshape(rows_p, LANE))

    out = pl.pallas_call(
        _maxpool_kernel,
        out_shape=jax.ShapeDtypeStruct((rows_p, LANE), x.dtype),
        grid_spec=pltpu.PrefetchScalarGridSpec(
            num_scalar_prefetch=0,
            grid=(rows_p // TR,),
            in_specs=[pl.BlockSpec((TR, LANE), lambda m: (m, 0))] * (k * k),
            out_specs=pl.BlockSpec((TR, LANE), lambda m: (m, 0)),
        ),
        compiler_params=pltpu.CompilerParams(dimension_semantics=("parallel",)),
    )(*taps)
    return out.reshape(-1)[:T].reshape(N, OH, OW, C)


def adaptive_avgpool_1x1(x):
    N, H, W, C = x.shape
    out = pl.pallas_call(
        _avgpool_kernel,
        out_shape=jax.ShapeDtypeStruct((N, C), jnp.float32),
    )(x.reshape(N, H * W, C).astype(jnp.float32))
    return out  # already flattened (N, C)  -- step_mode 's' flatten


# ------------------------------------------------------------------
# Parameter construction (arrays only; static config kept separate so nothing
# integer-valued gets traced under jit)
# ------------------------------------------------------------------
def init_conv(key, kh, kw, cin, cout):
    # kaiming_normal_(mode='fan_out', nonlinearity='relu'): std = sqrt(2 / (cout*kh*kw))
    std = (2.0 / (cout * kh * kw)) ** 0.5
    w = jax.random.normal(key, (kh, kw, cin, cout), jnp.float32) * std
    return w.reshape(kh * kw * cin, cout)


def init_bn(c):
    gamma = jnp.ones((c,), jnp.float32)
    beta = jnp.zeros((c,), jnp.float32)
    mean = jnp.zeros((c,), jnp.float32)
    var = jnp.ones((c,), jnp.float32)
    scale = gamma / jnp.sqrt(var + BN_EPS)
    shift = beta - mean * scale
    return {"scale": scale, "shift": shift}


def init_basic_block(key, inplanes, planes, stride):
    ks = jax.random.split(key, 3)
    p = {
        "conv1_w": init_conv(ks[0], 3, 3, inplanes, planes),
        "bn1": init_bn(planes),
        "conv2_w": init_conv(ks[1], 3, 3, planes, planes),
        "bn2": init_bn(planes),
    }
    has_down = (stride != 1) or (inplanes != planes)   # BasicBlock.expansion == 1
    if has_down:
        p["down_conv_w"] = init_conv(ks[2], 1, 1, inplanes, planes)
        p["down_bn"] = init_bn(planes)
    cfg = {"inplanes": inplanes, "planes": planes, "stride": stride,
           "has_down": has_down}
    return p, cfg


def init_sew_resnet(key, layers=(1, 1, 1, 1), num_classes=NUM_CLASSES):
    ks = jax.random.split(key, 8)
    params = {
        "conv1_w": init_conv(ks[0], 7, 7, 3, 64),
        "bn1": init_bn(64),
    }
    cfg = {"blocks": []}
    inplanes = 64
    stage_planes = (64, 128, 256, 512)
    stage_strides = (1, 2, 2, 2)
    for si in range(4):
        block_params, block_cfgs = [], []
        planes = stage_planes[si]
        stride = stage_strides[si]
        bkeys = jax.random.split(ks[1 + si], layers[si])
        for bi in range(layers[si]):
            s = stride if bi == 0 else 1
            bp, bc = init_basic_block(bkeys[bi], inplanes, planes, s)
            block_params.append(bp)
            block_cfgs.append(bc)
            inplanes = planes
        params[f"layer{si + 1}"] = block_params
        cfg["blocks"].append(block_cfgs)
    # fc: nn.Linear(512, num_classes)
    fan_in = 512
    bound = 1.0 / (fan_in ** 0.5)
    params["fc_w"] = jax.random.uniform(ks[5], (fan_in, num_classes), jnp.float32,
                                        -bound, bound)
    params["fc_b"] = jax.random.uniform(ks[6], (num_classes,), jnp.float32,
                                        -bound, bound)
    return params, cfg


# ------------------------------------------------------------------
# Forward pass (mirrors SEWResNet._forward_impl / BasicBlock.forward)
# ------------------------------------------------------------------
def basic_block_forward(x, bp, bc, is_last, cnf=CNF):
    planes = bc["planes"]
    stride = bc["stride"]
    if bc["has_down"]:
        # downsample = conv1x1 + BN, then downsample_sn (spike) -> fused epilogue.
        # Spike values are exactly 0/1 -> bf16 output is lossless and halves traffic.
        (identity,) = conv_bn_spike(x, bp["down_conv_w"], bp["down_bn"],
                                    1, 1, planes, stride, 0,
                                    out_dtype=jnp.bfloat16)
    else:
        identity = x

    if is_last:
        # last block's intermediates are part of all_feature_map -> emit them (f32)
        x01, x02, x03 = conv_bn_spike(x, bp["conv1_w"], bp["bn1"], 3, 3, planes,
                                      stride, 1, emit_inter=True)
        x04, x05, x06, x07 = conv_bn_spike(x03, bp["conv2_w"], bp["bn2"], 3, 3,
                                           planes, 1, 1, identity=identity,
                                           emit_inter=True, cnf=cnf)
        return [x01, x02, x03, x04, x05, x06, x07]
    else:
        # internal-only activations: spikes / SEW-ADD results are exact in bf16
        (x03,) = conv_bn_spike(x, bp["conv1_w"], bp["bn1"], 3, 3, planes,
                               stride, 1, out_dtype=jnp.bfloat16)
        (x07,) = conv_bn_spike(x03, bp["conv2_w"], bp["bn2"], 3, 3, planes, 1, 1,
                               identity=identity, cnf=cnf,
                               out_dtype=jnp.bfloat16)
        return [x07]


def sew_resnet_forward(params, x_nchw, cfg):
    # PyTorch NCHW -> internal NHWC
    x = jnp.transpose(x_nchw, (0, 2, 3, 1)).astype(jnp.float32)

    # stem: conv7x7 s2 + BN + spike fused in one GEMM (intermediates returned)
    x01_, x02_, x03_ = conv_bn_spike(x, params["conv1_w"], params["bn1"],
                                     7, 7, 64, 2, 3, emit_inter=True)
    x04_ = maxpool2d(x03_, 3, 2, 1)

    h = x04_
    x_list = None
    for si in range(4):
        bplist = params[f"layer{si + 1}"]
        bclist = cfg["blocks"][si]
        for bi, (bp, bc) in enumerate(zip(bplist, bclist)):
            is_last = (si == 3) and (bi == len(bplist) - 1)
            x_list = basic_block_forward(h, bp, bc, is_last, CNF)
            h = x_list[-1]

    x05_ = adaptive_avgpool_1x1(x_list[-1])            # [N, 512]
    (x06_,) = pallas_fused_gemm(                        # fc: scale=1, shift=bias
        x05_, params["fc_w"],
        jnp.ones((params["fc_w"].shape[1],), jnp.float32), params["fc_b"],
        apply_spike=False, in_dtype=jnp.float32)        # f32 GEMM: pooled values
                                                        # are not bf16-exact

    all_feature_map = [x01_, x02_, x03_, x04_, *x_list, x05_, x06_]
    return all_feature_map


if __name__ == "__main__":
    key = jax.random.PRNGKey(0)
    pkey, xkey = jax.random.split(key)
    params, cfg = init_sew_resnet(pkey, layers=(1, 1, 1, 1),
                                  num_classes=NUM_CLASSES)

    # Small NCHW input consistent with the module's stem (3 input channels).
    x = jax.random.normal(xkey, (2, 3, 32, 32), jnp.float32)

    fwd = jax.jit(lambda p, xx: sew_resnet_forward(p, xx, cfg))
    feats = fwd(params, x)
    feats = jax.block_until_ready(feats)

    # sanity: final logits / pooled-feature shapes
    assert feats[-1].shape == (2, NUM_CLASSES)
    assert feats[-2].shape == (2, 512)
    assert feats[0].shape == (2, 16, 16, 64)   # stem conv output (NHWC)
    print("KERNEL_OK")
</pallas_src>

<mosaic_0001>
module attributes {stable_mosaic.version = 11 : i64} {
  func.func @_fused_gemm_kernel(%arg0: i32, %arg1: i32, %arg2: i32, %arg3: memref<512x256xbf16, #tpu.memory_space<vmem>>, %arg4: memref<256x128xbf16, #tpu.memory_space<vmem>>, %arg5: memref<1x128xf32, #tpu.memory_space<vmem>>, %arg6: memref<1x128xf32, #tpu.memory_space<vmem>>, %arg7: memref<512x128xf32, #tpu.memory_space<vmem>>, %arg8: memref<512x128xf32, #tpu.memory_space<vmem>>, %arg9: memref<512x128xf32, #tpu.memory_space<vmem>>, %arg10: memref<512x128xf32, #tpu.memory_space<vmem>>) attributes {dimension_semantics = [#tpu.dimension_semantics<parallel>, #tpu.dimension_semantics<parallel>, #tpu.dimension_semantics<arbitrary>], iteration_bounds = array<i64: 1, 1, 1>, scalar_prefetch = 0 : i64, scratch_operands = 1 : i64, tpu.core_type = #tpu.core_type<tc>, window_params = [{transform_indices = @transform_0, window_bounds = array<i64: 512, 256>}, {transform_indices = @transform_1, window_bounds = array<i64: 256, 128>}, {transform_indices = @transform_2, window_bounds = array<i64: 1, 128>}, {transform_indices = @transform_3, window_bounds = array<i64: 1, 128>}, {transform_indices = @transform_4, window_bounds = array<i64: 512, 128>}, {transform_indices = @transform_5, window_bounds = array<i64: 512, 128>}, {transform_indices = @transform_6, window_bounds = array<i64: 512, 128>}]} {
    %c0_i32 = arith.constant 0 : i32
    %0 = arith.cmpi eq, %arg2, %c0_i32 : i32
    %1 = arith.extui %0 : i1 to i32
    %c0_i32_0 = arith.constant 0 : i32
    %2 = arith.cmpi ne, %1, %c0_i32_0 : i32
    scf.if %2 {
      %cst_10 = arith.constant 0.000000e+00 : f32
      %12 = vector.broadcast %cst_10 : f32 to vector<512x128xf32>
      %c0_11 = arith.constant 0 : index
      %c0_12 = arith.constant 0 : index
      %13 = vector.load %arg10[%c0_11, %c0_12] : memref<512x128xf32, #tpu.memory_space<vmem>>, vector<512x128xf32>
      tpu.vector_store %arg10[%c0_11, %c0_12], %12 {strides = array<i32>} : memref<512x128xf32, #tpu.memory_space<vmem>>, vector<512x128xf32>,
    } else {
    }
    %c0 = arith.constant 0 : index
    %c0_1 = arith.constant 0 : index
    %3 = vector.load %arg10[%c0, %c0_1] : memref<512x128xf32, #tpu.memory_space<vmem>>, vector<512x128xf32>
    %c0_2 = arith.constant 0 : index
    %c0_3 = arith.constant 0 : index
    %4 = vector.load %arg3[%c0_2, %c0_3] : memref<512x256xbf16, #tpu.memory_space<vmem>>, vector<512x256xbf16>
    %c0_4 = arith.constant 0 : index
    %c0_5 = arith.constant 0 : index
    %5 = vector.load %arg4[%c0_4, %c0_5] : memref<256x128xbf16, #tpu.memory_space<vmem>>, vector<256x128xbf16>
    %cst = arith.constant dense<0.000000e+00> : vector<512x128xf32>
    %6 = tpu.matmul %4, %5, %cst {dimension_numbers = #tpu.dot_dimension_numbers<[1], [0], [0], [1], [0, 0, 1, 1], [], []>} : vector<512x256xbf16>, vector<256x128xbf16>, vector<512x128xf32> -> vector<512x128xf32>
    %7 = arith.addf %3, %6 : vector<512x128xf32>
    %c0_6 = arith.constant 0 : index
    %c0_7 = arith.constant 0 : index
    %8 = vector.load %arg10[%c0_6, %c0_7] : memref<512x128xf32, #tpu.memory_space<vmem>>, vector<512x128xf32>
    tpu.vector_store %arg10[%c0_6, %c0_7], %7 {strides = array<i32>} : memref<512x128xf32, #tpu.memory_space<vmem>>, vector<512x128xf32>,
    %c0_i32_8 = arith.constant 0 : i32
    %9 = arith.cmpi eq, %arg2, %c0_i32_8 : i32
    %10 = arith.extui %9 : i1 to i32
    %c0_i32_9 = arith.constant 0 : i32
    %11 = arith.cmpi ne, %10, %c0_i32_9 : i32
    scf.if %11 {
      %c0_10 = arith.constant 0 : index
      %c0_11 = arith.constant 0 : index
      %12 = vector.load %arg10[%c0_10, %c0_11] : memref<512x128xf32, #tpu.memory_space<vmem>>, vector<512x128xf32>
      %c0_12 = arith.constant 0 : index
      %c0_13 = arith.constant 0 : index
      %13 = vector.load %arg5[%c0_12, %c0_13] : memref<1x128xf32, #tpu.memory_space<vmem>>, vector<1x128xf32>
      %14 = vector.broadcast %13 : vector<1x128xf32> to vector<512x128xf32>
      %15 = arith.mulf %12, %14 : vector<512x128xf32>
      %c0_14 = arith.constant 0 : index
      %c0_15 = arith.constant 0 : index
      %16 = vector.load %arg6[%c0_14, %c0_15] : memref<1x128xf32, #tpu.memory_space<vmem>>, vector<1x128xf32>
      %17 = vector.broadcast %16 : vector<1x128xf32> to vector<512x128xf32>
      %18 = arith.addf %15, %17 : vector<512x128xf32>
      %c0_16 = arith.constant 0 : index
      %c0_17 = arith.constant 0 : index
      %19 = vector.load %arg7[%c0_16, %c0_17] : memref<512x128xf32, #tpu.memory_space<vmem>>, vector<512x128xf32>
      tpu.vector_store %arg7[%c0_16, %c0_17], %12 {strides = array<i32>} : memref<512x128xf32, #tpu.memory_space<vmem>>, vector<512x128xf32>,
      %c0_18 = arith.constant 0 : index
      %c0_19 = arith.constant 0 : index
      %20 = vector.load %arg8[%c0_18, %c0_19] : memref<512x128xf32, #tpu.memory_space<vmem>>, vector<512x128xf32>
      tpu.vector_store %arg8[%c0_18, %c0_19], %18 {strides = array<i32>} : memref<512x128xf32, #tpu.memory_space<vmem>>, vector<512x128xf32>,
      %cst_20 = arith.constant 1.000000e+00 : f32
      %21 = vector.broadcast %cst_20 : f32 to vector<512x128xf32>
      %22 = arith.cmpf oge, %18, %21 : vector<512x128xf32>
      %23 = arith.extui %22 : vector<512x128xi1> to vector<512x128xi32>
      %24 = arith.sitofp %23 : vector<512x128xi32> to vector<512x128xf32>
      %c0_21 = arith.constant 0 : index
      %c0_22 = arith.constant 0 : index
      %25 = vector.load %arg9[%c0_21, %c0_22] : memref<512x128xf32, #tpu.memory_space<vmem>>, vector<512x128xf32>
      tpu.vector_store %arg9[%c0_21, %c0_22], %24 {strides = array<i32>} : memref<512x128xf32, #tpu.memory_space<vmem>>, vector<512x128xf32>,
    } else {
    }
    return
  }
  func.func @transform_0(%arg0: i32, %arg1: i32, %arg2: i32) -> (i32, i32) {
    %c0_i32 = arith.constant 0 : i32
    return %arg0, %arg2 : i32, i32
  }
  func.func @transform_1(%arg0: i32, %arg1: i32, %arg2: i32) -> (i32, i32) {
    %c0_i32 = arith.constant 0 : i32
    return %arg2, %arg1 : i32, i32
  }
  func.func @transform_2(%arg0: i32, %arg1: i32, %arg2: i32) -> (i32, i32) {
    %c0_i32 = arith.constant 0 : i32
    %c0_i32_0 = arith.constant 0 : i32
    return %c0_i32, %arg1 : i32, i32
  }
  func.func @transform_3(%arg0: i32, %arg1: i32, %arg2: i32) -> (i32, i32) {
    %c0_i32 = arith.constant 0 : i32
    %c0_i32_0 = arith.constant 0 : i32
    return %c0_i32, %arg1 : i32, i32
  }
  func.func @transform_4(%arg0: i32, %arg1: i32, %arg2: i32) -> (i32, i32) {
    %c0_i32 = arith.constant 0 : i32
    return %arg0, %arg1 : i32, i32
  }
  func.func @transform_5(%arg0: i32, %arg1: i32, %arg2: i32) -> (i32, i32) {
    %c0_i32 = arith.constant 0 : i32
    return %arg0, %arg1 : i32, i32
  }
  func.func @transform_6(%arg0: i32, %arg1: i32, %arg2: i32) -> (i32, i32) {
    %c0_i32 = arith.constant 0 : i32
    return %arg0, %arg1 : i32, i32
  }
}

module attributes {stable_mosaic.version = 11 : i64} {
  func.func @_maxpool_kernel(%arg0: i32, %arg1: memref<64x128xf32, #tpu.memory_space<vmem>>, %arg2: memref<64x128xf32, #tpu.memory_space<vmem>>, %arg3: memref<64x128xf32, #tpu.memory_space<vmem>>, %arg4: memref<64x128xf32, #tpu.memory_space<vmem>>, %arg5: memref<64x128xf32, #tpu.memory_space<vmem>>, %arg6: memref<64x128xf32, #tpu.memory_space<vmem>>, %arg7: memref<64x128xf32, #tpu.memory_space<vmem>>, %arg8: memref<64x128xf32, #tpu.memory_space<vmem>>, %arg9: memref<64x128xf32, #tpu.memory_space<vmem>>, %arg10: memref<64x128xf32, #tpu.memory_space<vmem>>) attributes {dimension_semantics = [#tpu.dimension_semantics<parallel>], iteration_bounds = array<i64: 1>, scalar_prefetch = 0 : i64, scratch_operands = 0 : i64, tpu.core_type = #tpu.core_type<tc>, window_params = [{transform_indices = @transform_0, window_bounds = array<i64: 64, 128>}, {transform_indices = @transform_1, window_bounds = array<i64: 64, 128>}, {transform_indices = @transform_2, window_bounds = array<i64: 64, 128>}, {transform_indices = @transform_3, window_bounds = array<i64: 64, 128>}, {transform_indices = @transform_4, window_bounds = array<i64: 64, 128>}, {transform_indices = @transform_5, window_bounds = array<i64: 64, 128>}, {transform_indices = @transform_6, window_bounds = array<i64: 64, 128>}, {transform_indices = @transform_7, window_bounds = array<i64: 64, 128>}, {transform_indices = @transform_8, window_bounds = array<i64: 64, 128>}, {transform_indices = @transform_9, window_bounds = array<i64: 64, 128>}]} {
    %c0 = arith.constant 0 : index
    %c0_0 = arith.constant 0 : index
    %0 = vector.load %arg1[%c0, %c0_0] : memref<64x128xf32, #tpu.memory_space<vmem>>, vector<64x128xf32>
    %c0_1 = arith.constant 0 : index
    %c0_2 = arith.constant 0 : index
    %1 = vector.load %arg2[%c0_1, %c0_2] : memref<64x128xf32, #tpu.memory_space<vmem>>, vector<64x128xf32>
    %2 = arith.maximumf %0, %1 : vector<64x128xf32>
    %c0_3 = arith.constant 0 : index
    %c0_4 = arith.constant 0 : index
    %3 = vector.load %arg3[%c0_3, %c0_4] : memref<64x128xf32, #tpu.memory_space<vmem>>, vector<64x128xf32>
    %4 = arith.maximumf %2, %3 : vector<64x128xf32>
    %c0_5 = arith.constant 0 : index
    %c0_6 = arith.constant 0 : index
    %5 = vector.load %arg4[%c0_5, %c0_6] : memref<64x128xf32, #tpu.memory_space<vmem>>, vector<64x128xf32>
    %6 = arith.maximumf %4, %5 : vector<64x128xf32>
    %c0_7 = arith.constant 0 : index
    %c0_8 = arith.constant 0 : index
    %7 = vector.load %arg5[%c0_7, %c0_8] : memref<64x128xf32, #tpu.memory_space<vmem>>, vector<64x128xf32>
    %8 = arith.maximumf %6, %7 : vector<64x128xf32>
    %c0_9 = arith.constant 0 : index
    %c0_10 = arith.constant 0 : index
    %9 = vector.load %arg6[%c0_9, %c0_10] : memref<64x128xf32, #tpu.memory_space<vmem>>, vector<64x128xf32>
    %10 = arith.maximumf %8, %9 : vector<64x128xf32>
    %c0_11 = arith.constant 0 : index
    %c0_12 = arith.constant 0 : index
    %11 = vector.load %arg7[%c0_11, %c0_12] : memref<64x128xf32, #tpu.memory_space<vmem>>, vector<64x128xf32>
    %12 = arith.maximumf %10, %11 : vector<64x128xf32>
    %c0_13 = arith.constant 0 : index
    %c0_14 = arith.constant 0 : index
    %13 = vector.load %arg8[%c0_13, %c0_14] : memref<64x128xf32, #tpu.memory_space<vmem>>, vector<64x128xf32>
    %14 = arith.maximumf %12, %13 : vector<64x128xf32>
    %c0_15 = arith.constant 0 : index
    %c0_16 = arith.constant 0 : index
    %15 = vector.load %arg9[%c0_15, %c0_16] : memref<64x128xf32, #tpu.memory_space<vmem>>, vector<64x128xf32>
    %16 = arith.maximumf %14, %15 : vector<64x128xf32>
    %c0_17 = arith.constant 0 : index
    %c0_18 = arith.constant 0 : index
    %17 = vector.load %arg10[%c0_17, %c0_18] : memref<64x128xf32, #tpu.memory_space<vmem>>, vector<64x128xf32>
    tpu.vector_store %arg10[%c0_17, %c0_18], %16 {strides = array<i32>} : memref<64x128xf32, #tpu.memory_space<vmem>>, vector<64x128xf32>,
    return
  }
  func.func @transform_0(%arg0: i32) -> (i32, i32) {
    %c0_i32 = arith.constant 0 : i32
    %c0_i32_0 = arith.constant 0 : i32
    return %arg0, %c0_i32 : i32, i32
  }
  func.func @transform_1(%arg0: i32) -> (i32, i32) {
    %c0_i32 = arith.constant 0 : i32
    %c0_i32_0 = arith.constant 0 : i32
    return %arg0, %c0_i32 : i32, i32
  }
  func.func @transform_2(%arg0: i32) -> (i32, i32) {
    %c0_i32 = arith.constant 0 : i32
    %c0_i32_0 = arith.constant 0 : i32
    return %arg0, %c0_i32 : i32, i32
  }
  func.func @transform_3(%arg0: i32) -> (i32, i32) {
    %c0_i32 = arith.constant 0 : i32
    %c0_i32_0 = arith.constant 0 : i32
    return %arg0, %c0_i32 : i32, i32
  }
  func.func @transform_4(%arg0: i32) -> (i32, i32) {
    %c0_i32 = arith.constant 0 : i32
    %c0_i32_0 = arith.constant 0 : i32
    return %arg0, %c0_i32 : i32, i32
  }
  func.func @transform_5(%arg0: i32) -> (i32, i32) {
    %c0_i32 = arith.constant 0 : i32
    %c0_i32_0 = arith.constant 0 : i32
    return %arg0, %c0_i32 : i32, i32
  }
  func.func @transform_6(%arg0: i32) -> (i32, i32) {
    %c0_i32 = arith.constant 0 : i32
    %c0_i32_0 = arith.constant 0 : i32
    return %arg0, %c0_i32 : i32, i32
  }
  func.func @transform_7(%arg0: i32) -> (i32, i32) {
    %c0_i32 = arith.constant 0 : i32
    %c0_i32_0 = arith.constant 0 : i32
    return %arg0, %c0_i32 : i32, i32
  }
  func.func @transform_8(%arg0: i32) -> (i32, i32) {
    %c0_i32 = arith.constant 0 : i32
    %c0_i32_0 = arith.constant 0 : i32
    return %arg0, %c0_i32 : i32, i32
  }
  func.func @transform_9(%arg0: i32) -> (i32, i32) {
    %c0_i32 = arith.constant 0 : i32
    %c0_i32_0 = arith.constant 0 : i32
    return %arg0, %c0_i32 : i32, i32
  }
}

module attributes {stable_mosaic.version = 11 : i64} {
  func.func @_fused_gemm_kernel(%arg0: i32, %arg1: i32, %arg2: i32, %arg3: memref<128x640xbf16, #tpu.memory_space<vmem>>, %arg4: memref<640x128xbf16, #tpu.memory_space<vmem>>, %arg5: memref<1x128xf32, #tpu.memory_space<vmem>>, %arg6: memref<1x128xf32, #tpu.memory_space<vmem>>, %arg7: memref<128x128xbf16, #tpu.memory_space<vmem>>, %arg8: memref<128x128xf32, #tpu.memory_space<vmem>>) attributes {dimension_semantics = [#tpu.dimension_semantics<parallel>, #tpu.dimension_semantics<parallel>, #tpu.dimension_semantics<arbitrary>], iteration_bounds = array<i64: 1, 1, 1>, scalar_prefetch = 0 : i64, scratch_operands = 1 : i64, tpu.core_type = #tpu.core_type<tc>, window_params = [{transform_indices = @transform_0, window_bounds = array<i64: 128, 640>}, {transform_indices = @transform_1, window_bounds = array<i64: 640, 128>}, {transform_indices = @transform_2, window_bounds = array<i64: 1, 128>}, {transform_indices = @transform_3, window_bounds = array<i64: 1, 128>}, {transform_indices = @transform_4, window_bounds = array<i64: 128, 128>}]} {
    %c0_i32 = arith.constant 0 : i32
    %0 = arith.cmpi eq, %arg2, %c0_i32 : i32
    %1 = arith.extui %0 : i1 to i32
    %c0_i32_0 = arith.constant 0 : i32
    %2 = arith.cmpi ne, %1, %c0_i32_0 : i32
    scf.if %2 {
      %cst_10 = arith.constant 0.000000e+00 : f32
      %12 = vector.broadcast %cst_10 : f32 to vector<128x128xf32>
      %c0_11 = arith.constant 0 : index
      %c0_12 = arith.constant 0 : index
      %13 = vector.load %arg8[%c0_11, %c0_12] : memref<128x128xf32, #tpu.memory_space<vmem>>, vector<128x128xf32>
      tpu.vector_store %arg8[%c0_11, %c0_12], %12 {strides = array<i32>} : memref<128x128xf32, #tpu.memory_space<vmem>>, vector<128x128xf32>,
    } else {
    }
    %c0 = arith.constant 0 : index
    %c0_1 = arith.constant 0 : index
    %3 = vector.load %arg8[%c0, %c0_1] : memref<128x128xf32, #tpu.memory_space<vmem>>, vector<128x128xf32>
    %c0_2 = arith.constant 0 : index
    %c0_3 = arith.constant 0 : index
    %4 = vector.load %arg3[%c0_2, %c0_3] : memref<128x640xbf16, #tpu.memory_space<vmem>>, vector<128x640xbf16>
    %c0_4 = arith.constant 0 : index
    %c0_5 = arith.constant 0 : index
    %5 = vector.load %arg4[%c0_4, %c0_5] : memref<640x128xbf16, #tpu.memory_space<vmem>>, vector<640x128xbf16>
    %cst = arith.constant dense<0.000000e+00> : vector<128x128xf32>
    %6 = tpu.matmul %4, %5, %cst {dimension_numbers = #tpu.dot_dimension_numbers<[1], [0], [0], [1], [0, 0, 1, 1], [], []>} : vector<128x640xbf16>, vector<640x128xbf16>, vector<128x128xf32> -> vector<128x128xf32>
    %7 = arith.addf %3, %6 : vector<128x128xf32>
    %c0_6 = arith.constant 0 : index
    %c0_7 = arith.constant 0 : index
    %8 = vector.load %arg8[%c0_6, %c0_7] : memref<128x128xf32, #tpu.memory_space<vmem>>, vector<128x128xf32>
    tpu.vector_store %arg8[%c0_6, %c0_7], %7 {strides = array<i32>} : memref<128x128xf32, #tpu.memory_space<vmem>>, vector<128x128xf32>,
    %c0_i32_8 = arith.constant 0 : i32
    %9 = arith.cmpi eq, %arg2, %c0_i32_8 : i32
    %10 = arith.extui %9 : i1 to i32
    %c0_i32_9 = arith.constant 0 : i32
    %11 = arith.cmpi ne, %10, %c0_i32_9 : i32
    scf.if %11 {
      %c0_10 = arith.constant 0 : index
      %c0_11 = arith.constant 0 : index
      %12 = vector.load %arg8[%c0_10, %c0_11] : memref<128x128xf32, #tpu.memory_space<vmem>>, vector<128x128xf32>
      %c0_12 = arith.constant 0 : index
      %c0_13 = arith.constant 0 : index
      %13 = vector.load %arg5[%c0_12, %c0_13] : memref<1x128xf32, #tpu.memory_space<vmem>>, vector<1x128xf32>
      %14 = vector.broadcast %13 : vector<1x128xf32> to vector<128x128xf32>
      %15 = arith.mulf %12, %14 : vector<128x128xf32>
      %c0_14 = arith.constant 0 : index
      %c0_15 = arith.constant 0 : index
      %16 = vector.load %arg6[%c0_14, %c0_15] : memref<1x128xf32, #tpu.memory_space<vmem>>, vector<1x128xf32>
      %17 = vector.broadcast %16 : vector<1x128xf32> to vector<128x128xf32>
      %18 = arith.addf %15, %17 : vector<128x128xf32>
      %cst_16 = arith.constant 1.000000e+00 : f32
      %19 = vector.broadcast %cst_16 : f32 to vector<128x128xf32>
      %20 = arith.cmpf oge, %18, %19 : vector<128x128xf32>
      %21 = arith.extui %20 : vector<128x128xi1> to vector<128x128xi32>
      %22 = arith.sitofp %21 : vector<128x128xi32> to vector<128x128xf32>
      %23 = arith.truncf %22 : vector<128x128xf32> to vector<128x128xbf16>
      %c0_17 = arith.constant 0 : index
      %c0_18 = arith.constant 0 : index
      %24 = vector.load %arg7[%c0_17, %c0_18] : memref<128x128xbf16, #tpu.memory_space<vmem>>, vector<128x128xbf16>
      tpu.vector_store %arg7[%c0_17, %c0_18], %23 {strides = array<i32>} : memref<128x128xbf16, #tpu.memory_space<vmem>>, vector<128x128xbf16>,
    } else {
    }
    return
  }
  func.func @transform_0(%arg0: i32, %arg1: i32, %arg2: i32) -> (i32, i32) {
    %c0_i32 = arith.constant 0 : i32
    return %arg0, %arg2 : i32, i32
  }
  func.func @transform_1(%arg0: i32, %arg1: i32, %arg2: i32) -> (i32, i32) {
    %c0_i32 = arith.constant 0 : i32
    return %arg2, %arg1 : i32, i32
  }
  func.func @transform_2(%arg0: i32, %arg1: i32, %arg2: i32) -> (i32, i32) {
    %c0_i32 = arith.constant 0 : i32
    %c0_i32_0 = arith.constant 0 : i32
    return %c0_i32, %arg1 : i32, i32
  }
  func.func @transform_3(%arg0: i32, %arg1: i32, %arg2: i32) -> (i32, i32) {
    %c0_i32 = arith.constant 0 : i32
    %c0_i32_0 = arith.constant 0 : i32
    return %c0_i32, %arg1 : i32, i32
  }
  func.func @transform_4(%arg0: i32, %arg1: i32, %arg2: i32) -> (i32, i32) {
    %c0_i32 = arith.constant 0 : i32
    return %arg0, %arg1 : i32, i32
  }
}

module attributes {stable_mosaic.version = 11 : i64} {
  func.func @_fused_gemm_kernel(%arg0: i32, %arg1: i32, %arg2: i32, %arg3: memref<128x640xbf16, #tpu.memory_space<vmem>>, %arg4: memref<640x128xbf16, #tpu.memory_space<vmem>>, %arg5: memref<1x128xf32, #tpu.memory_space<vmem>>, %arg6: memref<1x128xf32, #tpu.memory_space<vmem>>, %arg7: memref<128x128xf32, #tpu.memory_space<vmem>>, %arg8: memref<128x128xbf16, #tpu.memory_space<vmem>>, %arg9: memref<128x128xf32, #tpu.memory_space<vmem>>) attributes {dimension_semantics = [#tpu.dimension_semantics<parallel>, #tpu.dimension_semantics<parallel>, #tpu.dimension_semantics<arbitrary>], iteration_bounds = array<i64: 1, 1, 1>, scalar_prefetch = 0 : i64, scratch_operands = 1 : i64, tpu.core_type = #tpu.core_type<tc>, window_params = [{transform_indices = @transform_0, window_bounds = array<i64: 128, 640>}, {transform_indices = @transform_1, window_bounds = array<i64: 640, 128>}, {transform_indices = @transform_2, window_bounds = array<i64: 1, 128>}, {transform_indices = @transform_3, window_bounds = array<i64: 1, 128>}, {transform_indices = @transform_4, window_bounds = array<i64: 128, 128>}, {transform_indices = @transform_5, window_bounds = array<i64: 128, 128>}]} {
    %c0_i32 = arith.constant 0 : i32
    %0 = arith.cmpi eq, %arg2, %c0_i32 : i32
    %1 = arith.extui %0 : i1 to i32
    %c0_i32_0 = arith.constant 0 : i32
    %2 = arith.cmpi ne, %1, %c0_i32_0 : i32
    scf.if %2 {
      %cst_10 = arith.constant 0.000000e+00 : f32
      %12 = vector.broadcast %cst_10 : f32 to vector<128x128xf32>
      %c0_11 = arith.constant 0 : index
      %c0_12 = arith.constant 0 : index
      %13 = vector.load %arg9[%c0_11, %c0_12] : memref<128x128xf32, #tpu.memory_space<vmem>>, vector<128x128xf32>
      tpu.vector_store %arg9[%c0_11, %c0_12], %12 {strides = array<i32>} : memref<128x128xf32, #tpu.memory_space<vmem>>, vector<128x128xf32>,
    } else {
    }
    %c0 = arith.constant 0 : index
    %c0_1 = arith.constant 0 : index
    %3 = vector.load %arg9[%c0, %c0_1] : memref<128x128xf32, #tpu.memory_space<vmem>>, vector<128x128xf32>
    %c0_2 = arith.constant 0 : index
    %c0_3 = arith.constant 0 : index
    %4 = vector.load %arg3[%c0_2, %c0_3] : memref<128x640xbf16, #tpu.memory_space<vmem>>, vector<128x640xbf16>
    %c0_4 = arith.constant 0 : index
    %c0_5 = arith.constant 0 : index
    %5 = vector.load %arg4[%c0_4, %c0_5] : memref<640x128xbf16, #tpu.memory_space<vmem>>, vector<640x128xbf16>
    %cst = arith.constant dense<0.000000e+00> : vector<128x128xf32>
    %6 = tpu.matmul %4, %5, %cst {dimension_numbers = #tpu.dot_dimension_numbers<[1], [0], [0], [1], [0, 0, 1, 1], [], []>} : vector<128x640xbf16>, vector<640x128xbf16>, vector<128x128xf32> -> vector<128x128xf32>
    %7 = arith.addf %3, %6 : vector<128x128xf32>
    %c0_6 = arith.constant 0 : index
    %c0_7 = arith.constant 0 : index
    %8 = vector.load %arg9[%c0_6, %c0_7] : memref<128x128xf32, #tpu.memory_space<vmem>>, vector<128x128xf32>
    tpu.vector_store %arg9[%c0_6, %c0_7], %7 {strides = array<i32>} : memref<128x128xf32, #tpu.memory_space<vmem>>, vector<128x128xf32>,
    %c0_i32_8 = arith.constant 0 : i32
    %9 = arith.cmpi eq, %arg2, %c0_i32_8 : i32
    %10 = arith.extui %9 : i1 to i32
    %c0_i32_9 = arith.constant 0 : i32
    %11 = arith.cmpi ne, %10, %c0_i32_9 : i32
    scf.if %11 {
      %c0_10 = arith.constant 0 : index
      %c0_11 = arith.constant 0 : index
      %12 = vector.load %arg9[%c0_10, %c0_11] : memref<128x128xf32, #tpu.memory_space<vmem>>, vector<128x128xf32>
      %c0_12 = arith.constant 0 : index
      %c0_13 = arith.constant 0 : index
      %13 = vector.load %arg5[%c0_12, %c0_13] : memref<1x128xf32, #tpu.memory_space<vmem>>, vector<1x128xf32>
      %14 = vector.broadcast %13 : vector<1x128xf32> to vector<128x128xf32>
      %15 = arith.mulf %12, %14 : vector<128x128xf32>
      %c0_14 = arith.constant 0 : index
      %c0_15 = arith.constant 0 : index
      %16 = vector.load %arg6[%c0_14, %c0_15] : memref<1x128xf32, #tpu.memory_space<vmem>>, vector<1x128xf32>
      %17 = vector.broadcast %16 : vector<1x128xf32> to vector<128x128xf32>
      %18 = arith.addf %15, %17 : vector<128x128xf32>
      %cst_16 = arith.constant 1.000000e+00 : f32
      %19 = vector.broadcast %cst_16 : f32 to vector<128x128xf32>
      %20 = arith.cmpf oge, %18, %19 : vector<128x128xf32>
      %21 = arith.extui %20 : vector<128x128xi1> to vector<128x128xi32>
      %22 = arith.sitofp %21 : vector<128x128xi32> to vector<128x128xf32>
      %c0_17 = arith.constant 0 : index
      %c0_18 = arith.constant 0 : index
      %23 = vector.load %arg7[%c0_17, %c0_18] : memref<128x128xf32, #tpu.memory_space<vmem>>, vector<128x128xf32>
      %24 = arith.addf %23, %22 : vector<128x128xf32>
      %25 = arith.truncf %24 : vector<128x128xf32> to vector<128x128xbf16>
      %c0_19 = arith.constant 0 : index
      %c0_20 = arith.constant 0 : index
      %26 = vector.load %arg8[%c0_19, %c0_20] : memref<128x128xbf16, #tpu.memory_space<vmem>>, vector<128x128xbf16>
      tpu.vector_store %arg8[%c0_19, %c0_20], %25 {strides = array<i32>} : memref<128x128xbf16, #tpu.memory_space<vmem>>, vector<128x128xbf16>,
    } else {
    }
    return
  }
  func.func @transform_0(%arg0: i32, %arg1: i32, %arg2: i32) -> (i32, i32) {
    %c0_i32 = arith.constant 0 : i32
    return %arg0, %arg2 : i32, i32
  }
  func.func @transform_1(%arg0: i32, %arg1: i32, %arg2: i32) -> (i32, i32) {
    %c0_i32 = arith.constant 0 : i32
    return %arg2, %arg1 : i32, i32
  }
  func.func @transform_2(%arg0: i32, %arg1: i32, %arg2: i32) -> (i32, i32) {
    %c0_i32 = arith.constant 0 : i32
    %c0_i32_0 = arith.constant 0 : i32
    return %c0_i32, %arg1 : i32, i32
  }
  func.func @transform_3(%arg0: i32, %arg1: i32, %arg2: i32) -> (i32, i32) {
    %c0_i32 = arith.constant 0 : i32
    %c0_i32_0 = arith.constant 0 : i32
    return %c0_i32, %arg1 : i32, i32
  }
  func.func @transform_4(%arg0: i32, %arg1: i32, %arg2: i32) -> (i32, i32) {
    %c0_i32 = arith.constant 0 : i32
    return %arg0, %arg1 : i32, i32
  }
  func.func @transform_5(%arg0: i32, %arg1: i32, %arg2: i32) -> (i32, i32) {
    %c0_i32 = arith.constant 0 : i32
    return %arg0, %arg1 : i32, i32
  }
}

module attributes {stable_mosaic.version = 11 : i64} {
  func.func @_fused_gemm_kernel(%arg0: i32, %arg1: i32, %arg2: i32, %arg3: memref<32x640xbf16, #tpu.memory_space<vmem>>, %arg4: memref<640x128xbf16, #tpu.memory_space<vmem>>, %arg5: memref<1x128xf32, #tpu.memory_space<vmem>>, %arg6: memref<1x128xf32, #tpu.memory_space<vmem>>, %arg7: memref<32x128xbf16, #tpu.memory_space<vmem>>, %arg8: memref<32x128xf32, #tpu.memory_space<vmem>>) attributes {dimension_semantics = [#tpu.dimension_semantics<parallel>, #tpu.dimension_semantics<parallel>, #tpu.dimension_semantics<arbitrary>], iteration_bounds = array<i64: 1, 1, 1>, scalar_prefetch = 0 : i64, scratch_operands = 1 : i64, tpu.core_type = #tpu.core_type<tc>, window_params = [{transform_indices = @transform_0, window_bounds = array<i64: 32, 640>}, {transform_indices = @transform_1, window_bounds = array<i64: 640, 128>}, {transform_indices = @transform_2, window_bounds = array<i64: 1, 128>}, {transform_indices = @transform_3, window_bounds = array<i64: 1, 128>}, {transform_indices = @transform_4, window_bounds = array<i64: 32, 128>}]} {
    %c0_i32 = arith.constant 0 : i32
    %0 = arith.cmpi eq, %arg2, %c0_i32 : i32
    %1 = arith.extui %0 : i1 to i32
    %c0_i32_0 = arith.constant 0 : i32
    %2 = arith.cmpi ne, %1, %c0_i32_0 : i32
    scf.if %2 {
      %cst_10 = arith.constant 0.000000e+00 : f32
      %12 = vector.broadcast %cst_10 : f32 to vector<32x128xf32>
      %c0_11 = arith.constant 0 : index
      %c0_12 = arith.constant 0 : index
      %13 = vector.load %arg8[%c0_11, %c0_12] : memref<32x128xf32, #tpu.memory_space<vmem>>, vector<32x128xf32>
      tpu.vector_store %arg8[%c0_11, %c0_12], %12 {strides = array<i32>} : memref<32x128xf32, #tpu.memory_space<vmem>>, vector<32x128xf32>,
    } else {
    }
    %c0 = arith.constant 0 : index
    %c0_1 = arith.constant 0 : index
    %3 = vector.load %arg8[%c0, %c0_1] : memref<32x128xf32, #tpu.memory_space<vmem>>, vector<32x128xf32>
    %c0_2 = arith.constant 0 : index
    %c0_3 = arith.constant 0 : index
    %4 = vector.load %arg3[%c0_2, %c0_3] : memref<32x640xbf16, #tpu.memory_space<vmem>>, vector<32x640xbf16>
    %c0_4 = arith.constant 0 : index
    %c0_5 = arith.constant 0 : index
    %5 = vector.load %arg4[%c0_4, %c0_5] : memref<640x128xbf16, #tpu.memory_space<vmem>>, vector<640x128xbf16>
    %cst = arith.constant dense<0.000000e+00> : vector<32x128xf32>
    %6 = tpu.matmul %4, %5, %cst {dimension_numbers = #tpu.dot_dimension_numbers<[1], [0], [0], [1], [0, 0, 1, 1], [], []>} : vector<32x640xbf16>, vector<640x128xbf16>, vector<32x128xf32> -> vector<32x128xf32>
    %7 = arith.addf %3, %6 : vector<32x128xf32>
    %c0_6 = arith.constant 0 : index
    %c0_7 = arith.constant 0 : index
    %8 = vector.load %arg8[%c0_6, %c0_7] : memref<32x128xf32, #tpu.memory_space<vmem>>, vector<32x128xf32>
    tpu.vector_store %arg8[%c0_6, %c0_7], %7 {strides = array<i32>} : memref<32x128xf32, #tpu.memory_space<vmem>>, vector<32x128xf32>,
    %c0_i32_8 = arith.constant 0 : i32
    %9 = arith.cmpi eq, %arg2, %c0_i32_8 : i32
    %10 = arith.extui %9 : i1 to i32
    %c0_i32_9 = arith.constant 0 : i32
    %11 = arith.cmpi ne, %10, %c0_i32_9 : i32
    scf.if %11 {
      %c0_10 = arith.constant 0 : index
      %c0_11 = arith.constant 0 : index
      %12 = vector.load %arg8[%c0_10, %c0_11] : memref<32x128xf32, #tpu.memory_space<vmem>>, vector<32x128xf32>
      %c0_12 = arith.constant 0 : index
      %c0_13 = arith.constant 0 : index
      %13 = vector.load %arg5[%c0_12, %c0_13] : memref<1x128xf32, #tpu.memory_space<vmem>>, vector<1x128xf32>
      %14 = vector.broadcast %13 : vector<1x128xf32> to vector<32x128xf32>
      %15 = arith.mulf %12, %14 : vector<32x128xf32>
      %c0_14 = arith.constant 0 : index
      %c0_15 = arith.constant 0 : index
      %16 = vector.load %arg6[%c0_14, %c0_15] : memref<1x128xf32, #tpu.memory_space<vmem>>, vector<1x128xf32>
      %17 = vector.broadcast %16 : vector<1x128xf32> to vector<32x128xf32>
      %18 = arith.addf %15, %17 : vector<32x128xf32>
      %cst_16 = arith.constant 1.000000e+00 : f32
      %19 = vector.broadcast %cst_16 : f32 to vector<32x128xf32>
      %20 = arith.cmpf oge, %18, %19 : vector<32x128xf32>
      %21 = arith.extui %20 : vector<32x128xi1> to vector<32x128xi32>
      %22 = arith.sitofp %21 : vector<32x128xi32> to vector<32x128xf32>
      %23 = arith.truncf %22 : vector<32x128xf32> to vector<32x128xbf16>
      %c0_17 = arith.constant 0 : index
      %c0_18 = arith.constant 0 : index
      %24 = vector.load %arg7[%c0_17, %c0_18] : memref<32x128xbf16, #tpu.memory_space<vmem>>, vector<32x128xbf16>
      tpu.vector_store %arg7[%c0_17, %c0_18], %23 {strides = array<i32>} : memref<32x128xbf16, #tpu.memory_space<vmem>>, vector<32x128xbf16>,
    } else {
    }
    return
  }
  func.func @transform_0(%arg0: i32, %arg1: i32, %arg2: i32) -> (i32, i32) {
    %c0_i32 = arith.constant 0 : i32
    return %arg0, %arg2 : i32, i32
  }
  func.func @transform_1(%arg0: i32, %arg1: i32, %arg2: i32) -> (i32, i32) {
    %c0_i32 = arith.constant 0 : i32
    return %arg2, %arg1 : i32, i32
  }
  func.func @transform_2(%arg0: i32, %arg1: i32, %arg2: i32) -> (i32, i32) {
    %c0_i32 = arith.constant 0 : i32
    %c0_i32_0 = arith.constant 0 : i32
    return %c0_i32, %arg1 : i32, i32
  }
  func.func @transform_3(%arg0: i32, %arg1: i32, %arg2: i32) -> (i32, i32) {
    %c0_i32 = arith.constant 0 : i32
    %c0_i32_0 = arith.constant 0 : i32
    return %c0_i32, %arg1 : i32, i32
  }
  func.func @transform_4(%arg0: i32, %arg1: i32, %arg2: i32) -> (i32, i32) {
    %c0_i32 = arith.constant 0 : i32
    return %arg0, %arg1 : i32, i32
  }
}

module attributes {stable_mosaic.version = 11 : i64} {
  func.func @_fused_gemm_kernel(%arg0: i32, %arg1: i32, %arg2: i32, %arg3: memref<32x384xbf16, #tpu.memory_space<vmem>>, %arg4: memref<384x128xbf16, #tpu.memory_space<vmem>>, %arg5: memref<1x128xf32, #tpu.memory_space<vmem>>, %arg6: memref<1x128xf32, #tpu.memory_space<vmem>>, %arg7: memref<32x128xbf16, #tpu.memory_space<vmem>>, %arg8: memref<32x128xbf16, #tpu.memory_space<vmem>>, %arg9: memref<32x128xf32, #tpu.memory_space<vmem>>) attributes {dimension_semantics = [#tpu.dimension_semantics<parallel>, #tpu.dimension_semantics<parallel>, #tpu.dimension_semantics<arbitrary>], iteration_bounds = array<i64: 1, 1, 3>, scalar_prefetch = 0 : i64, scratch_operands = 1 : i64, tpu.core_type = #tpu.core_type<tc>, window_params = [{transform_indices = @transform_0, window_bounds = array<i64: 32, 384>}, {transform_indices = @transform_1, window_bounds = array<i64: 384, 128>}, {transform_indices = @transform_2, window_bounds = array<i64: 1, 128>}, {transform_indices = @transform_3, window_bounds = array<i64: 1, 128>}, {transform_indices = @transform_4, window_bounds = array<i64: 32, 128>}, {transform_indices = @transform_5, window_bounds = array<i64: 32, 128>}]} {
    %c0_i32 = arith.constant 0 : i32
    %0 = arith.cmpi eq, %arg2, %c0_i32 : i32
    %1 = arith.extui %0 : i1 to i32
    %c0_i32_0 = arith.constant 0 : i32
    %2 = arith.cmpi ne, %1, %c0_i32_0 : i32
    scf.if %2 {
      %cst_9 = arith.constant 0.000000e+00 : f32
      %12 = vector.broadcast %cst_9 : f32 to vector<32x128xf32>
      %c0_10 = arith.constant 0 : index
      %c0_11 = arith.constant 0 : index
      %13 = vector.load %arg9[%c0_10, %c0_11] : memref<32x128xf32, #tpu.memory_space<vmem>>, vector<32x128xf32>
      tpu.vector_store %arg9[%c0_10, %c0_11], %12 {strides = array<i32>} : memref<32x128xf32, #tpu.memory_space<vmem>>, vector<32x128xf32>,
    } else {
    }
    %c0 = arith.constant 0 : index
    %c0_1 = arith.constant 0 : index
    %3 = vector.load %arg9[%c0, %c0_1] : memref<32x128xf32, #tpu.memory_space<vmem>>, vector<32x128xf32>
    %c0_2 = arith.constant 0 : index
    %c0_3 = arith.constant 0 : index
    %4 = vector.load %arg3[%c0_2, %c0_3] : memref<32x384xbf16, #tpu.memory_space<vmem>>, vector<32x384xbf16>
    %c0_4 = arith.constant 0 : index
    %c0_5 = arith.constant 0 : index
    %5 = vector.load %arg4[%c0_4, %c0_5] : memref<384x128xbf16, #tpu.memory_space<vmem>>, vector<384x128xbf16>
    %cst = arith.constant dense<0.000000e+00> : vector<32x128xf32>
    %6 = tpu.matmul %4, %5, %cst {dimension_numbers = #tpu.dot_dimension_numbers<[1], [0], [0], [1], [0, 0, 1, 1], [], []>} : vector<32x384xbf16>, vector<384x128xbf16>, vector<32x128xf32> -> vector<32x128xf32>
    %7 = arith.addf %3, %6 : vector<32x128xf32>
    %c0_6 = arith.constant 0 : index
    %c0_7 = arith.constant 0 : index
    %8 = vector.load %arg9[%c0_6, %c0_7] : memref<32x128xf32, #tpu.memory_space<vmem>>, vector<32x128xf32>
    tpu.vector_store %arg9[%c0_6, %c0_7], %7 {strides = array<i32>} : memref<32x128xf32, #tpu.memory_space<vmem>>, vector<32x128xf32>,
    %c2_i32 = arith.constant 2 : i32
    %9 = arith.cmpi eq, %arg2, %c2_i32 : i32
    %10 = arith.extui %9 : i1 to i32
    %c0_i32_8 = arith.constant 0 : i32
    %11 = arith.cmpi ne, %10, %c0_i32_8 : i32
    scf.if %11 {
      %c0_9 = arith.constant 0 : index
      %c0_10 = arith.constant 0 : index
      %12 = vector.load %arg9[%c0_9, %c0_10] : memref<32x128xf32, #tpu.memory_space<vmem>>, vector<32x128xf32>
      %c0_11 = arith.constant 0 : index
      %c0_12 = arith.constant 0 : index
      %13 = vector.load %arg5[%c0_11, %c0_12] : memref<1x128xf32, #tpu.memory_space<vmem>>, vector<1x128xf32>
      %14 = vector.broadcast %13 : vector<1x128xf32> to vector<32x128xf32>
      %15 = arith.mulf %12, %14 : vector<32x128xf32>
      %c0_13 = arith.constant 0 : index
      %c0_14 = arith.constant 0 : index
      %16 = vector.load %arg6[%c0_13, %c0_14] : memref<1x128xf32, #tpu.memory_space<vmem>>, vector<1x128xf32>
      %17 = vector.broadcast %16 : vector<1x128xf32> to vector<32x128xf32>
      %18 = arith.addf %15, %17 : vector<32x128xf32>
      %cst_15 = arith.constant 1.000000e+00 : f32
      %19 = vector.broadcast %cst_15 : f32 to vector<32x128xf32>
      %20 = arith.cmpf oge, %18, %19 : vector<32x128xf32>
      %21 = arith.extui %20 : vector<32x128xi1> to vector<32x128xi32>
      %22 = arith.sitofp %21 : vector<32x128xi32> to vector<32x128xf32>
      %c0_16 = arith.constant 0 : index
      %c0_17 = arith.constant 0 : index
      %23 = vector.load %arg7[%c0_16, %c0_17] : memref<32x128xbf16, #tpu.memory_space<vmem>>, vector<32x128xbf16>
      %24 = arith.extf %23 : vector<32x128xbf16> to vector<32x128xf32>
      %25 = arith.addf %24, %22 : vector<32x128xf32>
      %26 = arith.truncf %25 : vector<32x128xf32> to vector<32x128xbf16>
      %c0_18 = arith.constant 0 : index
      %c0_19 = arith.constant 0 : index
      %27 = vector.load %arg8[%c0_18, %c0_19] : memref<32x128xbf16, #tpu.memory_space<vmem>>, vector<32x128xbf16>
      tpu.vector_store %arg8[%c0_18, %c0_19], %26 {strides = array<i32>} : memref<32x128xbf16, #tpu.memory_space<vmem>>, vector<32x128xbf16>,
    } else {
    }
    return
  }
  func.func @transform_0(%arg0: i32, %arg1: i32, %arg2: i32) -> (i32, i32) {
    %c0_i32 = arith.constant 0 : i32
    return %arg0, %arg2 : i32, i32
  }
  func.func @transform_1(%arg0: i32, %arg1: i32, %arg2: i32) -> (i32, i32) {
    %c0_i32 = arith.constant 0 : i32
    return %arg2, %arg1 : i32, i32
  }
  func.func @transform_2(%arg0: i32, %arg1: i32, %arg2: i32) -> (i32, i32) {
    %c0_i32 = arith.constant 0 : i32
    %c0_i32_0 = arith.constant 0 : i32
    return %c0_i32, %arg1 : i32, i32
  }
  func.func @transform_3(%arg0: i32, %arg1: i32, %arg2: i32) -> (i32, i32) {
    %c0_i32 = arith.constant 0 : i32
    %c0_i32_0 = arith.constant 0 : i32
    return %c0_i32, %arg1 : i32, i32
  }
  func.func @transform_4(%arg0: i32, %arg1: i32, %arg2: i32) -> (i32, i32) {
    %c0_i32 = arith.constant 0 : i32
    return %arg0, %arg1 : i32, i32
  }
  func.func @transform_5(%arg0: i32, %arg1: i32, %arg2: i32) -> (i32, i32) {
    %c0_i32 = arith.constant 0 : i32
    return %arg0, %arg1 : i32, i32
  }
}

module attributes {stable_mosaic.version = 11 : i64} {
  func.func @_fused_gemm_kernel(%arg0: i32, %arg1: i32, %arg2: i32, %arg3: memref<32x128xbf16, #tpu.memory_space<vmem>>, %arg4: memref<128x128xbf16, #tpu.memory_space<vmem>>, %arg5: memref<1x128xf32, #tpu.memory_space<vmem>>, %arg6: memref<1x128xf32, #tpu.memory_space<vmem>>, %arg7: memref<32x128xbf16, #tpu.memory_space<vmem>>, %arg8: memref<32x128xf32, #tpu.memory_space<vmem>>) attributes {dimension_semantics = [#tpu.dimension_semantics<parallel>, #tpu.dimension_semantics<parallel>, #tpu.dimension_semantics<arbitrary>], iteration_bounds = array<i64: 1, 1, 1>, scalar_prefetch = 0 : i64, scratch_operands = 1 : i64, tpu.core_type = #tpu.core_type<tc>, window_params = [{transform_indices = @transform_0, window_bounds = array<i64: 32, 128>}, {transform_indices = @transform_1, window_bounds = array<i64: 128, 128>}, {transform_indices = @transform_2, window_bounds = array<i64: 1, 128>}, {transform_indices = @transform_3, window_bounds = array<i64: 1, 128>}, {transform_indices = @transform_4, window_bounds = array<i64: 32, 128>}]} {
    %c0_i32 = arith.constant 0 : i32
    %0 = arith.cmpi eq, %arg2, %c0_i32 : i32
    %1 = arith.extui %0 : i1 to i32
    %c0_i32_0 = arith.constant 0 : i32
    %2 = arith.cmpi ne, %1, %c0_i32_0 : i32
    scf.if %2 {
      %cst_10 = arith.constant 0.000000e+00 : f32
      %12 = vector.broadcast %cst_10 : f32 to vector<32x128xf32>
      %c0_11 = arith.constant 0 : index
      %c0_12 = arith.constant 0 : index
      %13 = vector.load %arg8[%c0_11, %c0_12] : memref<32x128xf32, #tpu.memory_space<vmem>>, vector<32x128xf32>
      tpu.vector_store %arg8[%c0_11, %c0_12], %12 {strides = array<i32>} : memref<32x128xf32, #tpu.memory_space<vmem>>, vector<32x128xf32>,
    } else {
    }
    %c0 = arith.constant 0 : index
    %c0_1 = arith.constant 0 : index
    %3 = vector.load %arg8[%c0, %c0_1] : memref<32x128xf32, #tpu.memory_space<vmem>>, vector<32x128xf32>
    %c0_2 = arith.constant 0 : index
    %c0_3 = arith.constant 0 : index
    %4 = vector.load %arg3[%c0_2, %c0_3] : memref<32x128xbf16, #tpu.memory_space<vmem>>, vector<32x128xbf16>
    %c0_4 = arith.constant 0 : index
    %c0_5 = arith.constant 0 : index
    %5 = vector.load %arg4[%c0_4, %c0_5] : memref<128x128xbf16, #tpu.memory_space<vmem>>, vector<128x128xbf16>
    %cst = arith.constant dense<0.000000e+00> : vector<32x128xf32>
    %6 = tpu.matmul %4, %5, %cst {dimension_numbers = #tpu.dot_dimension_numbers<[1], [0], [0], [1], [0, 0, 1, 1], [], []>} : vector<32x128xbf16>, vector<128x128xbf16>, vector<32x128xf32> -> vector<32x128xf32>
    %7 = arith.addf %3, %6 : vector<32x128xf32>
    %c0_6 = arith.constant 0 : index
    %c0_7 = arith.constant 0 : index
    %8 = vector.load %arg8[%c0_6, %c0_7] : memref<32x128xf32, #tpu.memory_space<vmem>>, vector<32x128xf32>
    tpu.vector_store %arg8[%c0_6, %c0_7], %7 {strides = array<i32>} : memref<32x128xf32, #tpu.memory_space<vmem>>, vector<32x128xf32>,
    %c0_i32_8 = arith.constant 0 : i32
    %9 = arith.cmpi eq, %arg2, %c0_i32_8 : i32
    %10 = arith.extui %9 : i1 to i32
    %c0_i32_9 = arith.constant 0 : i32
    %11 = arith.cmpi ne, %10, %c0_i32_9 : i32
    scf.if %11 {
      %c0_10 = arith.constant 0 : index
      %c0_11 = arith.constant 0 : index
      %12 = vector.load %arg8[%c0_10, %c0_11] : memref<32x128xf32, #tpu.memory_space<vmem>>, vector<32x128xf32>
      %c0_12 = arith.constant 0 : index
      %c0_13 = arith.constant 0 : index
      %13 = vector.load %arg5[%c0_12, %c0_13] : memref<1x128xf32, #tpu.memory_space<vmem>>, vector<1x128xf32>
      %14 = vector.broadcast %13 : vector<1x128xf32> to vector<32x128xf32>
      %15 = arith.mulf %12, %14 : vector<32x128xf32>
      %c0_14 = arith.constant 0 : index
      %c0_15 = arith.constant 0 : index
      %16 = vector.load %arg6[%c0_14, %c0_15] : memref<1x128xf32, #tpu.memory_space<vmem>>, vector<1x128xf32>
      %17 = vector.broadcast %16 : vector<1x128xf32> to vector<32x128xf32>
      %18 = arith.addf %15, %17 : vector<32x128xf32>
      %cst_16 = arith.constant 1.000000e+00 : f32
      %19 = vector.broadcast %cst_16 : f32 to vector<32x128xf32>
      %20 = arith.cmpf oge, %18, %19 : vector<32x128xf32>
      %21 = arith.extui %20 : vector<32x128xi1> to vector<32x128xi32>
      %22 = arith.sitofp %21 : vector<32x128xi32> to vector<32x128xf32>
      %23 = arith.truncf %22 : vector<32x128xf32> to vector<32x128xbf16>
      %c0_17 = arith.constant 0 : index
      %c0_18 = arith.constant 0 : index
      %24 = vector.load %arg7[%c0_17, %c0_18] : memref<32x128xbf16, #tpu.memory_space<vmem>>, vector<32x128xbf16>
      tpu.vector_store %arg7[%c0_17, %c0_18], %23 {strides = array<i32>} : memref<32x128xbf16, #tpu.memory_space<vmem>>, vector<32x128xbf16>,
    } else {
    }
    return
  }
  func.func @transform_0(%arg0: i32, %arg1: i32, %arg2: i32) -> (i32, i32) {
    %c0_i32 = arith.constant 0 : i32
    return %arg0, %arg2 : i32, i32
  }
  func.func @transform_1(%arg0: i32, %arg1: i32, %arg2: i32) -> (i32, i32) {
    %c0_i32 = arith.constant 0 : i32
    return %arg2, %arg1 : i32, i32
  }
  func.func @transform_2(%arg0: i32, %arg1: i32, %arg2: i32) -> (i32, i32) {
    %c0_i32 = arith.constant 0 : i32
    %c0_i32_0 = arith.constant 0 : i32
    return %c0_i32, %arg1 : i32, i32
  }
  func.func @transform_3(%arg0: i32, %arg1: i32, %arg2: i32) -> (i32, i32) {
    %c0_i32 = arith.constant 0 : i32
    %c0_i32_0 = arith.constant 0 : i32
    return %c0_i32, %arg1 : i32, i32
  }
  func.func @transform_4(%arg0: i32, %arg1: i32, %arg2: i32) -> (i32, i32) {
    %c0_i32 = arith.constant 0 : i32
    return %arg0, %arg1 : i32, i32
  }
}

module attributes {stable_mosaic.version = 11 : i64} {
  func.func @_fused_gemm_kernel(%arg0: i32, %arg1: i32, %arg2: i32, %arg3: memref<8x384xbf16, #tpu.memory_space<vmem>>, %arg4: memref<384x256xbf16, #tpu.memory_space<vmem>>, %arg5: memref<1x256xf32, #tpu.memory_space<vmem>>, %arg6: memref<1x256xf32, #tpu.memory_space<vmem>>, %arg7: memref<8x256xbf16, #tpu.memory_space<vmem>>, %arg8: memref<8x256xf32, #tpu.memory_space<vmem>>) attributes {dimension_semantics = [#tpu.dimension_semantics<parallel>, #tpu.dimension_semantics<parallel>, #tpu.dimension_semantics<arbitrary>], iteration_bounds = array<i64: 1, 1, 3>, scalar_prefetch = 0 : i64, scratch_operands = 1 : i64, tpu.core_type = #tpu.core_type<tc>, window_params = [{transform_indices = @transform_0, window_bounds = array<i64: 8, 384>}, {transform_indices = @transform_1, window_bounds = array<i64: 384, 256>}, {transform_indices = @transform_2, window_bounds = array<i64: 1, 256>}, {transform_indices = @transform_3, window_bounds = array<i64: 1, 256>}, {transform_indices = @transform_4, window_bounds = array<i64: 8, 256>}]} {
    %c0_i32 = arith.constant 0 : i32
    %0 = arith.cmpi eq, %arg2, %c0_i32 : i32
    %1 = arith.extui %0 : i1 to i32
    %c0_i32_0 = arith.constant 0 : i32
    %2 = arith.cmpi ne, %1, %c0_i32_0 : i32
    scf.if %2 {
      %cst_9 = arith.constant 0.000000e+00 : f32
      %12 = vector.broadcast %cst_9 : f32 to vector<8x256xf32>
      %c0_10 = arith.constant 0 : index
      %c0_11 = arith.constant 0 : index
      %13 = vector.load %arg8[%c0_10, %c0_11] : memref<8x256xf32, #tpu.memory_space<vmem>>, vector<8x256xf32>
      tpu.vector_store %arg8[%c0_10, %c0_11], %12 {strides = array<i32>} : memref<8x256xf32, #tpu.memory_space<vmem>>, vector<8x256xf32>,
    } else {
    }
    %c0 = arith.constant 0 : index
    %c0_1 = arith.constant 0 : index
    %3 = vector.load %arg8[%c0, %c0_1] : memref<8x256xf32, #tpu.memory_space<vmem>>, vector<8x256xf32>
    %c0_2 = arith.constant 0 : index
    %c0_3 = arith.constant 0 : index
    %4 = vector.load %arg3[%c0_2, %c0_3] : memref<8x384xbf16, #tpu.memory_space<vmem>>, vector<8x384xbf16>
    %c0_4 = arith.constant 0 : index
    %c0_5 = arith.constant 0 : index
    %5 = vector.load %arg4[%c0_4, %c0_5] : memref<384x256xbf16, #tpu.memory_space<vmem>>, vector<384x256xbf16>
    %cst = arith.constant dense<0.000000e+00> : vector<8x256xf32>
    %6 = tpu.matmul %4, %5, %cst {dimension_numbers = #tpu.dot_dimension_numbers<[1], [0], [0], [1], [0, 0, 1, 1], [], []>} : vector<8x384xbf16>, vector<384x256xbf16>, vector<8x256xf32> -> vector<8x256xf32>
    %7 = arith.addf %3, %6 : vector<8x256xf32>
    %c0_6 = arith.constant 0 : index
    %c0_7 = arith.constant 0 : index
    %8 = vector.load %arg8[%c0_6, %c0_7] : memref<8x256xf32, #tpu.memory_space<vmem>>, vector<8x256xf32>
    tpu.vector_store %arg8[%c0_6, %c0_7], %7 {strides = array<i32>} : memref<8x256xf32, #tpu.memory_space<vmem>>, vector<8x256xf32>,
    %c2_i32 = arith.constant 2 : i32
    %9 = arith.cmpi eq, %arg2, %c2_i32 : i32
    %10 = arith.extui %9 : i1 to i32
    %c0_i32_8 = arith.constant 0 : i32
    %11 = arith.cmpi ne, %10, %c0_i32_8 : i32
    scf.if %11 {
      %c0_9 = arith.constant 0 : index
      %c0_10 = arith.constant 0 : index
      %12 = vector.load %arg8[%c0_9, %c0_10] : memref<8x256xf32, #tpu.memory_space<vmem>>, vector<8x256xf32>
      %c0_11 = arith.constant 0 : index
      %c0_12 = arith.constant 0 : index
      %13 = vector.load %arg5[%c0_11, %c0_12] : memref<1x256xf32, #tpu.memory_space<vmem>>, vector<1x256xf32>
      %14 = vector.broadcast %13 : vector<1x256xf32> to vector<8x256xf32>
      %15 = arith.mulf %12, %14 : vector<8x256xf32>
      %c0_13 = arith.constant 0 : index
      %c0_14 = arith.constant 0 : index
      %16 = vector.load %arg6[%c0_13, %c0_14] : memref<1x256xf32, #tpu.memory_space<vmem>>, vector<1x256xf32>
      %17 = vector.broadcast %16 : vector<1x256xf32> to vector<8x256xf32>
      %18 = arith.addf %15, %17 : vector<8x256xf32>
      %cst_15 = arith.constant 1.000000e+00 : f32
      %19 = vector.broadcast %cst_15 : f32 to vector<8x256xf32>
      %20 = arith.cmpf oge, %18, %19 : vector<8x256xf32>
      %21 = arith.extui %20 : vector<8x256xi1> to vector<8x256xi32>
      %22 = arith.sitofp %21 : vector<8x256xi32> to vector<8x256xf32>
      %23 = arith.truncf %22 : vector<8x256xf32> to vector<8x256xbf16>
      %c0_16 = arith.constant 0 : index
      %c0_17 = arith.constant 0 : index
      %24 = vector.load %arg7[%c0_16, %c0_17] : memref<8x256xbf16, #tpu.memory_space<vmem>>, vector<8x256xbf16>
      tpu.vector_store %arg7[%c0_16, %c0_17], %23 {strides = array<i32>} : memref<8x256xbf16, #tpu.memory_space<vmem>>, vector<8x256xbf16>,
    } else {
    }
    return
  }
  func.func @transform_0(%arg0: i32, %arg1: i32, %arg2: i32) -> (i32, i32) {
    %c0_i32 = arith.constant 0 : i32
    return %arg0, %arg2 : i32, i32
  }
  func.func @transform_1(%arg0: i32, %arg1: i32, %arg2: i32) -> (i32, i32) {
    %c0_i32 = arith.constant 0 : i32
    return %arg2, %arg1 : i32, i32
  }
  func.func @transform_2(%arg0: i32, %arg1: i32, %arg2: i32) -> (i32, i32) {
    %c0_i32 = arith.constant 0 : i32
    %c0_i32_0 = arith.constant 0 : i32
    return %c0_i32, %arg1 : i32, i32
  }
  func.func @transform_3(%arg0: i32, %arg1: i32, %arg2: i32) -> (i32, i32) {
    %c0_i32 = arith.constant 0 : i32
    %c0_i32_0 = arith.constant 0 : i32
    return %c0_i32, %arg1 : i32, i32
  }
  func.func @transform_4(%arg0: i32, %arg1: i32, %arg2: i32) -> (i32, i32) {
    %c0_i32 = arith.constant 0 : i32
    return %arg0, %arg1 : i32, i32
  }
}

module attributes {stable_mosaic.version = 11 : i64} {
  func.func @_fused_gemm_kernel(%arg0: i32, %arg1: i32, %arg2: i32, %arg3: memref<8x128xbf16, #tpu.memory_space<vmem>>, %arg4: memref<128x256xbf16, #tpu.memory_space<vmem>>, %arg5: memref<1x256xf32, #tpu.memory_space<vmem>>, %arg6: memref<1x256xf32, #tpu.memory_space<vmem>>, %arg7: memref<8x256xbf16, #tpu.memory_space<vmem>>, %arg8: memref<8x256xf32, #tpu.memory_space<vmem>>) attributes {dimension_semantics = [#tpu.dimension_semantics<parallel>, #tpu.dimension_semantics<parallel>, #tpu.dimension_semantics<arbitrary>], iteration_bounds = array<i64: 1, 1, 1>, scalar_prefetch = 0 : i64, scratch_operands = 1 : i64, tpu.core_type = #tpu.core_type<tc>, window_params = [{transform_indices = @transform_0, window_bounds = array<i64: 8, 128>}, {transform_indices = @transform_1, window_bounds = array<i64: 128, 256>}, {transform_indices = @transform_2, window_bounds = array<i64: 1, 256>}, {transform_indices = @transform_3, window_bounds = array<i64: 1, 256>}, {transform_indices = @transform_4, window_bounds = array<i64: 8, 256>}]} {
    %c0_i32 = arith.constant 0 : i32
    %0 = arith.cmpi eq, %arg2, %c0_i32 : i32
    %1 = arith.extui %0 : i1 to i32
    %c0_i32_0 = arith.constant 0 : i32
    %2 = arith.cmpi ne, %1, %c0_i32_0 : i32
    scf.if %2 {
      %cst_10 = arith.constant 0.000000e+00 : f32
      %12 = vector.broadcast %cst_10 : f32 to vector<8x256xf32>
      %c0_11 = arith.constant 0 : index
      %c0_12 = arith.constant 0 : index
      %13 = vector.load %arg8[%c0_11, %c0_12] : memref<8x256xf32, #tpu.memory_space<vmem>>, vector<8x256xf32>
      tpu.vector_store %arg8[%c0_11, %c0_12], %12 {strides = array<i32>} : memref<8x256xf32, #tpu.memory_space<vmem>>, vector<8x256xf32>,
    } else {
    }
    %c0 = arith.constant 0 : index
    %c0_1 = arith.constant 0 : index
    %3 = vector.load %arg8[%c0, %c0_1] : memref<8x256xf32, #tpu.memory_space<vmem>>, vector<8x256xf32>
    %c0_2 = arith.constant 0 : index
    %c0_3 = arith.constant 0 : index
    %4 = vector.load %arg3[%c0_2, %c0_3] : memref<8x128xbf16, #tpu.memory_space<vmem>>, vector<8x128xbf16>
    %c0_4 = arith.constant 0 : index
    %c0_5 = arith.constant 0 : index
    %5 = vector.load %arg4[%c0_4, %c0_5] : memref<128x256xbf16, #tpu.memory_space<vmem>>, vector<128x256xbf16>
    %cst = arith.constant dense<0.000000e+00> : vector<8x256xf32>
    %6 = tpu.matmul %4, %5, %cst {dimension_numbers = #tpu.dot_dimension_numbers<[1], [0], [0], [1], [0, 0, 1, 1], [], []>} : vector<8x128xbf16>, vector<128x256xbf16>, vector<8x256xf32> -> vector<8x256xf32>
    %7 = arith.addf %3, %6 : vector<8x256xf32>
    %c0_6 = arith.constant 0 : index
    %c0_7 = arith.constant 0 : index
    %8 = vector.load %arg8[%c0_6, %c0_7] : memref<8x256xf32, #tpu.memory_space<vmem>>, vector<8x256xf32>
    tpu.vector_store %arg8[%c0_6, %c0_7], %7 {strides = array<i32>} : memref<8x256xf32, #tpu.memory_space<vmem>>, vector<8x256xf32>,
    %c0_i32_8 = arith.constant 0 : i32
    %9 = arith.cmpi eq, %arg2, %c0_i32_8 : i32
    %10 = arith.extui %9 : i1 to i32
    %c0_i32_9 = arith.constant 0 : i32
    %11 = arith.cmpi ne, %10, %c0_i32_9 : i32
    scf.if %11 {
      %c0_10 = arith.constant 0 : index
      %c0_11 = arith.constant 0 : index
      %12 = vector.load %arg8[%c0_10, %c0_11] : memref<8x256xf32, #tpu.memory_space<vmem>>, vector<8x256xf32>
      %c0_12 = arith.constant 0 : index
      %c0_13 = arith.constant 0 : index
      %13 = vector.load %arg5[%c0_12, %c0_13] : memref<1x256xf32, #tpu.memory_space<vmem>>, vector<1x256xf32>
      %14 = vector.broadcast %13 : vector<1x256xf32> to vector<8x256xf32>
      %15 = arith.mulf %12, %14 : vector<8x256xf32>
      %c0_14 = arith.constant 0 : index
      %c0_15 = arith.constant 0 : index
      %16 = vector.load %arg6[%c0_14, %c0_15] : memref<1x256xf32, #tpu.memory_space<vmem>>, vector<1x256xf32>
      %17 = vector.broadcast %16 : vector<1x256xf32> to vector<8x256xf32>
      %18 = arith.addf %15, %17 : vector<8x256xf32>
      %cst_16 = arith.constant 1.000000e+00 : f32
      %19 = vector.broadcast %cst_16 : f32 to vector<8x256xf32>
      %20 = arith.cmpf oge, %18, %19 : vector<8x256xf32>
      %21 = arith.extui %20 : vector<8x256xi1> to vector<8x256xi32>
      %22 = arith.sitofp %21 : vector<8x256xi32> to vector<8x256xf32>
      %23 = arith.truncf %22 : vector<8x256xf32> to vector<8x256xbf16>
      %c0_17 = arith.constant 0 : index
      %c0_18 = arith.constant 0 : index
      %24 = vector.load %arg7[%c0_17, %c0_18] : memref<8x256xbf16, #tpu.memory_space<vmem>>, vector<8x256xbf16>
      tpu.vector_store %arg7[%c0_17, %c0_18], %23 {strides = array<i32>} : memref<8x256xbf16, #tpu.memory_space<vmem>>, vector<8x256xbf16>,
    } else {
    }
    return
  }
  func.func @transform_0(%arg0: i32, %arg1: i32, %arg2: i32) -> (i32, i32) {
    %c0_i32 = arith.constant 0 : i32
    return %arg0, %arg2 : i32, i32
  }
  func.func @transform_1(%arg0: i32, %arg1: i32, %arg2: i32) -> (i32, i32) {
    %c0_i32 = arith.constant 0 : i32
    return %arg2, %arg1 : i32, i32
  }
  func.func @transform_2(%arg0: i32, %arg1: i32, %arg2: i32) -> (i32, i32) {
    %c0_i32 = arith.constant 0 : i32
    %c0_i32_0 = arith.constant 0 : i32
    return %c0_i32, %arg1 : i32, i32
  }
  func.func @transform_3(%arg0: i32, %arg1: i32, %arg2: i32) -> (i32, i32) {
    %c0_i32 = arith.constant 0 : i32
    %c0_i32_0 = arith.constant 0 : i32
    return %c0_i32, %arg1 : i32, i32
  }
  func.func @transform_4(%arg0: i32, %arg1: i32, %arg2: i32) -> (i32, i32) {
    %c0_i32 = arith.constant 0 : i32
    return %arg0, %arg1 : i32, i32
  }
}

module attributes {stable_mosaic.version = 11 : i64} {
  func.func @_fused_gemm_kernel(%arg0: i32, %arg1: i32, %arg2: i32, %arg3: memref<8x768xbf16, #tpu.memory_space<vmem>>, %arg4: memref<768x256xbf16, #tpu.memory_space<vmem>>, %arg5: memref<1x256xf32, #tpu.memory_space<vmem>>, %arg6: memref<1x256xf32, #tpu.memory_space<vmem>>, %arg7: memref<8x256xbf16, #tpu.memory_space<vmem>>, %arg8: memref<8x256xbf16, #tpu.memory_space<vmem>>, %arg9: memref<8x256xf32, #tpu.memory_space<vmem>>) attributes {dimension_semantics = [#tpu.dimension_semantics<parallel>, #tpu.dimension_semantics<parallel>, #tpu.dimension_semantics<arbitrary>], iteration_bounds = array<i64: 1, 1, 3>, scalar_prefetch = 0 : i64, scratch_operands = 1 : i64, tpu.core_type = #tpu.core_type<tc>, window_params = [{transform_indices = @transform_0, window_bounds = array<i64: 8, 768>}, {transform_indices = @transform_1, window_bounds = array<i64: 768, 256>}, {transform_indices = @transform_2, window_bounds = array<i64: 1, 256>}, {transform_indices = @transform_3, window_bounds = array<i64: 1, 256>}, {transform_indices = @transform_4, window_bounds = array<i64: 8, 256>}, {transform_indices = @transform_5, window_bounds = array<i64: 8, 256>}]} {
    %c0_i32 = arith.constant 0 : i32
    %0 = arith.cmpi eq, %arg2, %c0_i32 : i32
    %1 = arith.extui %0 : i1 to i32
    %c0_i32_0 = arith.constant 0 : i32
    %2 = arith.cmpi ne, %1, %c0_i32_0 : i32
    scf.if %2 {
      %cst_9 = arith.constant 0.000000e+00 : f32
      %12 = vector.broadcast %cst_9 : f32 to vector<8x256xf32>
      %c0_10 = arith.constant 0 : index
      %c0_11 = arith.constant 0 : index
      %13 = vector.load %arg9[%c0_10, %c0_11] : memref<8x256xf32, #tpu.memory_space<vmem>>, vector<8x256xf32>
      tpu.vector_store %arg9[%c0_10, %c0_11], %12 {strides = array<i32>} : memref<8x256xf32, #tpu.memory_space<vmem>>, vector<8x256xf32>,
    } else {
    }
    %c0 = arith.constant 0 : index
    %c0_1 = arith.constant 0 : index
    %3 = vector.load %arg9[%c0, %c0_1] : memref<8x256xf32, #tpu.memory_space<vmem>>, vector<8x256xf32>
    %c0_2 = arith.constant 0 : index
    %c0_3 = arith.constant 0 : index
    %4 = vector.load %arg3[%c0_2, %c0_3] : memref<8x768xbf16, #tpu.memory_space<vmem>>, vector<8x768xbf16>
    %c0_4 = arith.constant 0 : index
    %c0_5 = arith.constant 0 : index
    %5 = vector.load %arg4[%c0_4, %c0_5] : memref<768x256xbf16, #tpu.memory_space<vmem>>, vector<768x256xbf16>
    %cst = arith.constant dense<0.000000e+00> : vector<8x256xf32>
    %6 = tpu.matmul %4, %5, %cst {dimension_numbers = #tpu.dot_dimension_numbers<[1], [0], [0], [1], [0, 0, 1, 1], [], []>} : vector<8x768xbf16>, vector<768x256xbf16>, vector<8x256xf32> -> vector<8x256xf32>
    %7 = arith.addf %3, %6 : vector<8x256xf32>
    %c0_6 = arith.constant 0 : index
    %c0_7 = arith.constant 0 : index
    %8 = vector.load %arg9[%c0_6, %c0_7] : memref<8x256xf32, #tpu.memory_space<vmem>>, vector<8x256xf32>
    tpu.vector_store %arg9[%c0_6, %c0_7], %7 {strides = array<i32>} : memref<8x256xf32, #tpu.memory_space<vmem>>, vector<8x256xf32>,
    %c2_i32 = arith.constant 2 : i32
    %9 = arith.cmpi eq, %arg2, %c2_i32 : i32
    %10 = arith.extui %9 : i1 to i32
    %c0_i32_8 = arith.constant 0 : i32
    %11 = arith.cmpi ne, %10, %c0_i32_8 : i32
    scf.if %11 {
      %c0_9 = arith.constant 0 : index
      %c0_10 = arith.constant 0 : index
      %12 = vector.load %arg9[%c0_9, %c0_10] : memref<8x256xf32, #tpu.memory_space<vmem>>, vector<8x256xf32>
      %c0_11 = arith.constant 0 : index
      %c0_12 = arith.constant 0 : index
      %13 = vector.load %arg5[%c0_11, %c0_12] : memref<1x256xf32, #tpu.memory_space<vmem>>, vector<1x256xf32>
      %14 = vector.broadcast %13 : vector<1x256xf32> to vector<8x256xf32>
      %15 = arith.mulf %12, %14 : vector<8x256xf32>
      %c0_13 = arith.constant 0 : index
      %c0_14 = arith.constant 0 : index
      %16 = vector.load %arg6[%c0_13, %c0_14] : memref<1x256xf32, #tpu.memory_space<vmem>>, vector<1x256xf32>
      %17 = vector.broadcast %16 : vector<1x256xf32> to vector<8x256xf32>
      %18 = arith.addf %15, %17 : vector<8x256xf32>
      %cst_15 = arith.constant 1.000000e+00 : f32
      %19 = vector.broadcast %cst_15 : f32 to vector<8x256xf32>
      %20 = arith.cmpf oge, %18, %19 : vector<8x256xf32>
      %21 = arith.extui %20 : vector<8x256xi1> to vector<8x256xi32>
      %22 = arith.sitofp %21 : vector<8x256xi32> to vector<8x256xf32>
      %c0_16 = arith.constant 0 : index
      %c0_17 = arith.constant 0 : index
      %23 = vector.load %arg7[%c0_16, %c0_17] : memref<8x256xbf16, #tpu.memory_space<vmem>>, vector<8x256xbf16>
      %24 = arith.extf %23 : vector<8x256xbf16> to vector<8x256xf32>
      %25 = arith.addf %24, %22 : vector<8x256xf32>
      %26 = arith.truncf %25 : vector<8x256xf32> to vector<8x256xbf16>
      %c0_18 = arith.constant 0 : index
      %c0_19 = arith.constant 0 : index
      %27 = vector.load %arg8[%c0_18, %c0_19] : memref<8x256xbf16, #tpu.memory_space<vmem>>, vector<8x256xbf16>
      tpu.vector_store %arg8[%c0_18, %c0_19], %26 {strides = array<i32>} : memref<8x256xbf16, #tpu.memory_space<vmem>>, vector<8x256xbf16>,
    } else {
    }
    return
  }
  func.func @transform_0(%arg0: i32, %arg1: i32, %arg2: i32) -> (i32, i32) {
    %c0_i32 = arith.constant 0 : i32
    return %arg0, %arg2 : i32, i32
  }
  func.func @transform_1(%arg0: i32, %arg1: i32, %arg2: i32) -> (i32, i32) {
    %c0_i32 = arith.constant 0 : i32
    return %arg2, %arg1 : i32, i32
  }
  func.func @transform_2(%arg0: i32, %arg1: i32, %arg2: i32) -> (i32, i32) {
    %c0_i32 = arith.constant 0 : i32
    %c0_i32_0 = arith.constant 0 : i32
    return %c0_i32, %arg1 : i32, i32
  }
  func.func @transform_3(%arg0: i32, %arg1: i32, %arg2: i32) -> (i32, i32) {
    %c0_i32 = arith.constant 0 : i32
    %c0_i32_0 = arith.constant 0 : i32
    return %c0_i32, %arg1 : i32, i32
  }
  func.func @transform_4(%arg0: i32, %arg1: i32, %arg2: i32) -> (i32, i32) {
    %c0_i32 = arith.constant 0 : i32
    return %arg0, %arg1 : i32, i32
  }
  func.func @transform_5(%arg0: i32, %arg1: i32, %arg2: i32) -> (i32, i32) {
    %c0_i32 = arith.constant 0 : i32
    return %arg0, %arg1 : i32, i32
  }
}

module attributes {stable_mosaic.version = 11 : i64} {
  func.func @_fused_gemm_kernel(%arg0: i32, %arg1: i32, %arg2: i32, %arg3: memref<8x768xbf16, #tpu.memory_space<vmem>>, %arg4: memref<768x256xbf16, #tpu.memory_space<vmem>>, %arg5: memref<1x256xf32, #tpu.memory_space<vmem>>, %arg6: memref<1x256xf32, #tpu.memory_space<vmem>>, %arg7: memref<8x256xf32, #tpu.memory_space<vmem>>, %arg8: memref<8x256xf32, #tpu.memory_space<vmem>>, %arg9: memref<8x256xf32, #tpu.memory_space<vmem>>, %arg10: memref<8x256xf32, #tpu.memory_space<vmem>>) attributes {dimension_semantics = [#tpu.dimension_semantics<parallel>, #tpu.dimension_semantics<parallel>, #tpu.dimension_semantics<arbitrary>], iteration_bounds = array<i64: 1, 2, 3>, scalar_prefetch = 0 : i64, scratch_operands = 1 : i64, tpu.core_type = #tpu.core_type<tc>, window_params = [{transform_indices = @transform_0, window_bounds = array<i64: 8, 768>}, {transform_indices = @transform_1, window_bounds = array<i64: 768, 256>}, {transform_indices = @transform_2, window_bounds = array<i64: 1, 256>}, {transform_indices = @transform_3, window_bounds = array<i64: 1, 256>}, {transform_indices = @transform_4, window_bounds = array<i64: 8, 256>}, {transform_indices = @transform_5, window_bounds = array<i64: 8, 256>}, {transform_indices = @transform_6, window_bounds = array<i64: 8, 256>}]} {
    %c0_i32 = arith.constant 0 : i32
    %0 = arith.cmpi eq, %arg2, %c0_i32 : i32
    %1 = arith.extui %0 : i1 to i32
    %c0_i32_0 = arith.constant 0 : i32
    %2 = arith.cmpi ne, %1, %c0_i32_0 : i32
    scf.if %2 {
      %cst_9 = arith.constant 0.000000e+00 : f32
      %12 = vector.broadcast %cst_9 : f32 to vector<8x256xf32>
      %c0_10 = arith.constant 0 : index
      %c0_11 = arith.constant 0 : index
      %13 = vector.load %arg10[%c0_10, %c0_11] : memref<8x256xf32, #tpu.memory_space<vmem>>, vector<8x256xf32>
      tpu.vector_store %arg10[%c0_10, %c0_11], %12 {strides = array<i32>} : memref<8x256xf32, #tpu.memory_space<vmem>>, vector<8x256xf32>,
    } else {
    }
    %c0 = arith.constant 0 : index
    %c0_1 = arith.constant 0 : index
    %3 = vector.load %arg10[%c0, %c0_1] : memref<8x256xf32, #tpu.memory_space<vmem>>, vector<8x256xf32>
    %c0_2 = arith.constant 0 : index
    %c0_3 = arith.constant 0 : index
    %4 = vector.load %arg3[%c0_2, %c0_3] : memref<8x768xbf16, #tpu.memory_space<vmem>>, vector<8x768xbf16>
    %c0_4 = arith.constant 0 : index
    %c0_5 = arith.constant 0 : index
    %5 = vector.load %arg4[%c0_4, %c0_5] : memref<768x256xbf16, #tpu.memory_space<vmem>>, vector<768x256xbf16>
    %cst = arith.constant dense<0.000000e+00> : vector<8x256xf32>
    %6 = tpu.matmul %4, %5, %cst {dimension_numbers = #tpu.dot_dimension_numbers<[1], [0], [0], [1], [0, 0, 1, 1], [], []>} : vector<8x768xbf16>, vector<768x256xbf16>, vector<8x256xf32> -> vector<8x256xf32>
    %7 = arith.addf %3, %6 : vector<8x256xf32>
    %c0_6 = arith.constant 0 : index
    %c0_7 = arith.constant 0 : index
    %8 = vector.load %arg10[%c0_6, %c0_7] : memref<8x256xf32, #tpu.memory_space<vmem>>, vector<8x256xf32>
    tpu.vector_store %arg10[%c0_6, %c0_7], %7 {strides = array<i32>} : memref<8x256xf32, #tpu.memory_space<vmem>>, vector<8x256xf32>,
    %c2_i32 = arith.constant 2 : i32
    %9 = arith.cmpi eq, %arg2, %c2_i32 : i32
    %10 = arith.extui %9 : i1 to i32
    %c0_i32_8 = arith.constant 0 : i32
    %11 = arith.cmpi ne, %10, %c0_i32_8 : i32
    scf.if %11 {
      %c0_9 = arith.constant 0 : index
      %c0_10 = arith.constant 0 : index
      %12 = vector.load %arg10[%c0_9, %c0_10] : memref<8x256xf32, #tpu.memory_space<vmem>>, vector<8x256xf32>
      %c0_11 = arith.constant 0 : index
      %c0_12 = arith.constant 0 : index
      %13 = vector.load %arg5[%c0_11, %c0_12] : memref<1x256xf32, #tpu.memory_space<vmem>>, vector<1x256xf32>
      %14 = vector.broadcast %13 : vector<1x256xf32> to vector<8x256xf32>
      %15 = arith.mulf %12, %14 : vector<8x256xf32>
      %c0_13 = arith.constant 0 : index
      %c0_14 = arith.constant 0 : index
      %16 = vector.load %arg6[%c0_13, %c0_14] : memref<1x256xf32, #tpu.memory_space<vmem>>, vector<1x256xf32>
      %17 = vector.broadcast %16 : vector<1x256xf32> to vector<8x256xf32>
      %18 = arith.addf %15, %17 : vector<8x256xf32>
      %c0_15 = arith.constant 0 : index
      %c0_16 = arith.constant 0 : index
      %19 = vector.load %arg7[%c0_15, %c0_16] : memref<8x256xf32, #tpu.memory_space<vmem>>, vector<8x256xf32>
      tpu.vector_store %arg7[%c0_15, %c0_16], %12 {strides = array<i32>} : memref<8x256xf32, #tpu.memory_space<vmem>>, vector<8x256xf32>,
      %c0_17 = arith.constant 0 : index
      %c0_18 = arith.constant 0 : index
      %20 = vector.load %arg8[%c0_17, %c0_18] : memref<8x256xf32, #tpu.memory_space<vmem>>, vector<8x256xf32>
      tpu.vector_store %arg8[%c0_17, %c0_18], %18 {strides = array<i32>} : memref<8x256xf32, #tpu.memory_space<vmem>>, vector<8x256xf32>,
      %cst_19 = arith.constant 1.000000e+00 : f32
      %21 = vector.broadcast %cst_19 : f32 to vector<8x256xf32>
      %22 = arith.cmpf oge, %18, %21 : vector<8x256xf32>
      %23 = arith.extui %22 : vector<8x256xi1> to vector<8x256xi32>
      %24 = arith.sitofp %23 : vector<8x256xi32> to vector<8x256xf32>
      %c0_20 = arith.constant 0 : index
      %c0_21 = arith.constant 0 : index
      %25 = vector.load %arg9[%c0_20, %c0_21] : memref<8x256xf32, #tpu.memory_space<vmem>>, vector<8x256xf32>
      tpu.vector_store %arg9[%c0_20, %c0_21], %24 {strides = array<i32>} : memref<8x256xf32, #tpu.memory_space<vmem>>, vector<8x256xf32>,
    } else {
    }
    return
  }
  func.func @transform_0(%arg0: i32, %arg1: i32, %arg2: i32) -> (i32, i32) {
    %c0_i32 = arith.constant 0 : i32
    return %arg0, %arg2 : i32, i32
  }
  func.func @transform_1(%arg0: i32, %arg1: i32, %arg2: i32) -> (i32, i32) {
    %c0_i32 = arith.constant 0 : i32
    return %arg2, %arg1 : i32, i32
  }
  func.func @transform_2(%arg0: i32, %arg1: i32, %arg2: i32) -> (i32, i32) {
    %c0_i32 = arith.constant 0 : i32
    %c0_i32_0 = arith.constant 0 : i32
    return %c0_i32, %arg1 : i32, i32
  }
  func.func @transform_3(%arg0: i32, %arg1: i32, %arg2: i32) -> (i32, i32) {
    %c0_i32 = arith.constant 0 : i32
    %c0_i32_0 = arith.constant 0 : i32
    return %c0_i32, %arg1 : i32, i32
  }
  func.func @transform_4(%arg0: i32, %arg1: i32, %arg2: i32) -> (i32, i32) {
    %c0_i32 = arith.constant 0 : i32
    return %arg0, %arg1 : i32, i32
  }
  func.func @transform_5(%arg0: i32, %arg1: i32, %arg2: i32) -> (i32, i32) {
    %c0_i32 = arith.constant 0 : i32
    return %arg0, %arg1 : i32, i32
  }
  func.func @transform_6(%arg0: i32, %arg1: i32, %arg2: i32) -> (i32, i32) {
    %c0_i32 = arith.constant 0 : i32
    return %arg0, %arg1 : i32, i32
  }
}

module attributes {stable_mosaic.version = 11 : i64} {
  func.func @_fused_gemm_kernel(%arg0: i32, %arg1: i32, %arg2: i32, %arg3: memref<8x256xbf16, #tpu.memory_space<vmem>>, %arg4: memref<256x256xbf16, #tpu.memory_space<vmem>>, %arg5: memref<1x256xf32, #tpu.memory_space<vmem>>, %arg6: memref<1x256xf32, #tpu.memory_space<vmem>>, %arg7: memref<8x256xbf16, #tpu.memory_space<vmem>>, %arg8: memref<8x256xf32, #tpu.memory_space<vmem>>) attributes {dimension_semantics = [#tpu.dimension_semantics<parallel>, #tpu.dimension_semantics<parallel>, #tpu.dimension_semantics<arbitrary>], iteration_bounds = array<i64: 1, 2, 1>, scalar_prefetch = 0 : i64, scratch_operands = 1 : i64, tpu.core_type = #tpu.core_type<tc>, window_params = [{transform_indices = @transform_0, window_bounds = array<i64: 8, 256>}, {transform_indices = @transform_1, window_bounds = array<i64: 256, 256>}, {transform_indices = @transform_2, window_bounds = array<i64: 1, 256>}, {transform_indices = @transform_3, window_bounds = array<i64: 1, 256>}, {transform_indices = @transform_4, window_bounds = array<i64: 8, 256>}]} {
    %c0_i32 = arith.constant 0 : i32
    %0 = arith.cmpi eq, %arg2, %c0_i32 : i32
    %1 = arith.extui %0 : i1 to i32
    %c0_i32_0 = arith.constant 0 : i32
    %2 = arith.cmpi ne, %1, %c0_i32_0 : i32
    scf.if %2 {
      %cst_10 = arith.constant 0.000000e+00 : f32
      %12 = vector.broadcast %cst_10 : f32 to vector<8x256xf32>
      %c0_11 = arith.constant 0 : index
      %c0_12 = arith.constant 0 : index
      %13 = vector.load %arg8[%c0_11, %c0_12] : memref<8x256xf32, #tpu.memory_space<vmem>>, vector<8x256xf32>
      tpu.vector_store %arg8[%c0_11, %c0_12], %12 {strides = array<i32>} : memref<8x256xf32, #tpu.memory_space<vmem>>, vector<8x256xf32>,
    } else {
    }
    %c0 = arith.constant 0 : index
    %c0_1 = arith.constant 0 : index
    %3 = vector.load %arg8[%c0, %c0_1] : memref<8x256xf32, #tpu.memory_space<vmem>>, vector<8x256xf32>
    %c0_2 = arith.constant 0 : index
    %c0_3 = arith.constant 0 : index
    %4 = vector.load %arg3[%c0_2, %c0_3] : memref<8x256xbf16, #tpu.memory_space<vmem>>, vector<8x256xbf16>
    %c0_4 = arith.constant 0 : index
    %c0_5 = arith.constant 0 : index
    %5 = vector.load %arg4[%c0_4, %c0_5] : memref<256x256xbf16, #tpu.memory_space<vmem>>, vector<256x256xbf16>
    %cst = arith.constant dense<0.000000e+00> : vector<8x256xf32>
    %6 = tpu.matmul %4, %5, %cst {dimension_numbers = #tpu.dot_dimension_numbers<[1], [0], [0], [1], [0, 0, 1, 1], [], []>} : vector<8x256xbf16>, vector<256x256xbf16>, vector<8x256xf32> -> vector<8x256xf32>
    %7 = arith.addf %3, %6 : vector<8x256xf32>
    %c0_6 = arith.constant 0 : index
    %c0_7 = arith.constant 0 : index
    %8 = vector.load %arg8[%c0_6, %c0_7] : memref<8x256xf32, #tpu.memory_space<vmem>>, vector<8x256xf32>
    tpu.vector_store %arg8[%c0_6, %c0_7], %7 {strides = array<i32>} : memref<8x256xf32, #tpu.memory_space<vmem>>, vector<8x256xf32>,
    %c0_i32_8 = arith.constant 0 : i32
    %9 = arith.cmpi eq, %arg2, %c0_i32_8 : i32
    %10 = arith.extui %9 : i1 to i32
    %c0_i32_9 = arith.constant 0 : i32
    %11 = arith.cmpi ne, %10, %c0_i32_9 : i32
    scf.if %11 {
      %c0_10 = arith.constant 0 : index
      %c0_11 = arith.constant 0 : index
      %12 = vector.load %arg8[%c0_10, %c0_11] : memref<8x256xf32, #tpu.memory_space<vmem>>, vector<8x256xf32>
      %c0_12 = arith.constant 0 : index
      %c0_13 = arith.constant 0 : index
      %13 = vector.load %arg5[%c0_12, %c0_13] : memref<1x256xf32, #tpu.memory_space<vmem>>, vector<1x256xf32>
      %14 = vector.broadcast %13 : vector<1x256xf32> to vector<8x256xf32>
      %15 = arith.mulf %12, %14 : vector<8x256xf32>
      %c0_14 = arith.constant 0 : index
      %c0_15 = arith.constant 0 : index
      %16 = vector.load %arg6[%c0_14, %c0_15] : memref<1x256xf32, #tpu.memory_space<vmem>>, vector<1x256xf32>
      %17 = vector.broadcast %16 : vector<1x256xf32> to vector<8x256xf32>
      %18 = arith.addf %15, %17 : vector<8x256xf32>
      %cst_16 = arith.constant 1.000000e+00 : f32
      %19 = vector.broadcast %cst_16 : f32 to vector<8x256xf32>
      %20 = arith.cmpf oge, %18, %19 : vector<8x256xf32>
      %21 = arith.extui %20 : vector<8x256xi1> to vector<8x256xi32>
      %22 = arith.sitofp %21 : vector<8x256xi32> to vector<8x256xf32>
      %23 = arith.truncf %22 : vector<8x256xf32> to vector<8x256xbf16>
      %c0_17 = arith.constant 0 : index
      %c0_18 = arith.constant 0 : index
      %24 = vector.load %arg7[%c0_17, %c0_18] : memref<8x256xbf16, #tpu.memory_space<vmem>>, vector<8x256xbf16>
      tpu.vector_store %arg7[%c0_17, %c0_18], %23 {strides = array<i32>} : memref<8x256xbf16, #tpu.memory_space<vmem>>, vector<8x256xbf16>,
    } else {
    }
    return
  }
  func.func @transform_0(%arg0: i32, %arg1: i32, %arg2: i32) -> (i32, i32) {
    %c0_i32 = arith.constant 0 : i32
    return %arg0, %arg2 : i32, i32
  }
  func.func @transform_1(%arg0: i32, %arg1: i32, %arg2: i32) -> (i32, i32) {
    %c0_i32 = arith.constant 0 : i32
    return %arg2, %arg1 : i32, i32
  }
  func.func @transform_2(%arg0: i32, %arg1: i32, %arg2: i32) -> (i32, i32) {
    %c0_i32 = arith.constant 0 : i32
    %c0_i32_0 = arith.constant 0 : i32
    return %c0_i32, %arg1 : i32, i32
  }
  func.func @transform_3(%arg0: i32, %arg1: i32, %arg2: i32) -> (i32, i32) {
    %c0_i32 = arith.constant 0 : i32
    %c0_i32_0 = arith.constant 0 : i32
    return %c0_i32, %arg1 : i32, i32
  }
  func.func @transform_4(%arg0: i32, %arg1: i32, %arg2: i32) -> (i32, i32) {
    %c0_i32 = arith.constant 0 : i32
    return %arg0, %arg1 : i32, i32
  }
}

module attributes {stable_mosaic.version = 11 : i64} {
  func.func @_fused_gemm_kernel(%arg0: i32, %arg1: i32, %arg2: i32, %arg3: memref<8x768xbf16, #tpu.memory_space<vmem>>, %arg4: memref<768x256xbf16, #tpu.memory_space<vmem>>, %arg5: memref<1x256xf32, #tpu.memory_space<vmem>>, %arg6: memref<1x256xf32, #tpu.memory_space<vmem>>, %arg7: memref<8x256xbf16, #tpu.memory_space<vmem>>, %arg8: memref<8x256xf32, #tpu.memory_space<vmem>>, %arg9: memref<8x256xf32, #tpu.memory_space<vmem>>, %arg10: memref<8x256xf32, #tpu.memory_space<vmem>>, %arg11: memref<8x256xf32, #tpu.memory_space<vmem>>, %arg12: memref<8x256xf32, #tpu.memory_space<vmem>>) attributes {dimension_semantics = [#tpu.dimension_semantics<parallel>, #tpu.dimension_semantics<parallel>, #tpu.dimension_semantics<arbitrary>], iteration_bounds = array<i64: 1, 2, 6>, scalar_prefetch = 0 : i64, scratch_operands = 1 : i64, tpu.core_type = #tpu.core_type<tc>, window_params = [{transform_indices = @transform_0, window_bounds = array<i64: 8, 768>}, {transform_indices = @transform_1, window_bounds = array<i64: 768, 256>}, {transform_indices = @transform_2, window_bounds = array<i64: 1, 256>}, {transform_indices = @transform_3, window_bounds = array<i64: 1, 256>}, {transform_indices = @transform_4, window_bounds = array<i64: 8, 256>}, {transform_indices = @transform_5, window_bounds = array<i64: 8, 256>}, {transform_indices = @transform_6, window_bounds = array<i64: 8, 256>}, {transform_indices = @transform_7, window_bounds = array<i64: 8, 256>}, {transform_indices = @transform_8, window_bounds = array<i64: 8, 256>}]} {
    %c0_i32 = arith.constant 0 : i32
    %0 = arith.cmpi eq, %arg2, %c0_i32 : i32
    %1 = arith.extui %0 : i1 to i32
    %c0_i32_0 = arith.constant 0 : i32
    %2 = arith.cmpi ne, %1, %c0_i32_0 : i32
    scf.if %2 {
      %cst_9 = arith.constant 0.000000e+00 : f32
      %12 = vector.broadcast %cst_9 : f32 to vector<8x256xf32>
      %c0_10 = arith.constant 0 : index
      %c0_11 = arith.constant 0 : index
      %13 = vector.load %arg12[%c0_10, %c0_11] : memref<8x256xf32, #tpu.memory_space<vmem>>, vector<8x256xf32>
      tpu.vector_store %arg12[%c0_10, %c0_11], %12 {strides = array<i32>} : memref<8x256xf32, #tpu.memory_space<vmem>>, vector<8x256xf32>,
    } else {
    }
    %c0 = arith.constant 0 : index
    %c0_1 = arith.constant 0 : index
    %3 = vector.load %arg12[%c0, %c0_1] : memref<8x256xf32, #tpu.memory_space<vmem>>, vector<8x256xf32>
    %c0_2 = arith.constant 0 : index
    %c0_3 = arith.constant 0 : index
    %4 = vector.load %arg3[%c0_2, %c0_3] : memref<8x768xbf16, #tpu.memory_space<vmem>>, vector<8x768xbf16>
    %c0_4 = arith.constant 0 : index
    %c0_5 = arith.constant 0 : index
    %5 = vector.load %arg4[%c0_4, %c0_5] : memref<768x256xbf16, #tpu.memory_space<vmem>>, vector<768x256xbf16>
    %cst = arith.constant dense<0.000000e+00> : vector<8x256xf32>
    %6 = tpu.matmul %4, %5, %cst {dimension_numbers = #tpu.dot_dimension_numbers<[1], [0], [0], [1], [0, 0, 1, 1], [], []>} : vector<8x768xbf16>, vector<768x256xbf16>, vector<8x256xf32> -> vector<8x256xf32>
    %7 = arith.addf %3, %6 : vector<8x256xf32>
    %c0_6 = arith.constant 0 : index
    %c0_7 = arith.constant 0 : index
    %8 = vector.load %arg12[%c0_6, %c0_7] : memref<8x256xf32, #tpu.memory_space<vmem>>, vector<8x256xf32>
    tpu.vector_store %arg12[%c0_6, %c0_7], %7 {strides = array<i32>} : memref<8x256xf32, #tpu.memory_space<vmem>>, vector<8x256xf32>,
    %c5_i32 = arith.constant 5 : i32
    %9 = arith.cmpi eq, %arg2, %c5_i32 : i32
    %10 = arith.extui %9 : i1 to i32
    %c0_i32_8 = arith.constant 0 : i32
    %11 = arith.cmpi ne, %10, %c0_i32_8 : i32
    scf.if %11 {
      %c0_9 = arith.constant 0 : index
      %c0_10 = arith.constant 0 : index
      %12 = vector.load %arg12[%c0_9, %c0_10] : memref<8x256xf32, #tpu.memory_space<vmem>>, vector<8x256xf32>
      %c0_11 = arith.constant 0 : index
      %c0_12 = arith.constant 0 : index
      %13 = vector.load %arg5[%c0_11, %c0_12] : memref<1x256xf32, #tpu.memory_space<vmem>>, vector<1x256xf32>
      %14 = vector.broadcast %13 : vector<1x256xf32> to vector<8x256xf32>
      %15 = arith.mulf %12, %14 : vector<8x256xf32>
      %c0_13 = arith.constant 0 : index
      %c0_14 = arith.constant 0 : index
      %16 = vector.load %arg6[%c0_13, %c0_14] : memref<1x256xf32, #tpu.memory_space<vmem>>, vector<1x256xf32>
      %17 = vector.broadcast %16 : vector<1x256xf32> to vector<8x256xf32>
      %18 = arith.addf %15, %17 : vector<8x256xf32>
      %c0_15 = arith.constant 0 : index
      %c0_16 = arith.constant 0 : index
      %19 = vector.load %arg8[%c0_15, %c0_16] : memref<8x256xf32, #tpu.memory_space<vmem>>, vector<8x256xf32>
      tpu.vector_store %arg8[%c0_15, %c0_16], %12 {strides = array<i32>} : memref<8x256xf32, #tpu.memory_space<vmem>>, vector<8x256xf32>,
      %c0_17 = arith.constant 0 : index
      %c0_18 = arith.constant 0 : index
      %20 = vector.load %arg9[%c0_17, %c0_18] : memref<8x256xf32, #tpu.memory_space<vmem>>, vector<8x256xf32>
      tpu.vector_store %arg9[%c0_17, %c0_18], %18 {strides = array<i32>} : memref<8x256xf32, #tpu.memory_space<vmem>>, vector<8x256xf32>,
      %cst_19 = arith.constant 1.000000e+00 : f32
      %21 = vector.broadcast %cst_19 : f32 to vector<8x256xf32>
      %22 = arith.cmpf oge, %18, %21 : vector<8x256xf32>
      %23 = arith.extui %22 : vector<8x256xi1> to vector<8x256xi32>
      %24 = arith.sitofp %23 : vector<8x256xi32> to vector<8x256xf32>
      %c0_20 = arith.constant 0 : index
      %c0_21 = arith.constant 0 : index
      %25 = vector.load %arg10[%c0_20, %c0_21] : memref<8x256xf32, #tpu.memory_space<vmem>>, vector<8x256xf32>
      tpu.vector_store %arg10[%c0_20, %c0_21], %24 {strides = array<i32>} : memref<8x256xf32, #tpu.memory_space<vmem>>, vector<8x256xf32>,
      %c0_22 = arith.constant 0 : index
      %c0_23 = arith.constant 0 : index
      %26 = vector.load %arg7[%c0_22, %c0_23] : memref<8x256xbf16, #tpu.memory_space<vmem>>, vector<8x256xbf16>
      %27 = arith.extf %26 : vector<8x256xbf16> to vector<8x256xf32>
      %28 = arith.addf %27, %24 : vector<8x256xf32>
      %c0_24 = arith.constant 0 : index
      %c0_25 = arith.constant 0 : index
      %29 = vector.load %arg11[%c0_24, %c0_25] : memref<8x256xf32, #tpu.memory_space<vmem>>, vector<8x256xf32>
      tpu.vector_store %arg11[%c0_24, %c0_25], %28 {strides = array<i32>} : memref<8x256xf32, #tpu.memory_space<vmem>>, vector<8x256xf32>,
    } else {
    }
    return
  }
  func.func @transform_0(%arg0: i32, %arg1: i32, %arg2: i32) -> (i32, i32) {
    %c0_i32 = arith.constant 0 : i32
    return %arg0, %arg2 : i32, i32
  }
  func.func @transform_1(%arg0: i32, %arg1: i32, %arg2: i32) -> (i32, i32) {
    %c0_i32 = arith.constant 0 : i32
    return %arg2, %arg1 : i32, i32
  }
  func.func @transform_2(%arg0: i32, %arg1: i32, %arg2: i32) -> (i32, i32) {
    %c0_i32 = arith.constant 0 : i32
    %c0_i32_0 = arith.constant 0 : i32
    return %c0_i32, %arg1 : i32, i32
  }
  func.func @transform_3(%arg0: i32, %arg1: i32, %arg2: i32) -> (i32, i32) {
    %c0_i32 = arith.constant 0 : i32
    %c0_i32_0 = arith.constant 0 : i32
    return %c0_i32, %arg1 : i32, i32
  }
  func.func @transform_4(%arg0: i32, %arg1: i32, %arg2: i32) -> (i32, i32) {
    %c0_i32 = arith.constant 0 : i32
    return %arg0, %arg1 : i32, i32
  }
  func.func @transform_5(%arg0: i32, %arg1: i32, %arg2: i32) -> (i32, i32) {
    %c0_i32 = arith.constant 0 : i32
    return %arg0, %arg1 : i32, i32
  }
  func.func @transform_6(%arg0: i32, %arg1: i32, %arg2: i32) -> (i32, i32) {
    %c0_i32 = arith.constant 0 : i32
    return %arg0, %arg1 : i32, i32
  }
  func.func @transform_7(%arg0: i32, %arg1: i32, %arg2: i32) -> (i32, i32) {
    %c0_i32 = arith.constant 0 : i32
    return %arg0, %arg1 : i32, i32
  }
  func.func @transform_8(%arg0: i32, %arg1: i32, %arg2: i32) -> (i32, i32) {
    %c0_i32 = arith.constant 0 : i32
    return %arg0, %arg1 : i32, i32
  }
}

module attributes {stable_mosaic.version = 11 : i64} {
  func.func @_avgpool_kernel(%arg0: memref<2x1x512xf32, #tpu.memory_space<vmem>>, %arg1: memref<2x512xf32, #tpu.memory_space<vmem>>) attributes {dimension_semantics = [], scalar_prefetch = 0 : i64, scratch_operands = 0 : i64, tpu.core_type = #tpu.core_type<tc>} {
    %c0 = arith.constant 0 : index
    %c0_0 = arith.constant 0 : index
    %c0_1 = arith.constant 0 : index
    %0 = vector.load %arg0[%c0, %c0_0, %c0_1] : memref<2x1x512xf32, #tpu.memory_space<vmem>>, vector<2x1x512xf32>
    %cst = arith.constant dense<0.000000e+00> : vector<2x512xf32>
    %1 = vector.multi_reduction <add>, %0, %cst [1] : vector<2x1x512xf32> to vector<2x512xf32>
    %cst_2 = arith.constant 1.000000e+00 : f32
    %2 = vector.broadcast %cst_2 : f32 to vector<2x512xf32>
    %3 = arith.divf %1, %2 : vector<2x512xf32>
    %c0_3 = arith.constant 0 : index
    %c0_4 = arith.constant 0 : index
    %4 = vector.load %arg1[%c0_3, %c0_4] : memref<2x512xf32, #tpu.memory_space<vmem>>, vector<2x512xf32>
    tpu.vector_store %arg1[%c0_3, %c0_4], %3 {strides = array<i32>} : memref<2x512xf32, #tpu.memory_space<vmem>>, vector<2x512xf32>,
    return
  }
}

module attributes {stable_mosaic.version = 11 : i64} {
  func.func @_fused_gemm_kernel(%arg0: i32, %arg1: i32, %arg2: i32, %arg3: memref<8x512xf32, #tpu.memory_space<vmem>>, %arg4: memref<512x256xf32, #tpu.memory_space<vmem>>, %arg5: memref<1x256xf32, #tpu.memory_space<vmem>>, %arg6: memref<1x256xf32, #tpu.memory_space<vmem>>, %arg7: memref<8x256xf32, #tpu.memory_space<vmem>>, %arg8: memref<8x256xf32, #tpu.memory_space<vmem>>) attributes {dimension_semantics = [#tpu.dimension_semantics<parallel>, #tpu.dimension_semantics<parallel>, #tpu.dimension_semantics<arbitrary>], iteration_bounds = array<i64: 1, 1, 1>, scalar_prefetch = 0 : i64, scratch_operands = 1 : i64, tpu.core_type = #tpu.core_type<tc>, window_params = [{transform_indices = @transform_0, window_bounds = array<i64: 8, 512>}, {transform_indices = @transform_1, window_bounds = array<i64: 512, 256>}, {transform_indices = @transform_2, window_bounds = array<i64: 1, 256>}, {transform_indices = @transform_3, window_bounds = array<i64: 1, 256>}, {transform_indices = @transform_4, window_bounds = array<i64: 8, 256>}]} {
    %c0_i32 = arith.constant 0 : i32
    %0 = arith.cmpi eq, %arg2, %c0_i32 : i32
    %1 = arith.extui %0 : i1 to i32
    %c0_i32_0 = arith.constant 0 : i32
    %2 = arith.cmpi ne, %1, %c0_i32_0 : i32
    scf.if %2 {
      %cst_10 = arith.constant 0.000000e+00 : f32
      %12 = vector.broadcast %cst_10 : f32 to vector<8x256xf32>
      %c0_11 = arith.constant 0 : index
      %c0_12 = arith.constant 0 : index
      %13 = vector.load %arg8[%c0_11, %c0_12] : memref<8x256xf32, #tpu.memory_space<vmem>>, vector<8x256xf32>
      tpu.vector_store %arg8[%c0_11, %c0_12], %12 {strides = array<i32>} : memref<8x256xf32, #tpu.memory_space<vmem>>, vector<8x256xf32>,
    } else {
    }
    %c0 = arith.constant 0 : index
    %c0_1 = arith.constant 0 : index
    %3 = vector.load %arg8[%c0, %c0_1] : memref<8x256xf32, #tpu.memory_space<vmem>>, vector<8x256xf32>
    %c0_2 = arith.constant 0 : index
    %c0_3 = arith.constant 0 : index
    %4 = vector.load %arg3[%c0_2, %c0_3] : memref<8x512xf32, #tpu.memory_space<vmem>>, vector<8x512xf32>
    %c0_4 = arith.constant 0 : index
    %c0_5 = arith.constant 0 : index
    %5 = vector.load %arg4[%c0_4, %c0_5] : memref<512x256xf32, #tpu.memory_space<vmem>>, vector<512x256xf32>
    %cst = arith.constant dense<0.000000e+00> : vector<8x256xf32>
    %6 = tpu.matmul %4, %5, %cst {dimension_numbers = #tpu.dot_dimension_numbers<[1], [0], [0], [1], [0, 0, 1, 1], [], []>} : vector<8x512xf32>, vector<512x256xf32>, vector<8x256xf32> -> vector<8x256xf32>
    %7 = arith.addf %3, %6 : vector<8x256xf32>
    %c0_6 = arith.constant 0 : index
    %c0_7 = arith.constant 0 : index
    %8 = vector.load %arg8[%c0_6, %c0_7] : memref<8x256xf32, #tpu.memory_space<vmem>>, vector<8x256xf32>
    tpu.vector_store %arg8[%c0_6, %c0_7], %7 {strides = array<i32>} : memref<8x256xf32, #tpu.memory_space<vmem>>, vector<8x256xf32>,
    %c0_i32_8 = arith.constant 0 : i32
    %9 = arith.cmpi eq, %arg2, %c0_i32_8 : i32
    %10 = arith.extui %9 : i1 to i32
    %c0_i32_9 = arith.constant 0 : i32
    %11 = arith.cmpi ne, %10, %c0_i32_9 : i32
    scf.if %11 {
      %c0_10 = arith.constant 0 : index
      %c0_11 = arith.constant 0 : index
      %12 = vector.load %arg8[%c0_10, %c0_11] : memref<8x256xf32, #tpu.memory_space<vmem>>, vector<8x256xf32>
      %c0_12 = arith.constant 0 : index
      %c0_13 = arith.constant 0 : index
      %13 = vector.load %arg5[%c0_12, %c0_13] : memref<1x256xf32, #tpu.memory_space<vmem>>, vector<1x256xf32>
      %14 = vector.broadcast %13 : vector<1x256xf32> to vector<8x256xf32>
      %15 = arith.mulf %12, %14 : vector<8x256xf32>
      %c0_14 = arith.constant 0 : index
      %c0_15 = arith.constant 0 : index
      %16 = vector.load %arg6[%c0_14, %c0_15] : memref<1x256xf32, #tpu.memory_space<vmem>>, vector<1x256xf32>
      %17 = vector.broadcast %16 : vector<1x256xf32> to vector<8x256xf32>
      %18 = arith.addf %15, %17 : vector<8x256xf32>
      %c0_16 = arith.constant 0 : index
      %c0_17 = arith.constant 0 : index
      %19 = vector.load %arg7[%c0_16, %c0_17] : memref<8x256xf32, #tpu.memory_space<vmem>>, vector<8x256xf32>
      tpu.vector_store %arg7[%c0_16, %c0_17], %18 {strides = array<i32>} : memref<8x256xf32, #tpu.memory_space<vmem>>, vector<8x256xf32>,
    } else {
    }
    return
  }
  func.func @transform_0(%arg0: i32, %arg1: i32, %arg2: i32) -> (i32, i32) {
    %c0_i32 = arith.constant 0 : i32
    return %arg0, %arg2 : i32, i32
  }
  func.func @transform_1(%arg0: i32, %arg1: i32, %arg2: i32) -> (i32, i32) {
    %c0_i32 = arith.constant 0 : i32
    return %arg2, %arg1 : i32, i32
  }
  func.func @transform_2(%arg0: i32, %arg1: i32, %arg2: i32) -> (i32, i32) {
    %c0_i32 = arith.constant 0 : i32
    %c0_i32_0 = arith.constant 0 : i32
    return %c0_i32, %arg1 : i32, i32
  }
  func.func @transform_3(%arg0: i32, %arg1: i32, %arg2: i32) -> (i32, i32) {
    %c0_i32 = arith.constant 0 : i32
    %c0_i32_0 = arith.constant 0 : i32
    return %c0_i32, %arg1 : i32, i32
  }
  func.func @transform_4(%arg0: i32, %arg1: i32, %arg2: i32) -> (i32, i32) {
    %c0_i32 = arith.constant 0 : i32
    return %arg0, %arg1 : i32, i32
  }
}

</mosaic_0001>

<bundles_post_ra>
// kernel: _lambda_.16
= control target key start
LH: loop header
LB: loop body
LE: loop exit
PB: predicated region body
PF: predicated region fallthrough
CT: control target
= control target key end

     0   :  { %s470_s0 = inlined_call_operand.vmem [shape: f32[64,128], index: 0, kind: input, shape index: {}]   ;;  %s471_s1 = inlined_call_operand.vmem [shape: f32[64,128], index: 1, kind: input, shape index: {}]   ;;  %s472_s2 = inlined_call_operand.vmem [shape: f32[64,128], index: 2, kind: input, shape index: {}]   ;;  %s473_s3 = inlined_call_operand.vmem [shape: f32[64,128], index: 3, kind: input, shape index: {}]   ;;  %s474_s4 = inlined_call_operand.vmem [shape: f32[64,128], index: 4, kind: input, shape index: {}]   ;;  %s475_s5 = inlined_call_operand.vmem [shape: f32[64,128], index: 5, kind: input, shape index: {}]   ;;  %s476_s6 = inlined_call_operand.vmem [shape: f32[64,128], index: 6, kind: input, shape index: {}]   ;;  %s477_s7 = inlined_call_operand.vmem [shape: f32[64,128], index: 7, kind: input, shape index: {}]   ;;  %s478_s8 = inlined_call_operand.vmem [shape: f32[64,128], index: 8, kind: input, shape index: {}]   ;;  %s479_s9 = inlined_call_operand.vmem [shape: f32[64,128], index: 9, kind: output, shape index: {}]  }
   0x1   :  { %v32_v0 = vld [vmem:[%s470_s0] sm:$0xff]  ;;  %v33_v6 = vld [vmem:[%s470_s0 + $0x8] sm:$0xff]  ;;  %v34_v15 = vld [vmem:[%s470_s0 + $0x10] sm:$0xff] }
   0x2   :  { %v40_v1 = vld [vmem:[%s471_s1] sm:$0xff]  ;;  %v41_v7 = vld [vmem:[%s471_s1 + $0x8] sm:$0xff]  ;;  %v42_v16 = vld [vmem:[%s471_s1 + $0x10] sm:$0xff] }
   0x3   :  { %v56_v2 = vld [vmem:[%s472_s2] sm:$0xff]  ;;  %v48_v3 = vmax.f32 %v32_v0, %v40_v1  ;;  %v57_v8 = vld [vmem:[%s472_s2 + $0x8] sm:$0xff]  ;;  %v49_v10 = vmax.f32 %v33_v6, %v41_v7  ;;  %v58_v17 = vld [vmem:[%s472_s2 + $0x10] sm:$0xff]  ;;  %v50_v20 = vmax.f32 %v34_v15, %v42_v16 }
   0x4   :  { %v72_v4 = vld [vmem:[%s473_s3] sm:$0xff]  ;;  %v73_v13 = vld [vmem:[%s473_s3 + $0x8] sm:$0xff]  ;;  %v74_v24 = vld [vmem:[%s473_s3 + $0x10] sm:$0xff] }
   0x5   :  { %v64_v5 = vmax.f32 %v48_v3, %v56_v2  ;;  %v88_v9 = vld [vmem:[%s474_s4] sm:$0xff]  ;;  %v65_v14 = vmax.f32 %v49_v10, %v57_v8  ;;  %v89_v19 = vld [vmem:[%s474_s4 + $0x8] sm:$0xff]  ;;  %v66_v26 = vmax.f32 %v50_v20, %v58_v17  ;;  %v35_v27 = vld [vmem:[%s470_s0 + $0x18] sm:$0xff] }
   0x6   :  { %v104_v12 = vld [vmem:[%s475_s5] sm:$0xff]  ;;  %v105_v23 = vld [vmem:[%s475_s5 + $0x8] sm:$0xff]  ;;  %v43_v28 = vld [vmem:[%s471_s1 + $0x18] sm:$0xff] }
   0x7   :  { %v80_v11 = vmax.f32 %v64_v5, %v72_v4  ;;  %v120_v21 = vld [vmem:[%s476_s6] sm:$0xff]  ;;  %v81_v22 = vmax.f32 %v65_v14, %v73_v13  ;;  %v59_v29 = vld [vmem:[%s472_s2 + $0x18] sm:$0xff]  ;;  %v90_v33 = vld [vmem:[%s474_s4 + $0x10] sm:$0xff]  ;;  %v51_v34 = vmax.f32 %v35_v27, %v43_v28  ;;  %v82_v37 = vmax.f32 %v66_v26, %v74_v24 }
   0x8   :  { %v136_v30 = vld [vmem:[%s477_s7] sm:$0xff]  ;;  %v121_v36 = vld [vmem:[%s476_s6 + $0x8] sm:$0xff]  ;;  %v106_v38 = vld [vmem:[%s475_s5 + $0x10] sm:$0xff] }
   0x9   :  { %v96_v18 = vmax.f32 %v80_v11, %v88_v9  ;;  %v152_v31 = vld [vmem:[%s478_s8] sm:$0xff]  ;;  %v97_v32 = vmax.f32 %v81_v22, %v89_v19  ;;  %v75_v39 = vld [vmem:[%s473_s3 + $0x18] sm:$0xff]  ;;  %v67_v41 = vmax.f32 %v51_v34, %v59_v29  ;;  %v137_v46 = vld [vmem:[%s477_s7 + $0x8] sm:$0xff]  ;;  %v98_v48 = vmax.f32 %v82_v37, %v90_v33 }
   0xa   :  { %v36_v42 = vld [vmem:[%s470_s0 + $0x20] sm:$0xff]  ;;  %v153_v47 = vld [vmem:[%s478_s8 + $0x8] sm:$0xff]  ;;  %v91_v49 = vld [vmem:[%s474_s4 + $0x18] sm:$0xff] }
   0xb   :  { %v112_v25 = vmax.f32 %v96_v18, %v104_v12  ;;  %v113_v40 = vmax.f32 %v97_v32, %v105_v23  ;;  %v44_v43 = vld [vmem:[%s471_s1 + $0x20] sm:$0xff]  ;;  %v122_v52 = vld [vmem:[%s476_s6 + $0x10] sm:$0xff]  ;;  %v83_v53 = vmax.f32 %v67_v41, %v75_v39  ;;  %v107_v54 = vld [vmem:[%s475_s5 + $0x18] sm:$0xff]  ;;  %v114_v57 = vmax.f32 %v98_v48, %v106_v38 }
   0xc   :  { %v60_v44 = vld [vmem:[%s472_s2 + $0x20] sm:$0xff]  ;;  %v52_v50 = vmax.f32 %v36_v42, %v44_v43  ;;  %v37_v59 = vld [vmem:[%s470_s0 + $0x28] sm:$0xff]  ;;  %v138_v63 = vld [vmem:[%s477_s7 + $0x10] sm:$0xff] }
   0xd   :  { %v128_v35 = vmax.f32 %v112_v25, %v120_v21  ;;  %v129_v51 = vmax.f32 %v113_v40, %v121_v36  ;;  %v76_v55 = vld [vmem:[%s473_s3 + $0x20] sm:$0xff]  ;;  %v45_v60 = vld [vmem:[%s471_s1 + $0x28] sm:$0xff]  ;;  %v154_v0 = vld [vmem:[%s478_s8 + $0x10] sm:$0xff]  ;;  %v99_v1 = vmax.f32 %v83_v53, %v91_v49  ;;  %v130_v4 = vmax.f32 %v114_v57, %v122_v52 }
   0xe   :  { %v68_v58 = vmax.f32 %v52_v50, %v60_v44  ;;  %v61_v61 = vld [vmem:[%s472_s2 + $0x28] sm:$0xff]  ;;  %v92_v2 = vld [vmem:[%s474_s4 + $0x20] sm:$0xff]  ;;  %v53_v3 = vmax.f32 %v37_v59, %v45_v60  ;;  %v123_v5 = vld [vmem:[%s476_s6 + $0x18] sm:$0xff] }
   0xf   :  { %v144_v45 = vmax.f32 %v128_v35, %v136_v30  ;;  %v145_v62 = vmax.f32 %v129_v51, %v137_v46  ;;  %v108_v7 = vld [vmem:[%s475_s5 + $0x20] sm:$0xff]  ;;  %v77_v8 = vld [vmem:[%s473_s3 + $0x28] sm:$0xff]  ;;  %v115_v10 = vmax.f32 %v99_v1, %v107_v54  ;;  %v38_v12 = vld [vmem:[%s470_s0 + $0x30] sm:$0xff]  ;;  %v146_v15 = vmax.f32 %v130_v4, %v138_v63 }
  0x10   :  { %v84_v6 = vmax.f32 %v68_v58, %v76_v55  ;;  %v69_v11 = vmax.f32 %v53_v3, %v61_v61  ;;  %v46_v13 = vld [vmem:[%s471_s1 + $0x30] sm:$0xff]  ;;  %v139_v16 = vld [vmem:[%s477_s7 + $0x18] sm:$0xff]  ;;  %v93_v19 = vld [vmem:[%s474_s4 + $0x28] sm:$0xff] }
  0x11   :  { %v160_v56 = vmax.f32 %v144_v45, %v152_v31  ;;  %v161_v9 = vmax.f32 %v145_v62, %v153_v47  ;;  %v62_v14 = vld [vmem:[%s472_s2 + $0x30] sm:$0xff]  ;;  %v155_v17 = vld [vmem:[%s478_s8 + $0x18] sm:$0xff]  ;;  %v54_v20 = vmax.f32 %v38_v12, %v46_v13  ;;  %v131_v21 = vmax.f32 %v115_v10, %v123_v5  ;;  %v124_v22 = vld [vmem:[%s476_s6 + $0x20] sm:$0xff] }
  0x12   :  { %v100_v18 = vmax.f32 %v84_v6, %v92_v2  ;;  %v85_v23 = vmax.f32 %v69_v11, %v77_v8  ;;  %v109_v24 = vld [vmem:[%s475_s5 + $0x28] sm:$0xff]  ;;  %v78_v25 = vld [vmem:[%s473_s3 + $0x30] sm:$0xff]  ;;  %v162_v26 = vmax.f32 %v146_v15, %v154_v0  ;;  %v39_v29 = vld [vmem:[%s470_s0 + $0x38] sm:$0xff] }
  0x13   :  { %168 = vst [vmem:[%s479_s9] sm:$0xff] %v160_v56  ;;  %169 = vst [vmem:[%s479_s9 + $0x8] sm:$0xff] %v161_v9  ;;  %v70_v28 = vmax.f32 %v54_v20, %v62_v14  ;;  %v47_v30 = vld [vmem:[%s471_s1 + $0x38] sm:$0xff]  ;;  %v147_v32 = vmax.f32 %v131_v21, %v139_v16  ;;  %v140_v33 = vld [vmem:[%s477_s7 + $0x20] sm:$0xff] }
  0x14   :  { %v116_v27 = vmax.f32 %v100_v18, %v108_v7  ;;  %v63_v31 = vld [vmem:[%s472_s2 + $0x38] sm:$0xff]  ;;  %v101_v34 = vmax.f32 %v85_v23, %v93_v19  ;;  %v94_v35 = vld [vmem:[%s474_s4 + $0x30] sm:$0xff]  ;;  %v55_v36 = vmax.f32 %v39_v29, %v47_v30  ;;  %170 = vst [vmem:[%s479_s9 + $0x10] sm:$0xff] %v162_v26  ;;  %v125_v38 = vld [vmem:[%s476_s6 + $0x28] sm:$0xff] }
  0x15   :  { %v86_v39 = vmax.f32 %v70_v28, %v78_v25  ;;  %v79_v40 = vld [vmem:[%s473_s3 + $0x38] sm:$0xff]  ;;  %v163_v41 = vmax.f32 %v147_v32, %v155_v17  ;;  %v156_v42 = vld [vmem:[%s478_s8 + $0x20] sm:$0xff]  ;;  %v110_v44 = vld [vmem:[%s475_s5 + $0x30] sm:$0xff] }
  0x16   :  { %v132_v37 = vmax.f32 %v116_v27, %v124_v22  ;;  %v117_v43 = vmax.f32 %v101_v34, %v109_v24  ;;  %v71_v45 = vmax.f32 %v55_v36, %v63_v31  ;;  %v141_v47 = vld [vmem:[%s477_s7 + $0x28] sm:$0xff]  ;;  %v95_v49 = vld [vmem:[%s474_s4 + $0x38] sm:$0xff]  ;;  %v126_v51 = vld [vmem:[%s476_s6 + $0x30] sm:$0xff] }
  0x17   :  { %v102_v48 = vmax.f32 %v86_v39, %v94_v35  ;;  %171 = vst [vmem:[%s479_s9 + $0x18] sm:$0xff] %v163_v41  ;;  %v157_v54 = vld [vmem:[%s478_s8 + $0x28] sm:$0xff]  ;;  %v111_v56 = vld [vmem:[%s475_s5 + $0x38] sm:$0xff]  ;;  %v142_v58 = vld [vmem:[%s477_s7 + $0x30] sm:$0xff] }
  0x18   :  { %v148_v46 = vmax.f32 %v132_v37, %v140_v33  ;;  %v133_v50 = vmax.f32 %v117_v43, %v125_v38  ;;  %v87_v52 = vmax.f32 %v71_v45, %v79_v40  ;;  %v127_v61 = vld [vmem:[%s476_s6 + $0x38] sm:$0xff]  ;;  %v158_v63 = vld [vmem:[%s478_s8 + $0x30] sm:$0xff] }
  0x19   :  { %v118_v55 = vmax.f32 %v102_v48, %v110_v44  ;;  %v143_v2 = vld [vmem:[%s477_s7 + $0x38] sm:$0xff] }
  0x1a   :  { %v164_v53 = vmax.f32 %v148_v46, %v156_v42  ;;  %v149_v57 = vmax.f32 %v133_v50, %v141_v47  ;;  %v103_v59 = vmax.f32 %v87_v52, %v95_v49  ;;  %v159_v5 = vld [vmem:[%s478_s8 + $0x38] sm:$0xff] }
  0x1b   :  { %v134_v60 = vmax.f32 %v118_v55, %v126_v51 }
  0x1c   :  { %172 = vst [vmem:[%s479_s9 + $0x20] sm:$0xff] %v164_v53  ;;  %v165_v62 = vmax.f32 %v149_v57, %v157_v54  ;;  %v119_v0 = vmax.f32 %v103_v59, %v111_v56 }
  0x1d   :  { %v150_v1 = vmax.f32 %v134_v60, %v142_v58 }
  0x1e   :  { %173 = vst [vmem:[%s479_s9 + $0x28] sm:$0xff] %v165_v62  ;;  %v135_v3 = vmax.f32 %v119_v0, %v127_v61 }
  0x1f   :  { %v166_v4 = vmax.f32 %v150_v1, %v158_v63 }
  0x20   :  { %v151_v6 = vmax.f32 %v135_v3, %v143_v2 }
  0x21   :  { %174 = vst [vmem:[%s479_s9 + $0x30] sm:$0xff] %v166_v4 }
  0x22   :  { %v167_v7 = vmax.f32 %v151_v6, %v159_v5 }
  0x24   :  { %175 = vst [vmem:[%s479_s9 + $0x38] sm:$0xff] %v167_v7 }

// kernel: _lambda_.15
= control target key start
LH: loop header
LB: loop body
LE: loop exit
PB: predicated region body
PF: predicated region fallthrough
CT: control target
= control target key end

     0   :  { %12 = vsyncpa [#allocation4], 0  ;;  %v2059_v1 = vmov 0   ;;  %s2805_s0 = inlined_call_operand.vmem [shape: bf16[512,256], index: 0, kind: input, shape index: {}]   ;;  %s2806_s1 = inlined_call_operand.vmem [shape: bf16[256,128], index: 1, kind: input, shape index: {}]   ;;  %s2807_s2 = inlined_call_operand.vmem [shape: f32[1,128], index: 2, kind: input, shape index: {}]   ;;  %s2808_s3 = inlined_call_operand.vmem [shape: f32[1,128], index: 3, kind: input, shape index: {}]   ;;  %s2809_s4 = inlined_call_operand.hbm [shape: f32[512,128], index: 4, kind: output, shape index: {0}]   ;;  %s2810_s5 = inlined_call_operand.hbm [shape: f32[512,128], index: 5, kind: output, shape index: {1}]   ;;  %s2811_s6 = inlined_call_operand.vmem [shape: f32[512,128], index: 6, kind: output, shape index: {2}]  }
   0x1   :  { %v1897_v0 = vld [vmem:[%s2806_s1] sm:$0xff]   ;;  %667 = vmatprep.subr.bf16.mxu0 %v2059_v1  ;;  %1859 = vmatprep.subr.bf16.mxu1 %v2059_v1  ;;  %v1898_v2 = vld [vmem:[%s2806_s1 + $0x8] sm:$0xff]   ;;  %v1899_v3 = vld [vmem:[%s2806_s1 + $0x10] sm:$0xff]  }
   0x2   :  { %668 = vmatpush1.bf16.msra.mxu0 %v1897_v0  ;;  %1875 = vmatpush1.bf16.msra.mxu1 %v1897_v0  ;;  %v1900_v4 = vld [vmem:[%s2806_s1 + $0x18] sm:$0xff]   ;;  %v1901_v5 = vld [vmem:[%s2806_s1 + $0x20] sm:$0xff]   ;;  %v1902_v7 = vld [vmem:[%s2806_s1 + $0x28] sm:$0xff]  }
   0x3   :  { %669 = vmatprep.subr.bf16.mxu0 %v2059_v1  ;;  %1860 = vmatprep.subr.bf16.mxu1 %v2059_v1  ;;  %v1915_v6 = vld [vmem:[%s2805_s0 + $0x4] ss:$8 sps:$4 sm:$0xff]   ;;  %v1903_v9 = vld [vmem:[%s2806_s1 + $0x30] sm:$0xff]   ;;  %v1904_v10 = vld [vmem:[%s2806_s1 + $0x38] sm:$0xff]  }
   0x4   :  { %v1918_v8 = vld [vmem:[%s2805_s0 + $0x104] ss:$8 sps:$4 sm:$0xff]   ;;  %699 = vmatprep.mubr.bf16.mxu0 %v1915_v6  ;;  %v1907_v13 = vld [vmem:[%s2806_s1 + $0x50] sm:$0xff]   ;;  %v1908_v14 = vld [vmem:[%s2806_s1 + $0x58] sm:$0xff]  }
   0x5   :  { %827 = vmatprep.mubr.bf16.mxu1 %v1918_v8  ;;  %v1905_v11 = vld [vmem:[%s2806_s1 + $0x40] sm:$0xff]   ;;  %v1906_v12 = vld [vmem:[%s2806_s1 + $0x48] sm:$0xff]   ;;  %v1911_v17 = vld [vmem:[%s2806_s1 + $0x70] sm:$0xff]  }
   0x6   :  { %670 = vmatpush1.bf16.msra.mxu0 %v1898_v2  ;;  %1876 = vmatpush1.bf16.msra.mxu1 %v1898_v2  ;;  %v1909_v15 = vld [vmem:[%s2806_s1 + $0x60] sm:$0xff]   ;;  %v1910_v16 = vld [vmem:[%s2806_s1 + $0x68] sm:$0xff]   ;;  %v1912_v18 = vld [vmem:[%s2806_s1 + $0x78] sm:$0xff]  }
   0x7   :  { %671 = vmatprep.subr.bf16.mxu0 %v2059_v1  ;;  %1861 = vmatprep.subr.bf16.mxu1 %v2059_v1 }
   0xa   :  { %672 = vmatpush1.bf16.msra.mxu0 %v1899_v3  ;;  %1877 = vmatpush1.bf16.msra.mxu1 %v1899_v3 }
   0xb   :  { %673 = vmatprep.subr.bf16.mxu0 %v2059_v1  ;;  %1862 = vmatprep.subr.bf16.mxu1 %v2059_v1 }
   0xe   :  { %674 = vmatpush1.bf16.msra.mxu0 %v1900_v4  ;;  %1878 = vmatpush1.bf16.msra.mxu1 %v1900_v4 }
   0xf   :  { %675 = vmatprep.subr.bf16.mxu0 %v2059_v1  ;;  %1863 = vmatprep.subr.bf16.mxu1 %v2059_v1 }
  0x12   :  { %676 = vmatpush1.bf16.msra.mxu0 %v1901_v5  ;;  %1879 = vmatpush1.bf16.msra.mxu1 %v1901_v5 }
  0x13   :  { %677 = vmatprep.subr.bf16.mxu0 %v2059_v1  ;;  %1864 = vmatprep.subr.bf16.mxu1 %v2059_v1 }
  0x16   :  { %678 = vmatpush1.bf16.msra.mxu0 %v1902_v7  ;;  %1880 = vmatpush1.bf16.msra.mxu1 %v1902_v7 }
  0x17   :  { %679 = vmatprep.subr.bf16.mxu0 %v2059_v1  ;;  %1865 = vmatprep.subr.bf16.mxu1 %v2059_v1 }
  0x1a   :  { %680 = vmatpush1.bf16.msra.mxu0 %v1903_v9  ;;  %1881 = vmatpush1.bf16.msra.mxu1 %v1903_v9 }
  0x1b   :  { %681 = vmatprep.subr.bf16.mxu0 %v2059_v1  ;;  %1866 = vmatprep.subr.bf16.mxu1 %v2059_v1 }
  0x1e   :  { %682 = vmatpush1.bf16.msra.mxu0 %v1904_v10  ;;  %1882 = vmatpush1.bf16.msra.mxu1 %v1904_v10 }
  0x1f   :  { %683 = vmatprep.subr.bf16.mxu0 %v2059_v1  ;;  %1867 = vmatprep.subr.bf16.mxu1 %v2059_v1 }
  0x22   :  { %684 = vmatpush1.bf16.msra.mxu0 %v1905_v11  ;;  %1883 = vmatpush1.bf16.msra.mxu1 %v1905_v11 }
  0x23   :  { %685 = vmatprep.subr.bf16.mxu0 %v2059_v1  ;;  %1868 = vmatprep.subr.bf16.mxu1 %v2059_v1 }
  0x26   :  { %686 = vmatpush1.bf16.msra.mxu0 %v1906_v12  ;;  %1884 = vmatpush1.bf16.msra.mxu1 %v1906_v12 }
  0x27   :  { %687 = vmatprep.subr.bf16.mxu0 %v2059_v1  ;;  %1869 = vmatprep.subr.bf16.mxu1 %v2059_v1 }
  0x2a   :  { %688 = vmatpush1.bf16.msra.mxu0 %v1907_v13  ;;  %1885 = vmatpush1.bf16.msra.mxu1 %v1907_v13 }
  0x2b   :  { %689 = vmatprep.subr.bf16.mxu0 %v2059_v1  ;;  %1870 = vmatprep.subr.bf16.mxu1 %v2059_v1 }
  0x2e   :  { %690 = vmatpush1.bf16.msra.mxu0 %v1908_v14  ;;  %1886 = vmatpush1.bf16.msra.mxu1 %v1908_v14 }
  0x2f   :  { %691 = vmatprep.subr.bf16.mxu0 %v2059_v1  ;;  %1871 = vmatprep.subr.bf16.mxu1 %v2059_v1 }
  0x32   :  { %692 = vmatpush1.bf16.msra.mxu0 %v1909_v15  ;;  %1887 = vmatpush1.bf16.msra.mxu1 %v1909_v15 }
  0x33   :  { %693 = vmatprep.subr.bf16.mxu0 %v2059_v1  ;;  %1872 = vmatprep.subr.bf16.mxu1 %v2059_v1 }
  0x36   :  { %694 = vmatpush1.bf16.msra.mxu0 %v1910_v16  ;;  %1888 = vmatpush1.bf16.msra.mxu1 %v1910_v16 }
  0x37   :  { %695 = vmatprep.subr.bf16.mxu0 %v2059_v1  ;;  %1873 = vmatprep.subr.bf16.mxu1 %v2059_v1 }
  0x3a   :  { %696 = vmatpush1.bf16.msra.mxu0 %v1911_v17  ;;  %1889 = vmatpush1.bf16.msra.mxu1 %v1911_v17 }
  0x3b   :  { %13 = vsyncpa [#allocation6], 0  ;;  %697 = vmatprep.subr.bf16.mxu0 %v2059_v1  ;;  %1874 = vmatprep.subr.bf16.mxu1 %v2059_v1  ;;  %v1913_v19 = vld [vmem:[%s2805_s0] ss:$8 sps:$4 sm:$0xff]   ;;  %v1919_v21 = vld [vmem:[%s2805_s0 + $0x14] ss:$8 sps:$4 sm:$0xff]  }
  0x3c   :  { %v1916_v20 = vld [vmem:[%s2805_s0 + $0x100] ss:$8 sps:$4 sm:$0xff]   ;;  %v1921_v22 = vld [vmem:[%s2805_s0 + $0x114] ss:$8 sps:$4 sm:$0xff]   ;;  %v1923_v23 = vld [vmem:[%s2805_s0 + $0x10] ss:$8 sps:$4 sm:$0xff]  }
  0x3d   :  { %v1924_v24 = vld [vmem:[%s2805_s0 + $0x110] ss:$8 sps:$4 sm:$0xff]   ;;  %v1925_v25 = vld [vmem:[%s2805_s0 + $0x24] ss:$8 sps:$4 sm:$0xff]   ;;  %v1929_v27 = vld [vmem:[%s2805_s0 + $0x20] ss:$8 sps:$4 sm:$0xff]  }
  0x3e   :  { %698 = vmatpush1.bf16.msra.mxu0 %v1912_v18  ;;  %1890 = vmatpush1.bf16.msra.mxu1 %v1912_v18  ;;  %v1927_v26 = vld [vmem:[%s2805_s0 + $0x124] ss:$8 sps:$4 sm:$0xff]   ;;  %v1930_v28 = vld [vmem:[%s2805_s0 + $0x120] ss:$8 sps:$4 sm:$0xff]   ;;  %v1931_v29 = vld [vmem:[%s2805_s0 + $0x34] ss:$8 sps:$4 sm:$0xff]  }
  0x3f   :  { %v1933_v30 = vld [vmem:[%s2805_s0 + $0x134] ss:$8 sps:$4 sm:$0xff]   ;;  %v1935_v31 = vld [vmem:[%s2805_s0 + $0x30] ss:$8 sps:$4 sm:$0xff]   ;;  %v1937_v33 = vld [vmem:[%s2805_s0 + $0x44] ss:$8 sps:$4 sm:$0xff]  }
  0x40   :  { %v1936_v32 = vld [vmem:[%s2805_s0 + $0x130] ss:$8 sps:$4 sm:$0xff]   ;;  %v1939_v34 = vld [vmem:[%s2805_s0 + $0x144] ss:$8 sps:$4 sm:$0xff]   ;;  %v1941_v35 = vld [vmem:[%s2805_s0 + $0x40] ss:$8 sps:$4 sm:$0xff]  }
  0x41   :  { %700 = vmatmul.mubr.bf16.vlgmr.msra.gmra.mrb[0].mxu0 %v1913_v19  ;;  %828 = vmatmul.mubr.bf16.vlgmr.msra.gmra.mrb[0].mxu1 %v1916_v20  ;;  %v1942_v36 = vld [vmem:[%s2805_s0 + $0x140] ss:$8 sps:$4 sm:$0xff]   ;;  %v1943_v37 = vld [vmem:[%s2805_s0 + $0x54] ss:$8 sps:$4 sm:$0xff]   ;;  %v1947_v39 = vld [vmem:[%s2805_s0 + $0x50] ss:$8 sps:$4 sm:$0xff]  }
  0x42   :  { %707 = vmatprep.mubr.bf16.mxu0 %v1919_v21  ;;  %835 = vmatprep.mubr.bf16.mxu1 %v1921_v22  ;;  %v1945_v38 = vld [vmem:[%s2805_s0 + $0x154] ss:$8 sps:$4 sm:$0xff]   ;;  %v1948_v40 = vld [vmem:[%s2805_s0 + $0x150] ss:$8 sps:$4 sm:$0xff]   ;;  %v1949_v41 = vld [vmem:[%s2805_s0 + $0x64] ss:$8 sps:$4 sm:$0xff]  }
  0x43   :  { %v1951_v42 = vld [vmem:[%s2805_s0 + $0x164] ss:$8 sps:$4 sm:$0xff]   ;;  %v1953_v43 = vld [vmem:[%s2805_s0 + $0x60] ss:$8 sps:$4 sm:$0xff]   ;;  %v1955_v45 = vld [vmem:[%s2805_s0 + $0x74] ss:$8 sps:$4 sm:$0xff]  }
  0x44   :  { %v1954_v44 = vld [vmem:[%s2805_s0 + $0x160] ss:$8 sps:$4 sm:$0xff]   ;;  %v1957_v46 = vld [vmem:[%s2805_s0 + $0x174] ss:$8 sps:$4 sm:$0xff]   ;;  %v1959_v47 = vld [vmem:[%s2805_s0 + $0x70] ss:$8 sps:$4 sm:$0xff]  }
  0x45   :  { %v1960_v48 = vld [vmem:[%s2805_s0 + $0x170] ss:$8 sps:$4 sm:$0xff]   ;;  %v1961_v49 = vld [vmem:[%s2805_s0 + $0x84] ss:$8 sps:$4 sm:$0xff]   ;;  %v1965_v51 = vld [vmem:[%s2805_s0 + $0x80] ss:$8 sps:$4 sm:$0xff]  }
  0x46   :  { %v1963_v50 = vld [vmem:[%s2805_s0 + $0x184] ss:$8 sps:$4 sm:$0xff]   ;;  %v1966_v52 = vld [vmem:[%s2805_s0 + $0x180] ss:$8 sps:$4 sm:$0xff]   ;;  %v1967_v53 = vld [vmem:[%s2805_s0 + $0x94] ss:$8 sps:$4 sm:$0xff]  }
  0x47   :  { %v1969_v54 = vld [vmem:[%s2805_s0 + $0x194] ss:$8 sps:$4 sm:$0xff]   ;;  %v1971_v55 = vld [vmem:[%s2805_s0 + $0x90] ss:$8 sps:$4 sm:$0xff]   ;;  %v1973_v57 = vld [vmem:[%s2805_s0 + $0xa4] ss:$8 sps:$4 sm:$0xff]  }
  0x48   :  { %v1972_v56 = vld [vmem:[%s2805_s0 + $0x190] ss:$8 sps:$4 sm:$0xff]   ;;  %v1975_v58 = vld [vmem:[%s2805_s0 + $0x1a4] ss:$8 sps:$4 sm:$0xff]   ;;  %v1977_v59 = vld [vmem:[%s2805_s0 + $0xa0] ss:$8 sps:$4 sm:$0xff]  }
  0x49   :  { %708 = vmatmul.mubr.bf16.gmra.mrb[4].mxu0 %v1923_v23  ;;  %836 = vmatmul.mubr.bf16.gmra.mrb[4].mxu1 %v1924_v24  ;;  %v1978_v60 = vld [vmem:[%s2805_s0 + $0x1a0] ss:$8 sps:$4 sm:$0xff]   ;;  %v1979_v61 = vld [vmem:[%s2805_s0 + $0xb4] ss:$8 sps:$4 sm:$0xff]   ;;  %v1983_v63 = vld [vmem:[%s2805_s0 + $0xb0] ss:$8 sps:$4 sm:$0xff]  }
  0x4a   :  { %715 = vmatprep.mubr.bf16.mxu0 %v1925_v25  ;;  %843 = vmatprep.mubr.bf16.mxu1 %v1927_v26  ;;  %v1981_v62 = vld [vmem:[%s2805_s0 + $0x1b4] ss:$8 sps:$4 sm:$0xff]   ;;  %v1984_v0 = vld [vmem:[%s2805_s0 + $0x1b0] ss:$8 sps:$4 sm:$0xff]   ;;  %v1985_v1 = vld [vmem:[%s2805_s0 + $0xc4] ss:$8 sps:$4 sm:$0xff]  }
  0x4b   :  { %v1987_v2 = vld [vmem:[%s2805_s0 + $0x1c4] ss:$8 sps:$4 sm:$0xff]   ;;  %v1989_v3 = vld [vmem:[%s2805_s0 + $0xc0] ss:$8 sps:$4 sm:$0xff]   ;;  %v1991_v5 = vld [vmem:[%s2805_s0 + $0xd4] ss:$8 sps:$4 sm:$0xff]  }
  0x4c   :  { %v1990_v4 = vld [vmem:[%s2805_s0 + $0x1c0] ss:$8 sps:$4 sm:$0xff]   ;;  %v1993_v6 = vld [vmem:[%s2805_s0 + $0x1d4] ss:$8 sps:$4 sm:$0xff]   ;;  %v1995_v7 = vld [vmem:[%s2805_s0 + $0xd0] ss:$8 sps:$4 sm:$0xff]  }
  0x4d   :  { %v1996_v8 = vld [vmem:[%s2805_s0 + $0x1d0] ss:$8 sps:$4 sm:$0xff]   ;;  %v1997_v9 = vld [vmem:[%s2805_s0 + $0xe4] ss:$8 sps:$4 sm:$0xff]   ;;  %v2001_v11 = vld [vmem:[%s2805_s0 + $0xe0] ss:$8 sps:$4 sm:$0xff]  }
  0x4e   :  { %v1999_v10 = vld [vmem:[%s2805_s0 + $0x1e4] ss:$8 sps:$4 sm:$0xff]   ;;  %v2002_v12 = vld [vmem:[%s2805_s0 + $0x1e0] ss:$8 sps:$4 sm:$0xff]   ;;  %v2003_v13 = vld [vmem:[%s2805_s0 + $0xf4] ss:$8 sps:$4 sm:$0xff]  }
  0x4f   :  { %v2005_v14 = vld [vmem:[%s2805_s0 + $0x1f4] ss:$8 sps:$4 sm:$0xff]   ;;  %v2007_v15 = vld [vmem:[%s2805_s0 + $0xf0] ss:$8 sps:$4 sm:$0xff]   ;;  %v2375_v17 = vld [vmem:[%s2807_s2] ss:$0 sm:$0xff] }
  0x50   :  { %v2008_v16 = vld [vmem:[%s2805_s0 + $0x1f0] ss:$8 sps:$4 sm:$0xff]   ;;  %v2380_v19 = vld [vmem:[%s2808_s3] ss:$0 sm:$0xff]  ;;  %s2062_s30 = smov [#allocation5]  }
  0x51   :  { %716 = vmatmul.mubr.bf16.gmra.mrb[8].mxu0 %v1929_v27  ;;  %844 = vmatmul.mubr.bf16.gmra.mrb[8].mxu1 %v1930_v28  ;;  %s1694_s7 = sshll.u32 %s2062_s30, 4  ;;  %s1695_s7 = int_to_ptr.vmem [resolvable:$true] %s1694_s7 }
  0x52   :  { %723 = vmatprep.mubr.bf16.mxu0 %v1931_v29  ;;  %851 = vmatprep.mubr.bf16.mxu1 %v1933_v30 }
  0x59   :  { %724 = vmatmul.mubr.bf16.gmra.mrb[12].mxu0 %v1935_v31  ;;  %852 = vmatmul.mubr.bf16.gmra.mrb[12].mxu1 %v1936_v32 }
  0x5a   :  { %731 = vmatprep.mubr.bf16.mxu0 %v1937_v33  ;;  %859 = vmatprep.mubr.bf16.mxu1 %v1939_v34 }
  0x61   :  { %732 = vmatmul.mubr.bf16.gmra.mrb[16].mxu0 %v1941_v35  ;;  %860 = vmatmul.mubr.bf16.gmra.mrb[16].mxu1 %v1942_v36  ;;  %v2060_v35 = vmov 0.0  }
  0x62   :  { %739 = vmatprep.mubr.bf16.mxu0 %v1943_v37  ;;  %867 = vmatprep.mubr.bf16.mxu1 %v1945_v38 }
  0x69   :  { %740 = vmatmul.mubr.bf16.gmra.mrb[20].mxu0 %v1947_v39  ;;  %868 = vmatmul.mubr.bf16.gmra.mrb[20].mxu1 %v1948_v40 }
  0x6a   :  { %747 = vmatprep.mubr.bf16.mxu0 %v1949_v41  ;;  %875 = vmatprep.mubr.bf16.mxu1 %v1951_v42 }
  0x71   :  { %748 = vmatmul.mubr.bf16.gmra.mrb[24].mxu0 %v1953_v43  ;;  %876 = vmatmul.mubr.bf16.gmra.mrb[24].mxu1 %v1954_v44 }
  0x72   :  { %755 = vmatprep.mubr.bf16.mxu0 %v1955_v45  ;;  %883 = vmatprep.mubr.bf16.mxu1 %v1957_v46 }
  0x79   :  { %756 = vmatmul.mubr.bf16.gmra.mrb[28].mxu0 %v1959_v47  ;;  %884 = vmatmul.mubr.bf16.gmra.mrb[28].mxu1 %v1960_v48 }
  0x7a   :  { %763 = vmatprep.mubr.bf16.mxu0 %v1961_v49  ;;  %891 = vmatprep.mubr.bf16.mxu1 %v1963_v50 }
  0x81   :  { %764 = vmatmul.mubr.bf16.gmra.mrb[32].mxu0 %v1965_v51  ;;  %892 = vmatmul.mubr.bf16.gmra.mrb[32].mxu1 %v1966_v52 }
  0x82   :  { %771 = vmatprep.mubr.bf16.mxu0 %v1967_v53  ;;  %899 = vmatprep.mubr.bf16.mxu1 %v1969_v54 }
  0x89   :  { %772 = vmatmul.mubr.bf16.gmra.mrb[36].mxu0 %v1971_v55  ;;  %900 = vmatmul.mubr.bf16.gmra.mrb[36].mxu1 %v1972_v56 }
  0x8a   :  { %779 = vmatprep.mubr.bf16.mxu0 %v1973_v57  ;;  %907 = vmatprep.mubr.bf16.mxu1 %v1975_v58 }
  0x91   :  { %780 = vmatmul.mubr.bf16.gmra.mrb[40].mxu0 %v1977_v59  ;;  %908 = vmatmul.mubr.bf16.gmra.mrb[40].mxu1 %v1978_v60 }
  0x92   :  { %787 = vmatprep.mubr.bf16.mxu0 %v1979_v61  ;;  %915 = vmatprep.mubr.bf16.mxu1 %v1981_v62 }
  0x99   :  { %788 = vmatmul.mubr.bf16.gmra.mrb[44].mxu0 %v1983_v63  ;;  %916 = vmatmul.mubr.bf16.gmra.mrb[44].mxu1 %v1984_v0 }
  0x9a   :  { %795 = vmatprep.mubr.bf16.mxu0 %v1985_v1  ;;  %923 = vmatprep.mubr.bf16.mxu1 %v1987_v2 }
  0xa1   :  { %796 = vmatmul.mubr.bf16.gmra.mrb[48].mxu0 %v1989_v3  ;;  %924 = vmatmul.mubr.bf16.gmra.mrb[48].mxu1 %v1990_v4 }
  0xa2   :  { %803 = vmatprep.mubr.bf16.mxu0 %v1991_v5  ;;  %931 = vmatprep.mubr.bf16.mxu1 %v1993_v6 }
  0xa9   :  { %804 = vmatmul.mubr.bf16.gmra.mrb[52].mxu0 %v1995_v7  ;;  %932 = vmatmul.mubr.bf16.gmra.mrb[52].mxu1 %v1996_v8 }
  0xaa   :  { %811 = vmatprep.mubr.bf16.mxu0 %v1997_v9  ;;  %939 = vmatprep.mubr.bf16.mxu1 %v1999_v10 }
  0xb1   :  { %812 = vmatmul.mubr.bf16.gmra.mrb[56].mxu0 %v2001_v11  ;;  %940 = vmatmul.mubr.bf16.gmra.mrb[56].mxu1 %v2002_v12 }
  0xb2   :  { %819 = vmatprep.mubr.bf16.mxu0 %v2003_v13  ;;  %947 = vmatprep.mubr.bf16.mxu1 %v2005_v14 }
  0xb9   :  { %820 = vmatmul.mubr.bf16.gmra.mrb[60].mxu0 %v2007_v15  ;;  %948 = vmatmul.mubr.bf16.gmra.mrb[60].mxu1 %v2008_v16 }
 0x114   :  { %v701_v18 = vpop.f32.mrb[0].mxu0  ;;  %v829_v20 = vpop.f32.mrb[0].mxu1 }
 0x115   :  { %v1158_v21 = vmul.f32 %v2375_v17, %v701_v18  ;;  %1293 = vst [vmem:[#allocation3] sm:$0xff] %v701_v18  ;;  %v1190_v22 = vmul.f32 %v2375_v17, %v829_v20  ;;  %1325 = vst [vmem:[#allocation3 + $0x100] sm:$0xff] %v829_v20  ;;  %v703_v23 = vpop.f32.mrb[1].mxu0  ;;  %v831_v24 = vpop.f32.mrb[1].mxu1 }
 0x116   :  { %v704_v25 = vpop.f32.mrb[2].mxu0  ;;  %v832_v26 = vpop.f32.mrb[2].mxu1 }
 0x117   :  { %v1229_v27 = vadd.f32 %v2380_v19, %v1158_v21  ;;  %v1261_v28 = vadd.f32 %v2380_v19, %v1190_v22  ;;  %v1159_v29 = vmul.f32 %v2375_v17, %v704_v25  ;;  %1294 = vst [vmem:[#allocation3 + $0x8] sm:$0xff] %v704_v25  ;;  %v1191_v30 = vmul.f32 %v2375_v17, %v832_v26  ;;  %v706_v31 = vpop.f32.mrb[3].mxu0  ;;  %v834_v32 = vpop.f32.mrb[3].mxu1 }
 0x118   :  { %1326 = vst [vmem:[#allocation3 + $0x108] sm:$0xff] %v832_v26 }
 0x119   :  { %1357 = vst [vmem:[#allocation5] sm:$0xff] %v1229_v27  ;;  %vm1421_vm0 = vcmp.ge.f32.partialorder %v1229_v27, 1.0  ;;  %1389 = vst [vmem:[#allocation5 + $0x100] sm:$0xff] %v1261_v28  ;;  %vm1453_vm1 = vcmp.ge.f32.partialorder %v1261_v28, 1.0  ;;  %v1230_v33 = vadd.f32 %v2380_v19, %v1159_v29  ;;  %v1262_v34 = vadd.f32 %v2380_v19, %v1191_v30 }
 0x11a   :  { %v1795_v36 = vsel %vm1421_vm0, 1.0, %v2060_v35  ;;  %v1827_v37 = vsel %vm1453_vm1, 1.0, %v2060_v35 }
 0x11b   :  { %1613 = vst [vmem:[%s2811_s6] sm:$0xff] %v1795_v36  ;;  %1645 = vst [vmem:[%s2811_s6 + $0x100] sm:$0xff] %v1827_v37  ;;  %vm1422_vm2 = vcmp.ge.f32.partialorder %v1230_v33, 1.0  ;;  %vm1454_vm3 = vcmp.ge.f32.partialorder %v1262_v34, 1.0 }
 0x11c   :  { %1358 = vst [vmem:[#allocation5 + $0x8] sm:$0xff] %v1230_v33  ;;  %1390 = vst [vmem:[#allocation5 + $0x108] sm:$0xff] %v1262_v34  ;;  %v1796_v38 = vsel %vm1422_vm2, 1.0, %v2060_v35  ;;  %v1828_v39 = vsel %vm1454_vm3, 1.0, %v2060_v35  ;;  %v709_v40 = vpop.f32.mrb[4].mxu0  ;;  %v837_v41 = vpop.f32.mrb[4].mxu1 }
 0x11d   :  { %1614 = vst [vmem:[%s2811_s6 + $0x8] sm:$0xff] %v1796_v38  ;;  %1646 = vst [vmem:[%s2811_s6 + $0x108] sm:$0xff] %v1828_v39  ;;  %v1160_v42 = vmul.f32 %v2375_v17, %v709_v40  ;;  %v1192_v43 = vmul.f32 %v2375_v17, %v837_v41  ;;  %v711_v44 = vpop.f32.mrb[5].mxu0  ;;  %v839_v45 = vpop.f32.mrb[5].mxu1 }
 0x11e   :  { %1295 = vst [vmem:[#allocation3 + $0x10] sm:$0xff] %v709_v40  ;;  %1327 = vst [vmem:[#allocation3 + $0x110] sm:$0xff] %v837_v41  ;;  %v712_v46 = vpop.f32.mrb[6].mxu0  ;;  %v840_v47 = vpop.f32.mrb[6].mxu1 }
 0x11f   :  { %v1231_v48 = vadd.f32 %v2380_v19, %v1160_v42  ;;  %v1263_v49 = vadd.f32 %v2380_v19, %v1192_v43  ;;  %v1161_v50 = vmul.f32 %v2375_v17, %v712_v46  ;;  %1296 = vst [vmem:[#allocation3 + $0x18] sm:$0xff] %v712_v46  ;;  %v1193_v51 = vmul.f32 %v2375_v17, %v840_v47  ;;  %v714_v52 = vpop.f32.mrb[7].mxu0  ;;  %v842_v53 = vpop.f32.mrb[7].mxu1 }
 0x120   :  { %1328 = vst [vmem:[#allocation3 + $0x118] sm:$0xff] %v840_v47 }
 0x121   :  { %1359 = vst [vmem:[#allocation5 + $0x10] sm:$0xff] %v1231_v48  ;;  %vm1423_vm4 = vcmp.ge.f32.partialorder %v1231_v48, 1.0  ;;  %1391 = vst [vmem:[#allocation5 + $0x110] sm:$0xff] %v1263_v49  ;;  %vm1455_vm5 = vcmp.ge.f32.partialorder %v1263_v49, 1.0  ;;  %v1232_v54 = vadd.f32 %v2380_v19, %v1161_v50  ;;  %v1264_v55 = vadd.f32 %v2380_v19, %v1193_v51 }
 0x122   :  { %v1797_v56 = vsel %vm1423_vm4, 1.0, %v2060_v35  ;;  %v1829_v57 = vsel %vm1455_vm5, 1.0, %v2060_v35 }
 0x123   :  { %1615 = vst [vmem:[%s2811_s6 + $0x10] sm:$0xff] %v1797_v56  ;;  %1647 = vst [vmem:[%s2811_s6 + $0x110] sm:$0xff] %v1829_v57  ;;  %vm1424_vm6 = vcmp.ge.f32.partialorder %v1232_v54, 1.0  ;;  %vm1456_vm7 = vcmp.ge.f32.partialorder %v1264_v55, 1.0 }
 0x124   :  { %1360 = vst [vmem:[#allocation5 + $0x18] sm:$0xff] %v1232_v54  ;;  %1392 = vst [vmem:[#allocation5 + $0x118] sm:$0xff] %v1264_v55  ;;  %v1798_v58 = vsel %vm1424_vm6, 1.0, %v2060_v35  ;;  %v1830_v59 = vsel %vm1456_vm7, 1.0, %v2060_v35  ;;  %v717_v60 = vpop.f32.mrb[8].mxu0  ;;  %v845_v61 = vpop.f32.mrb[8].mxu1 }
 0x125   :  { %1616 = vst [vmem:[%s2811_s6 + $0x18] sm:$0xff] %v1798_v58  ;;  %1648 = vst [vmem:[%s2811_s6 + $0x118] sm:$0xff] %v1830_v59  ;;  %v1162_v62 = vmul.f32 %v2375_v17, %v717_v60  ;;  %v1194_v63 = vmul.f32 %v2375_v17, %v845_v61  ;;  %v719_v0 = vpop.f32.mrb[9].mxu0  ;;  %v847_v1 = vpop.f32.mrb[9].mxu1 }
 0x126   :  { %1297 = vst [vmem:[#allocation3 + $0x20] sm:$0xff] %v717_v60  ;;  %1329 = vst [vmem:[#allocation3 + $0x120] sm:$0xff] %v845_v61  ;;  %v720_v2 = vpop.f32.mrb[10].mxu0  ;;  %v848_v3 = vpop.f32.mrb[10].mxu1 }
 0x127   :  { %v1233_v4 = vadd.f32 %v2380_v19, %v1162_v62  ;;  %v1265_v5 = vadd.f32 %v2380_v19, %v1194_v63  ;;  %v1163_v6 = vmul.f32 %v2375_v17, %v720_v2  ;;  %1298 = vst [vmem:[#allocation3 + $0x28] sm:$0xff] %v720_v2  ;;  %v1195_v7 = vmul.f32 %v2375_v17, %v848_v3  ;;  %v722_v8 = vpop.f32.mrb[11].mxu0  ;;  %v850_v9 = vpop.f32.mrb[11].mxu1 }
 0x128   :  { %1330 = vst [vmem:[#allocation3 + $0x128] sm:$0xff] %v848_v3 }
 0x129   :  { %1361 = vst [vmem:[#allocation5 + $0x20] sm:$0xff] %v1233_v4  ;;  %vm1425_vm8 = vcmp.ge.f32.partialorder %v1233_v4, 1.0  ;;  %1393 = vst [vmem:[#allocation5 + $0x120] sm:$0xff] %v1265_v5  ;;  %vm1457_vm9 = vcmp.ge.f32.partialorder %v1265_v5, 1.0  ;;  %v1234_v10 = vadd.f32 %v2380_v19, %v1163_v6  ;;  %v1266_v11 = vadd.f32 %v2380_v19, %v1195_v7 }
 0x12a   :  { %v1799_v12 = vsel %vm1425_vm8, 1.0, %v2060_v35  ;;  %v1831_v13 = vsel %vm1457_vm9, 1.0, %v2060_v35 }
 0x12b   :  { %1617 = vst [vmem:[%s2811_s6 + $0x20] sm:$0xff] %v1799_v12  ;;  %1649 = vst [vmem:[%s2811_s6 + $0x120] sm:$0xff] %v1831_v13  ;;  %vm1426_vm10 = vcmp.ge.f32.partialorder %v1234_v10, 1.0  ;;  %vm1458_vm11 = vcmp.ge.f32.partialorder %v1266_v11, 1.0 }
 0x12c   :  { %1362 = vst [vmem:[#allocation5 + $0x28] sm:$0xff] %v1234_v10  ;;  %1394 = vst [vmem:[#allocation5 + $0x128] sm:$0xff] %v1266_v11  ;;  %v1800_v14 = vsel %vm1426_vm10, 1.0, %v2060_v35  ;;  %v1832_v15 = vsel %vm1458_vm11, 1.0, %v2060_v35  ;;  %v725_v16 = vpop.f32.mrb[12].mxu0  ;;  %v853_v18 = vpop.f32.mrb[12].mxu1 }
 0x12d   :  { %1618 = vst [vmem:[%s2811_s6 + $0x28] sm:$0xff] %v1800_v14  ;;  %1650 = vst [vmem:[%s2811_s6 + $0x128] sm:$0xff] %v1832_v15  ;;  %v1164_v20 = vmul.f32 %v2375_v17, %v725_v16  ;;  %v1196_v21 = vmul.f32 %v2375_v17, %v853_v18  ;;  %v727_v22 = vpop.f32.mrb[13].mxu0  ;;  %v855_v23 = vpop.f32.mrb[13].mxu1 }
 0x12e   :  { %1299 = vst [vmem:[#allocation3 + $0x30] sm:$0xff] %v725_v16  ;;  %1331 = vst [vmem:[#allocation3 + $0x130] sm:$0xff] %v853_v18  ;;  %v728_v24 = vpop.f32.mrb[14].mxu0  ;;  %v856_v25 = vpop.f32.mrb[14].mxu1 }
 0x12f   :  { %v1235_v26 = vadd.f32 %v2380_v19, %v1164_v20  ;;  %v1267_v27 = vadd.f32 %v2380_v19, %v1196_v21  ;;  %v1165_v28 = vmul.f32 %v2375_v17, %v728_v24  ;;  %1300 = vst [vmem:[#allocation3 + $0x38] sm:$0xff] %v728_v24  ;;  %v1197_v29 = vmul.f32 %v2375_v17, %v856_v25  ;;  %v730_v30 = vpop.f32.mrb[15].mxu0  ;;  %v858_v31 = vpop.f32.mrb[15].mxu1 }
 0x130   :  { %1332 = vst [vmem:[#allocation3 + $0x138] sm:$0xff] %v856_v25 }
 0x131   :  { %1363 = vst [vmem:[#allocation5 + $0x30] sm:$0xff] %v1235_v26  ;;  %vm1427_vm12 = vcmp.ge.f32.partialorder %v1235_v26, 1.0  ;;  %1395 = vst [vmem:[#allocation5 + $0x130] sm:$0xff] %v1267_v27  ;;  %vm1459_vm13 = vcmp.ge.f32.partialorder %v1267_v27, 1.0  ;;  %v1236_v32 = vadd.f32 %v2380_v19, %v1165_v28  ;;  %v1268_v33 = vadd.f32 %v2380_v19, %v1197_v29 }
 0x132   :  { %v1801_v34 = vsel %vm1427_vm12, 1.0, %v2060_v35  ;;  %v1833_v36 = vsel %vm1459_vm13, 1.0, %v2060_v35 }
 0x133   :  { %1619 = vst [vmem:[%s2811_s6 + $0x30] sm:$0xff] %v1801_v34  ;;  %1651 = vst [vmem:[%s2811_s6 + $0x130] sm:$0xff] %v1833_v36  ;;  %vm1428_vm14 = vcmp.ge.f32.partialorder %v1236_v32, 1.0  ;;  %vm1460_vm15 = vcmp.ge.f32.partialorder %v1268_v33, 1.0 }
 0x134   :  { %1364 = vst [vmem:[#allocation5 + $0x38] sm:$0xff] %v1236_v32  ;;  %1396 = vst [vmem:[#allocation5 + $0x138] sm:$0xff] %v1268_v33  ;;  %v1802_v37 = vsel %vm1428_vm14, 1.0, %v2060_v35  ;;  %v1834_v38 = vsel %vm1460_vm15, 1.0, %v2060_v35  ;;  %v733_v39 = vpop.f32.mrb[16].mxu0  ;;  %v861_v40 = vpop.f32.mrb[16].mxu1 }
 0x135   :  { %1620 = vst [vmem:[%s2811_s6 + $0x38] sm:$0xff] %v1802_v37  ;;  %1652 = vst [vmem:[%s2811_s6 + $0x138] sm:$0xff] %v1834_v38  ;;  %v1166_v41 = vmul.f32 %v2375_v17, %v733_v39  ;;  %v1198_v42 = vmul.f32 %v2375_v17, %v861_v40  ;;  %v735_v43 = vpop.f32.mrb[17].mxu0  ;;  %v863_v44 = vpop.f32.mrb[17].mxu1 }
 0x136   :  { %1301 = vst [vmem:[#allocation3 + $0x40] sm:$0xff] %v733_v39  ;;  %1333 = vst [vmem:[#allocation3 + $0x140] sm:$0xff] %v861_v40  ;;  %v736_v45 = vpop.f32.mrb[18].mxu0  ;;  %v864_v46 = vpop.f32.mrb[18].mxu1 }
 0x137   :  { %v1237_v47 = vadd.f32 %v2380_v19, %v1166_v41  ;;  %v1269_v48 = vadd.f32 %v2380_v19, %v1198_v42  ;;  %v1167_v49 = vmul.f32 %v2375_v17, %v736_v45  ;;  %1302 = vst [vmem:[#allocation3 + $0x48] sm:$0xff] %v736_v45  ;;  %v1199_v50 = vmul.f32 %v2375_v17, %v864_v46  ;;  %v738_v51 = vpop.f32.mrb[19].mxu0  ;;  %v866_v52 = vpop.f32.mrb[19].mxu1 }
 0x138   :  { %1334 = vst [vmem:[#allocation3 + $0x148] sm:$0xff] %v864_v46 }
 0x139   :  { %1365 = vst [vmem:[#allocation5 + $0x40] sm:$0xff] %v1237_v47  ;;  %vm1429_vm0 = vcmp.ge.f32.partialorder %v1237_v47, 1.0  ;;  %1397 = vst [vmem:[#allocation5 + $0x140] sm:$0xff] %v1269_v48  ;;  %vm1461_vm1 = vcmp.ge.f32.partialorder %v1269_v48, 1.0  ;;  %v1238_v53 = vadd.f32 %v2380_v19, %v1167_v49  ;;  %v1270_v54 = vadd.f32 %v2380_v19, %v1199_v50 }
 0x13a   :  { %v1803_v55 = vsel %vm1429_vm0, 1.0, %v2060_v35  ;;  %v1835_v56 = vsel %vm1461_vm1, 1.0, %v2060_v35 }
 0x13b   :  { %1621 = vst [vmem:[%s2811_s6 + $0x40] sm:$0xff] %v1803_v55  ;;  %1653 = vst [vmem:[%s2811_s6 + $0x140] sm:$0xff] %v1835_v56  ;;  %vm1430_vm2 = vcmp.ge.f32.partialorder %v1238_v53, 1.0  ;;  %vm1462_vm3 = vcmp.ge.f32.partialorder %v1270_v54, 1.0 }
 0x13c   :  { %1366 = vst [vmem:[#allocation5 + $0x48] sm:$0xff] %v1238_v53  ;;  %1398 = vst [vmem:[#allocation5 + $0x148] sm:$0xff] %v1270_v54  ;;  %v1804_v57 = vsel %vm1430_vm2, 1.0, %v2060_v35  ;;  %v1836_v58 = vsel %vm1462_vm3, 1.0, %v2060_v35  ;;  %v741_v59 = vpop.f32.mrb[20].mxu0  ;;  %v869_v60 = vpop.f32.mrb[20].mxu1 }
 0x13d   :  { %1622 = vst [vmem:[%s2811_s6 + $0x48] sm:$0xff] %v1804_v57  ;;  %1654 = vst [vmem:[%s2811_s6 + $0x148] sm:$0xff] %v1836_v58  ;;  %v1168_v61 = vmul.f32 %v2375_v17, %v741_v59  ;;  %v1200_v62 = vmul.f32 %v2375_v17, %v869_v60  ;;  %v743_v63 = vpop.f32.mrb[21].mxu0  ;;  %v871_v0 = vpop.f32.mrb[21].mxu1 }
 0x13e   :  { %1303 = vst [vmem:[#allocation3 + $0x50] sm:$0xff] %v741_v59  ;;  %1335 = vst [vmem:[#allocation3 + $0x150] sm:$0xff] %v869_v60  ;;  %v744_v1 = vpop.f32.mrb[22].mxu0  ;;  %v872_v2 = vpop.f32.mrb[22].mxu1 }
 0x13f   :  { %v1239_v3 = vadd.f32 %v2380_v19, %v1168_v61  ;;  %v1271_v4 = vadd.f32 %v2380_v19, %v1200_v62  ;;  %v1169_v5 = vmul.f32 %v2375_v17, %v744_v1  ;;  %1304 = vst [vmem:[#allocation3 + $0x58] sm:$0xff] %v744_v1  ;;  %v1201_v6 = vmul.f32 %v2375_v17, %v872_v2  ;;  %v746_v7 = vpop.f32.mrb[23].mxu0  ;;  %v874_v8 = vpop.f32.mrb[23].mxu1 }
 0x140   :  { %1336 = vst [vmem:[#allocation3 + $0x158] sm:$0xff] %v872_v2 }
 0x141   :  { %1367 = vst [vmem:[#allocation5 + $0x50] sm:$0xff] %v1239_v3  ;;  %vm1431_vm4 = vcmp.ge.f32.partialorder %v1239_v3, 1.0  ;;  %1399 = vst [vmem:[#allocation5 + $0x150] sm:$0xff] %v1271_v4  ;;  %vm1463_vm5 = vcmp.ge.f32.partialorder %v1271_v4, 1.0  ;;  %v1240_v9 = vadd.f32 %v2380_v19, %v1169_v5  ;;  %v1272_v10 = vadd.f32 %v2380_v19, %v1201_v6 }
 0x142   :  { %v1805_v11 = vsel %vm1431_vm4, 1.0, %v2060_v35  ;;  %v1837_v12 = vsel %vm1463_vm5, 1.0, %v2060_v35 }
 0x143   :  { %1623 = vst [vmem:[%s2811_s6 + $0x50] sm:$0xff] %v1805_v11  ;;  %1655 = vst [vmem:[%s2811_s6 + $0x150] sm:$0xff] %v1837_v12  ;;  %vm1432_vm6 = vcmp.ge.f32.partialorder %v1240_v9, 1.0  ;;  %vm1464_vm7 = vcmp.ge.f32.partialorder %v1272_v10, 1.0 }
 0x144   :  { %1368 = vst [vmem:[#allocation5 + $0x58] sm:$0xff] %v1240_v9  ;;  %1400 = vst [vmem:[#allocation5 + $0x158] sm:$0xff] %v1272_v10  ;;  %v1806_v13 = vsel %vm1432_vm6, 1.0, %v2060_v35  ;;  %v1838_v14 = vsel %vm1464_vm7, 1.0, %v2060_v35  ;;  %v749_v15 = vpop.f32.mrb[24].mxu0  ;;  %v877_v16 = vpop.f32.mrb[24].mxu1 }
 0x145   :  { %1624 = vst [vmem:[%s2811_s6 + $0x58] sm:$0xff] %v1806_v13  ;;  %1656 = vst [vmem:[%s2811_s6 + $0x158] sm:$0xff] %v1838_v14  ;;  %v1170_v18 = vmul.f32 %v2375_v17, %v749_v15  ;;  %v1202_v20 = vmul.f32 %v2375_v17, %v877_v16  ;;  %v751_v21 = vpop.f32.mrb[25].mxu0  ;;  %v879_v22 = vpop.f32.mrb[25].mxu1 }
 0x146   :  { %1305 = vst [vmem:[#allocation3 + $0x60] sm:$0xff] %v749_v15  ;;  %1337 = vst [vmem:[#allocation3 + $0x160] sm:$0xff] %v877_v16  ;;  %v752_v23 = vpop.f32.mrb[26].mxu0  ;;  %v880_v24 = vpop.f32.mrb[26].mxu1 }
 0x147   :  { %v1241_v25 = vadd.f32 %v2380_v19, %v1170_v18  ;;  %v1273_v26 = vadd.f32 %v2380_v19, %v1202_v20  ;;  %v1171_v27 = vmul.f32 %v2375_v17, %v752_v23  ;;  %1306 = vst [vmem:[#allocation3 + $0x68] sm:$0xff] %v752_v23  ;;  %v1203_v28 = vmul.f32 %v2375_v17, %v880_v24  ;;  %v754_v29 = vpop.f32.mrb[27].mxu0  ;;  %v882_v30 = vpop.f32.mrb[27].mxu1 }
 0x148   :  { %1338 = vst [vmem:[#allocation3 + $0x168] sm:$0xff] %v880_v24 }
 0x149   :  { %1369 = vst [vmem:[#allocation5 + $0x60] sm:$0xff] %v1241_v25  ;;  %vm1433_vm8 = vcmp.ge.f32.partialorder %v1241_v25, 1.0  ;;  %1401 = vst [vmem:[#allocation5 + $0x160] sm:$0xff] %v1273_v26  ;;  %vm1465_vm9 = vcmp.ge.f32.partialorder %v1273_v26, 1.0  ;;  %v1242_v31 = vadd.f32 %v2380_v19, %v1171_v27  ;;  %v1274_v32 = vadd.f32 %v2380_v19, %v1203_v28 }
 0x14a   :  { %v1807_v33 = vsel %vm1433_vm8, 1.0, %v2060_v35  ;;  %v1839_v34 = vsel %vm1465_vm9, 1.0, %v2060_v35 }
 0x14b   :  { %1625 = vst [vmem:[%s2811_s6 + $0x60] sm:$0xff] %v1807_v33  ;;  %1657 = vst [vmem:[%s2811_s6 + $0x160] sm:$0xff] %v1839_v34  ;;  %vm1434_vm10 = vcmp.ge.f32.partialorder %v1242_v31, 1.0  ;;  %vm1466_vm11 = vcmp.ge.f32.partialorder %v1274_v32, 1.0 }
 0x14c   :  { %1370 = vst [vmem:[#allocation5 + $0x68] sm:$0xff] %v1242_v31  ;;  %1402 = vst [vmem:[#allocation5 + $0x168] sm:$0xff] %v1274_v32  ;;  %v1808_v36 = vsel %vm1434_vm10, 1.0, %v2060_v35  ;;  %v1840_v37 = vsel %vm1466_vm11, 1.0, %v2060_v35  ;;  %v757_v38 = vpop.f32.mrb[28].mxu0  ;;  %v885_v39 = vpop.f32.mrb[28].mxu1 }
 0x14d   :  { %1626 = vst [vmem:[%s2811_s6 + $0x68] sm:$0xff] %v1808_v36  ;;  %1658 = vst [vmem:[%s2811_s6 + $0x168] sm:$0xff] %v1840_v37  ;;  %v1172_v40 = vmul.f32 %v2375_v17, %v757_v38  ;;  %v1204_v41 = vmul.f32 %v2375_v17, %v885_v39  ;;  %v759_v42 = vpop.f32.mrb[29].mxu0  ;;  %v887_v43 = vpop.f32.mrb[29].mxu1 }
 0x14e   :  { %1307 = vst [vmem:[#allocation3 + $0x70] sm:$0xff] %v757_v38  ;;  %1339 = vst [vmem:[#allocation3 + $0x170] sm:$0xff] %v885_v39  ;;  %v760_v44 = vpop.f32.mrb[30].mxu0  ;;  %v888_v45 = vpop.f32.mrb[30].mxu1 }
 0x14f   :  { %v1243_v46 = vadd.f32 %v2380_v19, %v1172_v40  ;;  %v1275_v47 = vadd.f32 %v2380_v19, %v1204_v41  ;;  %v1173_v48 = vmul.f32 %v2375_v17, %v760_v44  ;;  %1308 = vst [vmem:[#allocation3 + $0x78] sm:$0xff] %v760_v44  ;;  %v1205_v49 = vmul.f32 %v2375_v17, %v888_v45  ;;  %v762_v50 = vpop.f32.mrb[31].mxu0  ;;  %v890_v51 = vpop.f32.mrb[31].mxu1 }
 0x150   :  { %1340 = vst [vmem:[#allocation3 + $0x178] sm:$0xff] %v888_v45 }
 0x151   :  { %1371 = vst [vmem:[#allocation5 + $0x70] sm:$0xff] %v1243_v46  ;;  %vm1435_vm12 = vcmp.ge.f32.partialorder %v1243_v46, 1.0  ;;  %1403 = vst [vmem:[#allocation5 + $0x170] sm:$0xff] %v1275_v47  ;;  %vm1467_vm13 = vcmp.ge.f32.partialorder %v1275_v47, 1.0  ;;  %v1244_v52 = vadd.f32 %v2380_v19, %v1173_v48  ;;  %v1276_v53 = vadd.f32 %v2380_v19, %v1205_v49 }
 0x152   :  { %v1809_v54 = vsel %vm1435_vm12, 1.0, %v2060_v35  ;;  %v1841_v55 = vsel %vm1467_vm13, 1.0, %v2060_v35 }
 0x153   :  { %1627 = vst [vmem:[%s2811_s6 + $0x70] sm:$0xff] %v1809_v54  ;;  %1659 = vst [vmem:[%s2811_s6 + $0x170] sm:$0xff] %v1841_v55  ;;  %vm1436_vm14 = vcmp.ge.f32.partialorder %v1244_v52, 1.0  ;;  %vm1468_vm15 = vcmp.ge.f32.partialorder %v1276_v53, 1.0 }
 0x154   :  { %1372 = vst [vmem:[#allocation5 + $0x78] sm:$0xff] %v1244_v52  ;;  %1404 = vst [vmem:[#allocation5 + $0x178] sm:$0xff] %v1276_v53  ;;  %v1810_v56 = vsel %vm1436_vm14, 1.0, %v2060_v35  ;;  %v1842_v57 = vsel %vm1468_vm15, 1.0, %v2060_v35  ;;  %v765_v58 = vpop.f32.mrb[32].mxu0  ;;  %v893_v59 = vpop.f32.mrb[32].mxu1 }
 0x155   :  { %1628 = vst [vmem:[%s2811_s6 + $0x78] sm:$0xff] %v1810_v56  ;;  %1660 = vst [vmem:[%s2811_s6 + $0x178] sm:$0xff] %v1842_v57  ;;  %v1174_v60 = vmul.f32 %v2375_v17, %v765_v58  ;;  %v1206_v61 = vmul.f32 %v2375_v17, %v893_v59  ;;  %v767_v62 = vpop.f32.mrb[33].mxu0  ;;  %v895_v63 = vpop.f32.mrb[33].mxu1 }
 0x156   :  { %1309 = vst [vmem:[#allocation3 + $0x80] sm:$0xff] %v765_v58  ;;  %1341 = vst [vmem:[#allocation3 + $0x180] sm:$0xff] %v893_v59  ;;  %v768_v0 = vpop.f32.mrb[34].mxu0  ;;  %v896_v1 = vpop.f32.mrb[34].mxu1 }
 0x157   :  { %v1245_v2 = vadd.f32 %v2380_v19, %v1174_v60  ;;  %v1277_v3 = vadd.f32 %v2380_v19, %v1206_v61  ;;  %v1175_v4 = vmul.f32 %v2375_v17, %v768_v0  ;;  %1310 = vst [vmem:[#allocation3 + $0x88] sm:$0xff] %v768_v0  ;;  %v1207_v5 = vmul.f32 %v2375_v17, %v896_v1  ;;  %v770_v6 = vpop.f32.mrb[35].mxu0  ;;  %v898_v7 = vpop.f32.mrb[35].mxu1 }
 0x158   :  { %1342 = vst [vmem:[#allocation3 + $0x188] sm:$0xff] %v896_v1 }
 0x159   :  { %1373 = vst [vmem:[#allocation5 + $0x80] sm:$0xff] %v1245_v2  ;;  %vm1437_vm0 = vcmp.ge.f32.partialorder %v1245_v2, 1.0  ;;  %1405 = vst [vmem:[#allocation5 + $0x180] sm:$0xff] %v1277_v3  ;;  %vm1469_vm1 = vcmp.ge.f32.partialorder %v1277_v3, 1.0  ;;  %v1246_v8 = vadd.f32 %v2380_v19, %v1175_v4  ;;  %v1278_v9 = vadd.f32 %v2380_v19, %v1207_v5 }
 0x15a   :  { %v1811_v10 = vsel %vm1437_vm0, 1.0, %v2060_v35  ;;  %v1843_v11 = vsel %vm1469_vm1, 1.0, %v2060_v35 }
 0x15b   :  { %1629 = vst [vmem:[%s2811_s6 + $0x80] sm:$0xff] %v1811_v10  ;;  %1661 = vst [vmem:[%s2811_s6 + $0x180] sm:$0xff] %v1843_v11  ;;  %vm1438_vm2 = vcmp.ge.f32.partialorder %v1246_v8, 1.0  ;;  %vm1470_vm3 = vcmp.ge.f32.partialorder %v1278_v9, 1.0 }
 0x15c   :  { %1374 = vst [vmem:[#allocation5 + $0x88] sm:$0xff] %v1246_v8  ;;  %1406 = vst [vmem:[#allocation5 + $0x188] sm:$0xff] %v1278_v9  ;;  %v1812_v12 = vsel %vm1438_vm2, 1.0, %v2060_v35  ;;  %v1844_v13 = vsel %vm1470_vm3, 1.0, %v2060_v35  ;;  %v773_v14 = vpop.f32.mrb[36].mxu0  ;;  %v901_v15 = vpop.f32.mrb[36].mxu1 }
 0x15d   :  { %1630 = vst [vmem:[%s2811_s6 + $0x88] sm:$0xff] %v1812_v12  ;;  %1662 = vst [vmem:[%s2811_s6 + $0x188] sm:$0xff] %v1844_v13  ;;  %v1176_v16 = vmul.f32 %v2375_v17, %v773_v14  ;;  %v1208_v18 = vmul.f32 %v2375_v17, %v901_v15  ;;  %v775_v20 = vpop.f32.mrb[37].mxu0  ;;  %v903_v21 = vpop.f32.mrb[37].mxu1 }
 0x15e   :  { %1311 = vst [vmem:[#allocation3 + $0x90] sm:$0xff] %v773_v14  ;;  %1343 = vst [vmem:[#allocation3 + $0x190] sm:$0xff] %v901_v15  ;;  %v776_v22 = vpop.f32.mrb[38].mxu0  ;;  %v904_v23 = vpop.f32.mrb[38].mxu1 }
 0x15f   :  { %v1247_v24 = vadd.f32 %v2380_v19, %v1176_v16  ;;  %v1279_v25 = vadd.f32 %v2380_v19, %v1208_v18  ;;  %v1177_v26 = vmul.f32 %v2375_v17, %v776_v22  ;;  %1312 = vst [vmem:[#allocation3 + $0x98] sm:$0xff] %v776_v22  ;;  %v1209_v27 = vmul.f32 %v2375_v17, %v904_v23  ;;  %v778_v28 = vpop.f32.mrb[39].mxu0  ;;  %v906_v29 = vpop.f32.mrb[39].mxu1 }
 0x160   :  { %1344 = vst [vmem:[#allocation3 + $0x198] sm:$0xff] %v904_v23 }
 0x161   :  { %1375 = vst [vmem:[#allocation5 + $0x90] sm:$0xff] %v1247_v24  ;;  %vm1439_vm4 = vcmp.ge.f32.partialorder %v1247_v24, 1.0  ;;  %1407 = vst [vmem:[#allocation5 + $0x190] sm:$0xff] %v1279_v25  ;;  %vm1471_vm5 = vcmp.ge.f32.partialorder %v1279_v25, 1.0  ;;  %v1248_v30 = vadd.f32 %v2380_v19, %v1177_v26  ;;  %v1280_v31 = vadd.f32 %v2380_v19, %v1209_v27 }
 0x162   :  { %v1813_v32 = vsel %vm1439_vm4, 1.0, %v2060_v35  ;;  %v1845_v33 = vsel %vm1471_vm5, 1.0, %v2060_v35 }
 0x163   :  { %1631 = vst [vmem:[%s2811_s6 + $0x90] sm:$0xff] %v1813_v32  ;;  %1663 = vst [vmem:[%s2811_s6 + $0x190] sm:$0xff] %v1845_v33  ;;  %vm1440_vm6 = vcmp.ge.f32.partialorder %v1248_v30, 1.0  ;;  %vm1472_vm7 = vcmp.ge.f32.partialorder %v1280_v31, 1.0 }
 0x164   :  { %1376 = vst [vmem:[#allocation5 + $0x98] sm:$0xff] %v1248_v30  ;;  %1408 = vst [vmem:[#allocation5 + $0x198] sm:$0xff] %v1280_v31  ;;  %v1814_v34 = vsel %vm1440_vm6, 1.0, %v2060_v35  ;;  %v1846_v36 = vsel %vm1472_vm7, 1.0, %v2060_v35  ;;  %v781_v37 = vpop.f32.mrb[40].mxu0  ;;  %v909_v38 = vpop.f32.mrb[40].mxu1 }
 0x165   :  { %1632 = vst [vmem:[%s2811_s6 + $0x98] sm:$0xff] %v1814_v34  ;;  %1664 = vst [vmem:[%s2811_s6 + $0x198] sm:$0xff] %v1846_v36  ;;  %v1178_v39 = vmul.f32 %v2375_v17, %v781_v37  ;;  %v1210_v40 = vmul.f32 %v2375_v17, %v909_v38  ;;  %v783_v41 = vpop.f32.mrb[41].mxu0  ;;  %v911_v42 = vpop.f32.mrb[41].mxu1 }
 0x166   :  { %1313 = vst [vmem:[#allocation3 + $0xa0] sm:$0xff] %v781_v37  ;;  %1345 = vst [vmem:[#allocation3 + $0x1a0] sm:$0xff] %v909_v38  ;;  %v784_v43 = vpop.f32.mrb[42].mxu0  ;;  %v912_v44 = vpop.f32.mrb[42].mxu1 }
 0x167   :  { %v1249_v45 = vadd.f32 %v2380_v19, %v1178_v39  ;;  %v1281_v46 = vadd.f32 %v2380_v19, %v1210_v40  ;;  %v1179_v47 = vmul.f32 %v2375_v17, %v784_v43  ;;  %1314 = vst [vmem:[#allocation3 + $0xa8] sm:$0xff] %v784_v43  ;;  %v1211_v48 = vmul.f32 %v2375_v17, %v912_v44  ;;  %v786_v49 = vpop.f32.mrb[43].mxu0  ;;  %v914_v50 = vpop.f32.mrb[43].mxu1 }
 0x168   :  { %1346 = vst [vmem:[#allocation3 + $0x1a8] sm:$0xff] %v912_v44 }
 0x169   :  { %1377 = vst [vmem:[#allocation5 + $0xa0] sm:$0xff] %v1249_v45  ;;  %vm1441_vm8 = vcmp.ge.f32.partialorder %v1249_v45, 1.0  ;;  %1409 = vst [vmem:[#allocation5 + $0x1a0] sm:$0xff] %v1281_v46  ;;  %vm1473_vm9 = vcmp.ge.f32.partialorder %v1281_v46, 1.0  ;;  %v1250_v51 = vadd.f32 %v2380_v19, %v1179_v47  ;;  %v1282_v52 = vadd.f32 %v2380_v19, %v1211_v48 }
 0x16a   :  { %v1815_v53 = vsel %vm1441_vm8, 1.0, %v2060_v35  ;;  %v1847_v54 = vsel %vm1473_vm9, 1.0, %v2060_v35 }
 0x16b   :  { %1633 = vst [vmem:[%s2811_s6 + $0xa0] sm:$0xff] %v1815_v53  ;;  %1665 = vst [vmem:[%s2811_s6 + $0x1a0] sm:$0xff] %v1847_v54  ;;  %vm1442_vm10 = vcmp.ge.f32.partialorder %v1250_v51, 1.0  ;;  %vm1474_vm11 = vcmp.ge.f32.partialorder %v1282_v52, 1.0 }
 0x16c   :  { %1378 = vst [vmem:[#allocation5 + $0xa8] sm:$0xff] %v1250_v51  ;;  %1410 = vst [vmem:[#allocation5 + $0x1a8] sm:$0xff] %v1282_v52  ;;  %v1816_v55 = vsel %vm1442_vm10, 1.0, %v2060_v35  ;;  %v1848_v56 = vsel %vm1474_vm11, 1.0, %v2060_v35  ;;  %v789_v57 = vpop.f32.mrb[44].mxu0  ;;  %v917_v58 = vpop.f32.mrb[44].mxu1 }
 0x16d   :  { %1634 = vst [vmem:[%s2811_s6 + $0xa8] sm:$0xff] %v1816_v55  ;;  %1666 = vst [vmem:[%s2811_s6 + $0x1a8] sm:$0xff] %v1848_v56  ;;  %v1180_v59 = vmul.f32 %v2375_v17, %v789_v57  ;;  %v1212_v60 = vmul.f32 %v2375_v17, %v917_v58  ;;  %v791_v61 = vpop.f32.mrb[45].mxu0  ;;  %v919_v62 = vpop.f32.mrb[45].mxu1 }
 0x16e   :  { %1315 = vst [vmem:[#allocation3 + $0xb0] sm:$0xff] %v789_v57  ;;  %1347 = vst [vmem:[#allocation3 + $0x1b0] sm:$0xff] %v917_v58  ;;  %v792_v63 = vpop.f32.mrb[46].mxu0  ;;  %v920_v0 = vpop.f32.mrb[46].mxu1 }
 0x16f   :  { %v1251_v1 = vadd.f32 %v2380_v19, %v1180_v59  ;;  %v1283_v2 = vadd.f32 %v2380_v19, %v1212_v60  ;;  %v1181_v3 = vmul.f32 %v2375_v17, %v792_v63  ;;  %1316 = vst [vmem:[#allocation3 + $0xb8] sm:$0xff] %v792_v63  ;;  %v1213_v4 = vmul.f32 %v2375_v17, %v920_v0  ;;  %v794_v5 = vpop.f32.mrb[47].mxu0  ;;  %v922_v6 = vpop.f32.mrb[47].mxu1  ;;  %v2723_v63 = vld [vmem:[%s2808_s3] ss:$0 sm:$0xff]  ;;  %s2061_s3 = smov [#allocation3]  }
 0x170   :  { %1348 = vst [vmem:[#allocation3 + $0x1b8] sm:$0xff] %v920_v0  ;;  %s1682_s22 = sshll.u32 %s2061_s3, 4  ;;  %s2742_s22 = int_to_ptr.vmem [resolvable:$true] %s1682_s22 }
 0x171   :  { %1379 = vst [vmem:[#allocation5 + $0xb0] sm:$0xff] %v1251_v1  ;;  %vm1443_vm12 = vcmp.ge.f32.partialorder %v1251_v1, 1.0  ;;  %1411 = vst [vmem:[#allocation5 + $0x1b0] sm:$0xff] %v1283_v2  ;;  %vm1475_vm13 = vcmp.ge.f32.partialorder %v1283_v2, 1.0  ;;  %v1252_v7 = vadd.f32 %v2380_v19, %v1181_v3  ;;  %v1284_v8 = vadd.f32 %v2380_v19, %v1213_v4  ;;  %v2010_v2 = vld [vmem:[%s2807_s2] ss:$0 sm:$0xff]  ;;  %p2016_p1 = scmp.lt.s32.totalorder %s2742_s22, %s2742_s22 }
 0x172   :  { %v1817_v9 = vsel %vm1443_vm12, 1.0, %v2060_v35  ;;  %v1849_v10 = vsel %vm1475_vm13, 1.0, %v2060_v35  ;;  %s2011_s8 = scalar_lea.vmem %s2742_s22, 8192 }
 0x173   :  { %1635 = vst [vmem:[%s2811_s6 + $0xb0] sm:$0xff] %v1817_v9  ;;  %1667 = vst [vmem:[%s2811_s6 + $0x1b0] sm:$0xff] %v1849_v10  ;;  %vm1444_vm14 = vcmp.ge.f32.partialorder %v1252_v7, 1.0  ;;  %vm1476_vm15 = vcmp.ge.f32.partialorder %v1284_v8, 1.0  ;;  %p2012_p0 = scmp.ne.s32.totalorder %s2742_s22, %s2011_s8  ;;  %p2017_p2 = scmp.lt.s32.totalorder %s2011_s8, %s2011_s8 }
 0x174   :  { %1380 = vst [vmem:[#allocation5 + $0xb8] sm:$0xff] %v1252_v7  ;;  %1412 = vst [vmem:[#allocation5 + $0x1b8] sm:$0xff] %v1284_v8  ;;  %v1818_v11 = vsel %vm1444_vm14, 1.0, %v2060_v35  ;;  %v1850_v12 = vsel %vm1476_vm15, 1.0, %v2060_v35  ;;  %v797_v13 = vpop.f32.mrb[48].mxu0  ;;  %v925_v14 = vpop.f32.mrb[48].mxu1 }
 0x175   :  { %1636 = vst [vmem:[%s2811_s6 + $0xb8] sm:$0xff] %v1818_v11  ;;  %1668 = vst [vmem:[%s2811_s6 + $0x1b8] sm:$0xff] %v1850_v12  ;;  %v1182_v15 = vmul.f32 %v2375_v17, %v797_v13  ;;  %v1214_v16 = vmul.f32 %v2375_v17, %v925_v14  ;;  %v799_v18 = vpop.f32.mrb[49].mxu0  ;;  %v927_v20 = vpop.f32.mrb[49].mxu1  ;;  %p2018_p3 = por %p2017_p2, %p2016_p1 }
 0x176   :  { %1317 = vst [vmem:[#allocation3 + $0xc0] sm:$0xff] %v797_v13  ;;  %1349 = vst [vmem:[#allocation3 + $0x1c0] sm:$0xff] %v925_v14  ;;  %v800_v21 = vpop.f32.mrb[50].mxu0  ;;  %v928_v22 = vpop.f32.mrb[50].mxu1 }
 0x177   :  { %v1253_v23 = vadd.f32 %v2380_v19, %v1182_v15  ;;  %v1285_v24 = vadd.f32 %v2380_v19, %v1214_v16  ;;  %v1183_v25 = vmul.f32 %v2375_v17, %v800_v21  ;;  %1318 = vst [vmem:[#allocation3 + $0xc8] sm:$0xff] %v800_v21  ;;  %v1215_v26 = vmul.f32 %v2375_v17, %v928_v22  ;;  %v802_v27 = vpop.f32.mrb[51].mxu0  ;;  %v930_v28 = vpop.f32.mrb[51].mxu1  ;;  %p2019_p4 = pnand %p2018_p3, %p2012_p0 }
 0x178   :  { %1350 = vst [vmem:[#allocation3 + $0x1c8] sm:$0xff] %v928_v22 }
 0x179   :  { %1381 = vst [vmem:[#allocation5 + $0xc0] sm:$0xff] %v1253_v23  ;;  %vm1445_vm0 = vcmp.ge.f32.partialorder %v1253_v23, 1.0  ;;  %1413 = vst [vmem:[#allocation5 + $0x1c0] sm:$0xff] %v1285_v24  ;;  %vm1477_vm1 = vcmp.ge.f32.partialorder %v1285_v24, 1.0  ;;  %v1254_v29 = vadd.f32 %v2380_v19, %v1183_v25  ;;  %v1286_v30 = vadd.f32 %v2380_v19, %v1215_v26 }
 0x17a   :  { %v1819_v31 = vsel %vm1445_vm0, 1.0, %v2060_v35  ;;  %v1851_v32 = vsel %vm1477_vm1, 1.0, %v2060_v35 }
 0x17b   :  { %1637 = vst [vmem:[%s2811_s6 + $0xc0] sm:$0xff] %v1819_v31  ;;  %1669 = vst [vmem:[%s2811_s6 + $0x1c0] sm:$0xff] %v1851_v32  ;;  %vm1446_vm2 = vcmp.ge.f32.partialorder %v1254_v29, 1.0  ;;  %vm1478_vm3 = vcmp.ge.f32.partialorder %v1286_v30, 1.0 }
 0x17c   :  { %1382 = vst [vmem:[#allocation5 + $0xc8] sm:$0xff] %v1254_v29  ;;  %1414 = vst [vmem:[#allocation5 + $0x1c8] sm:$0xff] %v1286_v30  ;;  %v1820_v33 = vsel %vm1446_vm2, 1.0, %v2060_v35  ;;  %v1852_v34 = vsel %vm1478_vm3, 1.0, %v2060_v35  ;;  %v805_v36 = vpop.f32.mrb[52].mxu0  ;;  %v933_v37 = vpop.f32.mrb[52].mxu1 }
 0x17d   :  { %1638 = vst [vmem:[%s2811_s6 + $0xc8] sm:$0xff] %v1820_v33  ;;  %1670 = vst [vmem:[%s2811_s6 + $0x1c8] sm:$0xff] %v1852_v34  ;;  %v1184_v38 = vmul.f32 %v2375_v17, %v805_v36  ;;  %v1216_v39 = vmul.f32 %v2375_v17, %v933_v37  ;;  %v807_v40 = vpop.f32.mrb[53].mxu0  ;;  %v935_v41 = vpop.f32.mrb[53].mxu1 }
 0x17e   :  { %1319 = vst [vmem:[#allocation3 + $0xd0] sm:$0xff] %v805_v36  ;;  %1351 = vst [vmem:[#allocation3 + $0x1d0] sm:$0xff] %v933_v37  ;;  %v808_v42 = vpop.f32.mrb[54].mxu0  ;;  %v936_v43 = vpop.f32.mrb[54].mxu1 }
 0x17f   :  { %v1255_v44 = vadd.f32 %v2380_v19, %v1184_v38  ;;  %v1287_v45 = vadd.f32 %v2380_v19, %v1216_v39  ;;  %v1185_v46 = vmul.f32 %v2375_v17, %v808_v42  ;;  %1320 = vst [vmem:[#allocation3 + $0xd8] sm:$0xff] %v808_v42  ;;  %v1217_v47 = vmul.f32 %v2375_v17, %v936_v43  ;;  %v810_v48 = vpop.f32.mrb[55].mxu0  ;;  %v938_v49 = vpop.f32.mrb[55].mxu1 }
 0x180   :  { %1352 = vst [vmem:[#allocation3 + $0x1d8] sm:$0xff] %v936_v43 }
 0x181   :  { %1383 = vst [vmem:[#allocation5 + $0xd0] sm:$0xff] %v1255_v44  ;;  %vm1447_vm4 = vcmp.ge.f32.partialorder %v1255_v44, 1.0  ;;  %1415 = vst [vmem:[#allocation5 + $0x1d0] sm:$0xff] %v1287_v45  ;;  %vm1479_vm5 = vcmp.ge.f32.partialorder %v1287_v45, 1.0  ;;  %v1256_v50 = vadd.f32 %v2380_v19, %v1185_v46  ;;  %v1288_v51 = vadd.f32 %v2380_v19, %v1217_v47 }
 0x182   :  { %v1821_v52 = vsel %vm1447_vm4, 1.0, %v2060_v35  ;;  %v1853_v53 = vsel %vm1479_vm5, 1.0, %v2060_v35 }
 0x183   :  { %1639 = vst [vmem:[%s2811_s6 + $0xd0] sm:$0xff] %v1821_v52  ;;  %1671 = vst [vmem:[%s2811_s6 + $0x1d0] sm:$0xff] %v1853_v53  ;;  %vm1448_vm6 = vcmp.ge.f32.partialorder %v1256_v50, 1.0  ;;  %vm1480_vm7 = vcmp.ge.f32.partialorder %v1288_v51, 1.0 }
 0x184   :  { %1384 = vst [vmem:[#allocation5 + $0xd8] sm:$0xff] %v1256_v50  ;;  %1416 = vst [vmem:[#allocation5 + $0x1d8] sm:$0xff] %v1288_v51  ;;  %v1822_v54 = vsel %vm1448_vm6, 1.0, %v2060_v35  ;;  %v1854_v19 = vsel %vm1480_vm7, 1.0, %v2060_v35  ;;  %v813_v55 = vpop.f32.mrb[56].mxu0  ;;  %v941_v56 = vpop.f32.mrb[56].mxu1 }
 0x185   :  { %1640 = vst [vmem:[%s2811_s6 + $0xd8] sm:$0xff] %v1822_v54  ;;  %1672 = vst [vmem:[%s2811_s6 + $0x1d8] sm:$0xff] %v1854_v19  ;;  %v1186_v57 = vmul.f32 %v2375_v17, %v813_v55  ;;  %v1218_v58 = vmul.f32 %v2375_v17, %v941_v56  ;;  %v815_v59 = vpop.f32.mrb[57].mxu0  ;;  %v943_v60 = vpop.f32.mrb[57].mxu1 }
 0x186   :  { %1321 = vst [vmem:[#allocation3 + $0xe0] sm:$0xff] %v813_v55  ;;  %1353 = vst [vmem:[#allocation3 + $0x1e0] sm:$0xff] %v941_v56  ;;  %v816_v61 = vpop.f32.mrb[58].mxu0  ;;  %v944_v62 = vpop.f32.mrb[58].mxu1 }
 0x187   :  { %v1257_v0 = vadd.f32 %v2723_v63, %v1186_v57  ;;  %v1289_v1 = vadd.f32 %v2723_v63, %v1218_v58  ;;  %v1187_v3 = vmul.f32 %v2010_v2, %v816_v61  ;;  %1322 = vst [vmem:[#allocation3 + $0xe8] sm:$0xff] %v816_v61  ;;  %v1219_v17 = vmul.f32 %v2010_v2, %v944_v62  ;;  %v818_v4 = vpop.f32.mrb[59].mxu0  ;;  %v946_v5 = vpop.f32.mrb[59].mxu1 }
 0x188   :  { %1354 = vst [vmem:[#allocation3 + $0x1e8] sm:$0xff] %v944_v62 }
 0x189   :  { %1385 = vst [vmem:[#allocation5 + $0xe0] sm:$0xff] %v1257_v0  ;;  %vm1449_vm8 = vcmp.ge.f32.partialorder %v1257_v0, 1.0  ;;  %1417 = vst [vmem:[#allocation5 + $0x1e0] sm:$0xff] %v1289_v1  ;;  %vm1481_vm9 = vcmp.ge.f32.partialorder %v1289_v1, 1.0  ;;  %v1258_v6 = vadd.f32 %v2723_v63, %v1187_v3  ;;  %v1290_v7 = vadd.f32 %v2723_v63, %v1219_v17 }
 0x18a   :  { %v1823_v8 = vsel %vm1449_vm8, 1.0, %v2060_v35  ;;  %v1855_v9 = vsel %vm1481_vm9, 1.0, %v2060_v35 }
 0x18b   :  { %1641 = vst [vmem:[%s2811_s6 + $0xe0] sm:$0xff] %v1823_v8  ;;  %1673 = vst [vmem:[%s2811_s6 + $0x1e0] sm:$0xff] %v1855_v9  ;;  %vm1450_vm10 = vcmp.ge.f32.partialorder %v1258_v6, 1.0  ;;  %vm1482_vm11 = vcmp.ge.f32.partialorder %v1290_v7, 1.0 }
 0x18c   :  { %1386 = vst [vmem:[#allocation5 + $0xe8] sm:$0xff] %v1258_v6  ;;  %1418 = vst [vmem:[#allocation5 + $0x1e8] sm:$0xff] %v1290_v7  ;;  %v1824_v10 = vsel %vm1450_vm10, 1.0, %v2060_v35  ;;  %v1856_v11 = vsel %vm1482_vm11, 1.0, %v2060_v35  ;;  %v821_v12 = vpop.f32.mrb[60].mxu0  ;;  %v949_v13 = vpop.f32.mrb[60].mxu1 }
 0x18d   :  { %1642 = vst [vmem:[%s2811_s6 + $0xe8] sm:$0xff] %v1824_v10  ;;  %1674 = vst [vmem:[%s2811_s6 + $0x1e8] sm:$0xff] %v1856_v11  ;;  %v1188_v14 = vmul.f32 %v2010_v2, %v821_v12  ;;  %v1220_v15 = vmul.f32 %v2010_v2, %v949_v13  ;;  %v823_v16 = vpop.f32.mrb[61].mxu0  ;;  %v951_v18 = vpop.f32.mrb[61].mxu1 }
 0x18e   :  { %1323 = vst [vmem:[#allocation3 + $0xf0] sm:$0xff] %v821_v12  ;;  %1355 = vst [vmem:[#allocation3 + $0x1f0] sm:$0xff] %v949_v13  ;;  %v824_v20 = vpop.f32.mrb[62].mxu0  ;;  %v952_v21 = vpop.f32.mrb[62].mxu1 }
 0x18f   :  { %v1259_v22 = vadd.f32 %v2723_v63, %v1188_v14  ;;  %v1291_v23 = vadd.f32 %v2723_v63, %v1220_v15  ;;  %v1189_v24 = vmul.f32 %v2010_v2, %v824_v20  ;;  %1324 = vst [vmem:[#allocation3 + $0xf8] sm:$0xff] %v824_v20  ;;  %v1221_v25 = vmul.f32 %v2010_v2, %v952_v21  ;;  %v826_v26 = vpop.f32.mrb[63].mxu0  ;;  %v954_v27 = vpop.f32.mrb[63].mxu1 }
 0x190   :  { %1356 = vst [vmem:[#allocation3 + $0x1f8] sm:$0xff] %v952_v21 }
 0x191   :  { %2022 = shalt.err (!%p2019_p4)
}
 0x192   :  { %s2023_s11 = scalar_lea.hbm %s2809_s4, 8192 }
 0x193   :  { %p2024_p5 = scmp.ne.s32.totalorder %s2809_s4, %s2023_s11  ;;  %p2027_p6 = scmp.lt.u32.totalorder %s2023_s11, %s2809_s4 }
 0x195   :  { %p2029_p7 = pnand %p2027_p6, %p2024_p5 }
 0x197   :  { %2032 = shalt.err (!%p2029_p7)
}
 0x198   :  { %s2063_s1 = smov 128   ;;  %s2064_s15 = smov 8   ;;  %1387 = vst [vmem:[#allocation5 + $0xf0] sm:$0xff] %v1259_v22  ;;  %vm1451_vm12 = vcmp.ge.f32.partialorder %v1259_v22, 1.0  ;;  %1419 = vst [vmem:[#allocation5 + $0x1f0] sm:$0xff] %v1291_v23  ;;  %vm1483_vm13 = vcmp.ge.f32.partialorder %v1291_v23, 1.0  ;;  %v1260_v28 = vadd.f32 %v2723_v63, %v1189_v24  ;;  %v1292_v29 = vadd.f32 %v2723_v63, %v1221_v25 }
 0x199   :  { %1688 = dma.vmem_to_hbm [thread:$0]  %s2742_s22, 8192, %s2809_s4, [#allocation4], %s2063_s1, %s2063_s1, %s2064_s15   ;;  %v1825_v30 = vsel %vm1451_vm12, 1.0, %v2060_v35  ;;  %v1857_v31 = vsel %vm1483_vm13, 1.0, %v2060_v35 }
 0x19a   :  { %1643 = vst [vmem:[%s2811_s6 + $0xf0] sm:$0xff] %v1825_v30  ;;  %1675 = vst [vmem:[%s2811_s6 + $0x1f0] sm:$0xff] %v1857_v31  ;;  %vm1452_vm14 = vcmp.ge.f32.partialorder %v1260_v28, 1.0  ;;  %vm1484_vm15 = vcmp.ge.f32.partialorder %v1292_v29, 1.0  ;;  %s2033_s4 = scalar_lea.vmem %s1695_s7, 8192  ;;  %p2038_p9 = scmp.lt.s32.totalorder %s1695_s7, %s1695_s7 }
 0x19b   :  { %1388 = vst [vmem:[#allocation5 + $0xf8] sm:$0xff] %v1260_v28  ;;  %1420 = vst [vmem:[#allocation5 + $0x1f8] sm:$0xff] %v1292_v29  ;;  %v1826_v32 = vsel %vm1452_vm14, 1.0, %v2060_v35  ;;  %v1858_v33 = vsel %vm1484_vm15, 1.0, %v2060_v35  ;;  %p2034_p8 = scmp.ne.s32.totalorder %s1695_s7, %s2033_s4  ;;  %p2039_p10 = scmp.lt.s32.totalorder %s2033_s4, %s2033_s4 }
 0x19d   :  { %p2040_p11 = por %p2039_p10, %p2038_p9 }
 0x19f   :  { %p2041_p12 = pnand %p2040_p11, %p2034_p8 }
 0x1a1   :  { %2044 = shalt.err (!%p2041_p12)
}
 0x1a2   :  { %s2045_s2 = scalar_lea.hbm %s2810_s5, 8192 }
 0x1a3   :  { %p2046_p13 = scmp.ne.s32.totalorder %s2810_s5, %s2045_s2  ;;  %p2049_p0 = scmp.lt.u32.totalorder %s2045_s2, %s2810_s5 }
 0x1a5   :  { %p2051_p1 = pnand %p2049_p0, %p2046_p13 }
 0x1a7   :  { %2054 = shalt.err (!%p2051_p1)
}
 0x1a8   :  { %1700 = dma.vmem_to_hbm [thread:$0]  %s1695_s7, 8192, %s2810_s5, [#allocation6], %s2063_s1, %s2063_s1, %s2064_s15  }
 0x1a9   :  { %1644 = vst [vmem:[%s2811_s6 + $0xf8] sm:$0xff] %v1826_v32  ;;  %1676 = vst [vmem:[%s2811_s6 + $0x1f8] sm:$0xff] %v1858_v33 }
 0x1aa   :  { %2055 = dma.done.wait [#allocation4], 8192  }
 0x1ab   :  { %2056 = vsyncadd [#allocation4], 4294959104 }
 0x1ac   :  { %2057 = dma.done.wait [#allocation6], 8192  }
 0x1ad   :  { %2058 = vsyncadd [#allocation6], 4294959104 }
 0x1ae   :  { %1711 = vsyncpa [#allocation4], 1 }
 0x1af   :  { %1712 = vsyncpa [#allocation6], 1 }

// kernel: _lambda_.17
= control target key start
LH: loop header
LB: loop body
LE: loop exit
PB: predicated region body
PF: predicated region fallthrough
CT: control target
= control target key end

     0   :  { %s1984_s1 = inlined_call_operand.vmem [shape: bf16[640,128], index: 1, kind: input, shape index: {}]   ;;  %s1985_s0 = inlined_call_operand.vmem [shape: bf16[128,640], index: 0, kind: input, shape index: {}]   ;;  %s1986_s2 = inlined_call_operand.vmem [shape: f32[1,128], index: 2, kind: input, shape index: {}]   ;;  %s1987_s3 = inlined_call_operand.vmem [shape: f32[1,128], index: 3, kind: input, shape index: {}]   ;;  %s1988_s4 = inlined_call_operand.vmem [shape: bf16[128,128], index: 4, kind: output, shape index: {}]  }
   0x1   :  { %v1504_v0 = vld [vmem:[%s1984_s1 + $0x40] sm:$0xff]   ;;  %v1508_v4 = vld [vmem:[%s1984_s1 + $0x48] sm:$0xff]   ;;  %v1512_v8 = vld [vmem:[%s1984_s1 + $0x50] sm:$0xff]  }
   0x2   :  { %v1505_v1 = vld [vmem:[%s1984_s1 + $0xc0] sm:$0xff]   ;;  %1311 = vmatprep.subr.bf16.mxu0 %v1504_v0  ;;  %v1509_v5 = vld [vmem:[%s1984_s1 + $0xc8] sm:$0xff]   ;;  %v1513_v9 = vld [vmem:[%s1984_s1 + $0xd0] sm:$0xff]  }
   0x3   :  { %v1506_v2 = vld [vmem:[%s1984_s1] sm:$0xff]   ;;  %1375 = vmatprep.subr.bf16.mxu1 %v1505_v1  ;;  %v1510_v6 = vld [vmem:[%s1984_s1 + $0x8] sm:$0xff]   ;;  %v1514_v10 = vld [vmem:[%s1984_s1 + $0x10] sm:$0xff]  }
   0x4   :  { %v1507_v3 = vld [vmem:[%s1984_s1 + $0x80] sm:$0xff]   ;;  %1312 = vmatpush3.bf16.msra.mxu0 %v1506_v2  ;;  %v1511_v7 = vld [vmem:[%s1984_s1 + $0x88] sm:$0xff]   ;;  %v1515_v11 = vld [vmem:[%s1984_s1 + $0x90] sm:$0xff]  }
   0x5   :  { %1376 = vmatpush3.bf16.msra.mxu1 %v1507_v3  ;;  %1313 = vmatprep.subr.bf16.mxu0 %v1508_v4  ;;  %v1516_v12 = vld [vmem:[%s1984_s1 + $0x58] sm:$0xff]   ;;  %v1520_v16 = vld [vmem:[%s1984_s1 + $0x60] sm:$0xff]   ;;  %v1524_v20 = vld [vmem:[%s1984_s1 + $0x68] sm:$0xff]  }
   0x6   :  { %1377 = vmatprep.subr.bf16.mxu1 %v1509_v5  ;;  %v1517_v13 = vld [vmem:[%s1984_s1 + $0xd8] sm:$0xff]   ;;  %v1521_v17 = vld [vmem:[%s1984_s1 + $0xe0] sm:$0xff]   ;;  %v1525_v21 = vld [vmem:[%s1984_s1 + $0xe8] sm:$0xff]  }
   0x7   :  { %v1518_v14 = vld [vmem:[%s1984_s1 + $0x18] sm:$0xff]   ;;  %v1522_v18 = vld [vmem:[%s1984_s1 + $0x20] sm:$0xff]   ;;  %v1526_v22 = vld [vmem:[%s1984_s1 + $0x28] sm:$0xff]  }
   0x8   :  { %1314 = vmatpush3.bf16.msra.mxu0 %v1510_v6  ;;  %v1519_v15 = vld [vmem:[%s1984_s1 + $0x98] sm:$0xff]   ;;  %v1523_v19 = vld [vmem:[%s1984_s1 + $0xa0] sm:$0xff]   ;;  %v1527_v23 = vld [vmem:[%s1984_s1 + $0xa8] sm:$0xff]  }
   0x9   :  { %1378 = vmatpush3.bf16.msra.mxu1 %v1511_v7  ;;  %1315 = vmatprep.subr.bf16.mxu0 %v1512_v8  ;;  %v1528_v24 = vld [vmem:[%s1984_s1 + $0x70] sm:$0xff]   ;;  %v1532_v28 = vld [vmem:[%s1984_s1 + $0x78] sm:$0xff]   ;;  %v1541_v35 = vld [vmem:[%s1985_s0 + $0xc] ss:$20 sps:$4 sm:$0xff]  }
   0xa   :  { %1379 = vmatprep.subr.bf16.mxu1 %v1513_v9  ;;  %v1529_v25 = vld [vmem:[%s1984_s1 + $0xf0] sm:$0xff]   ;;  %v1533_v29 = vld [vmem:[%s1984_s1 + $0xf8] sm:$0xff]   ;;  %v1542_v36 = vld [vmem:[%s1984_s1 + $0x100] sm:$0xff]   ;;  %759 = vmatprep.mubr.bf16.mxu1 %v1541_v35 }
   0xb   :  { %v1530_v26 = vld [vmem:[%s1984_s1 + $0x30] sm:$0xff]   ;;  %v1534_v30 = vld [vmem:[%s1984_s1 + $0x38] sm:$0xff]   ;;  %v1543_v37 = vld [vmem:[%s1985_s0 + $0x2c] ss:$20 sps:$4 sm:$0xff]  }
   0xc   :  { %1316 = vmatpush3.bf16.msra.mxu0 %v1514_v10  ;;  %v1531_v27 = vld [vmem:[%s1984_s1 + $0xb0] sm:$0xff]   ;;  %v1535_v31 = vld [vmem:[%s1984_s1 + $0xb8] sm:$0xff]   ;;  %v1549_v39 = vld [vmem:[%s1984_s1 + $0x108] sm:$0xff]  }
   0xd   :  { %1380 = vmatpush3.bf16.msra.mxu1 %v1515_v11  ;;  %1317 = vmatprep.subr.bf16.mxu0 %v1516_v12  ;;  %v1536_v32 = vld [vmem:[%s1985_s0] ss:$20 sps:$4 sm:$0xff]   ;;  %v1538_v33 = vld [vmem:[%s1985_s0 + $0x4] ss:$20 sps:$4 sm:$0xff]   ;;  %v1539_v34 = vld [vmem:[%s1985_s0 + $0x8] ss:$20 sps:$4 sm:$0xff]  }
   0xe   :  { %1381 = vmatprep.subr.bf16.mxu1 %v1517_v13  ;;  %662 = vmatprep.mubr.bf16.mxu0 %v1538_v33  ;;  %v1545_v38 = vld [vmem:[%s1985_s0 + $0x34] ss:$20 sps:$4 sm:$0xff]   ;;  %v1548_v41 = vld [vmem:[%s1985_s0 + $0x30] ss:$20 sps:$4 sm:$0xff]   ;;  %v1563_v45 = vld [vmem:[%s1984_s1 + $0x118] sm:$0xff]  }
   0xf   :  { %v1547_v40 = vld [vmem:[%s1985_s0 + $0x28] ss:$20 sps:$4 sm:$0xff]   ;;  %v1556_v44 = vld [vmem:[%s1984_s1 + $0x110] sm:$0xff]   ;;  %v1555_v47 = vld [vmem:[%s1985_s0 + $0x58] ss:$20 sps:$4 sm:$0xff]  }
  0x10   :  { %1318 = vmatpush3.bf16.msra.mxu0 %v1518_v14  ;;  %v1550_v42 = vld [vmem:[%s1985_s0 + $0x54] ss:$20 sps:$4 sm:$0xff]   ;;  %v1552_v43 = vld [vmem:[%s1985_s0 + $0x5c] ss:$20 sps:$4 sm:$0xff]   ;;  %v1559_v49 = vld [vmem:[%s1985_s0 + $0x84] ss:$20 sps:$4 sm:$0xff]  }
  0x11   :  { %1382 = vmatpush3.bf16.msra.mxu1 %v1519_v15  ;;  %1319 = vmatprep.subr.bf16.mxu0 %v1520_v16  ;;  %v1554_v46 = vld [vmem:[%s1985_s0 + $0x50] ss:$20 sps:$4 sm:$0xff]   ;;  %v1577_v51 = vld [vmem:[%s1984_s1 + $0x128] sm:$0xff]   ;;  %v1562_v53 = vld [vmem:[%s1985_s0 + $0x80] ss:$20 sps:$4 sm:$0xff]  }
  0x12   :  { %1383 = vmatprep.subr.bf16.mxu1 %v1521_v17  ;;  %v1557_v48 = vld [vmem:[%s1985_s0 + $0x7c] ss:$20 sps:$4 sm:$0xff]   ;;  %v1570_v50 = vld [vmem:[%s1984_s1 + $0x120] sm:$0xff]   ;;  %v1561_v52 = vld [vmem:[%s1985_s0 + $0x78] ss:$20 sps:$4 sm:$0xff]  }
  0x13   :  { %v1564_v54 = vld [vmem:[%s1985_s0 + $0xa4] ss:$20 sps:$4 sm:$0xff]   ;;  %v1584_v55 = vld [vmem:[%s1984_s1 + $0x130] sm:$0xff]   ;;  %v1566_v56 = vld [vmem:[%s1985_s0 + $0xac] ss:$20 sps:$4 sm:$0xff]  }
  0x14   :  { %1320 = vmatpush3.bf16.msra.mxu0 %v1522_v18  ;;  %v1591_v57 = vld [vmem:[%s1984_s1 + $0x138] sm:$0xff]   ;;  %v1568_v58 = vld [vmem:[%s1985_s0 + $0xa0] ss:$20 sps:$4 sm:$0xff]   ;;  %v1576_v63 = vld [vmem:[%s1985_s0 + $0xd0] ss:$20 sps:$4 sm:$0xff]  }
  0x15   :  { %1384 = vmatpush3.bf16.msra.mxu1 %v1523_v19  ;;  %1321 = vmatprep.subr.bf16.mxu0 %v1524_v20  ;;  %v1569_v59 = vld [vmem:[%s1985_s0 + $0xa8] ss:$20 sps:$4 sm:$0xff]   ;;  %v1571_v60 = vld [vmem:[%s1985_s0 + $0xcc] ss:$20 sps:$4 sm:$0xff]   ;;  %v1582_v2 = vld [vmem:[%s1985_s0 + $0xf0] ss:$20 sps:$4 sm:$0xff]  }
  0x16   :  { %1385 = vmatprep.subr.bf16.mxu1 %v1525_v21  ;;  %v1573_v61 = vld [vmem:[%s1985_s0 + $0xd4] ss:$20 sps:$4 sm:$0xff]   ;;  %v1580_v1 = vld [vmem:[%s1985_s0 + $0xfc] ss:$20 sps:$4 sm:$0xff]   ;;  %v1583_v3 = vld [vmem:[%s1985_s0 + $0xf8] ss:$20 sps:$4 sm:$0xff]  }
  0x17   :  { %v1575_v62 = vld [vmem:[%s1985_s0 + $0xc8] ss:$20 sps:$4 sm:$0xff]   ;;  %v1587_v5 = vld [vmem:[%s1985_s0 + $0x124] ss:$20 sps:$4 sm:$0xff]   ;;  %v1590_v7 = vld [vmem:[%s1985_s0 + $0x120] ss:$20 sps:$4 sm:$0xff]  }
  0x18   :  { %1322 = vmatpush3.bf16.msra.mxu0 %v1526_v22  ;;  %v1578_v0 = vld [vmem:[%s1985_s0 + $0xf4] ss:$20 sps:$4 sm:$0xff]   ;;  %v1585_v4 = vld [vmem:[%s1985_s0 + $0x11c] ss:$20 sps:$4 sm:$0xff]   ;;  %v1589_v6 = vld [vmem:[%s1985_s0 + $0x118] ss:$20 sps:$4 sm:$0xff]  }
  0x19   :  { %1386 = vmatpush3.bf16.msra.mxu1 %v1527_v23  ;;  %1323 = vmatprep.subr.bf16.mxu0 %v1528_v24  ;;  %v1592_v8 = vld [vmem:[%s1985_s0 + $0x10] ss:$20 sps:$4 sm:$0xff]   ;;  %v1594_v10 = vld [vmem:[%s1985_s0 + $0x38] ss:$20 sps:$4 sm:$0xff]   ;;  %v1596_v12 = vld [vmem:[%s1985_s0 + $0x60] ss:$20 sps:$4 sm:$0xff]  }
  0x1a   :  { %1387 = vmatprep.subr.bf16.mxu1 %v1529_v25  ;;  %v1593_v9 = vld [vmem:[%s1985_s0 + $0xb0] ss:$20 sps:$4 sm:$0xff]   ;;  %v1595_v11 = vld [vmem:[%s1985_s0 + $0xd8] ss:$20 sps:$4 sm:$0xff]   ;;  %v1597_v13 = vld [vmem:[%s1985_s0 + $0x100] ss:$20 sps:$4 sm:$0xff]  }
  0x1b   :  { %v1598_v14 = vld [vmem:[%s1985_s0 + $0x88] ss:$20 sps:$4 sm:$0xff]  }
  0x1c   :  { %1324 = vmatpush3.bf16.msra.mxu0 %v1530_v26  ;;  %v1599_v15 = vld [vmem:[%s1985_s0 + $0x128] ss:$20 sps:$4 sm:$0xff]  }
  0x1d   :  { %1388 = vmatpush3.bf16.msra.mxu1 %v1531_v27  ;;  %1325 = vmatprep.subr.bf16.mxu0 %v1532_v28 }
  0x1e   :  { %1389 = vmatprep.subr.bf16.mxu1 %v1533_v29 }
  0x20   :  { %1326 = vmatpush3.bf16.msra.mxu0 %v1534_v30 }
  0x21   :  { %1390 = vmatpush3.bf16.msra.mxu1 %v1535_v31  ;;  %1455 = vmatprep.subr.bf16.mxu0 %v1542_v36 }
  0x22   :  { %1487 = vmatprep.subr.bf16.mxu1 %v1542_v36 }
  0x23   :  { %663 = vmatmul.mubr.bf16.vlgmr.msra.gmra.mrb[0].mxu0 %v1536_v32 }
  0x24   :  { %760 = vmatmul.mubr.bf16.vlgmr.msra.gmra.mrb[0].mxu1 %v1539_v34  ;;  %1456 = vmatpush3.bf16.msra.mxu0 %v1542_v36 }
  0x25   :  { %1495 = vmatpush3.bf16.msra.mxu1 %v1542_v36  ;;  %670 = vmatprep.mubr.bf16.mxu0 %v1543_v37 }
  0x26   :  { %767 = vmatprep.mubr.bf16.mxu1 %v1545_v38  ;;  %1457 = vmatprep.subr.bf16.mxu0 %v1549_v39 }
  0x27   :  { %1488 = vmatprep.subr.bf16.mxu1 %v1549_v39 }
  0x28   :  { %1458 = vmatpush3.bf16.msra.mxu0 %v1549_v39 }
  0x29   :  { %1496 = vmatpush3.bf16.msra.mxu1 %v1549_v39  ;;  %1459 = vmatprep.subr.bf16.mxu0 %v1556_v44 }
  0x2a   :  { %1489 = vmatprep.subr.bf16.mxu1 %v1556_v44 }
  0x2b   :  { %671 = vmatmul.mubr.bf16.gmra.mrb[4].mxu0 %v1547_v40 }
  0x2c   :  { %768 = vmatmul.mubr.bf16.gmra.mrb[4].mxu1 %v1548_v41  ;;  %678 = vmatprep.mubr.bf16.mxu0 %v1550_v42 }
  0x2d   :  { %775 = vmatprep.mubr.bf16.mxu1 %v1552_v43  ;;  %1460 = vmatpush3.bf16.msra.mxu0 %v1556_v44 }
  0x2e   :  { %1497 = vmatpush3.bf16.msra.mxu1 %v1556_v44  ;;  %1461 = vmatprep.subr.bf16.mxu0 %v1563_v45 }
  0x2f   :  { %1490 = vmatprep.subr.bf16.mxu1 %v1563_v45 }
  0x31   :  { %1462 = vmatpush3.bf16.msra.mxu0 %v1563_v45 }
  0x32   :  { %1498 = vmatpush3.bf16.msra.mxu1 %v1563_v45  ;;  %1463 = vmatprep.subr.bf16.mxu0 %v1570_v50 }
  0x33   :  { %679 = vmatmul.mubr.bf16.gmra.mrb[8].mxu0 %v1554_v46  ;;  %1491 = vmatprep.subr.bf16.mxu1 %v1570_v50 }
  0x34   :  { %776 = vmatmul.mubr.bf16.gmra.mrb[8].mxu1 %v1555_v47  ;;  %686 = vmatprep.mubr.bf16.mxu0 %v1557_v48 }
  0x35   :  { %783 = vmatprep.mubr.bf16.mxu1 %v1559_v49  ;;  %1464 = vmatpush3.bf16.msra.mxu0 %v1570_v50 }
  0x36   :  { %1499 = vmatpush3.bf16.msra.mxu1 %v1570_v50  ;;  %1465 = vmatprep.subr.bf16.mxu0 %v1577_v51 }
  0x37   :  { %1492 = vmatprep.subr.bf16.mxu1 %v1577_v51 }
  0x39   :  { %1466 = vmatpush3.bf16.msra.mxu0 %v1577_v51 }
  0x3a   :  { %1500 = vmatpush3.bf16.msra.mxu1 %v1577_v51  ;;  %1467 = vmatprep.subr.bf16.mxu0 %v1584_v55 }
  0x3b   :  { %687 = vmatmul.mubr.bf16.gmra.mrb[12].mxu0 %v1561_v52  ;;  %1493 = vmatprep.subr.bf16.mxu1 %v1584_v55 }
  0x3c   :  { %784 = vmatmul.mubr.bf16.gmra.mrb[12].mxu1 %v1562_v53  ;;  %694 = vmatprep.mubr.bf16.mxu0 %v1564_v54 }
  0x3d   :  { %791 = vmatprep.mubr.bf16.mxu1 %v1566_v56  ;;  %1468 = vmatpush3.bf16.msra.mxu0 %v1584_v55 }
  0x3e   :  { %1501 = vmatpush3.bf16.msra.mxu1 %v1584_v55  ;;  %1469 = vmatprep.subr.bf16.mxu0 %v1591_v57 }
  0x3f   :  { %1494 = vmatprep.subr.bf16.mxu1 %v1591_v57 }
  0x41   :  { %1470 = vmatpush3.bf16.msra.mxu0 %v1591_v57 }
  0x42   :  { %1502 = vmatpush3.bf16.msra.mxu1 %v1591_v57 }
  0x43   :  { %695 = vmatmul.mubr.bf16.gmra.mrb[16].mxu0 %v1568_v58 }
  0x44   :  { %792 = vmatmul.mubr.bf16.gmra.mrb[16].mxu1 %v1569_v59  ;;  %702 = vmatprep.mubr.bf16.mxu0 %v1571_v60 }
  0x45   :  { %799 = vmatprep.mubr.bf16.mxu1 %v1573_v61 }
  0x4b   :  { %703 = vmatmul.mubr.bf16.gmra.mrb[20].mxu0 %v1575_v62 }
  0x4c   :  { %800 = vmatmul.mubr.bf16.gmra.mrb[20].mxu1 %v1576_v63  ;;  %710 = vmatprep.mubr.bf16.mxu0 %v1578_v0 }
  0x4d   :  { %807 = vmatprep.mubr.bf16.mxu1 %v1580_v1 }
  0x53   :  { %711 = vmatmul.mubr.bf16.gmra.mrb[24].mxu0 %v1582_v2 }
  0x54   :  { %808 = vmatmul.mubr.bf16.gmra.mrb[24].mxu1 %v1583_v3  ;;  %718 = vmatprep.mubr.bf16.mxu0 %v1585_v4 }
  0x55   :  { %815 = vmatprep.mubr.bf16.mxu1 %v1587_v5 }
  0x5b   :  { %719 = vmatmul.mubr.bf16.gmra.mrb[28].mxu0 %v1589_v6 }
  0x5c   :  { %816 = vmatmul.mubr.bf16.gmra.mrb[28].mxu1 %v1590_v7  ;;  %1471 = vmatprep.mubr.bf16.mxu0 %v1592_v8 }
  0x5d   :  { %1479 = vmatprep.mubr.bf16.mxu1 %v1593_v9 }
  0x63   :  { %1472 = vmatmul.mubr.bf16.vlgmr.msra.gmra.mrb[32].mxu0 %v1594_v10 }
  0x64   :  { %1480 = vmatmul.mubr.bf16.vlgmr.msra.gmra.mrb[32].mxu1 %v1595_v11  ;;  %1475 = vmatprep.mubr.bf16.mxu0 %v1596_v12 }
  0x65   :  { %1483 = vmatprep.mubr.bf16.mxu1 %v1597_v13 }
  0x6b   :  { %1476 = vmatmul.mubr.bf16.gmra.mrb[36].mxu0 %v1598_v14 }
  0x6c   :  { %1484 = vmatmul.mubr.bf16.gmra.mrb[36].mxu1 %v1599_v15 }
  0xf6   :  { %v1327_v16 = vpop.f32.mrb[0].mxu0 }
  0xf7   :  { %v1391_v17 = vpop.f32.mrb[0].mxu1  ;;  %v1328_v18 = vpop.f32.mrb[1].mxu0 }
  0xf8   :  { %v1329_v19 = vadd.f32 %v1328_v18, %v1327_v16  ;;  %v1392_v20 = vpop.f32.mrb[1].mxu1  ;;  %v1330_v21 = vpop.f32.mrb[2].mxu0 }
  0xf9   :  { %v1393_v22 = vadd.f32 %v1392_v20, %v1391_v17  ;;  %v1394_v23 = vpop.f32.mrb[2].mxu1  ;;  %v1331_v24 = vpop.f32.mrb[3].mxu0 }
  0xfa   :  { %v1332_v25 = vadd.f32 %v1331_v24, %v1330_v21  ;;  %v1395_v26 = vpop.f32.mrb[3].mxu1 }
  0xfb   :  { %v1396_v27 = vadd.f32 %v1395_v26, %v1394_v23  ;;  %v1866_v28 = vadd.f32 %v1393_v22, %v1329_v19 }
  0xfd   :  { %v1868_v29 = vadd.f32 %v1396_v27, %v1332_v25 }
  0xfe   :  { %v1333_v30 = vpop.f32.mrb[4].mxu0 }
  0xff   :  { %v1397_v31 = vpop.f32.mrb[4].mxu1  ;;  %v1334_v32 = vpop.f32.mrb[5].mxu0 }
 0x100   :  { %v1335_v33 = vadd.f32 %v1334_v32, %v1333_v30  ;;  %v1398_v34 = vpop.f32.mrb[5].mxu1  ;;  %v1336_v35 = vpop.f32.mrb[6].mxu0 }
 0x101   :  { %v1399_v36 = vadd.f32 %v1398_v34, %v1397_v31  ;;  %v1400_v37 = vpop.f32.mrb[6].mxu1  ;;  %v1337_v38 = vpop.f32.mrb[7].mxu0 }
 0x102   :  { %v1338_v39 = vadd.f32 %v1337_v38, %v1336_v35  ;;  %v1401_v40 = vpop.f32.mrb[7].mxu1 }
 0x103   :  { %v1402_v41 = vadd.f32 %v1401_v40, %v1400_v37  ;;  %v1870_v42 = vadd.f32 %v1399_v36, %v1335_v33 }
 0x105   :  { %v1872_v43 = vadd.f32 %v1402_v41, %v1338_v39 }
 0x106   :  { %v1339_v44 = vpop.f32.mrb[8].mxu0 }
 0x107   :  { %v1403_v45 = vpop.f32.mrb[8].mxu1  ;;  %v1340_v46 = vpop.f32.mrb[9].mxu0 }
 0x108   :  { %v1341_v47 = vadd.f32 %v1340_v46, %v1339_v44  ;;  %v1404_v48 = vpop.f32.mrb[9].mxu1  ;;  %v1342_v49 = vpop.f32.mrb[10].mxu0 }
 0x109   :  { %v1405_v50 = vadd.f32 %v1404_v48, %v1403_v45  ;;  %v1406_v51 = vpop.f32.mrb[10].mxu1  ;;  %v1343_v52 = vpop.f32.mrb[11].mxu0 }
 0x10a   :  { %v1344_v53 = vadd.f32 %v1343_v52, %v1342_v49  ;;  %v1407_v54 = vpop.f32.mrb[11].mxu1 }
 0x10b   :  { %v1408_v55 = vadd.f32 %v1407_v54, %v1406_v51  ;;  %v1874_v56 = vadd.f32 %v1405_v50, %v1341_v47 }
 0x10d   :  { %v1876_v57 = vadd.f32 %v1408_v55, %v1344_v53 }
 0x10e   :  { %v1345_v58 = vpop.f32.mrb[12].mxu0 }
 0x10f   :  { %v1409_v59 = vpop.f32.mrb[12].mxu1  ;;  %v1346_v60 = vpop.f32.mrb[13].mxu0 }
 0x110   :  { %v1347_v61 = vadd.f32 %v1346_v60, %v1345_v58  ;;  %v1410_v62 = vpop.f32.mrb[13].mxu1  ;;  %v1348_v63 = vpop.f32.mrb[14].mxu0 }
 0x111   :  { %v1411_v0 = vadd.f32 %v1410_v62, %v1409_v59  ;;  %v1412_v1 = vpop.f32.mrb[14].mxu1  ;;  %v1349_v2 = vpop.f32.mrb[15].mxu0 }
 0x112   :  { %v1350_v3 = vadd.f32 %v1349_v2, %v1348_v63  ;;  %v1413_v4 = vpop.f32.mrb[15].mxu1 }
 0x113   :  { %v1414_v5 = vadd.f32 %v1413_v4, %v1412_v1  ;;  %v1878_v6 = vadd.f32 %v1411_v0, %v1347_v61 }
 0x115   :  { %v1880_v7 = vadd.f32 %v1414_v5, %v1350_v3 }
 0x116   :  { %v1351_v8 = vpop.f32.mrb[16].mxu0 }
 0x117   :  { %v1415_v9 = vpop.f32.mrb[16].mxu1  ;;  %v1352_v10 = vpop.f32.mrb[17].mxu0 }
 0x118   :  { %v1353_v11 = vadd.f32 %v1352_v10, %v1351_v8  ;;  %v1416_v12 = vpop.f32.mrb[17].mxu1  ;;  %v1354_v13 = vpop.f32.mrb[18].mxu0 }
 0x119   :  { %v1417_v14 = vadd.f32 %v1416_v12, %v1415_v9  ;;  %v1418_v15 = vpop.f32.mrb[18].mxu1  ;;  %v1355_v16 = vpop.f32.mrb[19].mxu0  ;;  %v1893_v9 = vld [vmem:[%s1986_s2] ss:$0 sm:$0xff] }
 0x11a   :  { %v1356_v17 = vadd.f32 %v1355_v16, %v1354_v13  ;;  %v1419_v18 = vpop.f32.mrb[19].mxu1  ;;  %v1899_v13 = vld [vmem:[%s1987_s3] ss:$0 sm:$0xff] }
 0x11b   :  { %v1420_v19 = vadd.f32 %v1419_v18, %v1418_v15  ;;  %v794_v20 = vadd.f32 %v1417_v14, %v1353_v11 }
 0x11d   :  { %v1882_v21 = vadd.f32 %v1420_v19, %v1356_v17 }
 0x11e   :  { %v1357_v22 = vpop.f32.mrb[20].mxu0 }
 0x11f   :  { %v1421_v23 = vpop.f32.mrb[20].mxu1  ;;  %v1358_v24 = vpop.f32.mrb[21].mxu0 }
 0x120   :  { %v1359_v25 = vadd.f32 %v1358_v24, %v1357_v22  ;;  %v1422_v26 = vpop.f32.mrb[21].mxu1  ;;  %v1360_v27 = vpop.f32.mrb[22].mxu0 }
 0x121   :  { %v1423_v30 = vadd.f32 %v1422_v26, %v1421_v23  ;;  %v1424_v31 = vpop.f32.mrb[22].mxu1  ;;  %v1361_v32 = vpop.f32.mrb[23].mxu0 }
 0x122   :  { %v1362_v33 = vadd.f32 %v1361_v32, %v1360_v27  ;;  %v1425_v34 = vpop.f32.mrb[23].mxu1 }
 0x123   :  { %v1426_v35 = vadd.f32 %v1425_v34, %v1424_v31  ;;  %v802_v36 = vadd.f32 %v1423_v30, %v1359_v25 }
 0x125   :  { %v805_v37 = vadd.f32 %v1426_v35, %v1362_v33 }
 0x126   :  { %v1363_v38 = vpop.f32.mrb[24].mxu0 }
 0x127   :  { %v1427_v39 = vpop.f32.mrb[24].mxu1  ;;  %v1364_v40 = vpop.f32.mrb[25].mxu0 }
 0x128   :  { %v1365_v41 = vadd.f32 %v1364_v40, %v1363_v38  ;;  %v1428_v44 = vpop.f32.mrb[25].mxu1  ;;  %v1366_v45 = vpop.f32.mrb[26].mxu0  ;;  %v1600_v38 = vmov 0.0  }
 0x129   :  { %v1429_v46 = vadd.f32 %v1428_v44, %v1427_v39  ;;  %v1430_v47 = vpop.f32.mrb[26].mxu1  ;;  %v1367_v48 = vpop.f32.mrb[27].mxu0 }
 0x12a   :  { %v1368_v49 = vadd.f32 %v1367_v48, %v1366_v45  ;;  %v1431_v50 = vpop.f32.mrb[27].mxu1 }
 0x12b   :  { %v1432_v51 = vadd.f32 %v1431_v50, %v1430_v47  ;;  %v1884_v52 = vadd.f32 %v1429_v46, %v1365_v41 }
 0x12d   :  { %v1886_v53 = vadd.f32 %v1432_v51, %v1368_v49 }
 0x12e   :  { %v1369_v54 = vpop.f32.mrb[28].mxu0 }
 0x12f   :  { %v1433_v55 = vpop.f32.mrb[28].mxu1  ;;  %v1370_v58 = vpop.f32.mrb[29].mxu0 }
 0x130   :  { %v1371_v59 = vadd.f32 %v1370_v58, %v1369_v54  ;;  %v1434_v60 = vpop.f32.mrb[29].mxu1  ;;  %v1372_v61 = vpop.f32.mrb[30].mxu0 }
 0x131   :  { %v1435_v62 = vadd.f32 %v1434_v60, %v1433_v55  ;;  %v1436_v63 = vpop.f32.mrb[30].mxu1  ;;  %v1373_v0 = vpop.f32.mrb[31].mxu0 }
 0x132   :  { %v1374_v1 = vadd.f32 %v1373_v0, %v1372_v61  ;;  %v1437_v2 = vpop.f32.mrb[31].mxu1 }
 0x133   :  { %v1438_v3 = vadd.f32 %v1437_v2, %v1436_v63  ;;  %v818_v4 = vadd.f32 %v1435_v62, %v1371_v59 }
 0x135   :  { %v1888_v5 = vadd.f32 %v1438_v3, %v1374_v1 }
 0x136   :  { %v1473_v8 = vpop.f32.mrb[32].mxu0 }
 0x137   :  { %v867_v10 = vadd.f32 %v1473_v8, %v1870_v42  ;;  %v1481_v11 = vpop.f32.mrb[32].mxu1  ;;  %v858_v12 = vpop.f32.mrb[33].mxu0 }
 0x138   :  { %v899_v14 = vadd.f32 %v1481_v11, %v802_v36  ;;  %v859_v15 = vadd.f32 %v858_v12, %v1866_v28  ;;  %v890_v16 = vpop.f32.mrb[33].mxu1  ;;  %v1474_v17 = vpop.f32.mrb[34].mxu0 }
 0x139   :  { %v981_v18 = vmul.f32 %v1893_v9, %v867_v10  ;;  %v891_v19 = vadd.f32 %v890_v16, %v794_v20  ;;  %v870_v22 = vadd.f32 %v1474_v17, %v1872_v43  ;;  %v1482_v23 = vpop.f32.mrb[34].mxu1  ;;  %v861_v24 = vpop.f32.mrb[35].mxu0 }
 0x13a   :  { %v989_v42 = vmul.f32 %v1893_v9, %v899_v14  ;;  %v979_v25 = vmul.f32 %v1893_v9, %v859_v15  ;;  %v902_v26 = vadd.f32 %v1482_v23, %v805_v37  ;;  %v862_v27 = vadd.f32 %v861_v24, %v1868_v29  ;;  %v893_v30 = vpop.f32.mrb[35].mxu1 }
 0x13b   :  { %v1004_v31 = vadd.f32 %v1899_v13, %v981_v18  ;;  %v987_v28 = vmul.f32 %v1893_v9, %v891_v19  ;;  %v982_v32 = vmul.f32 %v1893_v9, %v870_v22  ;;  %v894_v20 = vadd.f32 %v893_v30, %v1882_v21 }
 0x13c   :  { %v1012_v43 = vadd.f32 %v1899_v13, %v989_v42  ;;  %v1002_v33 = vadd.f32 %v1899_v13, %v979_v25  ;;  %v990_v34 = vmul.f32 %v1893_v9, %v902_v26  ;;  %v980_v35 = vmul.f32 %v1893_v9, %v862_v27 }
 0x13d   :  { %vm1020_vm0 = vcmp.ge.f32.partialorder %v1004_v31, 1.0  ;;  %v1010_v29 = vadd.f32 %v1899_v13, %v987_v28  ;;  %v1005_v36 = vadd.f32 %v1899_v13, %v982_v32  ;;  %v988_v37 = vmul.f32 %v1893_v9, %v894_v20 }
 0x13e   :  { %v1234_v39 = vsel %vm1020_vm0, 1.0, %v1600_v38  ;;  %vm1028_vm1 = vcmp.ge.f32.partialorder %v1012_v43, 1.0  ;;  %vm1018_vm2 = vcmp.ge.f32.partialorder %v1002_v33, 1.0  ;;  %v1013_v21 = vadd.f32 %v1899_v13, %v990_v34  ;;  %v1477_v40 = vpop.f32.mrb[36].mxu0 }
 0x13f   :  { %v1242_v41 = vsel %vm1028_vm1, 1.0, %v1600_v38  ;;  %v1232_v44 = vsel %vm1018_vm2, 1.0, %v1600_v38  ;;  %vm1026_vm3 = vcmp.ge.f32.partialorder %v1010_v29, 1.0  ;;  %vm1021_vm4 = vcmp.ge.f32.partialorder %v1005_v36, 1.0  ;;  %v1485_v45 = vpop.f32.mrb[36].mxu1  ;;  %v874_v46 = vpop.f32.mrb[37].mxu0 }
 0x140   :  { %v1240_v47 = vsel %vm1026_vm3, 1.0, %v1600_v38  ;;  %v1235_v48 = vsel %vm1021_vm4, 1.0, %v1600_v38  ;;  %vm1029_vm5 = vcmp.ge.f32.partialorder %v1013_v21, 1.0  ;;  %v1003_v49 = vadd.f32 %v1899_v13, %v980_v35  ;;  %v906_v50 = vpop.f32.mrb[37].mxu1  ;;  %v1478_v51 = vpop.f32.mrb[38].mxu0 }
 0x141   :  { %v1284_v54 = vpack.c.bf16 %v1235_v48, %v1234_v39  ;;  %v1243_v55 = vsel %vm1029_vm5, 1.0, %v1600_v38  ;;  %v1011_v58 = vadd.f32 %v1899_v13, %v988_v37  ;;  %v883_v59 = vadd.f32 %v1477_v40, %v1878_v6  ;;  %v1486_v60 = vpop.f32.mrb[38].mxu1  ;;  %v877_v61 = vpop.f32.mrb[39].mxu0 }
 0x142   :  { %v1296_v62 = vpack.c.bf16 %v1243_v55, %v1242_v41  ;;  %vm1019_vm6 = vcmp.ge.f32.partialorder %v1003_v49, 1.0  ;;  %v915_v63 = vadd.f32 %v1485_v45, %v818_v4  ;;  %v875_v0 = vadd.f32 %v874_v46, %v1874_v56  ;;  %v909_v1 = vpop.f32.mrb[39].mxu1 }
 0x143   :  { %1304 = vst [vmem:[%s1988_s4 + $0x8] sm:$0xff] %v1284_v54   ;;  %v1233_v2 = vsel %vm1019_vm6, 1.0, %v1600_v38  ;;  %vm1027_vm7 = vcmp.ge.f32.partialorder %v1011_v58, 1.0  ;;  %v985_v3 = vmul.f32 %v1893_v9, %v883_v59  ;;  %v907_v8 = vadd.f32 %v906_v50, %v1884_v52 }
 0x144   :  { %1308 = vst [vmem:[%s1988_s4 + $0x28] sm:$0xff] %v1296_v62   ;;  %v1281_v6 = vpack.c.bf16 %v1233_v2, %v1232_v44  ;;  %v1241_v4 = vsel %vm1027_vm7, 1.0, %v1600_v38  ;;  %v993_v56 = vmul.f32 %v1893_v9, %v915_v63  ;;  %v983_v10 = vmul.f32 %v1893_v9, %v875_v0 }
 0x145   :  { %v1293_v11 = vpack.c.bf16 %v1241_v4, %v1240_v47  ;;  %v1008_v12 = vadd.f32 %v1899_v13, %v985_v3  ;;  %v991_v14 = vmul.f32 %v1893_v9, %v907_v8  ;;  %v886_v15 = vadd.f32 %v1478_v51, %v1880_v7 }
 0x146   :  { %1282 = vst [vmem:[%s1988_s4] sm:$0xff] %v1281_v6   ;;  %v1016_v52 = vadd.f32 %v1899_v13, %v993_v56  ;;  %v918_v16 = vadd.f32 %v1486_v60, %v1888_v5  ;;  %v878_v17 = vadd.f32 %v877_v61, %v1876_v57  ;;  %v1006_v18 = vadd.f32 %v1899_v13, %v983_v10 }
 0x147   :  { %1307 = vst [vmem:[%s1988_s4 + $0x20] sm:$0xff] %v1293_v11   ;;  %v1014_v19 = vadd.f32 %v1899_v13, %v991_v14  ;;  %v986_v7 = vmul.f32 %v1893_v9, %v886_v15  ;;  %v910_v22 = vadd.f32 %v909_v1, %v1886_v53  ;;  %vm1024_vm8 = vcmp.ge.f32.partialorder %v1008_v12, 1.0 }
 0x148   :  { %v994_v23 = vmul.f32 %v1893_v9, %v918_v16  ;;  %vm1032_vm9 = vcmp.ge.f32.partialorder %v1016_v52, 1.0  ;;  %v984_v5 = vmul.f32 %v1893_v9, %v878_v17  ;;  %v1238_v25 = vsel %vm1024_vm8, 1.0, %v1600_v38 }
 0x149   :  { %v1009_v24 = vadd.f32 %v1899_v13, %v986_v7  ;;  %v992_v42 = vmul.f32 %v1893_v9, %v910_v22  ;;  %vm1022_vm10 = vcmp.ge.f32.partialorder %v1006_v18, 1.0  ;;  %vm1030_vm11 = vcmp.ge.f32.partialorder %v1014_v19, 1.0 }
 0x14a   :  { %v1017_v57 = vadd.f32 %v1899_v13, %v994_v23  ;;  %v1007_v53 = vadd.f32 %v1899_v13, %v984_v5  ;;  %v1246_v30 = vsel %vm1032_vm9, 1.0, %v1600_v38  ;;  %v1236_v9 = vsel %vm1022_vm10, 1.0, %v1600_v38 }
 0x14b   :  { %vm1025_vm12 = vcmp.ge.f32.partialorder %v1009_v24, 1.0  ;;  %v1015_v27 = vadd.f32 %v1899_v13, %v992_v42  ;;  %v1244_v20 = vsel %vm1030_vm11, 1.0, %v1600_v38 }
 0x14c   :  { %v1239_v26 = vsel %vm1025_vm12, 1.0, %v1600_v38  ;;  %vm1033_vm13 = vcmp.ge.f32.partialorder %v1017_v57, 1.0  ;;  %vm1023_vm14 = vcmp.ge.f32.partialorder %v1007_v53, 1.0 }
 0x14d   :  { %v1290_v31 = vpack.c.bf16 %v1239_v26, %v1238_v25  ;;  %v1247_v28 = vsel %vm1033_vm13, 1.0, %v1600_v38  ;;  %vm1031_vm15 = vcmp.ge.f32.partialorder %v1015_v27, 1.0  ;;  %v1237_v43 = vsel %vm1023_vm14, 1.0, %v1600_v38 }
 0x14e   :  { %v1302_v32 = vpack.c.bf16 %v1247_v28, %v1246_v30  ;;  %v1245_v13 = vsel %vm1031_vm15, 1.0, %v1600_v38  ;;  %v1287_v33 = vpack.c.bf16 %v1237_v43, %v1236_v9 }
 0x14f   :  { %1306 = vst [vmem:[%s1988_s4 + $0x18] sm:$0xff] %v1290_v31   ;;  %v1299_v34 = vpack.c.bf16 %v1245_v13, %v1244_v20 }
 0x150   :  { %1310 = vst [vmem:[%s1988_s4 + $0x38] sm:$0xff] %v1302_v32   ;;  %1305 = vst [vmem:[%s1988_s4 + $0x10] sm:$0xff] %v1287_v33  }
 0x151   :  { %1309 = vst [vmem:[%s1988_s4 + $0x30] sm:$0xff] %v1299_v34  }

// kernel: _lambda_.18
= control target key start
LH: loop header
LB: loop body
LE: loop exit
PB: predicated region body
PF: predicated region fallthrough
CT: control target
= control target key end

     0   :  { %s2091_s1 = inlined_call_operand.vmem [shape: bf16[640,128], index: 1, kind: input, shape index: {}]   ;;  %s2092_s0 = inlined_call_operand.vmem [shape: bf16[128,640], index: 0, kind: input, shape index: {}]   ;;  %s2093_s2 = inlined_call_operand.vmem [shape: f32[1,128], index: 2, kind: input, shape index: {}]   ;;  %s2094_s3 = inlined_call_operand.vmem [shape: f32[1,128], index: 3, kind: input, shape index: {}]   ;;  %s2095_s4 = inlined_call_operand.vmem [shape: f32[128,128], index: 4, kind: input, shape index: {}]   ;;  %s2096_s5 = inlined_call_operand.vmem [shape: bf16[128,128], index: 5, kind: output, shape index: {}]  }
   0x1   :  { %v1555_v0 = vld [vmem:[%s2091_s1 + $0x40] sm:$0xff]   ;;  %v1559_v4 = vld [vmem:[%s2091_s1 + $0x48] sm:$0xff]   ;;  %v1563_v8 = vld [vmem:[%s2091_s1 + $0x50] sm:$0xff]  }
   0x2   :  { %v1556_v1 = vld [vmem:[%s2091_s1 + $0xc0] sm:$0xff]   ;;  %1362 = vmatprep.subr.bf16.mxu0 %v1555_v0  ;;  %v1560_v5 = vld [vmem:[%s2091_s1 + $0xc8] sm:$0xff]   ;;  %v1564_v9 = vld [vmem:[%s2091_s1 + $0xd0] sm:$0xff]  }
   0x3   :  { %v1557_v2 = vld [vmem:[%s2091_s1] sm:$0xff]   ;;  %1426 = vmatprep.subr.bf16.mxu1 %v1556_v1  ;;  %v1561_v6 = vld [vmem:[%s2091_s1 + $0x8] sm:$0xff]   ;;  %v1565_v10 = vld [vmem:[%s2091_s1 + $0x10] sm:$0xff]  }
   0x4   :  { %v1558_v3 = vld [vmem:[%s2091_s1 + $0x80] sm:$0xff]   ;;  %1363 = vmatpush3.bf16.msra.mxu0 %v1557_v2  ;;  %v1562_v7 = vld [vmem:[%s2091_s1 + $0x88] sm:$0xff]   ;;  %v1566_v11 = vld [vmem:[%s2091_s1 + $0x90] sm:$0xff]  }
   0x5   :  { %1427 = vmatpush3.bf16.msra.mxu1 %v1558_v3  ;;  %1364 = vmatprep.subr.bf16.mxu0 %v1559_v4  ;;  %v1567_v12 = vld [vmem:[%s2091_s1 + $0x58] sm:$0xff]   ;;  %v1571_v16 = vld [vmem:[%s2091_s1 + $0x60] sm:$0xff]   ;;  %v1575_v20 = vld [vmem:[%s2091_s1 + $0x68] sm:$0xff]  }
   0x6   :  { %1428 = vmatprep.subr.bf16.mxu1 %v1560_v5  ;;  %v1568_v13 = vld [vmem:[%s2091_s1 + $0xd8] sm:$0xff]   ;;  %v1572_v17 = vld [vmem:[%s2091_s1 + $0xe0] sm:$0xff]   ;;  %v1576_v21 = vld [vmem:[%s2091_s1 + $0xe8] sm:$0xff]  }
   0x7   :  { %v1569_v14 = vld [vmem:[%s2091_s1 + $0x18] sm:$0xff]   ;;  %v1573_v18 = vld [vmem:[%s2091_s1 + $0x20] sm:$0xff]   ;;  %v1577_v22 = vld [vmem:[%s2091_s1 + $0x28] sm:$0xff]  }
   0x8   :  { %1365 = vmatpush3.bf16.msra.mxu0 %v1561_v6  ;;  %v1570_v15 = vld [vmem:[%s2091_s1 + $0x98] sm:$0xff]   ;;  %v1574_v19 = vld [vmem:[%s2091_s1 + $0xa0] sm:$0xff]   ;;  %v1578_v23 = vld [vmem:[%s2091_s1 + $0xa8] sm:$0xff]  }
   0x9   :  { %1429 = vmatpush3.bf16.msra.mxu1 %v1562_v7  ;;  %1366 = vmatprep.subr.bf16.mxu0 %v1563_v8  ;;  %v1579_v24 = vld [vmem:[%s2091_s1 + $0x70] sm:$0xff]   ;;  %v1583_v28 = vld [vmem:[%s2091_s1 + $0x78] sm:$0xff]   ;;  %v1592_v35 = vld [vmem:[%s2092_s0 + $0xc] ss:$20 sps:$4 sm:$0xff]  }
   0xa   :  { %1430 = vmatprep.subr.bf16.mxu1 %v1564_v9  ;;  %v1580_v25 = vld [vmem:[%s2091_s1 + $0xf0] sm:$0xff]   ;;  %v1584_v29 = vld [vmem:[%s2091_s1 + $0xf8] sm:$0xff]   ;;  %v1593_v36 = vld [vmem:[%s2091_s1 + $0x100] sm:$0xff]   ;;  %762 = vmatprep.mubr.bf16.mxu1 %v1592_v35 }
   0xb   :  { %v1581_v26 = vld [vmem:[%s2091_s1 + $0x30] sm:$0xff]   ;;  %v1585_v30 = vld [vmem:[%s2091_s1 + $0x38] sm:$0xff]   ;;  %v1594_v37 = vld [vmem:[%s2092_s0 + $0x2c] ss:$20 sps:$4 sm:$0xff]  }
   0xc   :  { %1367 = vmatpush3.bf16.msra.mxu0 %v1565_v10  ;;  %v1582_v27 = vld [vmem:[%s2091_s1 + $0xb0] sm:$0xff]   ;;  %v1586_v31 = vld [vmem:[%s2091_s1 + $0xb8] sm:$0xff]   ;;  %v1600_v39 = vld [vmem:[%s2091_s1 + $0x108] sm:$0xff]  }
   0xd   :  { %1431 = vmatpush3.bf16.msra.mxu1 %v1566_v11  ;;  %1368 = vmatprep.subr.bf16.mxu0 %v1567_v12  ;;  %v1587_v32 = vld [vmem:[%s2092_s0] ss:$20 sps:$4 sm:$0xff]   ;;  %v1589_v33 = vld [vmem:[%s2092_s0 + $0x4] ss:$20 sps:$4 sm:$0xff]   ;;  %v1590_v34 = vld [vmem:[%s2092_s0 + $0x8] ss:$20 sps:$4 sm:$0xff]  }
   0xe   :  { %1432 = vmatprep.subr.bf16.mxu1 %v1568_v13  ;;  %665 = vmatprep.mubr.bf16.mxu0 %v1589_v33  ;;  %v1596_v38 = vld [vmem:[%s2092_s0 + $0x34] ss:$20 sps:$4 sm:$0xff]   ;;  %v1599_v41 = vld [vmem:[%s2092_s0 + $0x30] ss:$20 sps:$4 sm:$0xff]   ;;  %v1614_v45 = vld [vmem:[%s2091_s1 + $0x118] sm:$0xff]  }
   0xf   :  { %v1598_v40 = vld [vmem:[%s2092_s0 + $0x28] ss:$20 sps:$4 sm:$0xff]   ;;  %v1607_v44 = vld [vmem:[%s2091_s1 + $0x110] sm:$0xff]   ;;  %v1606_v47 = vld [vmem:[%s2092_s0 + $0x58] ss:$20 sps:$4 sm:$0xff]  }
  0x10   :  { %1369 = vmatpush3.bf16.msra.mxu0 %v1569_v14  ;;  %v1601_v42 = vld [vmem:[%s2092_s0 + $0x54] ss:$20 sps:$4 sm:$0xff]   ;;  %v1603_v43 = vld [vmem:[%s2092_s0 + $0x5c] ss:$20 sps:$4 sm:$0xff]   ;;  %v1610_v49 = vld [vmem:[%s2092_s0 + $0x84] ss:$20 sps:$4 sm:$0xff]  }
  0x11   :  { %1433 = vmatpush3.bf16.msra.mxu1 %v1570_v15  ;;  %1370 = vmatprep.subr.bf16.mxu0 %v1571_v16  ;;  %v1605_v46 = vld [vmem:[%s2092_s0 + $0x50] ss:$20 sps:$4 sm:$0xff]   ;;  %v1628_v51 = vld [vmem:[%s2091_s1 + $0x128] sm:$0xff]   ;;  %v1613_v53 = vld [vmem:[%s2092_s0 + $0x80] ss:$20 sps:$4 sm:$0xff]  }
  0x12   :  { %1434 = vmatprep.subr.bf16.mxu1 %v1572_v17  ;;  %v1608_v48 = vld [vmem:[%s2092_s0 + $0x7c] ss:$20 sps:$4 sm:$0xff]   ;;  %v1621_v50 = vld [vmem:[%s2091_s1 + $0x120] sm:$0xff]   ;;  %v1612_v52 = vld [vmem:[%s2092_s0 + $0x78] ss:$20 sps:$4 sm:$0xff]  }
  0x13   :  { %v1615_v54 = vld [vmem:[%s2092_s0 + $0xa4] ss:$20 sps:$4 sm:$0xff]   ;;  %v1635_v55 = vld [vmem:[%s2091_s1 + $0x130] sm:$0xff]   ;;  %v1617_v56 = vld [vmem:[%s2092_s0 + $0xac] ss:$20 sps:$4 sm:$0xff]  }
  0x14   :  { %1371 = vmatpush3.bf16.msra.mxu0 %v1573_v18  ;;  %v1642_v57 = vld [vmem:[%s2091_s1 + $0x138] sm:$0xff]   ;;  %v1619_v58 = vld [vmem:[%s2092_s0 + $0xa0] ss:$20 sps:$4 sm:$0xff]   ;;  %v1627_v63 = vld [vmem:[%s2092_s0 + $0xd0] ss:$20 sps:$4 sm:$0xff]  }
  0x15   :  { %1435 = vmatpush3.bf16.msra.mxu1 %v1574_v19  ;;  %1372 = vmatprep.subr.bf16.mxu0 %v1575_v20  ;;  %v1620_v59 = vld [vmem:[%s2092_s0 + $0xa8] ss:$20 sps:$4 sm:$0xff]   ;;  %v1622_v60 = vld [vmem:[%s2092_s0 + $0xcc] ss:$20 sps:$4 sm:$0xff]   ;;  %v1633_v2 = vld [vmem:[%s2092_s0 + $0xf0] ss:$20 sps:$4 sm:$0xff]  }
  0x16   :  { %1436 = vmatprep.subr.bf16.mxu1 %v1576_v21  ;;  %v1624_v61 = vld [vmem:[%s2092_s0 + $0xd4] ss:$20 sps:$4 sm:$0xff]   ;;  %v1631_v1 = vld [vmem:[%s2092_s0 + $0xfc] ss:$20 sps:$4 sm:$0xff]   ;;  %v1634_v3 = vld [vmem:[%s2092_s0 + $0xf8] ss:$20 sps:$4 sm:$0xff]  }
  0x17   :  { %v1626_v62 = vld [vmem:[%s2092_s0 + $0xc8] ss:$20 sps:$4 sm:$0xff]   ;;  %v1638_v5 = vld [vmem:[%s2092_s0 + $0x124] ss:$20 sps:$4 sm:$0xff]   ;;  %v1641_v7 = vld [vmem:[%s2092_s0 + $0x120] ss:$20 sps:$4 sm:$0xff]  }
  0x18   :  { %1373 = vmatpush3.bf16.msra.mxu0 %v1577_v22  ;;  %v1629_v0 = vld [vmem:[%s2092_s0 + $0xf4] ss:$20 sps:$4 sm:$0xff]   ;;  %v1636_v4 = vld [vmem:[%s2092_s0 + $0x11c] ss:$20 sps:$4 sm:$0xff]   ;;  %v1640_v6 = vld [vmem:[%s2092_s0 + $0x118] ss:$20 sps:$4 sm:$0xff]  }
  0x19   :  { %1437 = vmatpush3.bf16.msra.mxu1 %v1578_v23  ;;  %1374 = vmatprep.subr.bf16.mxu0 %v1579_v24  ;;  %v1643_v8 = vld [vmem:[%s2092_s0 + $0x10] ss:$20 sps:$4 sm:$0xff]   ;;  %v1645_v10 = vld [vmem:[%s2092_s0 + $0x38] ss:$20 sps:$4 sm:$0xff]   ;;  %v1647_v12 = vld [vmem:[%s2092_s0 + $0x60] ss:$20 sps:$4 sm:$0xff]  }
  0x1a   :  { %1438 = vmatprep.subr.bf16.mxu1 %v1580_v25  ;;  %v1644_v9 = vld [vmem:[%s2092_s0 + $0xb0] ss:$20 sps:$4 sm:$0xff]   ;;  %v1646_v11 = vld [vmem:[%s2092_s0 + $0xd8] ss:$20 sps:$4 sm:$0xff]   ;;  %v1648_v13 = vld [vmem:[%s2092_s0 + $0x100] ss:$20 sps:$4 sm:$0xff]  }
  0x1b   :  { %v1649_v14 = vld [vmem:[%s2092_s0 + $0x88] ss:$20 sps:$4 sm:$0xff]  }
  0x1c   :  { %1375 = vmatpush3.bf16.msra.mxu0 %v1581_v26  ;;  %v1650_v15 = vld [vmem:[%s2092_s0 + $0x128] ss:$20 sps:$4 sm:$0xff]  }
  0x1d   :  { %1439 = vmatpush3.bf16.msra.mxu1 %v1582_v27  ;;  %1376 = vmatprep.subr.bf16.mxu0 %v1583_v28 }
  0x1e   :  { %1440 = vmatprep.subr.bf16.mxu1 %v1584_v29 }
  0x20   :  { %1377 = vmatpush3.bf16.msra.mxu0 %v1585_v30 }
  0x21   :  { %1441 = vmatpush3.bf16.msra.mxu1 %v1586_v31  ;;  %1506 = vmatprep.subr.bf16.mxu0 %v1593_v36 }
  0x22   :  { %1538 = vmatprep.subr.bf16.mxu1 %v1593_v36 }
  0x23   :  { %666 = vmatmul.mubr.bf16.vlgmr.msra.gmra.mrb[0].mxu0 %v1587_v32 }
  0x24   :  { %763 = vmatmul.mubr.bf16.vlgmr.msra.gmra.mrb[0].mxu1 %v1590_v34  ;;  %1507 = vmatpush3.bf16.msra.mxu0 %v1593_v36 }
  0x25   :  { %1546 = vmatpush3.bf16.msra.mxu1 %v1593_v36  ;;  %673 = vmatprep.mubr.bf16.mxu0 %v1594_v37 }
  0x26   :  { %770 = vmatprep.mubr.bf16.mxu1 %v1596_v38  ;;  %1508 = vmatprep.subr.bf16.mxu0 %v1600_v39 }
  0x27   :  { %1539 = vmatprep.subr.bf16.mxu1 %v1600_v39 }
  0x28   :  { %1509 = vmatpush3.bf16.msra.mxu0 %v1600_v39 }
  0x29   :  { %1547 = vmatpush3.bf16.msra.mxu1 %v1600_v39  ;;  %1510 = vmatprep.subr.bf16.mxu0 %v1607_v44 }
  0x2a   :  { %1540 = vmatprep.subr.bf16.mxu1 %v1607_v44 }
  0x2b   :  { %674 = vmatmul.mubr.bf16.gmra.mrb[4].mxu0 %v1598_v40 }
  0x2c   :  { %771 = vmatmul.mubr.bf16.gmra.mrb[4].mxu1 %v1599_v41  ;;  %681 = vmatprep.mubr.bf16.mxu0 %v1601_v42 }
  0x2d   :  { %778 = vmatprep.mubr.bf16.mxu1 %v1603_v43  ;;  %1511 = vmatpush3.bf16.msra.mxu0 %v1607_v44 }
  0x2e   :  { %1548 = vmatpush3.bf16.msra.mxu1 %v1607_v44  ;;  %1512 = vmatprep.subr.bf16.mxu0 %v1614_v45 }
  0x2f   :  { %1541 = vmatprep.subr.bf16.mxu1 %v1614_v45 }
  0x31   :  { %1513 = vmatpush3.bf16.msra.mxu0 %v1614_v45 }
  0x32   :  { %1549 = vmatpush3.bf16.msra.mxu1 %v1614_v45  ;;  %1514 = vmatprep.subr.bf16.mxu0 %v1621_v50 }
  0x33   :  { %682 = vmatmul.mubr.bf16.gmra.mrb[8].mxu0 %v1605_v46  ;;  %1542 = vmatprep.subr.bf16.mxu1 %v1621_v50 }
  0x34   :  { %779 = vmatmul.mubr.bf16.gmra.mrb[8].mxu1 %v1606_v47  ;;  %689 = vmatprep.mubr.bf16.mxu0 %v1608_v48 }
  0x35   :  { %786 = vmatprep.mubr.bf16.mxu1 %v1610_v49  ;;  %1515 = vmatpush3.bf16.msra.mxu0 %v1621_v50 }
  0x36   :  { %1550 = vmatpush3.bf16.msra.mxu1 %v1621_v50  ;;  %1516 = vmatprep.subr.bf16.mxu0 %v1628_v51 }
  0x37   :  { %1543 = vmatprep.subr.bf16.mxu1 %v1628_v51 }
  0x39   :  { %1517 = vmatpush3.bf16.msra.mxu0 %v1628_v51 }
  0x3a   :  { %1551 = vmatpush3.bf16.msra.mxu1 %v1628_v51  ;;  %1518 = vmatprep.subr.bf16.mxu0 %v1635_v55 }
  0x3b   :  { %690 = vmatmul.mubr.bf16.gmra.mrb[12].mxu0 %v1612_v52  ;;  %1544 = vmatprep.subr.bf16.mxu1 %v1635_v55 }
  0x3c   :  { %787 = vmatmul.mubr.bf16.gmra.mrb[12].mxu1 %v1613_v53  ;;  %697 = vmatprep.mubr.bf16.mxu0 %v1615_v54 }
  0x3d   :  { %794 = vmatprep.mubr.bf16.mxu1 %v1617_v56  ;;  %1519 = vmatpush3.bf16.msra.mxu0 %v1635_v55 }
  0x3e   :  { %1552 = vmatpush3.bf16.msra.mxu1 %v1635_v55  ;;  %1520 = vmatprep.subr.bf16.mxu0 %v1642_v57 }
  0x3f   :  { %1545 = vmatprep.subr.bf16.mxu1 %v1642_v57 }
  0x41   :  { %1521 = vmatpush3.bf16.msra.mxu0 %v1642_v57 }
  0x42   :  { %1553 = vmatpush3.bf16.msra.mxu1 %v1642_v57 }
  0x43   :  { %698 = vmatmul.mubr.bf16.gmra.mrb[16].mxu0 %v1619_v58 }
  0x44   :  { %795 = vmatmul.mubr.bf16.gmra.mrb[16].mxu1 %v1620_v59  ;;  %705 = vmatprep.mubr.bf16.mxu0 %v1622_v60 }
  0x45   :  { %802 = vmatprep.mubr.bf16.mxu1 %v1624_v61 }
  0x4b   :  { %706 = vmatmul.mubr.bf16.gmra.mrb[20].mxu0 %v1626_v62 }
  0x4c   :  { %803 = vmatmul.mubr.bf16.gmra.mrb[20].mxu1 %v1627_v63  ;;  %713 = vmatprep.mubr.bf16.mxu0 %v1629_v0 }
  0x4d   :  { %810 = vmatprep.mubr.bf16.mxu1 %v1631_v1 }
  0x53   :  { %714 = vmatmul.mubr.bf16.gmra.mrb[24].mxu0 %v1633_v2 }
  0x54   :  { %811 = vmatmul.mubr.bf16.gmra.mrb[24].mxu1 %v1634_v3  ;;  %721 = vmatprep.mubr.bf16.mxu0 %v1636_v4 }
  0x55   :  { %818 = vmatprep.mubr.bf16.mxu1 %v1638_v5 }
  0x5b   :  { %722 = vmatmul.mubr.bf16.gmra.mrb[28].mxu0 %v1640_v6 }
  0x5c   :  { %819 = vmatmul.mubr.bf16.gmra.mrb[28].mxu1 %v1641_v7  ;;  %1522 = vmatprep.mubr.bf16.mxu0 %v1643_v8 }
  0x5d   :  { %1530 = vmatprep.mubr.bf16.mxu1 %v1644_v9 }
  0x63   :  { %1523 = vmatmul.mubr.bf16.vlgmr.msra.gmra.mrb[32].mxu0 %v1645_v10 }
  0x64   :  { %1531 = vmatmul.mubr.bf16.vlgmr.msra.gmra.mrb[32].mxu1 %v1646_v11  ;;  %1526 = vmatprep.mubr.bf16.mxu0 %v1647_v12 }
  0x65   :  { %1534 = vmatprep.mubr.bf16.mxu1 %v1648_v13 }
  0x6b   :  { %1527 = vmatmul.mubr.bf16.gmra.mrb[36].mxu0 %v1649_v14 }
  0x6c   :  { %1535 = vmatmul.mubr.bf16.gmra.mrb[36].mxu1 %v1650_v15 }
  0xf6   :  { %v1378_v16 = vpop.f32.mrb[0].mxu0 }
  0xf7   :  { %v1442_v17 = vpop.f32.mrb[0].mxu1  ;;  %v1379_v18 = vpop.f32.mrb[1].mxu0 }
  0xf8   :  { %v1380_v19 = vadd.f32 %v1379_v18, %v1378_v16  ;;  %v1443_v20 = vpop.f32.mrb[1].mxu1  ;;  %v1381_v21 = vpop.f32.mrb[2].mxu0 }
  0xf9   :  { %v1444_v22 = vadd.f32 %v1443_v20, %v1442_v17  ;;  %v1445_v23 = vpop.f32.mrb[2].mxu1  ;;  %v1382_v24 = vpop.f32.mrb[3].mxu0 }
  0xfa   :  { %v1383_v25 = vadd.f32 %v1382_v24, %v1381_v21  ;;  %v1446_v26 = vpop.f32.mrb[3].mxu1 }
  0xfb   :  { %v1447_v27 = vadd.f32 %v1446_v26, %v1445_v23  ;;  %v1922_v28 = vadd.f32 %v1444_v22, %v1380_v19 }
  0xfd   :  { %v1924_v29 = vadd.f32 %v1447_v27, %v1383_v25 }
  0xfe   :  { %v1384_v30 = vpop.f32.mrb[4].mxu0 }
  0xff   :  { %v1448_v31 = vpop.f32.mrb[4].mxu1  ;;  %v1385_v32 = vpop.f32.mrb[5].mxu0 }
 0x100   :  { %v1386_v33 = vadd.f32 %v1385_v32, %v1384_v30  ;;  %v1449_v34 = vpop.f32.mrb[5].mxu1  ;;  %v1387_v35 = vpop.f32.mrb[6].mxu0 }
 0x101   :  { %v1450_v36 = vadd.f32 %v1449_v34, %v1448_v31  ;;  %v1451_v37 = vpop.f32.mrb[6].mxu1  ;;  %v1388_v38 = vpop.f32.mrb[7].mxu0 }
 0x102   :  { %v1389_v39 = vadd.f32 %v1388_v38, %v1387_v35  ;;  %v1452_v40 = vpop.f32.mrb[7].mxu1 }
 0x103   :  { %v1453_v41 = vadd.f32 %v1452_v40, %v1451_v37  ;;  %v1926_v42 = vadd.f32 %v1450_v36, %v1386_v33 }
 0x105   :  { %v1928_v43 = vadd.f32 %v1453_v41, %v1389_v39 }
 0x106   :  { %v1390_v44 = vpop.f32.mrb[8].mxu0 }
 0x107   :  { %v1454_v45 = vpop.f32.mrb[8].mxu1  ;;  %v1391_v46 = vpop.f32.mrb[9].mxu0 }
 0x108   :  { %v1392_v47 = vadd.f32 %v1391_v46, %v1390_v44  ;;  %v1455_v48 = vpop.f32.mrb[9].mxu1  ;;  %v1393_v49 = vpop.f32.mrb[10].mxu0 }
 0x109   :  { %v1456_v50 = vadd.f32 %v1455_v48, %v1454_v45  ;;  %v1457_v51 = vpop.f32.mrb[10].mxu1  ;;  %v1394_v52 = vpop.f32.mrb[11].mxu0 }
 0x10a   :  { %v1395_v53 = vadd.f32 %v1394_v52, %v1393_v49  ;;  %v1458_v54 = vpop.f32.mrb[11].mxu1 }
 0x10b   :  { %v1459_v55 = vadd.f32 %v1458_v54, %v1457_v51  ;;  %v1930_v56 = vadd.f32 %v1456_v50, %v1392_v47 }
 0x10d   :  { %v1932_v57 = vadd.f32 %v1459_v55, %v1395_v53 }
 0x10e   :  { %v1396_v58 = vpop.f32.mrb[12].mxu0 }
 0x10f   :  { %v1460_v59 = vpop.f32.mrb[12].mxu1  ;;  %v1397_v60 = vpop.f32.mrb[13].mxu0 }
 0x110   :  { %v1398_v61 = vadd.f32 %v1397_v60, %v1396_v58  ;;  %v1461_v62 = vpop.f32.mrb[13].mxu1  ;;  %v1399_v63 = vpop.f32.mrb[14].mxu0 }
 0x111   :  { %v1462_v0 = vadd.f32 %v1461_v62, %v1460_v59  ;;  %v1463_v1 = vpop.f32.mrb[14].mxu1  ;;  %v1400_v2 = vpop.f32.mrb[15].mxu0 }
 0x112   :  { %v1401_v3 = vadd.f32 %v1400_v2, %v1399_v63  ;;  %v1464_v4 = vpop.f32.mrb[15].mxu1 }
 0x113   :  { %v1465_v5 = vadd.f32 %v1464_v4, %v1463_v1  ;;  %v1934_v6 = vadd.f32 %v1462_v0, %v1398_v61 }
 0x115   :  { %v1936_v7 = vadd.f32 %v1465_v5, %v1401_v3 }
 0x116   :  { %v1402_v8 = vpop.f32.mrb[16].mxu0 }
 0x117   :  { %v1466_v9 = vpop.f32.mrb[16].mxu1  ;;  %v1403_v10 = vpop.f32.mrb[17].mxu0 }
 0x118   :  { %v1404_v11 = vadd.f32 %v1403_v10, %v1402_v8  ;;  %v1467_v12 = vpop.f32.mrb[17].mxu1  ;;  %v1405_v13 = vpop.f32.mrb[18].mxu0 }
 0x119   :  { %v1468_v14 = vadd.f32 %v1467_v12, %v1466_v9  ;;  %v1469_v15 = vpop.f32.mrb[18].mxu1  ;;  %v1406_v16 = vpop.f32.mrb[19].mxu0  ;;  %v1951_v9 = vld [vmem:[%s2093_s2] ss:$0 sm:$0xff] }
 0x11a   :  { %v1407_v17 = vadd.f32 %v1406_v16, %v1405_v13  ;;  %v1470_v18 = vpop.f32.mrb[19].mxu1  ;;  %v1957_v13 = vld [vmem:[%s2094_s3] ss:$0 sm:$0xff] }
 0x11b   :  { %v1471_v19 = vadd.f32 %v1470_v18, %v1469_v15  ;;  %v797_v20 = vadd.f32 %v1468_v14, %v1404_v11 }
 0x11d   :  { %v1938_v21 = vadd.f32 %v1471_v19, %v1407_v17 }
 0x11e   :  { %v1408_v22 = vpop.f32.mrb[20].mxu0 }
 0x11f   :  { %v1472_v23 = vpop.f32.mrb[20].mxu1  ;;  %v1409_v24 = vpop.f32.mrb[21].mxu0 }
 0x120   :  { %v1410_v25 = vadd.f32 %v1409_v24, %v1408_v22  ;;  %v1473_v26 = vpop.f32.mrb[21].mxu1  ;;  %v1411_v27 = vpop.f32.mrb[22].mxu0 }
 0x121   :  { %v1474_v30 = vadd.f32 %v1473_v26, %v1472_v23  ;;  %v1475_v31 = vpop.f32.mrb[22].mxu1  ;;  %v1412_v32 = vpop.f32.mrb[23].mxu0 }
 0x122   :  { %v1413_v33 = vadd.f32 %v1412_v32, %v1411_v27  ;;  %v1476_v34 = vpop.f32.mrb[23].mxu1 }
 0x123   :  { %v1477_v35 = vadd.f32 %v1476_v34, %v1475_v31  ;;  %v805_v36 = vadd.f32 %v1474_v30, %v1410_v25 }
 0x125   :  { %v808_v37 = vadd.f32 %v1477_v35, %v1413_v33 }
 0x126   :  { %v1414_v38 = vpop.f32.mrb[24].mxu0 }
 0x127   :  { %v1478_v39 = vpop.f32.mrb[24].mxu1  ;;  %v1415_v40 = vpop.f32.mrb[25].mxu0 }
 0x128   :  { %v1416_v41 = vadd.f32 %v1415_v40, %v1414_v38  ;;  %v1479_v44 = vpop.f32.mrb[25].mxu1  ;;  %v1417_v45 = vpop.f32.mrb[26].mxu0  ;;  %v1651_v40 = vmov 0.0  }
 0x129   :  { %v1480_v46 = vadd.f32 %v1479_v44, %v1478_v39  ;;  %v1481_v47 = vpop.f32.mrb[26].mxu1  ;;  %v1418_v48 = vpop.f32.mrb[27].mxu0  ;;  %v1077_v44 = vld [vmem:[%s2095_s4 + $0x40] sm:$0xff] }
 0x12a   :  { %v1419_v49 = vadd.f32 %v1418_v48, %v1417_v45  ;;  %v1482_v50 = vpop.f32.mrb[27].mxu1 }
 0x12b   :  { %v1483_v51 = vadd.f32 %v1482_v50, %v1481_v47  ;;  %v1940_v52 = vadd.f32 %v1480_v46, %v1416_v41  ;;  %v1072_v50 = vld [vmem:[%s2095_s4 + $0x18] sm:$0xff] }
 0x12d   :  { %v1942_v53 = vadd.f32 %v1483_v51, %v1419_v49 }
 0x12e   :  { %v1420_v54 = vpop.f32.mrb[28].mxu0 }
 0x12f   :  { %v1484_v55 = vpop.f32.mrb[28].mxu1  ;;  %v1421_v58 = vpop.f32.mrb[29].mxu0 }
 0x130   :  { %v1422_v59 = vadd.f32 %v1421_v58, %v1420_v54  ;;  %v1485_v60 = vpop.f32.mrb[29].mxu1  ;;  %v1423_v61 = vpop.f32.mrb[30].mxu0 }
 0x131   :  { %v1486_v62 = vadd.f32 %v1485_v60, %v1484_v55  ;;  %v1487_v63 = vpop.f32.mrb[30].mxu1  ;;  %v1424_v0 = vpop.f32.mrb[31].mxu0  ;;  %v1080_v60 = vld [vmem:[%s2095_s4 + $0x58] sm:$0xff] }
 0x132   :  { %v1425_v1 = vadd.f32 %v1424_v0, %v1423_v61  ;;  %v1488_v2 = vpop.f32.mrb[31].mxu1 }
 0x133   :  { %v1489_v3 = vadd.f32 %v1488_v2, %v1487_v63  ;;  %v1944_v4 = vadd.f32 %v1486_v62, %v1422_v59 }
 0x135   :  { %v1946_v5 = vadd.f32 %v1489_v3, %v1425_v1 }
 0x136   :  { %v1524_v8 = vpop.f32.mrb[32].mxu0 }
 0x137   :  { %v870_v10 = vadd.f32 %v1524_v8, %v1926_v42  ;;  %v1532_v11 = vpop.f32.mrb[32].mxu1  ;;  %v861_v12 = vpop.f32.mrb[33].mxu0 }
 0x138   :  { %v902_v14 = vadd.f32 %v1532_v11, %v805_v36  ;;  %v862_v15 = vadd.f32 %v861_v12, %v1922_v28  ;;  %v893_v16 = vpop.f32.mrb[33].mxu1  ;;  %v1525_v17 = vpop.f32.mrb[34].mxu0  ;;  %v1079_v36 = vld [vmem:[%s2095_s4 + $0x50] sm:$0xff]  ;;  %v1070_v11 = vld [vmem:[%s2095_s4 + $0x8] sm:$0xff] }
 0x139   :  { %v984_v18 = vmul.f32 %v1951_v9, %v870_v10  ;;  %v894_v19 = vadd.f32 %v893_v16, %v797_v20  ;;  %v873_v22 = vadd.f32 %v1525_v17, %v1928_v43  ;;  %v1533_v23 = vpop.f32.mrb[34].mxu1  ;;  %v864_v24 = vpop.f32.mrb[35].mxu0  ;;  %v1071_v43 = vld [vmem:[%s2095_s4 + $0x10] sm:$0xff]  ;;  %v1078_v17 = vld [vmem:[%s2095_s4 + $0x48] sm:$0xff] }
 0x13a   :  { %v992_v42 = vmul.f32 %v1951_v9, %v902_v14  ;;  %v982_v25 = vmul.f32 %v1951_v9, %v862_v15  ;;  %v905_v26 = vadd.f32 %v1533_v23, %v808_v37  ;;  %v865_v27 = vadd.f32 %v864_v24, %v1924_v29  ;;  %v896_v30 = vpop.f32.mrb[35].mxu1 }
 0x13b   :  { %v1007_v31 = vadd.f32 %v1957_v13, %v984_v18  ;;  %v990_v28 = vmul.f32 %v1951_v9, %v894_v19  ;;  %v985_v32 = vmul.f32 %v1951_v9, %v873_v22  ;;  %v897_v20 = vadd.f32 %v896_v30, %v1938_v21  ;;  %v1069_v21 = vld [vmem:[%s2095_s4] sm:$0xff] }
 0x13c   :  { %v1015_v33 = vadd.f32 %v1957_v13, %v992_v42  ;;  %v1005_v34 = vadd.f32 %v1957_v13, %v982_v25  ;;  %v993_v35 = vmul.f32 %v1951_v9, %v905_v26  ;;  %v983_v29 = vmul.f32 %v1951_v9, %v865_v27 }
 0x13d   :  { %vm1023_vm0 = vcmp.ge.f32.partialorder %v1007_v31, 1.0  ;;  %v1013_v37 = vadd.f32 %v1957_v13, %v990_v28  ;;  %v1008_v38 = vadd.f32 %v1957_v13, %v985_v32  ;;  %v991_v39 = vmul.f32 %v1951_v9, %v897_v20 }
 0x13e   :  { %v1269_v41 = vsel %vm1023_vm0, 1.0, %v1651_v40  ;;  %vm1031_vm1 = vcmp.ge.f32.partialorder %v1015_v33, 1.0  ;;  %vm1021_vm2 = vcmp.ge.f32.partialorder %v1005_v34, 1.0  ;;  %v1016_v45 = vadd.f32 %v1957_v13, %v993_v35  ;;  %v1528_v46 = vpop.f32.mrb[36].mxu0 }
 0x13f   :  { %v1087_v47 = vadd.f32 %v1269_v41, %v1071_v43  ;;  %v1277_v48 = vsel %vm1031_vm1, 1.0, %v1651_v40  ;;  %v1267_v49 = vsel %vm1021_vm2, 1.0, %v1651_v40  ;;  %vm1029_vm3 = vcmp.ge.f32.partialorder %v1013_v37, 1.0  ;;  %v1536_v51 = vpop.f32.mrb[36].mxu1  ;;  %v877_v54 = vpop.f32.mrb[37].mxu0  ;;  %v1084_v41 = vld [vmem:[%s2095_s4 + $0x78] sm:$0xff] }
 0x140   :  { %v1095_v55 = vadd.f32 %v1277_v48, %v1079_v36  ;;  %v1085_v58 = vadd.f32 %v1267_v49, %v1069_v21  ;;  %v1275_v59 = vsel %vm1029_vm3, 1.0, %v1651_v40  ;;  %vm1024_vm4 = vcmp.ge.f32.partialorder %v1008_v38, 1.0  ;;  %v909_v61 = vpop.f32.mrb[37].mxu1  ;;  %v1529_v62 = vpop.f32.mrb[38].mxu0  ;;  %v1083_v36 = vld [vmem:[%s2095_s4 + $0x70] sm:$0xff] }
 0x141   :  { %v1093_v63 = vadd.f32 %v1275_v59, %v1077_v44  ;;  %v1270_v0 = vsel %vm1024_vm4, 1.0, %v1651_v40  ;;  %vm1032_vm5 = vcmp.ge.f32.partialorder %v1016_v45, 1.0  ;;  %v1006_v1 = vadd.f32 %v1957_v13, %v983_v29  ;;  %v1537_v2 = vpop.f32.mrb[38].mxu1  ;;  %v880_v3 = vpop.f32.mrb[39].mxu0 }
 0x142   :  { %v1088_v8 = vadd.f32 %v1270_v0, %v1072_v50  ;;  %v1278_v10 = vsel %vm1032_vm5, 1.0, %v1651_v40  ;;  %v1014_v12 = vadd.f32 %v1957_v13, %v991_v39  ;;  %v886_v14 = vadd.f32 %v1528_v46, %v1934_v6  ;;  %v912_v15 = vpop.f32.mrb[39].mxu1  ;;  %v1076_v39 = vld [vmem:[%s2095_s4 + $0x38] sm:$0xff]  ;;  %v1082_v0 = vld [vmem:[%s2095_s4 + $0x68] sm:$0xff] }
 0x143   :  { %v1096_v16 = vadd.f32 %v1278_v10, %v1080_v60  ;;  %vm1022_vm6 = vcmp.ge.f32.partialorder %v1006_v1, 1.0  ;;  %v918_v18 = vadd.f32 %v1536_v51, %v1944_v4  ;;  %v878_v19 = vadd.f32 %v877_v54, %v1930_v56 }
 0x144   :  { %v1323_v22 = vpack.c.bf16 %v1088_v8, %v1087_v47  ;;  %v1268_v23 = vsel %vm1022_vm6, 1.0, %v1651_v40  ;;  %vm1030_vm7 = vcmp.ge.f32.partialorder %v1014_v12, 1.0  ;;  %v988_v24 = vmul.f32 %v1951_v9, %v886_v14 }
 0x145   :  { %v1343_v42 = vpack.c.bf16 %v1096_v16, %v1095_v55  ;;  %v1086_v25 = vadd.f32 %v1268_v23, %v1070_v11  ;;  %v1276_v6 = vsel %vm1030_vm7, 1.0, %v1651_v40  ;;  %v996_v26 = vmul.f32 %v1951_v9, %v918_v18 }
 0x146   :  { %1355 = vst [vmem:[%s2096_s5 + $0x8] sm:$0xff] %v1323_v22   ;;  %v1094_v27 = vadd.f32 %v1276_v6, %v1078_v17  ;;  %v1011_v4 = vadd.f32 %v1957_v13, %v988_v24  ;;  %v986_v56 = vmul.f32 %v1951_v9, %v878_v19  ;;  %v910_v30 = vadd.f32 %v909_v61, %v1940_v52  ;;  %v1074_v61 = vld [vmem:[%s2095_s4 + $0x28] sm:$0xff] }
 0x147   :  { %1359 = vst [vmem:[%s2096_s5 + $0x28] sm:$0xff] %v1343_v42   ;;  %v1318_v31 = vpack.c.bf16 %v1086_v25, %v1085_v58  ;;  %v1019_v28 = vadd.f32 %v1957_v13, %v996_v26  ;;  %v889_v32 = vadd.f32 %v1529_v62, %v1936_v7  ;;  %v921_v20 = vadd.f32 %v1537_v2, %v1946_v5  ;;  %v1075_v5 = vld [vmem:[%s2095_s4 + $0x30] sm:$0xff]  ;;  %v1073_v58 = vld [vmem:[%s2095_s4 + $0x20] sm:$0xff] }
 0x148   :  { %v1338_v43 = vpack.c.bf16 %v1094_v27, %v1093_v63  ;;  %vm1027_vm8 = vcmp.ge.f32.partialorder %v1011_v4, 1.0  ;;  %v994_v33 = vmul.f32 %v1951_v9, %v910_v30  ;;  %v1009_v52 = vadd.f32 %v1957_v13, %v986_v56 }
 0x149   :  { %1319 = vst [vmem:[%s2096_s5] sm:$0xff] %v1318_v31   ;;  %vm1035_vm9 = vcmp.ge.f32.partialorder %v1019_v28, 1.0  ;;  %v989_v34 = vmul.f32 %v1951_v9, %v889_v32  ;;  %v997_v35 = vmul.f32 %v1951_v9, %v921_v20  ;;  %v1273_v7 = vsel %vm1027_vm8, 1.0, %v1651_v40 }
 0x14a   :  { %1358 = vst [vmem:[%s2096_s5 + $0x20] sm:$0xff] %v1338_v43   ;;  %v1281_v29 = vsel %vm1035_vm9, 1.0, %v1651_v40  ;;  %v1017_v21 = vadd.f32 %v1957_v13, %v994_v33  ;;  %v881_v44 = vadd.f32 %v880_v3, %v1932_v57  ;;  %v913_v45 = vadd.f32 %v912_v15, %v1942_v53 }
 0x14b   :  { %v1012_v37 = vadd.f32 %v1957_v13, %v989_v34  ;;  %v1020_v38 = vadd.f32 %v1957_v13, %v997_v35  ;;  %v1091_v46 = vadd.f32 %v1273_v7, %v1075_v5  ;;  %vm1025_vm10 = vcmp.ge.f32.partialorder %v1009_v52, 1.0 }
 0x14c   :  { %v1099_v47 = vadd.f32 %v1281_v29, %v1083_v36  ;;  %v987_v50 = vmul.f32 %v1951_v9, %v881_v44  ;;  %vm1033_vm13 = vcmp.ge.f32.partialorder %v1017_v21, 1.0  ;;  %v995_v55 = vmul.f32 %v1951_v9, %v913_v45  ;;  %v1081_v9 = vld [vmem:[%s2095_s4 + $0x60] sm:$0xff] }
 0x14d   :  { %vm1028_vm11 = vcmp.ge.f32.partialorder %v1012_v37, 1.0  ;;  %vm1036_vm12 = vcmp.ge.f32.partialorder %v1020_v38, 1.0  ;;  %v1271_v53 = vsel %vm1025_vm10, 1.0, %v1651_v40  ;;  %v1279_v63 = vsel %vm1033_vm13, 1.0, %v1651_v40 }
 0x14e   :  { %v1274_v48 = vsel %vm1028_vm11, 1.0, %v1651_v40  ;;  %v1282_v49 = vsel %vm1036_vm12, 1.0, %v1651_v40  ;;  %v1010_v57 = vadd.f32 %v1957_v13, %v987_v50  ;;  %v1018_v62 = vadd.f32 %v1957_v13, %v995_v55 }
 0x14f   :  { %v1092_v51 = vadd.f32 %v1274_v48, %v1076_v39  ;;  %v1100_v54 = vadd.f32 %v1282_v49, %v1084_v41  ;;  %v1089_v1 = vadd.f32 %v1271_v53, %v1073_v58  ;;  %v1097_v8 = vadd.f32 %v1279_v63, %v1081_v9 }
 0x150   :  { %vm1026_vm14 = vcmp.ge.f32.partialorder %v1010_v57, 1.0  ;;  %vm1034_vm15 = vcmp.ge.f32.partialorder %v1018_v62, 1.0 }
 0x151   :  { %v1333_v59 = vpack.c.bf16 %v1092_v51, %v1091_v46  ;;  %v1353_v60 = vpack.c.bf16 %v1100_v54, %v1099_v47  ;;  %v1272_v13 = vsel %vm1026_vm14, 1.0, %v1651_v40  ;;  %v1280_v3 = vsel %vm1034_vm15, 1.0, %v1651_v40 }
 0x152   :  { %v1090_v2 = vadd.f32 %v1272_v13, %v1074_v61  ;;  %v1098_v10 = vadd.f32 %v1280_v3, %v1082_v0 }
 0x153   :  { %1357 = vst [vmem:[%s2096_s5 + $0x18] sm:$0xff] %v1333_v59   ;;  %1361 = vst [vmem:[%s2096_s5 + $0x38] sm:$0xff] %v1353_v60  }
 0x154   :  { %v1328_v11 = vpack.c.bf16 %v1090_v2, %v1089_v1  ;;  %v1348_v12 = vpack.c.bf16 %v1098_v10, %v1097_v8 }
 0x156   :  { %1356 = vst [vmem:[%s2096_s5 + $0x10] sm:$0xff] %v1328_v11   ;;  %1360 = vst [vmem:[%s2096_s5 + $0x30] sm:$0xff] %v1348_v12  }

// kernel: _lambda_.20
= control target key start
LH: loop header
LB: loop body
LE: loop exit
PB: predicated region body
PF: predicated region fallthrough
CT: control target
= control target key end

     0   :  { %s1034_s1 = inlined_call_operand.vmem [shape: bf16[640,128], index: 1, kind: input, shape index: {}]   ;;  %s1035_s0 = inlined_call_operand.vmem [shape: bf16[32,640], index: 0, kind: input, shape index: {}]   ;;  %s1036_s2 = inlined_call_operand.vmem [shape: f32[1,128], index: 2, kind: input, shape index: {}]   ;;  %s1037_s3 = inlined_call_operand.vmem [shape: f32[1,128], index: 3, kind: input, shape index: {}]   ;;  %s1038_s4 = inlined_call_operand.vmem [shape: bf16[32,128], index: 4, kind: output, shape index: {}]  }
   0x1   :  { %v792_v0 = vld [vmem:[%s1034_s1 + $0x40] sm:$0xff]   ;;  %v796_v4 = vld [vmem:[%s1034_s1 + $0x48] sm:$0xff]   ;;  %v800_v8 = vld [vmem:[%s1034_s1 + $0x50] sm:$0xff]  }
   0x2   :  { %v793_v1 = vld [vmem:[%s1034_s1 + $0xc0] sm:$0xff]   ;;  %705 = vmatprep.subr.bf16.mxu0 %v792_v0  ;;  %v797_v5 = vld [vmem:[%s1034_s1 + $0xc8] sm:$0xff]   ;;  %v801_v9 = vld [vmem:[%s1034_s1 + $0xd0] sm:$0xff]  }
   0x3   :  { %v794_v2 = vld [vmem:[%s1034_s1] sm:$0xff]   ;;  %733 = vmatprep.subr.bf16.mxu1 %v793_v1  ;;  %v798_v6 = vld [vmem:[%s1034_s1 + $0x8] sm:$0xff]   ;;  %v802_v10 = vld [vmem:[%s1034_s1 + $0x10] sm:$0xff]  }
   0x4   :  { %v795_v3 = vld [vmem:[%s1034_s1 + $0x80] sm:$0xff]   ;;  %706 = vmatpush3.bf16.msra.mxu0 %v794_v2  ;;  %v799_v7 = vld [vmem:[%s1034_s1 + $0x88] sm:$0xff]   ;;  %v803_v11 = vld [vmem:[%s1034_s1 + $0x90] sm:$0xff]  }
   0x5   :  { %734 = vmatpush3.bf16.msra.mxu1 %v795_v3  ;;  %707 = vmatprep.subr.bf16.mxu0 %v796_v4  ;;  %v804_v12 = vld [vmem:[%s1034_s1 + $0x58] sm:$0xff]   ;;  %v808_v16 = vld [vmem:[%s1034_s1 + $0x60] sm:$0xff]   ;;  %v812_v20 = vld [vmem:[%s1034_s1 + $0x68] sm:$0xff]  }
   0x6   :  { %735 = vmatprep.subr.bf16.mxu1 %v797_v5  ;;  %v805_v13 = vld [vmem:[%s1034_s1 + $0xd8] sm:$0xff]   ;;  %v809_v17 = vld [vmem:[%s1034_s1 + $0xe0] sm:$0xff]   ;;  %v813_v21 = vld [vmem:[%s1034_s1 + $0xe8] sm:$0xff]  }
   0x7   :  { %v806_v14 = vld [vmem:[%s1034_s1 + $0x18] sm:$0xff]   ;;  %v810_v18 = vld [vmem:[%s1034_s1 + $0x20] sm:$0xff]   ;;  %v814_v22 = vld [vmem:[%s1034_s1 + $0x28] sm:$0xff]  }
   0x8   :  { %708 = vmatpush3.bf16.msra.mxu0 %v798_v6  ;;  %v807_v15 = vld [vmem:[%s1034_s1 + $0x98] sm:$0xff]   ;;  %v811_v19 = vld [vmem:[%s1034_s1 + $0xa0] sm:$0xff]   ;;  %v815_v23 = vld [vmem:[%s1034_s1 + $0xa8] sm:$0xff]  }
   0x9   :  { %736 = vmatpush3.bf16.msra.mxu1 %v799_v7  ;;  %709 = vmatprep.subr.bf16.mxu0 %v800_v8  ;;  %v816_v24 = vld [vmem:[%s1034_s1 + $0x70] sm:$0xff]   ;;  %v820_v28 = vld [vmem:[%s1034_s1 + $0x78] sm:$0xff]   ;;  %v829_v35 = vld [vmem:[%s1035_s0 + $0xc] ss:$20 sps:$4 sm:$0xff]  }
   0xa   :  { %737 = vmatprep.subr.bf16.mxu1 %v801_v9  ;;  %v817_v25 = vld [vmem:[%s1034_s1 + $0xf0] sm:$0xff]   ;;  %v821_v29 = vld [vmem:[%s1034_s1 + $0xf8] sm:$0xff]   ;;  %v830_v36 = vld [vmem:[%s1034_s1 + $0x100] sm:$0xff]   ;;  %495 = vmatprep.mubr.bf16.mxu1 %v829_v35 }
   0xb   :  { %v818_v26 = vld [vmem:[%s1034_s1 + $0x30] sm:$0xff]   ;;  %v822_v30 = vld [vmem:[%s1034_s1 + $0x38] sm:$0xff]   ;;  %v831_v37 = vld [vmem:[%s1034_s1 + $0x108] sm:$0xff]  }
   0xc   :  { %710 = vmatpush3.bf16.msra.mxu0 %v802_v10  ;;  %v819_v27 = vld [vmem:[%s1034_s1 + $0xb0] sm:$0xff]   ;;  %v823_v31 = vld [vmem:[%s1034_s1 + $0xb8] sm:$0xff]   ;;  %v835_v39 = vld [vmem:[%s1035_s0 + $0x2c] ss:$20 sps:$4 sm:$0xff]  }
   0xd   :  { %738 = vmatpush3.bf16.msra.mxu1 %v803_v11  ;;  %711 = vmatprep.subr.bf16.mxu0 %v804_v12  ;;  %v824_v32 = vld [vmem:[%s1035_s0] ss:$20 sps:$4 sm:$0xff]   ;;  %v826_v33 = vld [vmem:[%s1035_s0 + $0x4] ss:$20 sps:$4 sm:$0xff]   ;;  %v827_v34 = vld [vmem:[%s1035_s0 + $0x8] ss:$20 sps:$4 sm:$0xff]  }
   0xe   :  { %739 = vmatprep.subr.bf16.mxu1 %v805_v13  ;;  %446 = vmatprep.mubr.bf16.mxu0 %v826_v33  ;;  %v832_v38 = vld [vmem:[%s1034_s1 + $0x110] sm:$0xff]   ;;  %v833_v41 = vld [vmem:[%s1034_s1 + $0x118] sm:$0xff]   ;;  %v834_v45 = vld [vmem:[%s1034_s1 + $0x120] sm:$0xff]  }
   0xf   :  { %v837_v40 = vld [vmem:[%s1035_s0 + $0x34] ss:$20 sps:$4 sm:$0xff]   ;;  %v841_v43 = vld [vmem:[%s1035_s0 + $0x30] ss:$20 sps:$4 sm:$0xff]   ;;  %v843_v48 = vld [vmem:[%s1034_s1 + $0x138] sm:$0xff]  }
  0x10   :  { %712 = vmatpush3.bf16.msra.mxu0 %v806_v14  ;;  %v840_v42 = vld [vmem:[%s1035_s0 + $0x28] ss:$20 sps:$4 sm:$0xff]   ;;  %v844_v44 = vld [vmem:[%s1035_s0 + $0x10] ss:$20 sps:$4 sm:$0xff]   ;;  %v845_v49 = vld [vmem:[%s1035_s0 + $0x38] ss:$20 sps:$4 sm:$0xff]  }
  0x11   :  { %740 = vmatpush3.bf16.msra.mxu1 %v807_v15  ;;  %713 = vmatprep.subr.bf16.mxu0 %v808_v16  ;;  %v839_v46 = vld [vmem:[%s1034_s1 + $0x128] sm:$0xff]   ;;  %v842_v47 = vld [vmem:[%s1034_s1 + $0x130] sm:$0xff]   ;;  %v684_v15 = vld [vmem:[%s1036_s2] ss:$0 sm:$0xff] }
  0x12   :  { %741 = vmatprep.subr.bf16.mxu1 %v809_v17 }
  0x14   :  { %714 = vmatpush3.bf16.msra.mxu0 %v810_v18  ;;  %v685_v18 = vld [vmem:[%s1037_s3] ss:$0 sm:$0xff] }
  0x15   :  { %742 = vmatpush3.bf16.msra.mxu1 %v811_v19  ;;  %715 = vmatprep.subr.bf16.mxu0 %v812_v20 }
  0x16   :  { %743 = vmatprep.subr.bf16.mxu1 %v813_v21 }
  0x18   :  { %716 = vmatpush3.bf16.msra.mxu0 %v814_v22 }
  0x19   :  { %744 = vmatpush3.bf16.msra.mxu1 %v815_v23  ;;  %717 = vmatprep.subr.bf16.mxu0 %v816_v24 }
  0x1a   :  { %745 = vmatprep.subr.bf16.mxu1 %v817_v25 }
  0x1c   :  { %718 = vmatpush3.bf16.msra.mxu0 %v818_v26 }
  0x1d   :  { %746 = vmatpush3.bf16.msra.mxu1 %v819_v27  ;;  %719 = vmatprep.subr.bf16.mxu0 %v820_v28 }
  0x1e   :  { %747 = vmatprep.subr.bf16.mxu1 %v821_v29 }
  0x20   :  { %720 = vmatpush3.bf16.msra.mxu0 %v822_v30 }
  0x21   :  { %748 = vmatpush3.bf16.msra.mxu1 %v823_v31  ;;  %771 = vmatprep.subr.bf16.mxu0 %v830_v36 }
  0x23   :  { %447 = vmatmul.mubr.bf16.vlgmr.msra.gmra.mrb[0].mxu0 %v824_v32  ;;  %v846_v32 = vmov 0.0  }
  0x24   :  { %496 = vmatmul.mubr.bf16.vlgmr.msra.gmra.mrb[0].mxu1 %v827_v34  ;;  %772 = vmatpush3.bf16.msra.mxu0 %v830_v36 }
  0x25   :  { %773 = vmatprep.subr.bf16.mxu0 %v831_v37  ;;  %454 = vmatprep.mubr.bf16.mxu0 %v835_v39 }
  0x26   :  { %503 = vmatprep.mubr.bf16.mxu1 %v837_v40 }
  0x28   :  { %774 = vmatpush3.bf16.msra.mxu0 %v831_v37 }
  0x29   :  { %775 = vmatprep.subr.bf16.mxu0 %v832_v38 }
  0x2b   :  { %455 = vmatmul.mubr.bf16.gmra.mrb[4].mxu0 %v840_v42 }
  0x2c   :  { %504 = vmatmul.mubr.bf16.gmra.mrb[4].mxu1 %v841_v43  ;;  %776 = vmatpush3.bf16.msra.mxu0 %v832_v38 }
  0x2d   :  { %777 = vmatprep.subr.bf16.mxu0 %v833_v41  ;;  %787 = vmatprep.mubr.bf16.mxu0 %v844_v44 }
  0x30   :  { %778 = vmatpush3.bf16.msra.mxu0 %v833_v41 }
  0x31   :  { %779 = vmatprep.subr.bf16.mxu0 %v834_v45 }
  0x34   :  { %780 = vmatpush3.bf16.msra.mxu0 %v834_v45 }
  0x35   :  { %781 = vmatprep.subr.bf16.mxu0 %v839_v46 }
  0x38   :  { %782 = vmatpush3.bf16.msra.mxu0 %v839_v46 }
  0x39   :  { %783 = vmatprep.subr.bf16.mxu0 %v842_v47 }
  0x3c   :  { %784 = vmatpush3.bf16.msra.mxu0 %v842_v47 }
  0x3d   :  { %785 = vmatprep.subr.bf16.mxu0 %v843_v48 }
  0x40   :  { %786 = vmatpush3.bf16.msra.mxu0 %v843_v48 }
  0x43   :  { %788 = vmatmul.mubr.bf16.vlgmr.msra.gmra.mrb[8].mxu0 %v845_v49 }
  0xf6   :  { %v721_v50 = vpop.f32.mrb[0].mxu0 }
  0xf7   :  { %v749_v51 = vpop.f32.mrb[0].mxu1  ;;  %v722_v52 = vpop.f32.mrb[1].mxu0 }
  0xf8   :  { %v723_v53 = vadd.f32 %v722_v52, %v721_v50  ;;  %v750_v54 = vpop.f32.mrb[1].mxu1  ;;  %v724_v55 = vpop.f32.mrb[2].mxu0 }
  0xf9   :  { %v751_v56 = vadd.f32 %v750_v54, %v749_v51  ;;  %v752_v57 = vpop.f32.mrb[2].mxu1  ;;  %v725_v58 = vpop.f32.mrb[3].mxu0 }
  0xfa   :  { %v726_v59 = vadd.f32 %v725_v58, %v724_v55  ;;  %v753_v60 = vpop.f32.mrb[3].mxu1 }
  0xfb   :  { %v754_v61 = vadd.f32 %v753_v60, %v752_v57  ;;  %v498_v62 = vadd.f32 %v751_v56, %v723_v53 }
  0xfd   :  { %v501_v63 = vadd.f32 %v754_v61, %v726_v59 }
  0xfe   :  { %v727_v0 = vpop.f32.mrb[4].mxu0 }
  0xff   :  { %v755_v1 = vpop.f32.mrb[4].mxu1  ;;  %v728_v2 = vpop.f32.mrb[5].mxu0 }
 0x100   :  { %v729_v3 = vadd.f32 %v728_v2, %v727_v0  ;;  %v756_v4 = vpop.f32.mrb[5].mxu1  ;;  %v730_v5 = vpop.f32.mrb[6].mxu0 }
 0x101   :  { %v757_v6 = vadd.f32 %v756_v4, %v755_v1  ;;  %v758_v7 = vpop.f32.mrb[6].mxu1  ;;  %v731_v8 = vpop.f32.mrb[7].mxu0 }
 0x102   :  { %v732_v9 = vadd.f32 %v731_v8, %v730_v5  ;;  %v759_v10 = vpop.f32.mrb[7].mxu1 }
 0x103   :  { %v760_v11 = vadd.f32 %v759_v10, %v758_v7  ;;  %v506_v12 = vadd.f32 %v757_v6, %v729_v3 }
 0x105   :  { %v509_v13 = vadd.f32 %v760_v11, %v732_v9 }
 0x116   :  { %v789_v14 = vpop.f32.mrb[8].mxu0 }
 0x117   :  { %v555_v16 = vadd.f32 %v789_v14, %v506_v12  ;;  %v546_v17 = vpop.f32.mrb[9].mxu0 }
 0x118   :  { %v547_v19 = vadd.f32 %v546_v17, %v498_v62  ;;  %v790_v20 = vpop.f32.mrb[10].mxu0 }
 0x119   :  { %v585_v21 = vmul.f32 %v684_v15, %v555_v16  ;;  %v558_v22 = vadd.f32 %v790_v20, %v509_v13  ;;  %v549_v23 = vpop.f32.mrb[11].mxu0 }
 0x11a   :  { %v583_v24 = vmul.f32 %v684_v15, %v547_v19  ;;  %v550_v25 = vadd.f32 %v549_v23, %v501_v63 }
 0x11b   :  { %v596_v26 = vadd.f32 %v685_v18, %v585_v21  ;;  %v586_v27 = vmul.f32 %v684_v15, %v558_v22 }
 0x11c   :  { %v594_v28 = vadd.f32 %v685_v18, %v583_v24  ;;  %v584_v29 = vmul.f32 %v684_v15, %v550_v25 }
 0x11d   :  { %vm600_vm0 = vcmp.ge.f32.partialorder %v596_v26, 1.0  ;;  %v597_v30 = vadd.f32 %v685_v18, %v586_v27 }
 0x11e   :  { %vm598_vm1 = vcmp.ge.f32.partialorder %v594_v28, 1.0  ;;  %v595_v31 = vadd.f32 %v685_v18, %v584_v29  ;;  %v688_v33 = vsel %vm600_vm0, 1.0, %v846_v32 }
 0x11f   :  { %vm601_vm2 = vcmp.ge.f32.partialorder %v597_v30, 1.0  ;;  %v686_v35 = vsel %vm598_vm1, 1.0, %v846_v32 }
 0x120   :  { %v689_v34 = vsel %vm601_vm2, 1.0, %v846_v32  ;;  %vm599_vm3 = vcmp.ge.f32.partialorder %v595_v31, 1.0 }
 0x121   :  { %v702_v36 = vpack.c.bf16 %v689_v34, %v688_v33  ;;  %v687_v37 = vsel %vm599_vm3, 1.0, %v846_v32 }
 0x122   :  { %v699_v38 = vpack.c.bf16 %v687_v37, %v686_v35 }
 0x123   :  { %704 = vst [vmem:[%s1038_s4 + $0x8] sm:$0xff] %v702_v36  }
 0x124   :  { %700 = vst [vmem:[%s1038_s4] sm:$0xff] %v699_v38  }

// kernel: _lambda_.19
= control target key start
LH: loop header
LB: loop body
LE: loop exit
PB: predicated region body
PF: predicated region fallthrough
CT: control target
= control target key end

     0   :  { %v304_v24 = vmov 0.0   ;;  %s372_s1 = inlined_call_operand.vmem [shape: bf16[128,128], index: 1, kind: input, shape index: {}]   ;;  %s373_s0 = inlined_call_operand.vmem [shape: bf16[32,128], index: 0, kind: input, shape index: {}]   ;;  %s374_s2 = inlined_call_operand.vmem [shape: f32[1,128], index: 2, kind: input, shape index: {}]   ;;  %s375_s3 = inlined_call_operand.vmem [shape: f32[1,128], index: 3, kind: input, shape index: {}]   ;;  %s376_s4 = inlined_call_operand.vmem [shape: bf16[32,128], index: 4, kind: output, shape index: {}]  }
   0x1   :  { %v294_v0 = vld [vmem:[%s372_s1] sm:$0xff]   ;;  %v295_v1 = vld [vmem:[%s372_s1 + $0x8] sm:$0xff]   ;;  %v296_v2 = vld [vmem:[%s372_s1 + $0x10] sm:$0xff]  }
   0x2   :  { %273 = vmatprep.subr.bf16.mxu0 %v294_v0  ;;  %v297_v3 = vld [vmem:[%s372_s1 + $0x18] sm:$0xff]   ;;  %v302_v4 = vld [vmem:[%s373_s0] sm:$0xff]   ;;  %v299_v6 = vld [vmem:[%s372_s1 + $0x28] sm:$0xff]  }
   0x3   :  { %274 = vmatpush3.bf16.msra.mxu0 %v294_v0  ;;  %289 = vmatprep.mubr.bf16.mxu0 %v302_v4  ;;  %v298_v5 = vld [vmem:[%s372_s1 + $0x20] sm:$0xff]   ;;  %v300_v7 = vld [vmem:[%s372_s1 + $0x30] sm:$0xff]   ;;  %v301_v8 = vld [vmem:[%s372_s1 + $0x38] sm:$0xff]  }
   0x4   :  { %275 = vmatprep.subr.bf16.mxu0 %v295_v1  ;;  %v303_v9 = vld [vmem:[%s373_s0 + $0x8] sm:$0xff]   ;;  %v242_v10 = vld [vmem:[%s374_s2] ss:$0 sm:$0xff] }
   0x5   :  { %v243_v12 = vld [vmem:[%s375_s3] ss:$0 sm:$0xff] }
   0x7   :  { %276 = vmatpush3.bf16.msra.mxu0 %v295_v1 }
   0x8   :  { %277 = vmatprep.subr.bf16.mxu0 %v296_v2 }
   0xb   :  { %278 = vmatpush3.bf16.msra.mxu0 %v296_v2 }
   0xc   :  { %279 = vmatprep.subr.bf16.mxu0 %v297_v3 }
   0xf   :  { %280 = vmatpush3.bf16.msra.mxu0 %v297_v3 }
  0x10   :  { %281 = vmatprep.subr.bf16.mxu0 %v298_v5 }
  0x13   :  { %282 = vmatpush3.bf16.msra.mxu0 %v298_v5 }
  0x14   :  { %283 = vmatprep.subr.bf16.mxu0 %v299_v6 }
  0x17   :  { %284 = vmatpush3.bf16.msra.mxu0 %v299_v6 }
  0x18   :  { %285 = vmatprep.subr.bf16.mxu0 %v300_v7 }
  0x1b   :  { %286 = vmatpush3.bf16.msra.mxu0 %v300_v7 }
  0x1c   :  { %287 = vmatprep.subr.bf16.mxu0 %v301_v8 }
  0x1f   :  { %288 = vmatpush3.bf16.msra.mxu0 %v301_v8 }
  0x22   :  { %290 = vmatmul.mubr.bf16.vlgmr.msra.gmra.mrb[0].mxu0 %v303_v9 }
  0xf5   :  { %v291_v11 = vpop.f32.mrb[0].mxu0 }
  0xf6   :  { %v183_v13 = vmul.f32 %v291_v11, %v242_v10  ;;  %v144_v14 = vpop.f32.mrb[1].mxu0 }
  0xf7   :  { %v181_v15 = vmul.f32 %v242_v10, %v144_v14  ;;  %v292_v16 = vpop.f32.mrb[2].mxu0 }
  0xf8   :  { %v194_v17 = vadd.f32 %v243_v12, %v183_v13  ;;  %v184_v18 = vmul.f32 %v292_v16, %v242_v10  ;;  %v147_v19 = vpop.f32.mrb[3].mxu0 }
  0xf9   :  { %v192_v20 = vadd.f32 %v243_v12, %v181_v15  ;;  %v182_v21 = vmul.f32 %v242_v10, %v147_v19 }
  0xfa   :  { %vm198_vm0 = vcmp.ge.f32.partialorder %v194_v17, 1.0  ;;  %v195_v22 = vadd.f32 %v243_v12, %v184_v18 }
  0xfb   :  { %vm196_vm1 = vcmp.ge.f32.partialorder %v192_v20, 1.0  ;;  %v193_v23 = vadd.f32 %v243_v12, %v182_v21  ;;  %v246_v25 = vsel %vm198_vm0, 1.0, %v304_v24 }
  0xfc   :  { %vm199_vm2 = vcmp.ge.f32.partialorder %v195_v22, 1.0  ;;  %v244_v27 = vsel %vm196_vm1, 1.0, %v304_v24 }
  0xfd   :  { %v247_v26 = vsel %vm199_vm2, 1.0, %v304_v24  ;;  %vm197_vm3 = vcmp.ge.f32.partialorder %v193_v23, 1.0 }
  0xfe   :  { %v260_v28 = vpack.c.bf16 %v247_v26, %v246_v25  ;;  %v245_v29 = vsel %vm197_vm3, 1.0, %v304_v24 }
  0xff   :  { %v257_v30 = vpack.c.bf16 %v245_v29, %v244_v27 }
 0x100   :  { %262 = vst [vmem:[%s376_s4 + $0x8] sm:$0xff] %v260_v28  }
 0x101   :  { %258 = vst [vmem:[%s376_s4] sm:$0xff] %v257_v30  }

// kernel: _lambda_.21
= control target key start
LH: loop header
LB: loop body
LE: loop exit
PB: predicated region body
PF: predicated region fallthrough
CT: control target
= control target key end

     0   :  { %s1261_s18 = smov 0   ;;  %s1263_s19 = smov 0   ;;  %s1380_s0 = inlined_call_operand.vmem [shape: bf16[32,1152], index: 0, kind: input, shape index: {}]   ;;  %s1381_s1 = inlined_call_operand.vmem [shape: bf16[1152,128], index: 1, kind: input, shape index: {}]   ;;  %s1382_s2 = inlined_call_operand.vmem [shape: f32[1,128], index: 2, kind: input, shape index: {}]   ;;  %s1383_s3 = inlined_call_operand.vmem [shape: f32[1,128], index: 3, kind: input, shape index: {}]   ;;  %s1384_s4 = inlined_call_operand.vmem [shape: bf16[32,128], index: 4, kind: input, shape index: {}]   ;;  %s1385_s5 = inlined_call_operand.vmem [shape: bf16[32,128], index: 5, kind: output, shape index: {}]  }
   0x1   :  { %s1265_s20 = smov 0   ;;  %s1267_s21 = smov 0  }
   0x2   :  { %s1269_s22 = smov 0  }
   0x3 LB: > { %s27_s23 = sadd.s32 1, %s1223_s21  ;;  %p50_p1 = scmp.ne.s32.totalorder %s1215_s19, %s1211_s18  ;;  %s1227_s22 = sphi %s1269_s22, %s15_s22   ;;  %s1223_s21 = sphi %s1267_s21, %s1389_s21   ;;  %s1219_s20 = sphi %s1265_s20, %s1388_s20   ;;  %s1215_s19 = sphi %s1263_s19, %s1387_s19   ;;  %s1211_s18 = sphi %s1261_s18, %s1386_s18  }
   0x4   : > { %p28_p0 = scmp.ge.s32.totalorder %s27_s23, 3  ;;  %p51_p2 = scmp.eq.s32.totalorder %s1227_s22, 0 }
   0x5   : > { %s43_s25 = sadd.s32 1, %s1215_s19  ;;  %p972_p5 = scmp.ge.s32.totalorder %s1227_s22, 3 }
   0x6   : > { %s1391_s23 = smov (%p28_p0, %s27_s23), 0  ;;  %p52_p3 = por %p51_p2, %p50_p1 }
   0x7   : > { %s39_s24 = ssub.s32 %s1223_s21, %s1391_s23  ;;  %236 = sbr.rel (%p972_p5) target bundleno = 23 (0x17), region = 28 }
   0x8   : > { %p41_p4 = scmp.eq.s32.totalorder %s39_s24, 0 }
   0xa   : > { %s1296_s26 = scalar_select %p41_p4, %s1215_s19, %s43_s25  }
   0xe   : > { %239 = sbr.rel (!%p52_p3) target bundleno = 23 (0x17), region = 32  ;;  %s241_s27 = sand.u32 (%p52_p3), 1, %s1215_s19  }
   0xf   : > { %s1030_s28 = smul.u32 (%p52_p3), 12, %s1223_s21 }
  0x10   : > { %s1113_s29 = smul.u32 (%p52_p3), 48, %s241_s27 }
  0x11   : > { %s249_s7 = scalar_lea.vmem (%p52_p3), %s1380_s0, %s1030_s28 }
  0x12   : > { %v264_v0 = vld [vmem:[%s249_s7] sm:$0xff] (%p52_p3)  ;;  %v268_v2 = vld [vmem:[%s249_s7 + $0x48] sm:$0xff] (%p52_p3)  ;;  %s243_s8 = scalar_lea.vmem (%p52_p3), [#allocation3], %s1113_s29  ;;  %v978_v6 = vld [vmem:[%s249_s7 + $0x50] sm:$0xf] (%p52_p3) }
  0x13   : > { %v266_v1 = vld [vmem:[%s249_s7 + $0x24] sm:$0xff] (%p52_p3)  ;;  %265 = vst [vmem:[%s243_s8] sm:$0xff] (%p52_p3), %v264_v0  ;;  %269 = vst [vmem:[%s243_s8 + $0x18] sm:$0xff] (%p52_p3), %v268_v2  ;;  %v270_v3 = vld [vmem:[%s249_s7 + $0x6c] sm:$0xff] (%p52_p3) }
  0x14   : > { %267 = vst [vmem:[%s243_s8 + $0xc] sm:$0xff] (%p52_p3), %v266_v1  ;;  %v974_v4 = vld [vmem:[%s249_s7 + $0x8] sm:$0xf] (%p52_p3)  ;;  %v976_v5 = vld [vmem:[%s249_s7 + $0x2c] sm:$0xf] (%p52_p3)  ;;  %271 = vst [vmem:[%s243_s8 + $0x24] sm:$0xff] (%p52_p3), %v270_v3 }
  0x15   : > { %975 = vst [vmem:[%s243_s8 + $0x8] sm:$0xf] %v974_v4  ;;  %977 = vst [vmem:[%s243_s8 + $0x14] sm:$0xf] %v976_v5  ;;  %v980_v7 = vld [vmem:[%s249_s7 + $0x74] sm:$0xf] }
  0x16   : > { %979 = vst [vmem:[%s243_s8 + $0x20] sm:$0xf] %v978_v6  ;;  %981 = vst [vmem:[%s243_s8 + $0x2c] sm:$0xf] %v980_v7 }
  0x17 PF: > { %p982_p6 = scmp.ge.s32.totalorder %s1227_s22, 1  ;;  %p303_p7 = scmp.lt.s32.totalorder %s1227_s22, 4 }
  0x19   : > { %p304_p8 = pnand %p982_p6, %p303_p7 }
  0x1a   : > { %s310_s9 = sand.u32 (!%p304_p8), 1, %s1211_s18   ;;  %s364_s10 = smul.u32 (!%p304_p8), 48, %s1219_s20 }
  0x1b   : > { %307 = sbr.rel (%p304_p8) target bundleno = 322 (0x142), region = 62  ;;  %p984_p10 = scmp.ne.s32.totalorder (!%p304_p8), %s1219_s20, 0 }
  0x1c   : > { %s1114_s11 = smul.u32 (!%p304_p8), 48, %s310_s9  ;;  %p365_p9 = scmp.lt.s32.totalorder (!%p304_p8), %s364_s10, 143 }
  0x1e   : > { %s1313_s16 = scalar_lea.vmem (!%p304_p8), [#allocation3], %s1114_s11 }
  0x22   : > { %s1393_s10 = smov (!%p365_p9, %s364_s10), 143  ;;  %401 = sbr.rel (%p984_p10) target bundleno = 41 (0x29), region = 70 }
  0x23   : > { %s983_s12 = sshll.u32 %s1393_s10, 2  ;;  %v1229_v8 = vmov (!%p984_p10), 0.0  }
  0x24   : > { %s1311_s15 = scalar_lea.vmem %s1381_s1, %s983_s12  ;;  %402 = vst [vmem:[#allocation2] sm:$0xff] (!%p984_p10), %v1229_v8  ;;  %403 = vst [vmem:[#allocation2 + $0x8] sm:$0xff] (!%p984_p10), %v1229_v8 }
  0x25   : > { %404 = vst [vmem:[#allocation2 + $0x10] sm:$0xff] (!%p984_p10), %v1229_v8  ;;  %405 = vst [vmem:[#allocation2 + $0x18] sm:$0xff] (!%p984_p10), %v1229_v8 }
  0x29 PF: > { %v1157_v9 = vld [vmem:[%s1311_s15 + $0x40] sm:$0xff]   ;;  %v1160_v12 = vld [vmem:[%s1311_s15 + $0x48] sm:$0xff]   ;;  %v1163_v15 = vld [vmem:[%s1311_s15 + $0x50] sm:$0xff]   ;;  %p1015_p11 = scmp.ne.s32.totalorder %s1219_s20, 2 }
  0x2a   : > { %v1158_v10 = vld [vmem:[%s1311_s15] sm:$0xff]   ;;  %1055 = vmatprep.subr.bf16.mxu0 %v1157_v9  ;;  %v1161_v13 = vld [vmem:[%s1311_s15 + $0x8] sm:$0xff]   ;;  %v1164_v16 = vld [vmem:[%s1311_s15 + $0x10] sm:$0xff]  }
  0x2b   : > { %v1159_v11 = vld [vmem:[%s1311_s15 + $0x80] sm:$0xff]   ;;  %1056 = vmatpush3.bf16.msra.mxu0 %v1158_v10  ;;  %v1162_v14 = vld [vmem:[%s1311_s15 + $0x88] sm:$0xff]   ;;  %v1165_v17 = vld [vmem:[%s1311_s15 + $0x90] sm:$0xff]  }
  0x2c   : > { %1093 = vmatprep.subr.bf16.mxu1 %v1159_v11  ;;  %1057 = vmatprep.subr.bf16.mxu0 %v1160_v12  ;;  %v1166_v18 = vld [vmem:[%s1311_s15 + $0x58] sm:$0xff]   ;;  %v1169_v21 = vld [vmem:[%s1311_s15 + $0x60] sm:$0xff]   ;;  %v1172_v24 = vld [vmem:[%s1311_s15 + $0x68] sm:$0xff]  }
  0x2d   : > { %1094 = vmatpush3.bf16.msra.mxu1 %v1159_v11  ;;  %v1167_v19 = vld [vmem:[%s1311_s15 + $0x18] sm:$0xff]   ;;  %v1171_v22 = vld [vmem:[%s1311_s15 + $0xa0] sm:$0xff]   ;;  %v1174_v25 = vld [vmem:[%s1311_s15 + $0xa8] sm:$0xff]  }
  0x2e   : > { %1095 = vmatprep.subr.bf16.mxu1 %v1162_v14  ;;  %v1168_v20 = vld [vmem:[%s1311_s15 + $0x98] sm:$0xff]   ;;  %v1170_v23 = vld [vmem:[%s1311_s15 + $0x20] sm:$0xff]   ;;  %v1173_v26 = vld [vmem:[%s1311_s15 + $0x28] sm:$0xff]  }
  0x2f   : > { %1058 = vmatpush3.bf16.msra.mxu0 %v1161_v13  ;;  %v1175_v27 = vld [vmem:[%s1311_s15 + $0x70] sm:$0xff]   ;;  %v1178_v30 = vld [vmem:[%s1311_s15 + $0x78] sm:$0xff]   ;;  %v406_v45 = vld [vmem:[#allocation2] sm:$0xff] }
  0x30   : > { %1059 = vmatprep.subr.bf16.mxu0 %v1163_v15  ;;  %v1176_v28 = vld [vmem:[%s1311_s15 + $0x30] sm:$0xff]   ;;  %v1180_v31 = vld [vmem:[%s1311_s15 + $0xb8] sm:$0xff]   ;;  %v407_v50 = vld [vmem:[#allocation2 + $0x8] sm:$0xff] }
  0x31   : > { %1096 = vmatpush3.bf16.msra.mxu1 %v1162_v14  ;;  %v1177_v29 = vld [vmem:[%s1311_s15 + $0xb0] sm:$0xff]   ;;  %v1179_v34 = vld [vmem:[%s1311_s15 + $0x38] sm:$0xff]   ;;  %v1016_v5 = vld [vmem:[%s1382_s2] ss:$0 sm:$0xff] (!%p1015_p11) }
  0x32   : > { %1097 = vmatprep.subr.bf16.mxu1 %v1165_v17  ;;  %v1183_v32 = vld [vmem:[%s1313_s16 + $0x4] ss:$12 sps:$4 sm:$0xff]   ;;  %v1184_v33 = vld [vmem:[%s1313_s16 + $0x8] ss:$12 sps:$4 sm:$0xff]   ;;  %v1181_v35 = vld [vmem:[%s1313_s16] ss:$12 sps:$4 sm:$0xff]  }
  0x33   : > { %1060 = vmatpush3.bf16.msra.mxu0 %v1164_v16  ;;  %674 = vmatprep.mubr.bf16.mxu0 %v1183_v32  ;;  %v1186_v36 = vld [vmem:[%s1313_s16 + $0x1c] ss:$12 sps:$4 sm:$0xff]   ;;  %v1185_v37 = vld [vmem:[%s1313_s16 + $0x20] ss:$12 sps:$4 sm:$0xff]   ;;  %v1188_v38 = vld [vmem:[%s1313_s16 + $0x18] ss:$12 sps:$4 sm:$0xff]  }
  0x34   : > { %1061 = vmatprep.subr.bf16.mxu0 %v1166_v18  ;;  %1109 = vmatprep.mubr.bf16.mxu1 %v1184_v33  ;;  %v408_v59 = vld [vmem:[#allocation2 + $0x10] sm:$0xff]  ;;  %v409_v63 = vld [vmem:[#allocation2 + $0x18] sm:$0xff]  ;;  %v1017_v8 = vld [vmem:[%s1383_s3] ss:$0 sm:$0xff] (!%p1015_p11) }
  0x35   : > { %1098 = vmatpush3.bf16.msra.mxu1 %v1165_v17  ;;  %v1036_v9 = vld [vmem:[%s1384_s4] sm:$0xff] (!%p1015_p11)   ;;  %v1053_v14 = vld [vmem:[%s1384_s4 + $0x8] sm:$0xff] (!%p1015_p11)  }
  0x36   : > { %1099 = vmatprep.subr.bf16.mxu1 %v1168_v20  ;;  %v1037_v11 = vunpack.c.l.bf16 (!%p1015_p11), %v1036_v9  ;;  %v1038_v17 = vunpack.c.h.bf16 (!%p1015_p11), %v1036_v9 }
  0x37   : > { %1062 = vmatpush3.bf16.msra.mxu0 %v1167_v19 }
  0x38   : > { %1063 = vmatprep.subr.bf16.mxu0 %v1169_v21 }
  0x39   : > { %1100 = vmatpush3.bf16.msra.mxu1 %v1168_v20  ;;  %v1041_v20 = vunpack.c.l.bf16 (!%p1015_p11), %v1053_v14 }
  0x3a   : > { %1101 = vmatprep.subr.bf16.mxu1 %v1171_v22 }
  0x3b   : > { %1064 = vmatpush3.bf16.msra.mxu0 %v1170_v23  ;;  %v1230_v23 = vmov (!%p1015_p11), 0.0  }
  0x3c   : > { %1065 = vmatprep.subr.bf16.mxu0 %v1172_v24 }
  0x3d   : > { %1102 = vmatpush3.bf16.msra.mxu1 %v1171_v22  ;;  %v1042_v22 = vunpack.c.h.bf16 (!%p1015_p11), %v1053_v14 }
  0x3e   : > { %1103 = vmatprep.subr.bf16.mxu1 %v1174_v25 }
  0x3f   : > { %1066 = vmatpush3.bf16.msra.mxu0 %v1173_v26 }
  0x40   : > { %1067 = vmatprep.subr.bf16.mxu0 %v1175_v27 }
  0x41   : > { %1104 = vmatpush3.bf16.msra.mxu1 %v1174_v25 }
  0x42   : > { %1105 = vmatprep.subr.bf16.mxu1 %v1177_v29 }
  0x43   : > { %1068 = vmatpush3.bf16.msra.mxu0 %v1176_v28 }
  0x44   : > { %1069 = vmatprep.subr.bf16.mxu0 %v1178_v30 }
  0x45   : > { %1106 = vmatpush3.bf16.msra.mxu1 %v1177_v29 }
  0x46   : > { %1107 = vmatprep.subr.bf16.mxu1 %v1180_v31 }
  0x47   : > { %1070 = vmatpush3.bf16.msra.mxu0 %v1179_v34 }
  0x49   : > { %1108 = vmatpush3.bf16.msra.mxu1 %v1180_v31 }
  0x4a   : > { %675 = vmatmul.mubr.bf16.vlgmr.msra.gmra.mrb[0].mxu0 %v1181_v35 }
  0x4b   : > { %682 = vmatprep.mubr.bf16.mxu0 %v1186_v36 }
  0x4c   : > { %1110 = vmatmul.mubr.bf16.vlgmr.msra.gmra.mrb[0].mxu1 %v1185_v37 }
  0x52   : > { %683 = vmatmul.mubr.bf16.gmra.mrb[4].mxu0 %v1188_v38 }
 0x11d   : > { %v1071_v39 = vpop.f32.mrb[0].mxu0 }
 0x11e   : > { %v1072_v40 = vpop.f32.mrb[1].mxu0 }
 0x11f   : > { %v1073_v41 = vadd.f32 %v1072_v40, %v1071_v39  ;;  %v1074_v42 = vpop.f32.mrb[2].mxu0  ;;  %v1111_v43 = vpop.f32.mrb[0].mxu1 }
 0x120   : > { %v1075_v44 = vpop.f32.mrb[3].mxu0  ;;  %v725_v46 = vpop.f32.mrb[1].mxu1 }
 0x121   : > { %v1076_v47 = vadd.f32 %v1075_v44, %v1074_v42  ;;  %v726_v48 = vadd.f32 %v1073_v41, %v725_v46  ;;  %v1112_v49 = vpop.f32.mrb[2].mxu1 }
 0x122   : > { %v728_v51 = vpop.f32.mrb[3].mxu1 }
 0x123   : > { %v740_v52 = vadd.f32 %v726_v48, %v406_v45  ;;  %v729_v53 = vadd.f32 %v1076_v47, %v728_v51 }
 0x125   : > { %744 = vst [vmem:[#allocation2] sm:$0xff] %v740_v52  ;;  %v741_v54 = vadd.f32 %v729_v53, %v407_v50  ;;  %v1077_v55 = vpop.f32.mrb[4].mxu0 }
 0x126   : > { %v1078_v56 = vpop.f32.mrb[5].mxu0 }
 0x127   : > { %745 = vst [vmem:[#allocation2 + $0x8] sm:$0xff] %v741_v54  ;;  %v1079_v57 = vadd.f32 %v1078_v56, %v1077_v55  ;;  %v1080_v58 = vpop.f32.mrb[6].mxu0 }
 0x128   : > { %v1081_v60 = vpop.f32.mrb[7].mxu0 }
 0x129   : > { %v734_v61 = vadd.f32 %v1111_v43, %v1079_v57  ;;  %v1082_v62 = vadd.f32 %v1081_v60, %v1080_v58  ;;  %751 = sbr.rel (%p1015_p11) target bundleno = 322 (0x142), region = 74 }
 0x12b   : > { %v742_v0 = vadd.f32 %v734_v61, %v408_v59  ;;  %v737_v1 = vadd.f32 %v1112_v49, %v1082_v62 }
 0x12c   : > { %v752_v3 = vld [vmem:[#allocation2] sm:$0xff] (!%p1015_p11) }
 0x12d   : > { %746 = vst [vmem:[#allocation2 + $0x10] sm:$0xff] %v742_v0  ;;  %v743_v2 = vadd.f32 %v737_v1, %v409_v63  ;;  %v763_v6 = vmul.f32 (!%p1015_p11), %v1016_v5, %v752_v3 }
 0x12e   : > { %v753_v4 = vld [vmem:[#allocation2 + $0x8] sm:$0xff] (!%p1015_p11) }
 0x12f   : > { %747 = vst [vmem:[#allocation2 + $0x18] sm:$0xff] %v743_v2  ;;  %v764_v7 = vmul.f32 (!%p1015_p11), %v1016_v5, %v753_v4  ;;  %v774_v15 = vadd.f32 (!%p1015_p11), %v1017_v8, %v763_v6 }
 0x131   : > { %v775_v16 = vadd.f32 %v1017_v8, %v764_v7  ;;  %vm778_vm0 = vcmp.ge.f32.partialorder %v774_v15, 1.0 }
 0x132   : > { %v1018_v24 = vsel %vm778_vm0, 1.0, %v1230_v23 }
 0x133   : > { %vm779_vm1 = vcmp.ge.f32.partialorder %v775_v16, 1.0  ;;  %v798_v26 = vadd.f32 %v1037_v11, %v1018_v24 }
 0x134   : > { %v754_v10 = vld [vmem:[#allocation2 + $0x10] sm:$0xff]  ;;  %v1019_v25 = vsel %vm779_vm1, 1.0, %v1230_v23 }
 0x135   : > { %v765_v13 = vmul.f32 %v1016_v5, %v754_v10  ;;  %v799_v27 = vadd.f32 %v1038_v17, %v1019_v25 }
 0x136   : > { %v755_v12 = vld [vmem:[#allocation2 + $0x18] sm:$0xff] }
 0x137   : > { %v766_v18 = vmul.f32 %v1016_v5, %v755_v12  ;;  %v776_v19 = vadd.f32 %v1017_v8, %v765_v13  ;;  %v1046_v31 = vpack.c.bf16 %v799_v27, %v798_v26 }
 0x139   : > { %v777_v21 = vadd.f32 %v1017_v8, %v766_v18  ;;  %vm780_vm2 = vcmp.ge.f32.partialorder %v776_v19, 1.0  ;;  %1047 = vst [vmem:[%s1385_s5] sm:$0xff] %v1046_v31  }
 0x13a   : > { %v1020_v28 = vsel %vm780_vm2, 1.0, %v1230_v23 }
 0x13b   : > { %vm781_vm3 = vcmp.ge.f32.partialorder %v777_v21, 1.0  ;;  %v800_v30 = vadd.f32 %v1041_v20, %v1020_v28 }
 0x13c   : > { %v1021_v29 = vsel %vm781_vm3, 1.0, %v1230_v23 }
 0x13d   : > { %v801_v32 = vadd.f32 %v1042_v22, %v1021_v29 }
 0x13f   : > { %v1051_v33 = vpack.c.bf16 %v801_v32, %v800_v30 }
 0x141   : > { %1054 = vst [vmem:[%s1385_s5 + $0x8] sm:$0xff] %v1051_v33  }
 0x142 PF: > { %s15_s22 = sadd.s32 1, %s1227_s22   ;;  %s1386_s18 = smov %s1215_s19 }
 0x143   : > { %p12_p12 = scmp.ge.s32.totalorder %s15_s22, 5   ;;  %s1387_s19 = smov %s1296_s26 }
 0x144   : > { %s1388_s20 = smov %s1223_s21  ;;  %s1389_s21 = smov %s1391_s23 }
 0x145   :  { %14 = sbr.rel (!%p12_p12) target bundleno = 3 (0x3), region = 127 }

// kernel: _lambda_.23
= control target key start
LH: loop header
LB: loop body
LE: loop exit
PB: predicated region body
PF: predicated region fallthrough
CT: control target
= control target key end

     0   :  { %s1122_s15 = smov 0   ;;  %s1124_s16 = smov 0   ;;  %s1224_s0 = inlined_call_operand.vmem [shape: bf16[8,1152], index: 0, kind: input, shape index: {}]   ;;  %s1225_s1 = inlined_call_operand.vmem [shape: bf16[1152,256], index: 1, kind: input, shape index: {}]   ;;  %s1226_s2 = inlined_call_operand.vmem [shape: f32[1,256], index: 2, kind: input, shape index: {}]   ;;  %s1227_s3 = inlined_call_operand.vmem [shape: f32[1,256], index: 3, kind: input, shape index: {}]   ;;  %s1228_s4 = inlined_call_operand.vmem [shape: bf16[8,256], index: 4, kind: output, shape index: {}]  }
   0x1   :  { %s1126_s17 = smov 0  }
   0x2 LB: > { %s26_s18 = sadd.s32 1, %s1088_s16  ;;  %p902_p0 = scmp.ge.s32.totalorder %s1092_s17, 1  ;;  %s1092_s17 = sphi %s1126_s17, %s14_s17   ;;  %s1088_s16 = sphi %s1124_s16, %s1230_s16   ;;  %s1084_s15 = sphi %s1122_s15, %s1229_s15  }
   0x3   : > { %p27_p1 = scmp.ge.s32.totalorder %s26_s18, 3  ;;  %p229_p2 = scmp.lt.s32.totalorder %s1092_s17, 4 }
   0x5   : > { %s1232_s18 = smov (%p27_p1, %s26_s18), 0  ;;  %p230_p3 = pnand %p902_p0, %p229_p2 }
   0x6   : > { %s281_s19 = smul.u32 (!%p230_p3), 3, %s1084_s15  ;;  %p906_p6 = scmp.ne.s32.totalorder (!%p230_p3), %s1084_s15, 0 }
   0x7   : > { %233 = sbr.rel (%p230_p3) target bundleno = 323 (0x143), region = 36 }
   0x8   : > { %s291_s20 = smul.u32 (!%p230_p3), 48, %s1084_s15  ;;  %p284_p4 = scmp.lt.s32.totalorder (!%p230_p3), %s281_s19, 8 }
   0xa   : > { %p293_p5 = scmp.lt.s32.totalorder (!%p230_p3), %s291_s20, 143 }
   0xe   : > { %s1234_s19 = smov (!%p284_p4, %s281_s19), 8  ;;  %s1236_s20 = smov (!%p293_p5, %s291_s20), 143 }
   0xf   : > { %s903_s21 = sshll.u32 %s1234_s19, 2  ;;  %s966_s25 = sshll.u32 %s1236_s20, 3  ;;  %v1094_v0 = vmov (!%p906_p6), 0.0  }
  0x10   : > { %s1147_s24 = scalar_lea.vmem %s1224_s0, %s903_s21  ;;  %s1152_s28 = scalar_lea.vmem %s1225_s1, %s966_s25  ;;  %328 = vst [vmem:[#allocation2] sm:$0xff] (!%p906_p6), %v1094_v0  ;;  %329 = vst [vmem:[#allocation2 + $0x8] sm:$0xff] (!%p906_p6), %v1094_v0 }
  0x11   : > { %327 = sbr.rel (%p906_p6) target bundleno = 24 (0x18), region = 40 }
  0x18 PF: > { %v995_v1 = vld [vmem:[%s1152_s28 + $0x4] ss:$8 sps:$4 sm:$0xff]   ;;  %v997_v2 = vld [vmem:[%s1152_s28] ss:$8 sps:$4 sm:$0xff]   ;;  %v1095_v3 = vmov 0   ;;  %p958_p7 = scmp.ne.s32.totalorder %s1084_s15, 2 }
  0x19   : > { %706 = vmatprep.mubr.bf16.mxu1 %v1095_v3  ;;  %633 = vmatprep.subr.bf16.mxu0 %v995_v1  ;;  %v998_v4 = vld [vmem:[%s1152_s28 + $0x14] ss:$8 sps:$4 sm:$0xff]   ;;  %v1000_v5 = vld [vmem:[%s1152_s28 + $0x10] ss:$8 sps:$4 sm:$0xff]   ;;  %v1001_v6 = vld [vmem:[%s1152_s28 + $0x24] ss:$8 sps:$4 sm:$0xff]  }
  0x1a   : > { %634 = vmatpush1.bf16.msra.mxu0 %v997_v2  ;;  %v1003_v7 = vld [vmem:[%s1152_s28 + $0x20] ss:$8 sps:$4 sm:$0xff]   ;;  %v1004_v8 = vld [vmem:[%s1152_s28 + $0x34] ss:$8 sps:$4 sm:$0xff]   ;;  %v1006_v9 = vld [vmem:[%s1152_s28 + $0x30] ss:$8 sps:$4 sm:$0xff]  }
  0x1b   : > { %635 = vmatprep.subr.bf16.mxu0 %v998_v4  ;;  %v1019_v10 = vld [vmem:[%s1152_s28 + $0x104] ss:$8 sps:$4 sm:$0xff]   ;;  %v1021_v11 = vld [vmem:[%s1152_s28 + $0x100] ss:$8 sps:$4 sm:$0xff]   ;;  %v1025_v13 = vld [vmem:[%s1152_s28 + $0x114] ss:$8 sps:$4 sm:$0xff]   ;;  %v727_v4 = vlaneseq (!%p958_p7) }
  0x1c   : > { %v1007_v12 = vld [vmem:[%s1152_s28 + $0x44] ss:$8 sps:$4 sm:$0xff]   ;;  %674 = vmatprep.subr.bf16.mxu1 %v1019_v10  ;;  %v1027_v14 = vld [vmem:[%s1152_s28 + $0x110] ss:$8 sps:$4 sm:$0xff]   ;;  %v1009_v15 = vld [vmem:[%s1152_s28 + $0x40] ss:$8 sps:$4 sm:$0xff]  }
  0x1d   : > { %675 = vmatpush1.bf16.msra.mxu1 %v1021_v11  ;;  %v1010_v16 = vld [vmem:[%s1152_s28 + $0x54] ss:$8 sps:$4 sm:$0xff]   ;;  %v1031_v17 = vld [vmem:[%s1152_s28 + $0x124] ss:$8 sps:$4 sm:$0xff]   ;;  %v1033_v18 = vld [vmem:[%s1152_s28 + $0x120] ss:$8 sps:$4 sm:$0xff]  }
  0x1e   : > { %636 = vmatpush1.bf16.msra.mxu0 %v1000_v5  ;;  %676 = vmatprep.subr.bf16.mxu1 %v1025_v13  ;;  %v1012_v19 = vld [vmem:[%s1152_s28 + $0x50] ss:$8 sps:$4 sm:$0xff]   ;;  %v1037_v20 = vld [vmem:[%s1152_s28 + $0x134] ss:$8 sps:$4 sm:$0xff]   ;;  %v1013_v21 = vld [vmem:[%s1152_s28 + $0x64] ss:$8 sps:$4 sm:$0xff]  }
  0x1f   : > { %637 = vmatprep.subr.bf16.mxu0 %v1001_v6  ;;  %v1039_v22 = vld [vmem:[%s1152_s28 + $0x130] ss:$8 sps:$4 sm:$0xff]   ;;  %v1015_v23 = vld [vmem:[%s1152_s28 + $0x60] ss:$8 sps:$4 sm:$0xff]   ;;  %v1043_v24 = vld [vmem:[%s1152_s28 + $0x144] ss:$8 sps:$4 sm:$0xff]  }
  0x20   : > { %v1016_v25 = vld [vmem:[%s1152_s28 + $0x74] ss:$8 sps:$4 sm:$0xff]   ;;  %v1045_v26 = vld [vmem:[%s1152_s28 + $0x140] ss:$8 sps:$4 sm:$0xff]   ;;  %v1018_v27 = vld [vmem:[%s1152_s28 + $0x70] ss:$8 sps:$4 sm:$0xff]  }
  0x21   : > { %677 = vmatpush1.bf16.msra.mxu1 %v1027_v14  ;;  %v1049_v28 = vld [vmem:[%s1152_s28 + $0x154] ss:$8 sps:$4 sm:$0xff]   ;;  %v1022_v29 = vld [vmem:[%s1152_s28 + $0x84] ss:$8 sps:$4 sm:$0xff]   ;;  %v1051_v30 = vld [vmem:[%s1152_s28 + $0x150] ss:$8 sps:$4 sm:$0xff]  }
  0x22   : > { %638 = vmatpush1.bf16.msra.mxu0 %v1003_v7  ;;  %678 = vmatprep.subr.bf16.mxu1 %v1031_v17  ;;  %v1024_v31 = vld [vmem:[%s1152_s28 + $0x80] ss:$8 sps:$4 sm:$0xff]   ;;  %v1055_v32 = vld [vmem:[%s1152_s28 + $0x164] ss:$8 sps:$4 sm:$0xff]   ;;  %v1028_v33 = vld [vmem:[%s1152_s28 + $0x94] ss:$8 sps:$4 sm:$0xff]  }
  0x23   : > { %639 = vmatprep.subr.bf16.mxu0 %v1004_v8  ;;  %v332_v34 = vld [vmem:[%s1147_s24] sm:$0xff]  ;;  %v1030_v37 = vld [vmem:[%s1152_s28 + $0x90] ss:$8 sps:$4 sm:$0xff]   ;;  %v1061_v38 = vld [vmem:[%s1152_s28 + $0x174] ss:$8 sps:$4 sm:$0xff]   ;;  %v728_v5 = vshrl.u32 (!%p958_p7), %v727_v4, 7 }
  0x24   : > { %v908_v35 = vcombine.high %v332_v34, %v332_v34  ;;  %v1057_v36 = vld [vmem:[%s1152_s28 + $0x160] ss:$8 sps:$4 sm:$0xff]   ;;  %v1034_v39 = vld [vmem:[%s1152_s28 + $0xa4] ss:$8 sps:$4 sm:$0xff]   ;;  %v1063_v40 = vld [vmem:[%s1152_s28 + $0x170] ss:$8 sps:$4 sm:$0xff]   ;;  %v907_v53 = vcombine.low %v332_v34, %v332_v34 }
  0x25   : > { %679 = vmatpush1.bf16.msra.mxu1 %v1033_v18  ;;  %v1036_v41 = vld [vmem:[%s1152_s28 + $0xa0] ss:$8 sps:$4 sm:$0xff]   ;;  %v1040_v42 = vld [vmem:[%s1152_s28 + $0xb4] ss:$8 sps:$4 sm:$0xff]   ;;  %v1042_v44 = vld [vmem:[%s1152_s28 + $0xb0] ss:$8 sps:$4 sm:$0xff]  }
  0x26   : > { %640 = vmatpush1.bf16.msra.mxu0 %v1006_v9  ;;  %680 = vmatprep.subr.bf16.mxu1 %v1037_v20  ;;  %v1067_v43 = vld [vmem:[%s1147_s24 + $0x8] ss:$0 sps:$4 sm:$0xff]   ;;  %v1046_v45 = vld [vmem:[%s1152_s28 + $0xc4] ss:$8 sps:$4 sm:$0xff]   ;;  %v1052_v47 = vld [vmem:[%s1152_s28 + $0xd4] ss:$8 sps:$4 sm:$0xff]  }
  0x27   : > { %641 = vmatprep.subr.bf16.mxu0 %v1007_v12  ;;  %665 = vmatprep.mubr.bf16.mxu0 %v908_v35  ;;  %v1048_v46 = vld [vmem:[%s1152_s28 + $0xc0] ss:$8 sps:$4 sm:$0xff]   ;;  %v1054_v48 = vld [vmem:[%s1152_s28 + $0xd0] ss:$8 sps:$4 sm:$0xff]   ;;  %v1058_v49 = vld [vmem:[%s1152_s28 + $0xe4] ss:$8 sps:$4 sm:$0xff]  }
  0x28   : > { %v1060_v50 = vld [vmem:[%s1152_s28 + $0xe0] ss:$8 sps:$4 sm:$0xff]   ;;  %v1064_v51 = vld [vmem:[%s1152_s28 + $0xf4] ss:$8 sps:$4 sm:$0xff]   ;;  %v1066_v52 = vld [vmem:[%s1152_s28 + $0xf0] ss:$8 sps:$4 sm:$0xff]  }
  0x29   : > { %681 = vmatpush1.bf16.msra.mxu1 %v1039_v22  ;;  %v330_v58 = vld [vmem:[#allocation2] sm:$0xff]  ;;  %v331_v61 = vld [vmem:[#allocation2 + $0x8] sm:$0xff]  ;;  %v729_v8 = vsub.s32 (!%p958_p7), 0, %v728_v5  ;;  %v733_v9 = vsub.s32 (!%p958_p7), 1, %v728_v5  ;;  %v1096_v20 = vmov (!%p958_p7), 0.0  }
  0x2a   : > { %642 = vmatpush1.bf16.msra.mxu0 %v1009_v15  ;;  %682 = vmatprep.subr.bf16.mxu1 %v1043_v24  ;;  %v725_v6 = vld [vmem:[%s1226_s2] sm:$0x3] (!%p958_p7) }
  0x2b   : > { %643 = vmatprep.subr.bf16.mxu0 %v1010_v16  ;;  %v739_v7 = vld [vmem:[%s1227_s3] sm:$0x3] (!%p958_p7)  ;;  %v730_v12 = vrot.slane (!%p958_p7), %v725_v6, %v729_v8  ;;  %v734_v13 = vrot.slane (!%p958_p7), %v725_v6, %v733_v9 }
  0x2c   : > { %v744_v14 = vrot.slane (!%p958_p7), %v739_v7, %v729_v8  ;;  %v748_v15 = vrot.slane (!%p958_p7), %v739_v7, %v733_v9 }
  0x2d   : > { %683 = vmatpush1.bf16.msra.mxu1 %v1045_v26 }
  0x2e   : > { %644 = vmatpush1.bf16.msra.mxu0 %v1012_v19  ;;  %684 = vmatprep.subr.bf16.mxu1 %v1049_v28 }
  0x2f   : > { %645 = vmatprep.subr.bf16.mxu0 %v1013_v21 }
  0x31   : > { %685 = vmatpush1.bf16.msra.mxu1 %v1051_v30 }
  0x32   : > { %646 = vmatpush1.bf16.msra.mxu0 %v1015_v23  ;;  %686 = vmatprep.subr.bf16.mxu1 %v1055_v32 }
  0x33   : > { %647 = vmatprep.subr.bf16.mxu0 %v1016_v25 }
  0x35   : > { %687 = vmatpush1.bf16.msra.mxu1 %v1057_v36 }
  0x36   : > { %648 = vmatpush1.bf16.msra.mxu0 %v1018_v27  ;;  %688 = vmatprep.subr.bf16.mxu1 %v1061_v38 }
  0x37   : > { %649 = vmatprep.subr.bf16.mxu0 %v1022_v29 }
  0x39   : > { %689 = vmatpush1.bf16.msra.mxu1 %v1063_v40 }
  0x3a   : > { %650 = vmatpush1.bf16.msra.mxu0 %v1024_v31 }
  0x3b   : > { %651 = vmatprep.subr.bf16.mxu0 %v1028_v33 }
  0x3c   : > { %707 = vmatmul.mubr.bf16.vlgmr.msra.gmra.mrb[0].mxu1 %v1067_v43 }
  0x3e   : > { %652 = vmatpush1.bf16.msra.mxu0 %v1030_v37 }
  0x3f   : > { %653 = vmatprep.subr.bf16.mxu0 %v1034_v39 }
  0x42   : > { %654 = vmatpush1.bf16.msra.mxu0 %v1036_v41 }
  0x43   : > { %655 = vmatprep.subr.bf16.mxu0 %v1040_v42 }
  0x46   : > { %656 = vmatpush1.bf16.msra.mxu0 %v1042_v44 }
  0x47   : > { %657 = vmatprep.subr.bf16.mxu0 %v1046_v45 }
  0x4a   : > { %658 = vmatpush1.bf16.msra.mxu0 %v1048_v46 }
  0x4b   : > { %659 = vmatprep.subr.bf16.mxu0 %v1052_v47 }
  0x4e   : > { %660 = vmatpush1.bf16.msra.mxu0 %v1054_v48 }
  0x4f   : > { %661 = vmatprep.subr.bf16.mxu0 %v1058_v49 }
  0x52   : > { %662 = vmatpush1.bf16.msra.mxu0 %v1060_v50 }
  0x53   : > { %663 = vmatprep.subr.bf16.mxu0 %v1064_v51 }
  0x56   : > { %664 = vmatpush1.bf16.msra.mxu0 %v1066_v52 }
  0x59   : > { %666 = vmatmul.mubr.bf16.vlgmr.msra.gmra.mrb[0].mxu0 %v907_v53 }
 0x10f   : > { %v708_v54 = vpop.f32.mrb[0].mxu1 }
 0x110   : > { %v710_v55 = vpop.f32.mrb[1].mxu1 }
 0x111   : > { %v712_v56 = vpop.f32.mrb[2].mxu1 }
 0x112   : > { %v713_v57 = vpop.f32.mrb[3].mxu1 }
 0x12c   : > { %v667_v59 = vpop.f32.mrb[0].mxu0  ;;  %722 = sbr.rel (%p958_p7) target bundleno = 323 (0x143), region = 44 }
 0x12d   : > { %v709_v60 = vadd.f32 %v708_v54, %v667_v59  ;;  %v669_v62 = vpop.f32.mrb[1].mxu0 }
 0x12e   : > { %v711_v63 = vadd.f32 %v710_v55, %v669_v62  ;;  %v671_v0 = vpop.f32.mrb[2].mxu0 }
 0x12f   : > { %v715_v1 = vadd.f32 %v709_v60, %v330_v58  ;;  %v672_v2 = vpop.f32.mrb[3].mxu0 }
 0x130   : > { %v716_v3 = vadd.f32 %v711_v63, %v331_v61 }
 0x131   : > { %717 = vst [vmem:[#allocation2] sm:$0xff] %v715_v1 }
 0x132   : > { %718 = vst [vmem:[#allocation2 + $0x8] sm:$0xff] %v716_v3 }
 0x138   : > { %v723_v10 = vld [vmem:[#allocation2] sm:$0xff] }
 0x139   : > { %v724_v11 = vld [vmem:[#allocation2 + $0x8] sm:$0xff]  ;;  %v737_v16 = vmul.f32 %v730_v12, %v723_v10 }
 0x13a   : > { %v738_v17 = vmul.f32 %v734_v13, %v724_v11 }
 0x13b   : > { %v751_v18 = vadd.f32 %v744_v14, %v737_v16 }
 0x13c   : > { %v752_v19 = vadd.f32 %v748_v15, %v738_v17 }
 0x13d   : > { %vm753_vm0 = vcmp.ge.f32.partialorder %v751_v18, 1.0 }
 0x13e   : > { %vm754_vm1 = vcmp.ge.f32.partialorder %v752_v19, 1.0  ;;  %v959_v21 = vsel %vm753_vm0, 1.0, %v1096_v20 }
 0x13f   : > { %v960_v22 = vsel %vm754_vm1, 1.0, %v1096_v20 }
 0x140   : > { %v967_v23 = vpack.c.bf16 %v960_v22, %v959_v21 }
 0x142   : > { %767 = vst [vmem:[%s1228_s4] sm:$0xff] %v967_v23 }
 0x143 PF: > { %s14_s17 = sadd.s32 1, %s1092_s17   ;;  %s1229_s15 = smov %s1088_s16 }
 0x144   : > { %p11_p8 = scmp.ge.s32.totalorder %s14_s17, 5   ;;  %s1230_s16 = smov %s1232_s18 }
 0x146   :  { %13 = sbr.rel (!%p11_p8) target bundleno = 2 (0x2), region = 83 }

// kernel: _lambda_.22
= control target key start
LH: loop header
LB: loop body
LE: loop exit
PB: predicated region body
PF: predicated region fallthrough
CT: control target
= control target key end

     0   :  { %v266_v1 = vmov 0   ;;  %v175_v18 = vlaneseq  ;;  %v267_v36 = vmov 0.0   ;;  %s353_s1 = inlined_call_operand.vmem [shape: bf16[128,256], index: 1, kind: input, shape index: {}]   ;;  %s354_s0 = inlined_call_operand.vmem [shape: bf16[8,128], index: 0, kind: input, shape index: {}]   ;;  %s355_s2 = inlined_call_operand.vmem [shape: f32[1,256], index: 2, kind: input, shape index: {}]   ;;  %s356_s3 = inlined_call_operand.vmem [shape: f32[1,256], index: 3, kind: input, shape index: {}]   ;;  %s357_s4 = inlined_call_operand.vmem [shape: bf16[8,256], index: 4, kind: output, shape index: {}]  }
   0x1   :  { %v242_v0 = vld [vmem:[%s353_s1 + $0x4] ss:$8 sps:$4 sm:$0xff]   ;;  %155 = vmatprep.mubr.bf16.mxu0 %v266_v1  ;;  %v244_v2 = vld [vmem:[%s353_s1] ss:$8 sps:$4 sm:$0xff]   ;;  %v245_v3 = vld [vmem:[%s353_s1 + $0x14] ss:$8 sps:$4 sm:$0xff]  }
   0x2   :  { %123 = vmatprep.subr.bf16.mxu0 %v242_v0  ;;  %v247_v4 = vld [vmem:[%s353_s1 + $0x10] ss:$8 sps:$4 sm:$0xff]   ;;  %v248_v5 = vld [vmem:[%s353_s1 + $0x24] ss:$8 sps:$4 sm:$0xff]   ;;  %v250_v6 = vld [vmem:[%s353_s1 + $0x20] ss:$8 sps:$4 sm:$0xff]  }
   0x3   :  { %124 = vmatpush1.bf16.msra.mxu0 %v244_v2  ;;  %v251_v7 = vld [vmem:[%s353_s1 + $0x34] ss:$8 sps:$4 sm:$0xff]   ;;  %v253_v8 = vld [vmem:[%s353_s1 + $0x30] ss:$8 sps:$4 sm:$0xff]   ;;  %v254_v9 = vld [vmem:[%s353_s1 + $0x44] ss:$8 sps:$4 sm:$0xff]  }
   0x4   :  { %125 = vmatprep.subr.bf16.mxu0 %v245_v3  ;;  %v256_v10 = vld [vmem:[%s353_s1 + $0x40] ss:$8 sps:$4 sm:$0xff]   ;;  %v257_v11 = vld [vmem:[%s353_s1 + $0x54] ss:$8 sps:$4 sm:$0xff]   ;;  %v259_v12 = vld [vmem:[%s353_s1 + $0x50] ss:$8 sps:$4 sm:$0xff]  }
   0x5   :  { %v260_v13 = vld [vmem:[%s353_s1 + $0x64] ss:$8 sps:$4 sm:$0xff]   ;;  %v262_v14 = vld [vmem:[%s353_s1 + $0x60] ss:$8 sps:$4 sm:$0xff]   ;;  %v263_v15 = vld [vmem:[%s353_s1 + $0x74] ss:$8 sps:$4 sm:$0xff]  }
   0x6   :  { %v265_v16 = vld [vmem:[%s353_s1 + $0x70] ss:$8 sps:$4 sm:$0xff]   ;;  %v26_v17 = vld [vmem:[%s354_s0] sm:$0xf]  ;;  %v176_v19 = vshrl.u32 %v175_v18, 7 }
   0x7   :  { %126 = vmatpush1.bf16.msra.mxu0 %v247_v4  ;;  %v173_v21 = vld [vmem:[%s355_s2] sm:$0x3] }
   0x8   :  { %127 = vmatprep.subr.bf16.mxu0 %v248_v5  ;;  %v177_v20 = vsub.s32 0, %v176_v19  ;;  %v181_v22 = vsub.s32 1, %v176_v19  ;;  %v187_v23 = vld [vmem:[%s356_s3] sm:$0x3] }
   0xa   :  { %v178_v24 = vrot.slane %v173_v21, %v177_v20  ;;  %v182_v25 = vrot.slane %v173_v21, %v181_v22  ;;  %v192_v26 = vrot.slane %v187_v23, %v177_v20  ;;  %v196_v28 = vrot.slane %v187_v23, %v181_v22 }
   0xb   :  { %128 = vmatpush1.bf16.msra.mxu0 %v250_v6 }
   0xc   :  { %129 = vmatprep.subr.bf16.mxu0 %v251_v7 }
   0xf   :  { %130 = vmatpush1.bf16.msra.mxu0 %v253_v8 }
  0x10   :  { %131 = vmatprep.subr.bf16.mxu0 %v254_v9 }
  0x13   :  { %132 = vmatpush1.bf16.msra.mxu0 %v256_v10 }
  0x14   :  { %133 = vmatprep.subr.bf16.mxu0 %v257_v11 }
  0x17   :  { %134 = vmatpush1.bf16.msra.mxu0 %v259_v12 }
  0x18   :  { %135 = vmatprep.subr.bf16.mxu0 %v260_v13 }
  0x1b   :  { %136 = vmatpush1.bf16.msra.mxu0 %v262_v14 }
  0x1c   :  { %137 = vmatprep.subr.bf16.mxu0 %v263_v15 }
  0x1f   :  { %138 = vmatpush1.bf16.msra.mxu0 %v265_v16 }
  0x22   :  { %156 = vmatmul.mubr.bf16.vlgmr.msra.gmra.mrb[0].mxu0 %v26_v17 }
  0xf5   :  { %v157_v27 = vpop.f32.mrb[0].mxu0 }
  0xf6   :  { %v185_v29 = vmul.f32 %v178_v24, %v157_v27  ;;  %v159_v30 = vpop.f32.mrb[1].mxu0 }
  0xf7   :  { %v186_v31 = vmul.f32 %v182_v25, %v159_v30  ;;  %v161_v32 = vpop.f32.mrb[2].mxu0 }
  0xf8   :  { %v199_v33 = vadd.f32 %v192_v26, %v185_v29  ;;  %v162_v34 = vpop.f32.mrb[3].mxu0 }
  0xf9   :  { %v200_v35 = vadd.f32 %v196_v28, %v186_v31 }
  0xfa   :  { %vm201_vm0 = vcmp.ge.f32.partialorder %v199_v33, 1.0 }
  0xfb   :  { %v236_v37 = vsel %vm201_vm0, 1.0, %v267_v36  ;;  %vm202_vm1 = vcmp.ge.f32.partialorder %v200_v35, 1.0 }
  0xfc   :  { %v237_v38 = vsel %vm202_vm1, 1.0, %v267_v36 }
  0xfd   :  { %v239_v39 = vpack.c.bf16 %v237_v38, %v236_v37 }
  0xff   :  { %215 = vst [vmem:[%s357_s4] sm:$0xff] %v239_v39 }

// kernel: _lambda_.24
= control target key start
LH: loop header
LB: loop body
LE: loop exit
PB: predicated region body
PF: predicated region fallthrough
CT: control target
= control target key end

     0   :  { %s1680_s18 = smov 0   ;;  %s1682_s19 = smov 0   ;;  %s1840_s0 = inlined_call_operand.vmem [shape: bf16[8,2304], index: 0, kind: input, shape index: {}]   ;;  %s1841_s1 = inlined_call_operand.vmem [shape: bf16[2304,256], index: 1, kind: input, shape index: {}]   ;;  %s1842_s2 = inlined_call_operand.vmem [shape: f32[1,256], index: 2, kind: input, shape index: {}]   ;;  %s1843_s3 = inlined_call_operand.vmem [shape: f32[1,256], index: 3, kind: input, shape index: {}]   ;;  %s1844_s4 = inlined_call_operand.vmem [shape: bf16[8,256], index: 4, kind: input, shape index: {}]   ;;  %s1845_s5 = inlined_call_operand.vmem [shape: bf16[8,256], index: 5, kind: output, shape index: {}]  }
   0x1   :  { %s1684_s20 = smov 0  }
   0x2 LB: > { %s27_s21 = sadd.s32 1, %s1642_s19  ;;  %p1331_p0 = scmp.ge.s32.totalorder %s1646_s20, 1  ;;  %s1646_s20 = sphi %s1684_s20, %s15_s20   ;;  %s1642_s19 = sphi %s1682_s19, %s1847_s19   ;;  %s1638_s18 = sphi %s1680_s18, %s1846_s18  }
   0x3   : > { %p28_p1 = scmp.ge.s32.totalorder %s27_s21, 3  ;;  %p271_p2 = scmp.lt.s32.totalorder %s1646_s20, 4 }
   0x5   : > { %s1849_s21 = smov (%p28_p1, %s27_s21), 0  ;;  %p272_p3 = pnand %p1331_p0, %p271_p2 }
   0x6   : > { %s334_s22 = smul.u32 (!%p272_p3), 6, %s1638_s18  ;;  %p1335_p6 = scmp.ne.s32.totalorder (!%p272_p3), %s1638_s18, 0 }
   0x7   : > { %275 = sbr.rel (%p272_p3) target bundleno = 389 (0x185), region = 40 }
   0x8   : > { %s344_s23 = smul.u32 (!%p272_p3), 96, %s1638_s18  ;;  %p337_p4 = scmp.lt.s32.totalorder (!%p272_p3), %s334_s22, 17 }
   0xa   : > { %p346_p5 = scmp.lt.s32.totalorder (!%p272_p3), %s344_s23, 287 }
   0xe   : > { %s1851_s22 = smov (!%p337_p4, %s334_s22), 17  ;;  %s1853_s23 = smov (!%p346_p5, %s344_s23), 287 }
   0xf   : > { %s1332_s24 = sshll.u32 %s1851_s22, 2  ;;  %s1446_s28 = sshll.u32 %s1853_s23, 3  ;;  %v1648_v0 = vmov (!%p1335_p6), 0.0  }
  0x10   : > { %s1705_s27 = scalar_lea.vmem %s1840_s0, %s1332_s24  ;;  %s1710_s6 = scalar_lea.vmem %s1841_s1, %s1446_s28  ;;  %390 = vst [vmem:[#allocation2] sm:$0xff] (!%p1335_p6), %v1648_v0  ;;  %391 = vst [vmem:[#allocation2 + $0x8] sm:$0xff] (!%p1335_p6), %v1648_v0 }
  0x11   : > { %389 = sbr.rel (%p1335_p6) target bundleno = 24 (0x18), region = 44 }
  0x18 PF: > { %v1474_v1 = vld [vmem:[%s1710_s6 + $0x4] ss:$8 sps:$4 sm:$0xff]   ;;  %v1478_v3 = vld [vmem:[%s1710_s6] ss:$8 sps:$4 sm:$0xff]   ;;  %v1480_v5 = vld [vmem:[%s1710_s6 + $0x14] ss:$8 sps:$4 sm:$0xff]  }
  0x19   : > { %v1476_v2 = vld [vmem:[%s1710_s6 + $0x104] ss:$8 sps:$4 sm:$0xff]   ;;  %994 = vmatprep.subr.bf16.mxu0 %v1474_v1  ;;  %v1479_v4 = vld [vmem:[%s1710_s6 + $0x100] ss:$8 sps:$4 sm:$0xff]   ;;  %v1482_v6 = vld [vmem:[%s1710_s6 + $0x114] ss:$8 sps:$4 sm:$0xff]  }
  0x1a   : > { %1035 = vmatprep.subr.bf16.mxu1 %v1476_v2  ;;  %995 = vmatpush1.bf16.msra.mxu0 %v1478_v3  ;;  %v1484_v7 = vld [vmem:[%s1710_s6 + $0x10] ss:$8 sps:$4 sm:$0xff]   ;;  %v1486_v9 = vld [vmem:[%s1710_s6 + $0x24] ss:$8 sps:$4 sm:$0xff]   ;;  %v1490_v11 = vld [vmem:[%s1710_s6 + $0x20] ss:$8 sps:$4 sm:$0xff]  }
  0x1b   : > { %1036 = vmatpush1.bf16.msra.mxu1 %v1479_v4  ;;  %996 = vmatprep.subr.bf16.mxu0 %v1480_v5  ;;  %v1485_v8 = vld [vmem:[%s1710_s6 + $0x110] ss:$8 sps:$4 sm:$0xff]   ;;  %v1488_v10 = vld [vmem:[%s1710_s6 + $0x124] ss:$8 sps:$4 sm:$0xff]   ;;  %v1491_v12 = vld [vmem:[%s1710_s6 + $0x120] ss:$8 sps:$4 sm:$0xff]  }
  0x1c   : > { %1037 = vmatprep.subr.bf16.mxu1 %v1482_v6  ;;  %v1492_v13 = vld [vmem:[%s1710_s6 + $0x34] ss:$8 sps:$4 sm:$0xff]   ;;  %v1496_v15 = vld [vmem:[%s1710_s6 + $0x30] ss:$8 sps:$4 sm:$0xff]   ;;  %v1498_v17 = vld [vmem:[%s1710_s6 + $0x44] ss:$8 sps:$4 sm:$0xff]  }
  0x1d   : > { %v1494_v14 = vld [vmem:[%s1710_s6 + $0x134] ss:$8 sps:$4 sm:$0xff]   ;;  %v1497_v16 = vld [vmem:[%s1710_s6 + $0x130] ss:$8 sps:$4 sm:$0xff]   ;;  %v1500_v18 = vld [vmem:[%s1710_s6 + $0x144] ss:$8 sps:$4 sm:$0xff]  }
  0x1e   : > { %997 = vmatpush1.bf16.msra.mxu0 %v1484_v7  ;;  %v1502_v19 = vld [vmem:[%s1710_s6 + $0x40] ss:$8 sps:$4 sm:$0xff]   ;;  %v1504_v21 = vld [vmem:[%s1710_s6 + $0x54] ss:$8 sps:$4 sm:$0xff]   ;;  %v1508_v23 = vld [vmem:[%s1710_s6 + $0x50] ss:$8 sps:$4 sm:$0xff]  }
  0x1f   : > { %1038 = vmatpush1.bf16.msra.mxu1 %v1485_v8  ;;  %998 = vmatprep.subr.bf16.mxu0 %v1486_v9  ;;  %v1503_v20 = vld [vmem:[%s1710_s6 + $0x140] ss:$8 sps:$4 sm:$0xff]   ;;  %v1506_v22 = vld [vmem:[%s1710_s6 + $0x154] ss:$8 sps:$4 sm:$0xff]   ;;  %v1509_v24 = vld [vmem:[%s1710_s6 + $0x150] ss:$8 sps:$4 sm:$0xff]  }
  0x20   : > { %1039 = vmatprep.subr.bf16.mxu1 %v1488_v10  ;;  %v1510_v25 = vld [vmem:[%s1710_s6 + $0x64] ss:$8 sps:$4 sm:$0xff]   ;;  %v1514_v27 = vld [vmem:[%s1710_s6 + $0x60] ss:$8 sps:$4 sm:$0xff]   ;;  %v1516_v29 = vld [vmem:[%s1710_s6 + $0x74] ss:$8 sps:$4 sm:$0xff]  }
  0x21   : > { %v1512_v26 = vld [vmem:[%s1710_s6 + $0x164] ss:$8 sps:$4 sm:$0xff]   ;;  %v1515_v28 = vld [vmem:[%s1710_s6 + $0x160] ss:$8 sps:$4 sm:$0xff]   ;;  %v1518_v30 = vld [vmem:[%s1710_s6 + $0x174] ss:$8 sps:$4 sm:$0xff]  }
  0x22   : > { %999 = vmatpush1.bf16.msra.mxu0 %v1490_v11  ;;  %v1520_v31 = vld [vmem:[%s1710_s6 + $0x70] ss:$8 sps:$4 sm:$0xff]   ;;  %v1522_v33 = vld [vmem:[%s1710_s6 + $0x84] ss:$8 sps:$4 sm:$0xff]   ;;  %v1526_v35 = vld [vmem:[%s1710_s6 + $0x80] ss:$8 sps:$4 sm:$0xff]  }
  0x23   : > { %1040 = vmatpush1.bf16.msra.mxu1 %v1491_v12  ;;  %1000 = vmatprep.subr.bf16.mxu0 %v1492_v13  ;;  %v1521_v32 = vld [vmem:[%s1710_s6 + $0x170] ss:$8 sps:$4 sm:$0xff]   ;;  %v1524_v34 = vld [vmem:[%s1710_s6 + $0x184] ss:$8 sps:$4 sm:$0xff]   ;;  %v1527_v36 = vld [vmem:[%s1710_s6 + $0x180] ss:$8 sps:$4 sm:$0xff]  }
  0x24   : > { %1041 = vmatprep.subr.bf16.mxu1 %v1494_v14  ;;  %v1528_v37 = vld [vmem:[%s1710_s6 + $0x94] ss:$8 sps:$4 sm:$0xff]   ;;  %v1532_v39 = vld [vmem:[%s1710_s6 + $0x90] ss:$8 sps:$4 sm:$0xff]   ;;  %v1534_v41 = vld [vmem:[%s1710_s6 + $0xa4] ss:$8 sps:$4 sm:$0xff]  }
  0x25   : > { %v1530_v38 = vld [vmem:[%s1710_s6 + $0x194] ss:$8 sps:$4 sm:$0xff]   ;;  %v1533_v40 = vld [vmem:[%s1710_s6 + $0x190] ss:$8 sps:$4 sm:$0xff]   ;;  %v1536_v42 = vld [vmem:[%s1710_s6 + $0x1a4] ss:$8 sps:$4 sm:$0xff]  }
  0x26   : > { %1001 = vmatpush1.bf16.msra.mxu0 %v1496_v15  ;;  %v1538_v43 = vld [vmem:[%s1710_s6 + $0xa0] ss:$8 sps:$4 sm:$0xff]   ;;  %v1540_v45 = vld [vmem:[%s1710_s6 + $0xb4] ss:$8 sps:$4 sm:$0xff]   ;;  %v1544_v50 = vld [vmem:[%s1710_s6 + $0xb0] ss:$8 sps:$4 sm:$0xff]  }
  0x27   : > { %1042 = vmatpush1.bf16.msra.mxu1 %v1497_v16  ;;  %1002 = vmatprep.subr.bf16.mxu0 %v1498_v17  ;;  %v1539_v44 = vld [vmem:[%s1710_s6 + $0x1a0] ss:$8 sps:$4 sm:$0xff]   ;;  %v1542_v46 = vld [vmem:[%s1710_s6 + $0x1b4] ss:$8 sps:$4 sm:$0xff]   ;;  %v1545_v51 = vld [vmem:[%s1710_s6 + $0x1b0] ss:$8 sps:$4 sm:$0xff]  }
  0x28   : > { %1043 = vmatprep.subr.bf16.mxu1 %v1500_v18  ;;  %v394_v47 = vld [vmem:[%s1705_s27] sm:$0xff]  ;;  %v395_v49 = vld [vmem:[%s1705_s27 + $0x8] sm:$0xff]  ;;  %v1552_v57 = vld [vmem:[%s1710_s6 + $0xd4] ss:$8 sps:$4 sm:$0xff]   ;;  %p1438_p7 = scmp.ne.s32.totalorder %s1638_s18, 2 }
  0x29   : > { %v1337_v48 = vcombine.high %v394_v47, %v394_v47  ;;  %v1339_v52 = vcombine.high %v395_v49, %v395_v49  ;;  %v1546_v53 = vld [vmem:[%s1710_s6 + $0xc4] ss:$8 sps:$4 sm:$0xff]   ;;  %v1550_v55 = vld [vmem:[%s1710_s6 + $0xc0] ss:$8 sps:$4 sm:$0xff]   ;;  %v1554_v58 = vld [vmem:[%s1710_s6 + $0x1d4] ss:$8 sps:$4 sm:$0xff]   ;;  %v1336_v6 = vcombine.low %v394_v47, %v394_v47  ;;  %v1338_v7 = vcombine.low %v395_v49, %v395_v49 }
  0x2a   : > { %1003 = vmatpush1.bf16.msra.mxu0 %v1502_v19  ;;  %v1548_v54 = vld [vmem:[%s1710_s6 + $0x1c4] ss:$8 sps:$4 sm:$0xff]   ;;  %v1551_v56 = vld [vmem:[%s1710_s6 + $0x1c0] ss:$8 sps:$4 sm:$0xff]   ;;  %v1556_v59 = vld [vmem:[%s1710_s6 + $0xd0] ss:$8 sps:$4 sm:$0xff]  }
  0x2b   : > { %1044 = vmatpush1.bf16.msra.mxu1 %v1503_v20  ;;  %1004 = vmatprep.subr.bf16.mxu0 %v1504_v21  ;;  %v1557_v60 = vld [vmem:[%s1710_s6 + $0x1d0] ss:$8 sps:$4 sm:$0xff]   ;;  %v1558_v61 = vld [vmem:[%s1710_s6 + $0xe4] ss:$8 sps:$4 sm:$0xff]   ;;  %v1562_v63 = vld [vmem:[%s1710_s6 + $0xe0] ss:$8 sps:$4 sm:$0xff]  }
  0x2c   : > { %1045 = vmatprep.subr.bf16.mxu1 %v1506_v22  ;;  %1026 = vmatprep.mubr.bf16.mxu0 %v1337_v48  ;;  %v1560_v62 = vld [vmem:[%s1710_s6 + $0x1e4] ss:$8 sps:$4 sm:$0xff]   ;;  %v1563_v0 = vld [vmem:[%s1710_s6 + $0x1e0] ss:$8 sps:$4 sm:$0xff]   ;;  %v1564_v1 = vld [vmem:[%s1710_s6 + $0xf4] ss:$8 sps:$4 sm:$0xff]  }
  0x2d   : > { %1067 = vmatprep.mubr.bf16.mxu1 %v1339_v52  ;;  %v1566_v2 = vld [vmem:[%s1710_s6 + $0x1f4] ss:$8 sps:$4 sm:$0xff]   ;;  %v1568_v3 = vld [vmem:[%s1710_s6 + $0xf0] ss:$8 sps:$4 sm:$0xff]   ;;  %v1576_v5 = vld [vmem:[%s1710_s6 + $0x204] ss:$8 sps:$4 sm:$0xff]  }
  0x2e   : > { %1005 = vmatpush1.bf16.msra.mxu0 %v1508_v23  ;;  %v1569_v4 = vld [vmem:[%s1710_s6 + $0x1f0] ss:$8 sps:$4 sm:$0xff]   ;;  %v1574_v8 = vld [vmem:[%s1710_s6 + $0x200] ss:$8 sps:$4 sm:$0xff]   ;;  %v1579_v10 = vld [vmem:[%s1710_s6 + $0x214] ss:$8 sps:$4 sm:$0xff]  }
  0x2f   : > { %1046 = vmatpush1.bf16.msra.mxu1 %v1509_v24  ;;  %1006 = vmatprep.subr.bf16.mxu0 %v1510_v25  ;;  %v1782_v9 = vld [vmem:[%s1705_s27 + $0x10] sm:$0xff]  ;;  %v1582_v13 = vld [vmem:[%s1710_s6 + $0x224] ss:$8 sps:$4 sm:$0xff]   ;;  %v1580_v14 = vld [vmem:[%s1710_s6 + $0x220] ss:$8 sps:$4 sm:$0xff]  }
  0x30   : > { %1047 = vmatprep.subr.bf16.mxu1 %v1512_v26  ;;  %v1341_v11 = vcombine.high %v1782_v9, %v1782_v9  ;;  %v1577_v12 = vld [vmem:[%s1710_s6 + $0x210] ss:$8 sps:$4 sm:$0xff]   ;;  %v1585_v15 = vld [vmem:[%s1710_s6 + $0x234] ss:$8 sps:$4 sm:$0xff]   ;;  %v1588_v17 = vld [vmem:[%s1710_s6 + $0x244] ss:$8 sps:$4 sm:$0xff]  }
  0x31   : > { %v1583_v16 = vld [vmem:[%s1710_s6 + $0x230] ss:$8 sps:$4 sm:$0xff]   ;;  %v1586_v18 = vld [vmem:[%s1710_s6 + $0x240] ss:$8 sps:$4 sm:$0xff]   ;;  %v1591_v19 = vld [vmem:[%s1710_s6 + $0x254] ss:$8 sps:$4 sm:$0xff]  }
  0x32   : > { %1007 = vmatpush1.bf16.msra.mxu0 %v1514_v27  ;;  %v1589_v20 = vld [vmem:[%s1710_s6 + $0x250] ss:$8 sps:$4 sm:$0xff]   ;;  %v1594_v21 = vld [vmem:[%s1710_s6 + $0x264] ss:$8 sps:$4 sm:$0xff]   ;;  %v1592_v22 = vld [vmem:[%s1710_s6 + $0x260] ss:$8 sps:$4 sm:$0xff]  }
  0x33   : > { %1048 = vmatpush1.bf16.msra.mxu1 %v1515_v28  ;;  %1008 = vmatprep.subr.bf16.mxu0 %v1516_v29  ;;  %v1597_v23 = vld [vmem:[%s1710_s6 + $0x274] ss:$8 sps:$4 sm:$0xff]   ;;  %v1595_v24 = vld [vmem:[%s1710_s6 + $0x270] ss:$8 sps:$4 sm:$0xff]   ;;  %v1600_v25 = vld [vmem:[%s1710_s6 + $0x284] ss:$8 sps:$4 sm:$0xff]  }
  0x34   : > { %1049 = vmatprep.subr.bf16.mxu1 %v1518_v30  ;;  %v1598_v26 = vld [vmem:[%s1710_s6 + $0x280] ss:$8 sps:$4 sm:$0xff]   ;;  %v1603_v27 = vld [vmem:[%s1710_s6 + $0x294] ss:$8 sps:$4 sm:$0xff]   ;;  %v1601_v28 = vld [vmem:[%s1710_s6 + $0x290] ss:$8 sps:$4 sm:$0xff]  }
  0x35   : > { %v1606_v29 = vld [vmem:[%s1710_s6 + $0x2a4] ss:$8 sps:$4 sm:$0xff]   ;;  %v1604_v30 = vld [vmem:[%s1710_s6 + $0x2a0] ss:$8 sps:$4 sm:$0xff]  }
  0x36   : > { %1009 = vmatpush1.bf16.msra.mxu0 %v1520_v31  ;;  %v1609_v31 = vld [vmem:[%s1710_s6 + $0x2b4] ss:$8 sps:$4 sm:$0xff]   ;;  %v392_v52 = vld [vmem:[#allocation2] sm:$0xff] }
  0x37   : > { %1050 = vmatpush1.bf16.msra.mxu1 %v1521_v32  ;;  %1010 = vmatprep.subr.bf16.mxu0 %v1522_v33  ;;  %v1607_v32 = vld [vmem:[%s1710_s6 + $0x2b0] ss:$8 sps:$4 sm:$0xff]   ;;  %v1612_v33 = vld [vmem:[%s1710_s6 + $0x2c4] ss:$8 sps:$4 sm:$0xff]  }
  0x38   : > { %1051 = vmatprep.subr.bf16.mxu1 %v1524_v34  ;;  %v1610_v34 = vld [vmem:[%s1710_s6 + $0x2c0] ss:$8 sps:$4 sm:$0xff]  }
  0x3a   : > { %1011 = vmatpush1.bf16.msra.mxu0 %v1526_v35  ;;  %v1615_v35 = vld [vmem:[%s1710_s6 + $0x2d4] ss:$8 sps:$4 sm:$0xff]  }
  0x3b   : > { %1052 = vmatpush1.bf16.msra.mxu1 %v1527_v36  ;;  %1012 = vmatprep.subr.bf16.mxu0 %v1528_v37  ;;  %v1613_v36 = vld [vmem:[%s1710_s6 + $0x2d0] ss:$8 sps:$4 sm:$0xff]   ;;  %v1618_v37 = vld [vmem:[%s1710_s6 + $0x2e4] ss:$8 sps:$4 sm:$0xff]  }
  0x3c   : > { %1053 = vmatprep.subr.bf16.mxu1 %v1530_v38  ;;  %v1616_v38 = vld [vmem:[%s1710_s6 + $0x2e0] ss:$8 sps:$4 sm:$0xff]  }
  0x3e   : > { %1013 = vmatpush1.bf16.msra.mxu0 %v1532_v39  ;;  %v1621_v39 = vld [vmem:[%s1710_s6 + $0x2f4] ss:$8 sps:$4 sm:$0xff]  }
  0x3f   : > { %1054 = vmatpush1.bf16.msra.mxu1 %v1533_v40  ;;  %1014 = vmatprep.subr.bf16.mxu0 %v1534_v41  ;;  %v1619_v40 = vld [vmem:[%s1710_s6 + $0x2f0] ss:$8 sps:$4 sm:$0xff]   ;;  %v1340_v41 = vcombine.low %v1782_v9, %v1782_v9 }
  0x40   : > { %1055 = vmatprep.subr.bf16.mxu1 %v1536_v42 }
  0x42   : > { %1015 = vmatpush1.bf16.msra.mxu0 %v1538_v43 }
  0x43   : > { %1056 = vmatpush1.bf16.msra.mxu1 %v1539_v44  ;;  %1016 = vmatprep.subr.bf16.mxu0 %v1540_v45 }
  0x44   : > { %1057 = vmatprep.subr.bf16.mxu1 %v1542_v46 }
  0x46   : > { %1017 = vmatpush1.bf16.msra.mxu0 %v1544_v50 }
  0x47   : > { %1058 = vmatpush1.bf16.msra.mxu1 %v1545_v51  ;;  %1018 = vmatprep.subr.bf16.mxu0 %v1546_v53 }
  0x48   : > { %1059 = vmatprep.subr.bf16.mxu1 %v1548_v54 }
  0x4a   : > { %1019 = vmatpush1.bf16.msra.mxu0 %v1550_v55  ;;  %v393_v55 = vld [vmem:[#allocation2 + $0x8] sm:$0xff] }
  0x4b   : > { %1060 = vmatpush1.bf16.msra.mxu1 %v1551_v56  ;;  %1020 = vmatprep.subr.bf16.mxu0 %v1552_v57 }
  0x4c   : > { %1061 = vmatprep.subr.bf16.mxu1 %v1554_v58 }
  0x4e   : > { %1021 = vmatpush1.bf16.msra.mxu0 %v1556_v59 }
  0x4f   : > { %1062 = vmatpush1.bf16.msra.mxu1 %v1557_v60  ;;  %1022 = vmatprep.subr.bf16.mxu0 %v1558_v61 }
  0x50   : > { %1063 = vmatprep.subr.bf16.mxu1 %v1560_v62  ;;  %v1129_v62 = vlaneseq (!%p1438_p7) }
  0x52   : > { %1023 = vmatpush1.bf16.msra.mxu0 %v1562_v63  ;;  %v1130_v63 = vshrl.u32 (!%p1438_p7), %v1129_v62, 7 }
  0x53   : > { %1064 = vmatpush1.bf16.msra.mxu1 %v1563_v0  ;;  %1024 = vmatprep.subr.bf16.mxu0 %v1564_v1  ;;  %v1127_v0 = vld [vmem:[%s1842_s2] sm:$0x3] (!%p1438_p7) }
  0x54   : > { %1065 = vmatprep.subr.bf16.mxu1 %v1566_v2  ;;  %v1141_v1 = vld [vmem:[%s1843_s3] sm:$0x3] (!%p1438_p7)  ;;  %v1131_v2 = vsub.s32 (!%p1438_p7), 0, %v1130_v63 }
  0x56   : > { %1025 = vmatpush1.bf16.msra.mxu0 %v1568_v3  ;;  %v1135_v3 = vsub.s32 (!%p1438_p7), 1, %v1130_v63 }
  0x57   : > { %1066 = vmatpush1.bf16.msra.mxu1 %v1569_v4  ;;  %1076 = vmatprep.subr.bf16.mxu0 %v1576_v5 }
  0x58   : > { %v1150_v9 = vrot.slane (!%p1438_p7), %v1141_v1, %v1135_v3 }
  0x59   : > { %1027 = vmatmul.mubr.bf16.vlgmr.msra.gmra.mrb[0].mxu0 %v1336_v6  ;;  %v1132_v6 = vrot.slane (!%p1438_p7), %v1127_v0, %v1131_v2 }
  0x5a   : > { %1068 = vmatmul.mubr.bf16.vlgmr.msra.gmra.mrb[0].mxu1 %v1338_v7  ;;  %1077 = vmatpush1.bf16.msra.mxu0 %v1574_v8  ;;  %v1136_v7 = vrot.slane (!%p1438_p7), %v1127_v0, %v1135_v3  ;;  %v1146_v8 = vrot.slane (!%p1438_p7), %v1141_v1, %v1131_v2 }
  0x5b   : > { %1108 = vmatprep.mubr.bf16.mxu0 %v1341_v11  ;;  %1078 = vmatprep.subr.bf16.mxu0 %v1579_v10  ;;  %v1161_v10 = vld [vmem:[%s1844_s4] sm:$0xff] (!%p1438_p7) }
  0x5e   : > { %1079 = vmatpush1.bf16.msra.mxu0 %v1577_v12 }
  0x5f   : > { %1080 = vmatprep.subr.bf16.mxu0 %v1582_v13 }
  0x62   : > { %1081 = vmatpush1.bf16.msra.mxu0 %v1580_v14 }
  0x63   : > { %1082 = vmatprep.subr.bf16.mxu0 %v1585_v15  ;;  %v1162_v15 = vunpack.c.l.bf16 (!%p1438_p7), %v1161_v10 }
  0x66   : > { %1083 = vmatpush1.bf16.msra.mxu0 %v1583_v16  ;;  %v1163_v16 = vunpack.c.h.bf16 (!%p1438_p7), %v1161_v10 }
  0x67   : > { %1084 = vmatprep.subr.bf16.mxu0 %v1588_v17  ;;  %v1649_v17 = vmov (!%p1438_p7), 0.0  }
  0x6a   : > { %1085 = vmatpush1.bf16.msra.mxu0 %v1586_v18 }
  0x6b   : > { %1086 = vmatprep.subr.bf16.mxu0 %v1591_v19 }
  0x6e   : > { %1087 = vmatpush1.bf16.msra.mxu0 %v1589_v20 }
  0x6f   : > { %1088 = vmatprep.subr.bf16.mxu0 %v1594_v21 }
  0x72   : > { %1089 = vmatpush1.bf16.msra.mxu0 %v1592_v22 }
  0x73   : > { %1090 = vmatprep.subr.bf16.mxu0 %v1597_v23 }
  0x76   : > { %1091 = vmatpush1.bf16.msra.mxu0 %v1595_v24 }
  0x77   : > { %1092 = vmatprep.subr.bf16.mxu0 %v1600_v25 }
  0x7a   : > { %1093 = vmatpush1.bf16.msra.mxu0 %v1598_v26 }
  0x7b   : > { %1094 = vmatprep.subr.bf16.mxu0 %v1603_v27 }
  0x7e   : > { %1095 = vmatpush1.bf16.msra.mxu0 %v1601_v28 }
  0x7f   : > { %1096 = vmatprep.subr.bf16.mxu0 %v1606_v29 }
  0x82   : > { %1097 = vmatpush1.bf16.msra.mxu0 %v1604_v30 }
  0x83   : > { %1098 = vmatprep.subr.bf16.mxu0 %v1609_v31 }
  0x86   : > { %1099 = vmatpush1.bf16.msra.mxu0 %v1607_v32 }
  0x87   : > { %1100 = vmatprep.subr.bf16.mxu0 %v1612_v33 }
  0x8a   : > { %1101 = vmatpush1.bf16.msra.mxu0 %v1610_v34 }
  0x8b   : > { %1102 = vmatprep.subr.bf16.mxu0 %v1615_v35 }
  0x8e   : > { %1103 = vmatpush1.bf16.msra.mxu0 %v1613_v36 }
  0x8f   : > { %1104 = vmatprep.subr.bf16.mxu0 %v1618_v37 }
  0x92   : > { %1105 = vmatpush1.bf16.msra.mxu0 %v1616_v38 }
  0x93   : > { %1106 = vmatprep.subr.bf16.mxu0 %v1621_v39 }
  0x96   : > { %1107 = vmatpush1.bf16.msra.mxu0 %v1619_v40 }
  0x99   : > { %1109 = vmatmul.mubr.bf16.vlgmr.msra.gmra.mrb[4].mxu0 %v1340_v41 }
 0x12c   : > { %v1028_v42 = vpop.f32.mrb[0].mxu0 }
 0x12d   : > { %v1069_v43 = vpop.f32.mrb[0].mxu1  ;;  %v1030_v45 = vpop.f32.mrb[1].mxu0 }
 0x12e   : > { %v1070_v44 = vadd.f32 %v1069_v43, %v1028_v42  ;;  %v1071_v46 = vpop.f32.mrb[1].mxu1  ;;  %v1032_v48 = vpop.f32.mrb[2].mxu0 }
 0x12f   : > { %v1072_v47 = vadd.f32 %v1071_v46, %v1030_v45  ;;  %v1073_v49 = vpop.f32.mrb[2].mxu1  ;;  %v1033_v50 = vpop.f32.mrb[3].mxu0 }
 0x130   : > { %v1074_v51 = vpop.f32.mrb[3].mxu1 }
 0x16c   : > { %v1110_v53 = vpop.f32.mrb[4].mxu0  ;;  %1124 = sbr.rel (%p1438_p7) target bundleno = 389 (0x185), region = 48 }
 0x16d   : > { %v1111_v54 = vadd.f32 %v1110_v53, %v1070_v44  ;;  %v1112_v56 = vpop.f32.mrb[5].mxu0 }
 0x16e   : > { %v1113_v57 = vadd.f32 %v1112_v56, %v1072_v47  ;;  %v1114_v58 = vpop.f32.mrb[6].mxu0 }
 0x16f   : > { %v1117_v59 = vadd.f32 %v1111_v54, %v392_v52  ;;  %v1115_v60 = vpop.f32.mrb[7].mxu0 }
 0x170   : > { %v1118_v61 = vadd.f32 %v1113_v57, %v393_v55 }
 0x171   : > { %1119 = vst [vmem:[#allocation2] sm:$0xff] %v1117_v59 }
 0x172   : > { %1120 = vst [vmem:[#allocation2 + $0x8] sm:$0xff] %v1118_v61 }
 0x178   : > { %v1125_v4 = vld [vmem:[#allocation2] sm:$0xff] }
 0x179   : > { %v1126_v5 = vld [vmem:[#allocation2 + $0x8] sm:$0xff]  ;;  %v1139_v11 = vmul.f32 %v1132_v6, %v1125_v4 }
 0x17a   : > { %v1140_v12 = vmul.f32 %v1136_v7, %v1126_v5 }
 0x17b   : > { %v1153_v13 = vadd.f32 %v1146_v8, %v1139_v11 }
 0x17c   : > { %v1154_v14 = vadd.f32 %v1150_v9, %v1140_v12 }
 0x17d   : > { %vm1155_vm0 = vcmp.ge.f32.partialorder %v1153_v13, 1.0 }
 0x17e   : > { %vm1156_vm1 = vcmp.ge.f32.partialorder %v1154_v14, 1.0  ;;  %v1439_v18 = vsel %vm1155_vm0, 1.0, %v1649_v17 }
 0x17f   : > { %v1440_v19 = vsel %vm1156_vm1, 1.0, %v1649_v17  ;;  %v1164_v20 = vadd.f32 %v1439_v18, %v1162_v15 }
 0x180   : > { %v1165_v21 = vadd.f32 %v1440_v19, %v1163_v16 }
 0x182   : > { %v1447_v22 = vpack.c.bf16 %v1165_v21, %v1164_v20 }
 0x184   : > { %1174 = vst [vmem:[%s1845_s5] sm:$0xff] %v1447_v22 }
 0x185 PF: > { %s15_s20 = sadd.s32 1, %s1646_s20   ;;  %s1846_s18 = smov %s1642_s19 }
 0x186   : > { %p12_p8 = scmp.ge.s32.totalorder %s15_s20, 5   ;;  %s1847_s19 = smov %s1849_s21 }
 0x188   :  { %14 = sbr.rel (!%p12_p8) target bundleno = 2 (0x2), region = 90 }

// kernel: _lambda_.26
= control target key start
LH: loop header
LB: loop body
LE: loop exit
PB: predicated region body
PF: predicated region fallthrough
CT: control target
= control target key end

     0   :  { %s2705_s0 = inlined_call_operand.vmem [shape: bf16[8,2304], index: 0, kind: input, shape index: {}]   ;;  %s2706_s1 = inlined_call_operand.vmem [shape: bf16[2304,512], index: 1, kind: input, shape index: {}]   ;;  %s2707_s2 = inlined_call_operand.vmem [shape: f32[1,512], index: 2, kind: input, shape index: {}]   ;;  %s2708_s3 = inlined_call_operand.vmem [shape: f32[1,512], index: 3, kind: input, shape index: {}]   ;;  %s2709_s4 = inlined_call_operand.vmem [shape: f32[8,512], index: 4, kind: output, shape index: {0}]   ;;  %s2710_s5 = inlined_call_operand.vmem [shape: f32[8,512], index: 5, kind: output, shape index: {1}]   ;;  %s2711_s6 = inlined_call_operand.vmem [shape: f32[8,512], index: 6, kind: output, shape index: {2}]  }
   0x1   :  { %2713 = sst [smem:[#allocation5_spill]] %s2706_s1 }
   0x2   :  { %s2267_s21 = smov 0   ;;  %s2269_s22 = smov 0  }
   0x3   :  { %s2271_s23 = smov 0   ;;  %s2273_s24 = smov 0  }
   0x4   :  { %s2275_s25 = smov 0   ;;  %s2277_s26 = smov 0  }
   0x5   :  { %s2279_s27 = smov 0  }
   0x6 LB: > { %s29_s28 = sadd.s32 1, %s2220_s25  ;;  %s32_s29 = sadd.s32 1, %s2224_s26  ;;  %s2228_s27 = sphi %s2279_s27, %s17_s27   ;;  %s2224_s26 = sphi %s2277_s26, %s2722_s26   ;;  %s2220_s25 = sphi %s2275_s25, %s2721_s25   ;;  %s2216_s24 = sphi %s2273_s24, %s2720_s24   ;;  %s2212_s23 = sphi %s2271_s23, %s2719_s23   ;;  %s2208_s22 = sphi %s2269_s22, %s2718_s22   ;;  %s2204_s21 = sphi %s2267_s21, %s2717_s21  }
   0x7   : > { %p30_p0 = scmp.ge.s32.totalorder %s29_s28, 3  ;;  %p80_p1 = scmp.ne.s32.totalorder %s2208_s22, %s2204_s21 }
   0x8   : > { %p81_p2 = scmp.eq.s32.totalorder %s2228_s27, 0  ;;  %s73_s9 = sadd.s32 1, %s2208_s22 }
   0x9   : > { %s2724_s28 = smov (%p30_p0, %s29_s28), 0  ;;  %s2726_s29 = smov (!%p30_p0, %s32_s29), %s2224_s26 }
   0xa   : > { %p82_p3 = por %p81_p2, %p80_p1  ;;  %p34_p4 = scmp.ge.s32.totalorder %s2726_s29, 2 }
   0xb   : > { %s68_s30 = ssub.s32 %s2220_s25, %s2724_s28  ;;  %p1841_p6 = scmp.ge.s32.totalorder %s2228_s27, 6 }
   0xc   : > { %s2728_s29 = smov (%p34_p4, %s2726_s29), 0 }
   0xd   : > { %2714 = sst [smem:[#allocation4_spill]] %s2728_s29  ;;  %s69_s7 = ssub.s32 %s2224_s26, %s2728_s29 }
   0xe   : > { %s70_s8 = sor.u32 %s69_s7, %s68_s30  ;;  %242 = sbr.rel (%p1841_p6) target bundleno = 79 (0x4f), region = 16 }
   0xf   : > { %p71_p5 = scmp.eq.s32.totalorder %s70_s8, 0 }
  0x11   : > { %s2318_s10 = scalar_select %p71_p5, %s2208_s22, %s73_s9  }
  0x15   : > { %258 = sbr.rel (!%p82_p3) target bundleno = 79 (0x4f), region = 24  ;;  %s260_s11 = sand.u32 (%p82_p3), 1, %s2208_s22  }
  0x16   : > { %s1964_s12 = smul.u32 (%p82_p3), 768, %s260_s11  ;;  %s1842_s13 = sshll.u32 (%p82_p3), %s2224_s26, 1 }
  0x17   : > { %s1963_s14 = smul.u32 (%p82_p3), 384, %s2220_s25  ;;  %s2715_s1 = sld [smem:[#allocation5_spill]] (%p82_p3) }
  0x18   : > { %s2332_s20 = scalar_lea.vmem (%p82_p3), [#allocation3], %s1964_s12 }
  0x19   : > { %s266_s15 = sadd.s32 (%p82_p3), %s1963_s14, %s1842_s13 }
  0x1a   : > { %s1844_s16 = sshll.u32 (%p82_p3), %s266_s15, 2 }
  0x1d   : > { %s2327_s19 = scalar_lea.vmem %s2715_s1, %s1844_s16 }
  0x1e   : > { %v486_v0 = vld [vmem:[%s2327_s19] sm:$0xff]  ;;  %v488_v1 = vld [vmem:[%s2327_s19 + $0x10] sm:$0xff] }
  0x1f   : > { %v490_v2 = vld [vmem:[%s2327_s19 + $0x20] sm:$0xff]  ;;  %487 = vst [vmem:[%s2332_s20] sm:$0xff] %v486_v0  ;;  %489 = vst [vmem:[%s2332_s20 + $0x8] sm:$0xff] %v488_v1  ;;  %v492_v3 = vld [vmem:[%s2327_s19 + $0x30] sm:$0xff] }
  0x20   : > { %491 = vst [vmem:[%s2332_s20 + $0x10] sm:$0xff] %v490_v2  ;;  %v494_v4 = vld [vmem:[%s2327_s19 + $0x40] sm:$0xff]  ;;  %v496_v5 = vld [vmem:[%s2327_s19 + $0x50] sm:$0xff]  ;;  %493 = vst [vmem:[%s2332_s20 + $0x18] sm:$0xff] %v492_v3 }
  0x21   : > { %495 = vst [vmem:[%s2332_s20 + $0x20] sm:$0xff] %v494_v4  ;;  %497 = vst [vmem:[%s2332_s20 + $0x28] sm:$0xff] %v496_v5  ;;  %v498_v6 = vld [vmem:[%s2327_s19 + $0x60] sm:$0xff]  ;;  %v500_v7 = vld [vmem:[%s2327_s19 + $0x70] sm:$0xff] }
  0x22   : > { %v502_v8 = vld [vmem:[%s2327_s19 + $0x80] sm:$0xff]  ;;  %499 = vst [vmem:[%s2332_s20 + $0x30] sm:$0xff] %v498_v6  ;;  %501 = vst [vmem:[%s2332_s20 + $0x38] sm:$0xff] %v500_v7  ;;  %v504_v9 = vld [vmem:[%s2327_s19 + $0x90] sm:$0xff] }
  0x23   : > { %503 = vst [vmem:[%s2332_s20 + $0x40] sm:$0xff] %v502_v8  ;;  %v506_v10 = vld [vmem:[%s2327_s19 + $0xa0] sm:$0xff]  ;;  %v508_v11 = vld [vmem:[%s2327_s19 + $0xb0] sm:$0xff]  ;;  %505 = vst [vmem:[%s2332_s20 + $0x48] sm:$0xff] %v504_v9 }
  0x24   : > { %507 = vst [vmem:[%s2332_s20 + $0x50] sm:$0xff] %v506_v10  ;;  %509 = vst [vmem:[%s2332_s20 + $0x58] sm:$0xff] %v508_v11  ;;  %v510_v12 = vld [vmem:[%s2327_s19 + $0xc0] sm:$0xff]  ;;  %v512_v13 = vld [vmem:[%s2327_s19 + $0xd0] sm:$0xff] }
  0x25   : > { %v514_v14 = vld [vmem:[%s2327_s19 + $0xe0] sm:$0xff]  ;;  %511 = vst [vmem:[%s2332_s20 + $0x60] sm:$0xff] %v510_v12  ;;  %513 = vst [vmem:[%s2332_s20 + $0x68] sm:$0xff] %v512_v13  ;;  %v516_v15 = vld [vmem:[%s2327_s19 + $0xf0] sm:$0xff] }
  0x26   : > { %515 = vst [vmem:[%s2332_s20 + $0x70] sm:$0xff] %v514_v14  ;;  %v518_v16 = vld [vmem:[%s2327_s19 + $0x100] sm:$0xff]  ;;  %v520_v17 = vld [vmem:[%s2327_s19 + $0x110] sm:$0xff]  ;;  %517 = vst [vmem:[%s2332_s20 + $0x78] sm:$0xff] %v516_v15 }
  0x27   : > { %519 = vst [vmem:[%s2332_s20 + $0x80] sm:$0xff] %v518_v16  ;;  %521 = vst [vmem:[%s2332_s20 + $0x88] sm:$0xff] %v520_v17  ;;  %v522_v18 = vld [vmem:[%s2327_s19 + $0x120] sm:$0xff]  ;;  %v524_v19 = vld [vmem:[%s2327_s19 + $0x130] sm:$0xff] }
  0x28   : > { %v526_v20 = vld [vmem:[%s2327_s19 + $0x140] sm:$0xff]  ;;  %523 = vst [vmem:[%s2332_s20 + $0x90] sm:$0xff] %v522_v18  ;;  %525 = vst [vmem:[%s2332_s20 + $0x98] sm:$0xff] %v524_v19  ;;  %v528_v21 = vld [vmem:[%s2327_s19 + $0x150] sm:$0xff] }
  0x29   : > { %527 = vst [vmem:[%s2332_s20 + $0xa0] sm:$0xff] %v526_v20  ;;  %v530_v22 = vld [vmem:[%s2327_s19 + $0x160] sm:$0xff]  ;;  %v532_v23 = vld [vmem:[%s2327_s19 + $0x170] sm:$0xff]  ;;  %529 = vst [vmem:[%s2332_s20 + $0xa8] sm:$0xff] %v528_v21 }
  0x2a   : > { %531 = vst [vmem:[%s2332_s20 + $0xb0] sm:$0xff] %v530_v22  ;;  %533 = vst [vmem:[%s2332_s20 + $0xb8] sm:$0xff] %v532_v23  ;;  %v534_v24 = vld [vmem:[%s2327_s19 + $0x180] sm:$0xff]  ;;  %v536_v25 = vld [vmem:[%s2327_s19 + $0x190] sm:$0xff] }
  0x2b   : > { %v538_v26 = vld [vmem:[%s2327_s19 + $0x1a0] sm:$0xff]  ;;  %535 = vst [vmem:[%s2332_s20 + $0xc0] sm:$0xff] %v534_v24  ;;  %537 = vst [vmem:[%s2332_s20 + $0xc8] sm:$0xff] %v536_v25  ;;  %v540_v27 = vld [vmem:[%s2327_s19 + $0x1b0] sm:$0xff] }
  0x2c   : > { %539 = vst [vmem:[%s2332_s20 + $0xd0] sm:$0xff] %v538_v26  ;;  %v542_v28 = vld [vmem:[%s2327_s19 + $0x1c0] sm:$0xff]  ;;  %v544_v29 = vld [vmem:[%s2327_s19 + $0x1d0] sm:$0xff]  ;;  %541 = vst [vmem:[%s2332_s20 + $0xd8] sm:$0xff] %v540_v27 }
  0x2d   : > { %543 = vst [vmem:[%s2332_s20 + $0xe0] sm:$0xff] %v542_v28  ;;  %545 = vst [vmem:[%s2332_s20 + $0xe8] sm:$0xff] %v544_v29  ;;  %v546_v30 = vld [vmem:[%s2327_s19 + $0x1e0] sm:$0xff]  ;;  %v548_v31 = vld [vmem:[%s2327_s19 + $0x1f0] sm:$0xff] }
  0x2e   : > { %v550_v32 = vld [vmem:[%s2327_s19 + $0x200] sm:$0xff]  ;;  %547 = vst [vmem:[%s2332_s20 + $0xf0] sm:$0xff] %v546_v30  ;;  %549 = vst [vmem:[%s2332_s20 + $0xf8] sm:$0xff] %v548_v31  ;;  %v552_v33 = vld [vmem:[%s2327_s19 + $0x210] sm:$0xff] }
  0x2f   : > { %551 = vst [vmem:[%s2332_s20 + $0x100] sm:$0xff] %v550_v32  ;;  %v554_v34 = vld [vmem:[%s2327_s19 + $0x220] sm:$0xff]  ;;  %v556_v35 = vld [vmem:[%s2327_s19 + $0x230] sm:$0xff]  ;;  %553 = vst [vmem:[%s2332_s20 + $0x108] sm:$0xff] %v552_v33 }
  0x30   : > { %555 = vst [vmem:[%s2332_s20 + $0x110] sm:$0xff] %v554_v34  ;;  %557 = vst [vmem:[%s2332_s20 + $0x118] sm:$0xff] %v556_v35  ;;  %v558_v36 = vld [vmem:[%s2327_s19 + $0x240] sm:$0xff]  ;;  %v560_v37 = vld [vmem:[%s2327_s19 + $0x250] sm:$0xff] }
  0x31   : > { %v562_v38 = vld [vmem:[%s2327_s19 + $0x260] sm:$0xff]  ;;  %559 = vst [vmem:[%s2332_s20 + $0x120] sm:$0xff] %v558_v36  ;;  %561 = vst [vmem:[%s2332_s20 + $0x128] sm:$0xff] %v560_v37  ;;  %v564_v39 = vld [vmem:[%s2327_s19 + $0x270] sm:$0xff] }
  0x32   : > { %563 = vst [vmem:[%s2332_s20 + $0x130] sm:$0xff] %v562_v38  ;;  %v566_v40 = vld [vmem:[%s2327_s19 + $0x280] sm:$0xff]  ;;  %v568_v41 = vld [vmem:[%s2327_s19 + $0x290] sm:$0xff]  ;;  %565 = vst [vmem:[%s2332_s20 + $0x138] sm:$0xff] %v564_v39 }
  0x33   : > { %567 = vst [vmem:[%s2332_s20 + $0x140] sm:$0xff] %v566_v40  ;;  %569 = vst [vmem:[%s2332_s20 + $0x148] sm:$0xff] %v568_v41  ;;  %v570_v42 = vld [vmem:[%s2327_s19 + $0x2a0] sm:$0xff]  ;;  %v572_v43 = vld [vmem:[%s2327_s19 + $0x2b0] sm:$0xff] }
  0x34   : > { %v574_v44 = vld [vmem:[%s2327_s19 + $0x2c0] sm:$0xff]  ;;  %571 = vst [vmem:[%s2332_s20 + $0x150] sm:$0xff] %v570_v42  ;;  %573 = vst [vmem:[%s2332_s20 + $0x158] sm:$0xff] %v572_v43  ;;  %v576_v45 = vld [vmem:[%s2327_s19 + $0x2d0] sm:$0xff] }
  0x35   : > { %575 = vst [vmem:[%s2332_s20 + $0x160] sm:$0xff] %v574_v44  ;;  %v578_v46 = vld [vmem:[%s2327_s19 + $0x2e0] sm:$0xff]  ;;  %v580_v47 = vld [vmem:[%s2327_s19 + $0x2f0] sm:$0xff]  ;;  %577 = vst [vmem:[%s2332_s20 + $0x168] sm:$0xff] %v576_v45 }
  0x36   : > { %579 = vst [vmem:[%s2332_s20 + $0x170] sm:$0xff] %v578_v46  ;;  %581 = vst [vmem:[%s2332_s20 + $0x178] sm:$0xff] %v580_v47  ;;  %v582_v48 = vld [vmem:[%s2327_s19 + $0x300] sm:$0xff]  ;;  %v584_v49 = vld [vmem:[%s2327_s19 + $0x310] sm:$0xff] }
  0x37   : > { %v586_v50 = vld [vmem:[%s2327_s19 + $0x320] sm:$0xff]  ;;  %583 = vst [vmem:[%s2332_s20 + $0x180] sm:$0xff] %v582_v48  ;;  %585 = vst [vmem:[%s2332_s20 + $0x188] sm:$0xff] %v584_v49  ;;  %v588_v51 = vld [vmem:[%s2327_s19 + $0x330] sm:$0xff] }
  0x38   : > { %587 = vst [vmem:[%s2332_s20 + $0x190] sm:$0xff] %v586_v50  ;;  %v590_v52 = vld [vmem:[%s2327_s19 + $0x340] sm:$0xff]  ;;  %v592_v53 = vld [vmem:[%s2327_s19 + $0x350] sm:$0xff]  ;;  %589 = vst [vmem:[%s2332_s20 + $0x198] sm:$0xff] %v588_v51 }
  0x39   : > { %591 = vst [vmem:[%s2332_s20 + $0x1a0] sm:$0xff] %v590_v52  ;;  %593 = vst [vmem:[%s2332_s20 + $0x1a8] sm:$0xff] %v592_v53  ;;  %v594_v54 = vld [vmem:[%s2327_s19 + $0x360] sm:$0xff]  ;;  %v596_v55 = vld [vmem:[%s2327_s19 + $0x370] sm:$0xff] }
  0x3a   : > { %v598_v56 = vld [vmem:[%s2327_s19 + $0x380] sm:$0xff]  ;;  %595 = vst [vmem:[%s2332_s20 + $0x1b0] sm:$0xff] %v594_v54  ;;  %597 = vst [vmem:[%s2332_s20 + $0x1b8] sm:$0xff] %v596_v55  ;;  %v600_v57 = vld [vmem:[%s2327_s19 + $0x390] sm:$0xff] }
  0x3b   : > { %599 = vst [vmem:[%s2332_s20 + $0x1c0] sm:$0xff] %v598_v56  ;;  %v602_v58 = vld [vmem:[%s2327_s19 + $0x3a0] sm:$0xff]  ;;  %v604_v59 = vld [vmem:[%s2327_s19 + $0x3b0] sm:$0xff]  ;;  %601 = vst [vmem:[%s2332_s20 + $0x1c8] sm:$0xff] %v600_v57 }
  0x3c   : > { %603 = vst [vmem:[%s2332_s20 + $0x1d0] sm:$0xff] %v602_v58  ;;  %605 = vst [vmem:[%s2332_s20 + $0x1d8] sm:$0xff] %v604_v59  ;;  %v606_v60 = vld [vmem:[%s2327_s19 + $0x3c0] sm:$0xff]  ;;  %v608_v61 = vld [vmem:[%s2327_s19 + $0x3d0] sm:$0xff] }
  0x3d   : > { %v610_v62 = vld [vmem:[%s2327_s19 + $0x3e0] sm:$0xff]  ;;  %607 = vst [vmem:[%s2332_s20 + $0x1e0] sm:$0xff] %v606_v60  ;;  %609 = vst [vmem:[%s2332_s20 + $0x1e8] sm:$0xff] %v608_v61  ;;  %v612_v63 = vld [vmem:[%s2327_s19 + $0x3f0] sm:$0xff] }
  0x3e   : > { %611 = vst [vmem:[%s2332_s20 + $0x1f0] sm:$0xff] %v610_v62  ;;  %v614_v0 = vld [vmem:[%s2327_s19 + $0x400] sm:$0xff]  ;;  %v616_v1 = vld [vmem:[%s2327_s19 + $0x410] sm:$0xff]  ;;  %613 = vst [vmem:[%s2332_s20 + $0x1f8] sm:$0xff] %v612_v63 }
  0x3f   : > { %615 = vst [vmem:[%s2332_s20 + $0x200] sm:$0xff] %v614_v0  ;;  %617 = vst [vmem:[%s2332_s20 + $0x208] sm:$0xff] %v616_v1  ;;  %v618_v2 = vld [vmem:[%s2327_s19 + $0x420] sm:$0xff]  ;;  %v620_v3 = vld [vmem:[%s2327_s19 + $0x430] sm:$0xff] }
  0x40   : > { %v622_v4 = vld [vmem:[%s2327_s19 + $0x440] sm:$0xff]  ;;  %619 = vst [vmem:[%s2332_s20 + $0x210] sm:$0xff] %v618_v2  ;;  %621 = vst [vmem:[%s2332_s20 + $0x218] sm:$0xff] %v620_v3  ;;  %v624_v5 = vld [vmem:[%s2327_s19 + $0x450] sm:$0xff] }
  0x41   : > { %623 = vst [vmem:[%s2332_s20 + $0x220] sm:$0xff] %v622_v4  ;;  %v626_v6 = vld [vmem:[%s2327_s19 + $0x460] sm:$0xff]  ;;  %v628_v7 = vld [vmem:[%s2327_s19 + $0x470] sm:$0xff]  ;;  %625 = vst [vmem:[%s2332_s20 + $0x228] sm:$0xff] %v624_v5 }
  0x42   : > { %627 = vst [vmem:[%s2332_s20 + $0x230] sm:$0xff] %v626_v6  ;;  %629 = vst [vmem:[%s2332_s20 + $0x238] sm:$0xff] %v628_v7  ;;  %v630_v8 = vld [vmem:[%s2327_s19 + $0x480] sm:$0xff]  ;;  %v632_v9 = vld [vmem:[%s2327_s19 + $0x490] sm:$0xff] }
  0x43   : > { %v634_v10 = vld [vmem:[%s2327_s19 + $0x4a0] sm:$0xff]  ;;  %631 = vst [vmem:[%s2332_s20 + $0x240] sm:$0xff] %v630_v8  ;;  %633 = vst [vmem:[%s2332_s20 + $0x248] sm:$0xff] %v632_v9  ;;  %v636_v11 = vld [vmem:[%s2327_s19 + $0x4b0] sm:$0xff] }
  0x44   : > { %635 = vst [vmem:[%s2332_s20 + $0x250] sm:$0xff] %v634_v10  ;;  %v638_v12 = vld [vmem:[%s2327_s19 + $0x4c0] sm:$0xff]  ;;  %v640_v13 = vld [vmem:[%s2327_s19 + $0x4d0] sm:$0xff]  ;;  %637 = vst [vmem:[%s2332_s20 + $0x258] sm:$0xff] %v636_v11 }
  0x45   : > { %639 = vst [vmem:[%s2332_s20 + $0x260] sm:$0xff] %v638_v12  ;;  %641 = vst [vmem:[%s2332_s20 + $0x268] sm:$0xff] %v640_v13  ;;  %v642_v14 = vld [vmem:[%s2327_s19 + $0x4e0] sm:$0xff]  ;;  %v644_v15 = vld [vmem:[%s2327_s19 + $0x4f0] sm:$0xff] }
  0x46   : > { %v646_v16 = vld [vmem:[%s2327_s19 + $0x500] sm:$0xff]  ;;  %643 = vst [vmem:[%s2332_s20 + $0x270] sm:$0xff] %v642_v14  ;;  %645 = vst [vmem:[%s2332_s20 + $0x278] sm:$0xff] %v644_v15  ;;  %v648_v17 = vld [vmem:[%s2327_s19 + $0x510] sm:$0xff] }
  0x47   : > { %647 = vst [vmem:[%s2332_s20 + $0x280] sm:$0xff] %v646_v16  ;;  %v650_v18 = vld [vmem:[%s2327_s19 + $0x520] sm:$0xff]  ;;  %v652_v19 = vld [vmem:[%s2327_s19 + $0x530] sm:$0xff]  ;;  %649 = vst [vmem:[%s2332_s20 + $0x288] sm:$0xff] %v648_v17 }
  0x48   : > { %651 = vst [vmem:[%s2332_s20 + $0x290] sm:$0xff] %v650_v18  ;;  %653 = vst [vmem:[%s2332_s20 + $0x298] sm:$0xff] %v652_v19  ;;  %v654_v20 = vld [vmem:[%s2327_s19 + $0x540] sm:$0xff]  ;;  %v656_v21 = vld [vmem:[%s2327_s19 + $0x550] sm:$0xff] }
  0x49   : > { %v658_v22 = vld [vmem:[%s2327_s19 + $0x560] sm:$0xff]  ;;  %655 = vst [vmem:[%s2332_s20 + $0x2a0] sm:$0xff] %v654_v20  ;;  %657 = vst [vmem:[%s2332_s20 + $0x2a8] sm:$0xff] %v656_v21  ;;  %v660_v23 = vld [vmem:[%s2327_s19 + $0x570] sm:$0xff] }
  0x4a   : > { %659 = vst [vmem:[%s2332_s20 + $0x2b0] sm:$0xff] %v658_v22  ;;  %v662_v24 = vld [vmem:[%s2327_s19 + $0x580] sm:$0xff]  ;;  %v664_v25 = vld [vmem:[%s2327_s19 + $0x590] sm:$0xff]  ;;  %661 = vst [vmem:[%s2332_s20 + $0x2b8] sm:$0xff] %v660_v23 }
  0x4b   : > { %663 = vst [vmem:[%s2332_s20 + $0x2c0] sm:$0xff] %v662_v24  ;;  %665 = vst [vmem:[%s2332_s20 + $0x2c8] sm:$0xff] %v664_v25  ;;  %v666_v26 = vld [vmem:[%s2327_s19 + $0x5a0] sm:$0xff]  ;;  %v668_v27 = vld [vmem:[%s2327_s19 + $0x5b0] sm:$0xff] }
  0x4c   : > { %v670_v28 = vld [vmem:[%s2327_s19 + $0x5c0] sm:$0xff]  ;;  %667 = vst [vmem:[%s2332_s20 + $0x2d0] sm:$0xff] %v666_v26  ;;  %669 = vst [vmem:[%s2332_s20 + $0x2d8] sm:$0xff] %v668_v27  ;;  %v672_v29 = vld [vmem:[%s2327_s19 + $0x5d0] sm:$0xff] }
  0x4d   : > { %671 = vst [vmem:[%s2332_s20 + $0x2e0] sm:$0xff] %v670_v28  ;;  %v674_v30 = vld [vmem:[%s2327_s19 + $0x5e0] sm:$0xff]  ;;  %v676_v31 = vld [vmem:[%s2327_s19 + $0x5f0] sm:$0xff]  ;;  %673 = vst [vmem:[%s2332_s20 + $0x2e8] sm:$0xff] %v672_v29 }
  0x4e   : > { %675 = vst [vmem:[%s2332_s20 + $0x2f0] sm:$0xff] %v674_v30  ;;  %677 = vst [vmem:[%s2332_s20 + $0x2f8] sm:$0xff] %v676_v31 }
  0x4f PF: > { %p1845_p7 = scmp.ge.s32.totalorder %s2228_s27, 1  ;;  %p698_p8 = scmp.lt.s32.totalorder %s2228_s27, 7 }
  0x51   : > { %p699_p9 = pnand %p1845_p7, %p698_p8 }
  0x52   : > { %s705_s30 = sand.u32 (!%p699_p9), 1, %s2204_s21   ;;  %s773_s7 = smul.u32 (!%p699_p9), 6, %s2212_s23 }
  0x53   : > { %702 = sbr.rel (%p699_p9) target bundleno = 461 (0x1cd), region = 70  ;;  %s1847_s9 = sshll.u32 (!%p699_p9), %s2216_s24, 1 }
  0x54   : > { %s1965_s8 = smul.u32 (!%p699_p9), 768, %s705_s30  ;;  %p776_p10 = scmp.lt.s32.totalorder (!%p699_p9), %s773_s7, 17 }
  0x55   : > { %p786_p11 = scmp.lt.s32.totalorder (!%p699_p9), %s1847_s9, 3  ;;  %p1855_p12 = scmp.ne.s32.totalorder (!%p699_p9), %s2212_s23, 0 }
  0x56   : > { %s2559_s16 = scalar_lea.vmem (!%p699_p9), [#allocation3], %s1965_s8 }
  0x5a   : > { %s2730_s7 = smov (!%p776_p10, %s773_s7), 17  ;;  %s2732_s9 = smov (!%p786_p11, %s1847_s9), 3 }
  0x5b   : > { %s1846_s11 = sshll.u32 %s2730_s7, 2  ;;  %s788_s21 = scalar_lea.vmem %s2707_s2, %s2732_s9  ;;  %v2230_v32 = vmov (!%p1855_p12), 0.0  }
  0x5c   : > { %s2533_s14 = scalar_lea.vmem %s2705_s0, %s1846_s11  ;;  %s793_s18 = scalar_lea.vmem %s2708_s3, %s2732_s9  ;;  %829 = vst [vmem:[#allocation2] sm:$0xff] (!%p1855_p12), %v2230_v32  ;;  %830 = vst [vmem:[#allocation2 + $0x8] sm:$0xff] (!%p1855_p12), %v2230_v32 }
  0x5d   : > { %s1850_s19 = sshll.u32 %s2732_s9, 3  ;;  %828 = sbr.rel (%p1855_p12) target bundleno = 100 (0x64), region = 78 }
  0x5e   : > { %s2547_s1 = scalar_lea.vmem %s2709_s4, %s1850_s19  ;;  %s2552_s12 = scalar_lea.vmem %s2710_s5, %s1850_s19 }
  0x5f   : > { %s2557_s15 = scalar_lea.vmem %s2711_s6, %s1850_s19 }
  0x64 PF: > { %v2024_v33 = vld [vmem:[%s2559_s16 + $0x4] ss:$8 sps:$4 sm:$0xff]   ;;  %v2028_v35 = vld [vmem:[%s2559_s16] ss:$8 sps:$4 sm:$0xff]   ;;  %v2030_v37 = vld [vmem:[%s2559_s16 + $0x14] ss:$8 sps:$4 sm:$0xff]  }
  0x65   : > { %v2026_v34 = vld [vmem:[%s2559_s16 + $0x104] ss:$8 sps:$4 sm:$0xff]   ;;  %1433 = vmatprep.subr.bf16.mxu0 %v2024_v33  ;;  %v2029_v36 = vld [vmem:[%s2559_s16 + $0x100] ss:$8 sps:$4 sm:$0xff]   ;;  %v2032_v38 = vld [vmem:[%s2559_s16 + $0x114] ss:$8 sps:$4 sm:$0xff]  }
  0x66   : > { %1474 = vmatprep.subr.bf16.mxu1 %v2026_v34  ;;  %1434 = vmatpush1.bf16.msra.mxu0 %v2028_v35  ;;  %v2034_v39 = vld [vmem:[%s2559_s16 + $0x10] ss:$8 sps:$4 sm:$0xff]   ;;  %v2036_v41 = vld [vmem:[%s2559_s16 + $0x24] ss:$8 sps:$4 sm:$0xff]   ;;  %v2040_v43 = vld [vmem:[%s2559_s16 + $0x20] ss:$8 sps:$4 sm:$0xff]  }
  0x67   : > { %1475 = vmatpush1.bf16.msra.mxu1 %v2029_v36  ;;  %1435 = vmatprep.subr.bf16.mxu0 %v2030_v37  ;;  %v2035_v40 = vld [vmem:[%s2559_s16 + $0x110] ss:$8 sps:$4 sm:$0xff]   ;;  %v2038_v42 = vld [vmem:[%s2559_s16 + $0x124] ss:$8 sps:$4 sm:$0xff]   ;;  %v2041_v44 = vld [vmem:[%s2559_s16 + $0x120] ss:$8 sps:$4 sm:$0xff]  }
  0x68   : > { %1476 = vmatprep.subr.bf16.mxu1 %v2032_v38  ;;  %v2042_v45 = vld [vmem:[%s2559_s16 + $0x34] ss:$8 sps:$4 sm:$0xff]   ;;  %v2046_v47 = vld [vmem:[%s2559_s16 + $0x30] ss:$8 sps:$4 sm:$0xff]   ;;  %v2048_v49 = vld [vmem:[%s2559_s16 + $0x44] ss:$8 sps:$4 sm:$0xff]  }
  0x69   : > { %v2044_v46 = vld [vmem:[%s2559_s16 + $0x134] ss:$8 sps:$4 sm:$0xff]   ;;  %v2047_v48 = vld [vmem:[%s2559_s16 + $0x130] ss:$8 sps:$4 sm:$0xff]   ;;  %v2050_v50 = vld [vmem:[%s2559_s16 + $0x144] ss:$8 sps:$4 sm:$0xff]  }
  0x6a   : > { %1436 = vmatpush1.bf16.msra.mxu0 %v2034_v39  ;;  %v2052_v51 = vld [vmem:[%s2559_s16 + $0x40] ss:$8 sps:$4 sm:$0xff]   ;;  %v2054_v53 = vld [vmem:[%s2559_s16 + $0x54] ss:$8 sps:$4 sm:$0xff]   ;;  %v2058_v55 = vld [vmem:[%s2559_s16 + $0x50] ss:$8 sps:$4 sm:$0xff]  }
  0x6b   : > { %1477 = vmatpush1.bf16.msra.mxu1 %v2035_v40  ;;  %1437 = vmatprep.subr.bf16.mxu0 %v2036_v41  ;;  %v2053_v52 = vld [vmem:[%s2559_s16 + $0x140] ss:$8 sps:$4 sm:$0xff]   ;;  %v2056_v54 = vld [vmem:[%s2559_s16 + $0x154] ss:$8 sps:$4 sm:$0xff]   ;;  %v2059_v56 = vld [vmem:[%s2559_s16 + $0x150] ss:$8 sps:$4 sm:$0xff]  }
  0x6c   : > { %1478 = vmatprep.subr.bf16.mxu1 %v2038_v42  ;;  %v2060_v57 = vld [vmem:[%s2559_s16 + $0x64] ss:$8 sps:$4 sm:$0xff]   ;;  %v2064_v59 = vld [vmem:[%s2559_s16 + $0x60] ss:$8 sps:$4 sm:$0xff]   ;;  %v2066_v61 = vld [vmem:[%s2559_s16 + $0x74] ss:$8 sps:$4 sm:$0xff]  }
  0x6d   : > { %v2062_v58 = vld [vmem:[%s2559_s16 + $0x164] ss:$8 sps:$4 sm:$0xff]   ;;  %v2065_v60 = vld [vmem:[%s2559_s16 + $0x160] ss:$8 sps:$4 sm:$0xff]   ;;  %v2068_v62 = vld [vmem:[%s2559_s16 + $0x174] ss:$8 sps:$4 sm:$0xff]  }
  0x6e   : > { %1438 = vmatpush1.bf16.msra.mxu0 %v2040_v43  ;;  %v2070_v63 = vld [vmem:[%s2559_s16 + $0x70] ss:$8 sps:$4 sm:$0xff]   ;;  %v2072_v1 = vld [vmem:[%s2559_s16 + $0x84] ss:$8 sps:$4 sm:$0xff]   ;;  %v2076_v3 = vld [vmem:[%s2559_s16 + $0x80] ss:$8 sps:$4 sm:$0xff]  }
  0x6f   : > { %1479 = vmatpush1.bf16.msra.mxu1 %v2041_v44  ;;  %1439 = vmatprep.subr.bf16.mxu0 %v2042_v45  ;;  %v2071_v0 = vld [vmem:[%s2559_s16 + $0x170] ss:$8 sps:$4 sm:$0xff]   ;;  %v2074_v2 = vld [vmem:[%s2559_s16 + $0x184] ss:$8 sps:$4 sm:$0xff]   ;;  %v2077_v4 = vld [vmem:[%s2559_s16 + $0x180] ss:$8 sps:$4 sm:$0xff]  }
  0x70   : > { %1480 = vmatprep.subr.bf16.mxu1 %v2044_v46  ;;  %v2078_v5 = vld [vmem:[%s2559_s16 + $0x94] ss:$8 sps:$4 sm:$0xff]   ;;  %v2082_v7 = vld [vmem:[%s2559_s16 + $0x90] ss:$8 sps:$4 sm:$0xff]   ;;  %v2084_v9 = vld [vmem:[%s2559_s16 + $0xa4] ss:$8 sps:$4 sm:$0xff]  }
  0x71   : > { %v2080_v6 = vld [vmem:[%s2559_s16 + $0x194] ss:$8 sps:$4 sm:$0xff]   ;;  %v2083_v8 = vld [vmem:[%s2559_s16 + $0x190] ss:$8 sps:$4 sm:$0xff]   ;;  %v2086_v10 = vld [vmem:[%s2559_s16 + $0x1a4] ss:$8 sps:$4 sm:$0xff]  }
  0x72   : > { %1440 = vmatpush1.bf16.msra.mxu0 %v2046_v47  ;;  %v2088_v11 = vld [vmem:[%s2559_s16 + $0xa0] ss:$8 sps:$4 sm:$0xff]   ;;  %v2090_v13 = vld [vmem:[%s2559_s16 + $0xb4] ss:$8 sps:$4 sm:$0xff]   ;;  %v2094_v18 = vld [vmem:[%s2559_s16 + $0xb0] ss:$8 sps:$4 sm:$0xff]  }
  0x73   : > { %1481 = vmatpush1.bf16.msra.mxu1 %v2047_v48  ;;  %1441 = vmatprep.subr.bf16.mxu0 %v2048_v49  ;;  %v2089_v12 = vld [vmem:[%s2559_s16 + $0x1a0] ss:$8 sps:$4 sm:$0xff]   ;;  %v2092_v14 = vld [vmem:[%s2559_s16 + $0x1b4] ss:$8 sps:$4 sm:$0xff]   ;;  %v2095_v19 = vld [vmem:[%s2559_s16 + $0x1b0] ss:$8 sps:$4 sm:$0xff]  }
  0x74   : > { %1482 = vmatprep.subr.bf16.mxu1 %v2050_v50  ;;  %v833_v15 = vld [vmem:[%s2533_s14] sm:$0xff]  ;;  %v834_v17 = vld [vmem:[%s2533_s14 + $0x8] sm:$0xff]  ;;  %v2096_v21 = vld [vmem:[%s2559_s16 + $0xc4] ss:$8 sps:$4 sm:$0xff]   ;;  %p1958_p13 = scmp.ne.s32.totalorder %s2212_s23, 2 }
  0x75   : > { %v1857_v16 = vcombine.high %v833_v15, %v833_v15  ;;  %v1859_v20 = vcombine.high %v834_v17, %v834_v17  ;;  %v2098_v22 = vld [vmem:[%s2559_s16 + $0x1c4] ss:$8 sps:$4 sm:$0xff]   ;;  %v2100_v23 = vld [vmem:[%s2559_s16 + $0xc0] ss:$8 sps:$4 sm:$0xff]   ;;  %v2102_v25 = vld [vmem:[%s2559_s16 + $0xd4] ss:$8 sps:$4 sm:$0xff]   ;;  %v1856_v38 = vcombine.low %v833_v15, %v833_v15  ;;  %v1858_v39 = vcombine.low %v834_v17, %v834_v17 }
  0x76   : > { %1442 = vmatpush1.bf16.msra.mxu0 %v2052_v51  ;;  %v2101_v24 = vld [vmem:[%s2559_s16 + $0x1c0] ss:$8 sps:$4 sm:$0xff]   ;;  %v2104_v26 = vld [vmem:[%s2559_s16 + $0x1d4] ss:$8 sps:$4 sm:$0xff]   ;;  %v2106_v27 = vld [vmem:[%s2559_s16 + $0xd0] ss:$8 sps:$4 sm:$0xff]  }
  0x77   : > { %1483 = vmatpush1.bf16.msra.mxu1 %v2053_v52  ;;  %1443 = vmatprep.subr.bf16.mxu0 %v2054_v53  ;;  %v2107_v28 = vld [vmem:[%s2559_s16 + $0x1d0] ss:$8 sps:$4 sm:$0xff]   ;;  %v2108_v29 = vld [vmem:[%s2559_s16 + $0xe4] ss:$8 sps:$4 sm:$0xff]   ;;  %v2112_v31 = vld [vmem:[%s2559_s16 + $0xe0] ss:$8 sps:$4 sm:$0xff]  }
  0x78   : > { %1484 = vmatprep.subr.bf16.mxu1 %v2056_v54  ;;  %1465 = vmatprep.mubr.bf16.mxu0 %v1857_v16  ;;  %v2110_v30 = vld [vmem:[%s2559_s16 + $0x1e4] ss:$8 sps:$4 sm:$0xff]   ;;  %v2113_v32 = vld [vmem:[%s2559_s16 + $0x1e0] ss:$8 sps:$4 sm:$0xff]   ;;  %v2114_v33 = vld [vmem:[%s2559_s16 + $0xf4] ss:$8 sps:$4 sm:$0xff]  }
  0x79   : > { %1506 = vmatprep.mubr.bf16.mxu1 %v1859_v20  ;;  %v2116_v34 = vld [vmem:[%s2559_s16 + $0x1f4] ss:$8 sps:$4 sm:$0xff]   ;;  %v2118_v35 = vld [vmem:[%s2559_s16 + $0xf0] ss:$8 sps:$4 sm:$0xff]   ;;  %v2126_v37 = vld [vmem:[%s2559_s16 + $0x204] ss:$8 sps:$4 sm:$0xff]  }
  0x7a   : > { %1444 = vmatpush1.bf16.msra.mxu0 %v2058_v55  ;;  %v2119_v36 = vld [vmem:[%s2559_s16 + $0x1f0] ss:$8 sps:$4 sm:$0xff]   ;;  %v2124_v40 = vld [vmem:[%s2559_s16 + $0x200] ss:$8 sps:$4 sm:$0xff]   ;;  %v2129_v42 = vld [vmem:[%s2559_s16 + $0x214] ss:$8 sps:$4 sm:$0xff]  }
  0x7b   : > { %1485 = vmatpush1.bf16.msra.mxu1 %v2059_v56  ;;  %1445 = vmatprep.subr.bf16.mxu0 %v2060_v57  ;;  %v2631_v41 = vld [vmem:[%s2533_s14 + $0x10] sm:$0xff]  ;;  %v2127_v44 = vld [vmem:[%s2559_s16 + $0x210] ss:$8 sps:$4 sm:$0xff]   ;;  %v2135_v47 = vld [vmem:[%s2559_s16 + $0x234] ss:$8 sps:$4 sm:$0xff]  }
  0x7c   : > { %1486 = vmatprep.subr.bf16.mxu1 %v2062_v58  ;;  %v1861_v43 = vcombine.high %v2631_v41, %v2631_v41  ;;  %v2132_v45 = vld [vmem:[%s2559_s16 + $0x224] ss:$8 sps:$4 sm:$0xff]   ;;  %v2130_v46 = vld [vmem:[%s2559_s16 + $0x220] ss:$8 sps:$4 sm:$0xff]   ;;  %v2133_v48 = vld [vmem:[%s2559_s16 + $0x230] ss:$8 sps:$4 sm:$0xff]  }
  0x7d   : > { %v2138_v49 = vld [vmem:[%s2559_s16 + $0x244] ss:$8 sps:$4 sm:$0xff]   ;;  %v2136_v50 = vld [vmem:[%s2559_s16 + $0x240] ss:$8 sps:$4 sm:$0xff]   ;;  %v2141_v51 = vld [vmem:[%s2559_s16 + $0x254] ss:$8 sps:$4 sm:$0xff]  }
  0x7e   : > { %1446 = vmatpush1.bf16.msra.mxu0 %v2064_v59  ;;  %v2139_v52 = vld [vmem:[%s2559_s16 + $0x250] ss:$8 sps:$4 sm:$0xff]   ;;  %v2144_v53 = vld [vmem:[%s2559_s16 + $0x264] ss:$8 sps:$4 sm:$0xff]   ;;  %v2142_v54 = vld [vmem:[%s2559_s16 + $0x260] ss:$8 sps:$4 sm:$0xff]  }
  0x7f   : > { %1487 = vmatpush1.bf16.msra.mxu1 %v2065_v60  ;;  %1447 = vmatprep.subr.bf16.mxu0 %v2066_v61  ;;  %v2147_v55 = vld [vmem:[%s2559_s16 + $0x274] ss:$8 sps:$4 sm:$0xff]   ;;  %v2145_v56 = vld [vmem:[%s2559_s16 + $0x270] ss:$8 sps:$4 sm:$0xff]   ;;  %v2150_v57 = vld [vmem:[%s2559_s16 + $0x284] ss:$8 sps:$4 sm:$0xff]  }
  0x80   : > { %1488 = vmatprep.subr.bf16.mxu1 %v2068_v62  ;;  %v2148_v58 = vld [vmem:[%s2559_s16 + $0x280] ss:$8 sps:$4 sm:$0xff]   ;;  %v2153_v59 = vld [vmem:[%s2559_s16 + $0x294] ss:$8 sps:$4 sm:$0xff]   ;;  %v2151_v60 = vld [vmem:[%s2559_s16 + $0x290] ss:$8 sps:$4 sm:$0xff]  }
  0x81   : > { %v2156_v61 = vld [vmem:[%s2559_s16 + $0x2a4] ss:$8 sps:$4 sm:$0xff]   ;;  %v2154_v62 = vld [vmem:[%s2559_s16 + $0x2a0] ss:$8 sps:$4 sm:$0xff]   ;;  %v831_v20 = vld [vmem:[#allocation2] sm:$0xff] }
  0x82   : > { %1448 = vmatpush1.bf16.msra.mxu0 %v2070_v63  ;;  %v2159_v63 = vld [vmem:[%s2559_s16 + $0x2b4] ss:$8 sps:$4 sm:$0xff]  }
  0x83   : > { %1489 = vmatpush1.bf16.msra.mxu1 %v2071_v0  ;;  %1449 = vmatprep.subr.bf16.mxu0 %v2072_v1  ;;  %v2157_v0 = vld [vmem:[%s2559_s16 + $0x2b0] ss:$8 sps:$4 sm:$0xff]   ;;  %v2162_v1 = vld [vmem:[%s2559_s16 + $0x2c4] ss:$8 sps:$4 sm:$0xff]  }
  0x84   : > { %1490 = vmatprep.subr.bf16.mxu1 %v2074_v2  ;;  %v2160_v2 = vld [vmem:[%s2559_s16 + $0x2c0] ss:$8 sps:$4 sm:$0xff]  }
  0x86   : > { %1450 = vmatpush1.bf16.msra.mxu0 %v2076_v3  ;;  %v2165_v3 = vld [vmem:[%s2559_s16 + $0x2d4] ss:$8 sps:$4 sm:$0xff]  }
  0x87   : > { %1491 = vmatpush1.bf16.msra.mxu1 %v2077_v4  ;;  %1451 = vmatprep.subr.bf16.mxu0 %v2078_v5  ;;  %v2163_v4 = vld [vmem:[%s2559_s16 + $0x2d0] ss:$8 sps:$4 sm:$0xff]   ;;  %v2168_v5 = vld [vmem:[%s2559_s16 + $0x2e4] ss:$8 sps:$4 sm:$0xff]  }
  0x88   : > { %1492 = vmatprep.subr.bf16.mxu1 %v2080_v6  ;;  %v2166_v6 = vld [vmem:[%s2559_s16 + $0x2e0] ss:$8 sps:$4 sm:$0xff]  }
  0x8a   : > { %1452 = vmatpush1.bf16.msra.mxu0 %v2082_v7  ;;  %v2171_v7 = vld [vmem:[%s2559_s16 + $0x2f4] ss:$8 sps:$4 sm:$0xff]  }
  0x8b   : > { %1493 = vmatpush1.bf16.msra.mxu1 %v2083_v8  ;;  %1453 = vmatprep.subr.bf16.mxu0 %v2084_v9  ;;  %v2169_v8 = vld [vmem:[%s2559_s16 + $0x2f0] ss:$8 sps:$4 sm:$0xff]   ;;  %v1860_v9 = vcombine.low %v2631_v41, %v2631_v41 }
  0x8c   : > { %1494 = vmatprep.subr.bf16.mxu1 %v2086_v10 }
  0x8e   : > { %1454 = vmatpush1.bf16.msra.mxu0 %v2088_v11 }
  0x8f   : > { %1495 = vmatpush1.bf16.msra.mxu1 %v2089_v12  ;;  %1455 = vmatprep.subr.bf16.mxu0 %v2090_v13 }
  0x90   : > { %1496 = vmatprep.subr.bf16.mxu1 %v2092_v14 }
  0x92   : > { %1456 = vmatpush1.bf16.msra.mxu0 %v2094_v18 }
  0x93   : > { %1497 = vmatpush1.bf16.msra.mxu1 %v2095_v19  ;;  %1457 = vmatprep.subr.bf16.mxu0 %v2096_v21 }
  0x94   : > { %1498 = vmatprep.subr.bf16.mxu1 %v2098_v22 }
  0x96   : > { %1458 = vmatpush1.bf16.msra.mxu0 %v2100_v23  ;;  %v832_v23 = vld [vmem:[#allocation2 + $0x8] sm:$0xff] }
  0x97   : > { %1499 = vmatpush1.bf16.msra.mxu1 %v2101_v24  ;;  %1459 = vmatprep.subr.bf16.mxu0 %v2102_v25 }
  0x98   : > { %1500 = vmatprep.subr.bf16.mxu1 %v2104_v26 }
  0x9a   : > { %1460 = vmatpush1.bf16.msra.mxu0 %v2106_v27 }
  0x9b   : > { %1501 = vmatpush1.bf16.msra.mxu1 %v2107_v28  ;;  %1461 = vmatprep.subr.bf16.mxu0 %v2108_v29 }
  0x9c   : > { %1502 = vmatprep.subr.bf16.mxu1 %v2110_v30 }
  0x9e   : > { %1462 = vmatpush1.bf16.msra.mxu0 %v2112_v31  ;;  %v1568_v31 = vlaneseq (!%p1958_p13) }
  0x9f   : > { %1503 = vmatpush1.bf16.msra.mxu1 %v2113_v32  ;;  %1463 = vmatprep.subr.bf16.mxu0 %v2114_v33 }
  0xa0   : > { %1504 = vmatprep.subr.bf16.mxu1 %v2116_v34  ;;  %v1569_v33 = vshrl.u32 (!%p1958_p13), %v1568_v31, 7  ;;  %v1566_v34 = vld [vmem:[%s788_s21] sm:$0x3] (!%p1958_p13) }
  0xa2   : > { %1464 = vmatpush1.bf16.msra.mxu0 %v2118_v35  ;;  %v1580_v35 = vld [vmem:[%s793_s18] sm:$0x3] (!%p1958_p13) }
  0xa3   : > { %1505 = vmatpush1.bf16.msra.mxu1 %v2119_v36  ;;  %1515 = vmatprep.subr.bf16.mxu0 %v2126_v37  ;;  %v1570_v36 = vsub.s32 (!%p1958_p13), 0, %v1569_v33  ;;  %v1574_v37 = vsub.s32 (!%p1958_p13), 1, %v1569_v33 }
  0xa5   : > { %1466 = vmatmul.mubr.bf16.vlgmr.msra.gmra.mrb[0].mxu0 %v1856_v38  ;;  %v1571_v38 = vrot.slane (!%p1958_p13), %v1566_v34, %v1570_v36  ;;  %v1589_v41 = vrot.slane (!%p1958_p13), %v1580_v35, %v1574_v37 }
  0xa6   : > { %1507 = vmatmul.mubr.bf16.vlgmr.msra.gmra.mrb[0].mxu1 %v1858_v39  ;;  %1516 = vmatpush1.bf16.msra.mxu0 %v2124_v40  ;;  %v1585_v39 = vrot.slane (!%p1958_p13), %v1580_v35, %v1570_v36  ;;  %v1575_v40 = vrot.slane (!%p1958_p13), %v1566_v34, %v1574_v37 }
  0xa7   : > { %1547 = vmatprep.mubr.bf16.mxu0 %v1861_v43  ;;  %1517 = vmatprep.subr.bf16.mxu0 %v2129_v42 }
  0xaa   : > { %1518 = vmatpush1.bf16.msra.mxu0 %v2127_v44 }
  0xab   : > { %1519 = vmatprep.subr.bf16.mxu0 %v2132_v45 }
  0xae   : > { %1520 = vmatpush1.bf16.msra.mxu0 %v2130_v46  ;;  %v2231_v46 = vmov (!%p1958_p13), 0.0  }
  0xaf   : > { %1521 = vmatprep.subr.bf16.mxu0 %v2135_v47 }
  0xb2   : > { %1522 = vmatpush1.bf16.msra.mxu0 %v2133_v48 }
  0xb3   : > { %1523 = vmatprep.subr.bf16.mxu0 %v2138_v49 }
  0xb6   : > { %1524 = vmatpush1.bf16.msra.mxu0 %v2136_v50 }
  0xb7   : > { %1525 = vmatprep.subr.bf16.mxu0 %v2141_v51 }
  0xba   : > { %1526 = vmatpush1.bf16.msra.mxu0 %v2139_v52 }
  0xbb   : > { %1527 = vmatprep.subr.bf16.mxu0 %v2144_v53 }
  0xbe   : > { %1528 = vmatpush1.bf16.msra.mxu0 %v2142_v54 }
  0xbf   : > { %1529 = vmatprep.subr.bf16.mxu0 %v2147_v55 }
  0xc2   : > { %1530 = vmatpush1.bf16.msra.mxu0 %v2145_v56 }
  0xc3   : > { %1531 = vmatprep.subr.bf16.mxu0 %v2150_v57 }
  0xc6   : > { %1532 = vmatpush1.bf16.msra.mxu0 %v2148_v58 }
  0xc7   : > { %1533 = vmatprep.subr.bf16.mxu0 %v2153_v59 }
  0xca   : > { %1534 = vmatpush1.bf16.msra.mxu0 %v2151_v60 }
  0xcb   : > { %1535 = vmatprep.subr.bf16.mxu0 %v2156_v61 }
  0xce   : > { %1536 = vmatpush1.bf16.msra.mxu0 %v2154_v62 }
  0xcf   : > { %1537 = vmatprep.subr.bf16.mxu0 %v2159_v63 }
  0xd2   : > { %1538 = vmatpush1.bf16.msra.mxu0 %v2157_v0 }
  0xd3   : > { %1539 = vmatprep.subr.bf16.mxu0 %v2162_v1 }
  0xd6   : > { %1540 = vmatpush1.bf16.msra.mxu0 %v2160_v2 }
  0xd7   : > { %1541 = vmatprep.subr.bf16.mxu0 %v2165_v3 }
  0xda   : > { %1542 = vmatpush1.bf16.msra.mxu0 %v2163_v4 }
  0xdb   : > { %1543 = vmatprep.subr.bf16.mxu0 %v2168_v5 }
  0xde   : > { %1544 = vmatpush1.bf16.msra.mxu0 %v2166_v6 }
  0xdf   : > { %1545 = vmatprep.subr.bf16.mxu0 %v2171_v7 }
  0xe2   : > { %1546 = vmatpush1.bf16.msra.mxu0 %v2169_v8 }
  0xe5   : > { %1548 = vmatmul.mubr.bf16.vlgmr.msra.gmra.mrb[4].mxu0 %v1860_v9 }
 0x178   : > { %v1467_v10 = vpop.f32.mrb[0].mxu0 }
 0x179   : > { %v1508_v11 = vpop.f32.mrb[0].mxu1  ;;  %v1469_v13 = vpop.f32.mrb[1].mxu0 }
 0x17a   : > { %v1509_v12 = vadd.f32 %v1508_v11, %v1467_v10  ;;  %v1510_v14 = vpop.f32.mrb[1].mxu1  ;;  %v1471_v16 = vpop.f32.mrb[2].mxu0 }
 0x17b   : > { %v1511_v15 = vadd.f32 %v1510_v14, %v1469_v13  ;;  %v1512_v17 = vpop.f32.mrb[2].mxu1  ;;  %v1472_v18 = vpop.f32.mrb[3].mxu0 }
 0x17c   : > { %v1513_v19 = vpop.f32.mrb[3].mxu1 }
 0x1b8   : > { %v1549_v21 = vpop.f32.mrb[4].mxu0  ;;  %1563 = sbr.rel (%p1958_p13) target bundleno = 461 (0x1cd), region = 82 }
 0x1b9   : > { %v1550_v22 = vadd.f32 %v1549_v21, %v1509_v12  ;;  %v1551_v24 = vpop.f32.mrb[5].mxu0 }
 0x1ba   : > { %v1552_v25 = vadd.f32 %v1551_v24, %v1511_v15  ;;  %v1553_v26 = vpop.f32.mrb[6].mxu0 }
 0x1bb   : > { %v1556_v27 = vadd.f32 %v1550_v22, %v831_v20  ;;  %v1554_v28 = vpop.f32.mrb[7].mxu0 }
 0x1bc   : > { %v1557_v29 = vadd.f32 %v1552_v25, %v832_v23 }
 0x1bd   : > { %1558 = vst [vmem:[#allocation2] sm:$0xff] %v1556_v27 }
 0x1be   : > { %1559 = vst [vmem:[#allocation2 + $0x8] sm:$0xff] %v1557_v29 }
 0x1c4   : > { %v1564_v30 = vld [vmem:[#allocation2] sm:$0xff] }
 0x1c5   : > { %1594 = vst [vmem:[%s2547_s1] sm:$0xff] %v1564_v30  ;;  %v1565_v32 = vld [vmem:[#allocation2 + $0x8] sm:$0xff]  ;;  %v1578_v42 = vmul.f32 %v1571_v38, %v1564_v30 }
 0x1c6   : > { %1595 = vst [vmem:[%s2547_s1 + $0x8] sm:$0xff] %v1565_v32  ;;  %v1579_v43 = vmul.f32 %v1575_v40, %v1565_v32 }
 0x1c7   : > { %v1592_v44 = vadd.f32 %v1585_v39, %v1578_v42 }
 0x1c8   : > { %v1593_v45 = vadd.f32 %v1589_v41, %v1579_v43 }
 0x1c9   : > { %1596 = vst [vmem:[%s2552_s12] sm:$0xff] %v1592_v44  ;;  %vm1598_vm0 = vcmp.ge.f32.partialorder %v1592_v44, 1.0 }
 0x1ca   : > { %vm1599_vm1 = vcmp.ge.f32.partialorder %v1593_v45, 1.0  ;;  %v1959_v47 = vsel %vm1598_vm0, 1.0, %v2231_v46  ;;  %1597 = vst [vmem:[%s2552_s12 + $0x8] sm:$0xff] %v1593_v45 }
 0x1cb   : > { %v1960_v48 = vsel %vm1599_vm1, 1.0, %v2231_v46  ;;  %1604 = vst [vmem:[%s2557_s15] sm:$0xff] %v1959_v47 }
 0x1cc   : > { %1605 = vst [vmem:[%s2557_s15 + $0x8] sm:$0xff] %v1960_v48 }
 0x1cd PF: > { %s17_s27 = sadd.s32 1, %s2228_s27   ;;  %s2716_s1 = sld [smem:[#allocation4_spill]] }
 0x1ce   : > { %p14_p0 = scmp.ge.s32.totalorder %s17_s27, 8   ;;  %s2717_s21 = smov %s2208_s22 }
 0x1cf   : > { %s2718_s22 = smov %s2318_s10  ;;  %s2719_s23 = smov %s2220_s25 }
 0x1d0   : > { %s2720_s24 = smov %s2224_s26  ;;  %s2721_s25 = smov %s2724_s28 }
 0x1d1   :  { %16 = sbr.rel (!%p14_p0) target bundleno = 6 (0x6), region = 150 }
 0x1d3   : > { %s2722_s26 = smov %s2716_s1 }

// kernel: _lambda_.25
= control target key start
LH: loop header
LB: loop body
LE: loop exit
PB: predicated region body
PF: predicated region fallthrough
CT: control target
= control target key end

     0   :  { %s1113_s15 = smov 0   ;;  %s1115_s16 = smov 0   ;;  %s1295_s0 = inlined_call_operand.vmem [shape: bf16[8,256], index: 0, kind: input, shape index: {}]   ;;  %s1296_s1 = inlined_call_operand.vmem [shape: bf16[256,512], index: 1, kind: input, shape index: {}]   ;;  %s1297_s2 = inlined_call_operand.vmem [shape: f32[1,512], index: 2, kind: input, shape index: {}]   ;;  %s1298_s3 = inlined_call_operand.vmem [shape: f32[1,512], index: 3, kind: input, shape index: {}]   ;;  %s1299_s4 = inlined_call_operand.vmem [shape: bf16[8,512], index: 4, kind: output, shape index: {}]  }
   0x1   :  { %s1117_s17 = smov 0   ;;  %s1119_s18 = smov 0  }
   0x2   :  { %s1121_s19 = smov 0  }
   0x3 LB: > { %s29_s20 = sadd.s32 1, %s1081_s18  ;;  %p77_p1 = scmp.ne.s32.totalorder %s1073_s16, %s1069_s15  ;;  %s1085_s19 = sphi %s1121_s19, %s14_s19   ;;  %s1081_s18 = sphi %s1119_s18, %s1303_s18   ;;  %s1077_s17 = sphi %s1117_s17, %s1302_s17   ;;  %s1073_s16 = sphi %s1115_s16, %s1301_s16   ;;  %s1069_s15 = sphi %s1113_s15, %s1300_s15  }
   0x4   : > { %p31_p0 = scmp.ge.s32.totalorder %s29_s20, 2  ;;  %p78_p2 = scmp.eq.s32.totalorder %s1085_s19, 0 }
   0x5   : > { %s70_s22 = sadd.s32 1, %s1073_s16  ;;  %p905_p5 = scmp.ge.s32.totalorder %s1085_s19, 2 }
   0x6   : > { %s1305_s20 = smov (%p31_p0, %s29_s20), 0  ;;  %p79_p3 = por %p78_p2, %p77_p1 }
   0x7   : > { %s66_s21 = ssub.s32 %s1081_s18, %s1305_s20  ;;  %196 = sbr.rel (%p905_p5) target bundleno = 34 (0x22), region = 20 }
   0x8   : > { %p68_p4 = scmp.eq.s32.totalorder %s66_s21, 0 }
   0xa   : > { %s1148_s23 = scalar_select %p68_p4, %s1073_s16, %s70_s22  }
   0xe   : > { %199 = sbr.rel (!%p79_p3) target bundleno = 34 (0x22), region = 24  ;;  %s201_s24 = sand.u32 (%p79_p3), 1, %s1073_s16  }
   0xf   : > { %s954_s25 = sshll.u32 (%p79_p3), %s1081_s18, 3  ;;  %s906_s26 = sshll.u32 (%p79_p3), %s201_s24, 8 }
  0x10   : > { %s1156_s29 = scalar_lea.vmem (%p79_p3), %s1296_s1, %s954_s25  ;;  %s1161_s30 = scalar_lea.vmem (%p79_p3), [#allocation3], %s906_s26 }
  0x11   : > { %v299_v0 = vld [vmem:[%s1156_s29] sm:$0xff] (%p79_p3)  ;;  %v301_v1 = vld [vmem:[%s1156_s29 + $0x10] sm:$0xff] (%p79_p3) }
  0x12   : > { %v303_v2 = vld [vmem:[%s1156_s29 + $0x20] sm:$0xff] (%p79_p3)  ;;  %300 = vst [vmem:[%s1161_s30] sm:$0xff] (%p79_p3), %v299_v0  ;;  %302 = vst [vmem:[%s1161_s30 + $0x8] sm:$0xff] (%p79_p3), %v301_v1  ;;  %v305_v3 = vld [vmem:[%s1156_s29 + $0x30] sm:$0xff] (%p79_p3) }
  0x13   : > { %304 = vst [vmem:[%s1161_s30 + $0x10] sm:$0xff] (%p79_p3), %v303_v2  ;;  %v307_v4 = vld [vmem:[%s1156_s29 + $0x40] sm:$0xff] (%p79_p3)  ;;  %v309_v5 = vld [vmem:[%s1156_s29 + $0x50] sm:$0xff] (%p79_p3)  ;;  %306 = vst [vmem:[%s1161_s30 + $0x18] sm:$0xff] (%p79_p3), %v305_v3 }
  0x14   : > { %308 = vst [vmem:[%s1161_s30 + $0x20] sm:$0xff] (%p79_p3), %v307_v4  ;;  %310 = vst [vmem:[%s1161_s30 + $0x28] sm:$0xff] (%p79_p3), %v309_v5  ;;  %v311_v6 = vld [vmem:[%s1156_s29 + $0x60] sm:$0xff] (%p79_p3)  ;;  %v313_v7 = vld [vmem:[%s1156_s29 + $0x70] sm:$0xff] (%p79_p3) }
  0x15   : > { %v315_v8 = vld [vmem:[%s1156_s29 + $0x80] sm:$0xff]  ;;  %312 = vst [vmem:[%s1161_s30 + $0x30] sm:$0xff] %v311_v6  ;;  %314 = vst [vmem:[%s1161_s30 + $0x38] sm:$0xff] %v313_v7  ;;  %v317_v9 = vld [vmem:[%s1156_s29 + $0x90] sm:$0xff] }
  0x16   : > { %316 = vst [vmem:[%s1161_s30 + $0x40] sm:$0xff] %v315_v8  ;;  %v319_v10 = vld [vmem:[%s1156_s29 + $0xa0] sm:$0xff]  ;;  %v321_v11 = vld [vmem:[%s1156_s29 + $0xb0] sm:$0xff]  ;;  %318 = vst [vmem:[%s1161_s30 + $0x48] sm:$0xff] %v317_v9 }
  0x17   : > { %320 = vst [vmem:[%s1161_s30 + $0x50] sm:$0xff] %v319_v10  ;;  %322 = vst [vmem:[%s1161_s30 + $0x58] sm:$0xff] %v321_v11  ;;  %v323_v12 = vld [vmem:[%s1156_s29 + $0xc0] sm:$0xff]  ;;  %v325_v13 = vld [vmem:[%s1156_s29 + $0xd0] sm:$0xff] }
  0x18   : > { %v327_v14 = vld [vmem:[%s1156_s29 + $0xe0] sm:$0xff]  ;;  %324 = vst [vmem:[%s1161_s30 + $0x60] sm:$0xff] %v323_v12  ;;  %326 = vst [vmem:[%s1161_s30 + $0x68] sm:$0xff] %v325_v13  ;;  %v329_v15 = vld [vmem:[%s1156_s29 + $0xf0] sm:$0xff] }
  0x19   : > { %328 = vst [vmem:[%s1161_s30 + $0x70] sm:$0xff] %v327_v14  ;;  %v331_v16 = vld [vmem:[%s1156_s29 + $0x100] sm:$0xff]  ;;  %v333_v17 = vld [vmem:[%s1156_s29 + $0x110] sm:$0xff]  ;;  %330 = vst [vmem:[%s1161_s30 + $0x78] sm:$0xff] %v329_v15 }
  0x1a   : > { %332 = vst [vmem:[%s1161_s30 + $0x80] sm:$0xff] %v331_v16  ;;  %334 = vst [vmem:[%s1161_s30 + $0x88] sm:$0xff] %v333_v17  ;;  %v335_v18 = vld [vmem:[%s1156_s29 + $0x120] sm:$0xff]  ;;  %v337_v19 = vld [vmem:[%s1156_s29 + $0x130] sm:$0xff] }
  0x1b   : > { %v339_v20 = vld [vmem:[%s1156_s29 + $0x140] sm:$0xff]  ;;  %336 = vst [vmem:[%s1161_s30 + $0x90] sm:$0xff] %v335_v18  ;;  %338 = vst [vmem:[%s1161_s30 + $0x98] sm:$0xff] %v337_v19  ;;  %v341_v21 = vld [vmem:[%s1156_s29 + $0x150] sm:$0xff] }
  0x1c   : > { %340 = vst [vmem:[%s1161_s30 + $0xa0] sm:$0xff] %v339_v20  ;;  %v343_v22 = vld [vmem:[%s1156_s29 + $0x160] sm:$0xff]  ;;  %v345_v23 = vld [vmem:[%s1156_s29 + $0x170] sm:$0xff]  ;;  %342 = vst [vmem:[%s1161_s30 + $0xa8] sm:$0xff] %v341_v21 }
  0x1d   : > { %344 = vst [vmem:[%s1161_s30 + $0xb0] sm:$0xff] %v343_v22  ;;  %346 = vst [vmem:[%s1161_s30 + $0xb8] sm:$0xff] %v345_v23  ;;  %v347_v24 = vld [vmem:[%s1156_s29 + $0x180] sm:$0xff]  ;;  %v349_v25 = vld [vmem:[%s1156_s29 + $0x190] sm:$0xff] }
  0x1e   : > { %v351_v26 = vld [vmem:[%s1156_s29 + $0x1a0] sm:$0xff]  ;;  %348 = vst [vmem:[%s1161_s30 + $0xc0] sm:$0xff] %v347_v24  ;;  %350 = vst [vmem:[%s1161_s30 + $0xc8] sm:$0xff] %v349_v25  ;;  %v353_v27 = vld [vmem:[%s1156_s29 + $0x1b0] sm:$0xff] }
  0x1f   : > { %352 = vst [vmem:[%s1161_s30 + $0xd0] sm:$0xff] %v351_v26  ;;  %v355_v28 = vld [vmem:[%s1156_s29 + $0x1c0] sm:$0xff]  ;;  %v357_v29 = vld [vmem:[%s1156_s29 + $0x1d0] sm:$0xff]  ;;  %354 = vst [vmem:[%s1161_s30 + $0xd8] sm:$0xff] %v353_v27 }
  0x20   : > { %356 = vst [vmem:[%s1161_s30 + $0xe0] sm:$0xff] %v355_v28  ;;  %358 = vst [vmem:[%s1161_s30 + $0xe8] sm:$0xff] %v357_v29  ;;  %v359_v30 = vld [vmem:[%s1156_s29 + $0x1e0] sm:$0xff]  ;;  %v361_v31 = vld [vmem:[%s1156_s29 + $0x1f0] sm:$0xff] }
  0x21   : > { %360 = vst [vmem:[%s1161_s30 + $0xf0] sm:$0xff] %v359_v30  ;;  %362 = vst [vmem:[%s1161_s30 + $0xf8] sm:$0xff] %v361_v31 }
  0x22 PF: > { %p909_p6 = scmp.ge.s32.totalorder %s1085_s19, 1  ;;  %p383_p7 = scmp.lt.s32.totalorder %s1085_s19, 3 }
  0x24   : > { %p384_p8 = pnand %p909_p6, %p383_p7 }
  0x25   : > { %s390_s5 = sand.u32 (!%p384_p8), 1, %s1069_s15   ;;  %v1230_v32 = vld [vmem:[%s1295_s0] sm:$0xff] (!%p384_p8)  ;;  %s911_s10 = sshll.u32 (!%p384_p8), %s1077_s17, 1  ;;  %v728_v3 = vlaneseq (!%p384_p8)  ;;  %v1087_v21 = vmov (!%p384_p8), 0.0  }
  0x26   : > { %387 = sbr.rel (%p384_p8) target bundleno = 327 (0x147), region = 70  ;;  %s910_s8 = sshll.u32 (!%p384_p8), %s390_s5, 8  ;;  %v916_v33 = vcombine.high (!%p384_p8), %v1230_v32, %v1230_v32  ;;  %v915_v2 = vcombine.low (!%p384_p8), %v1230_v32, %v1230_v32 }
  0x27   : > { %s1234_s9 = scalar_lea.vmem (!%p384_p8), [#allocation3], %s910_s8  ;;  %p449_p9 = scmp.lt.s32.totalorder (!%p384_p8), %s911_s10, 3  ;;  %v729_v4 = vshrl.u32 (!%p384_p8), %v728_v3, 7 }
  0x28   : > { %v997_v34 = vld [vmem:[%s1234_s9 + $0x4] ss:$8 sps:$4 sm:$0xff] (!%p384_p8)   ;;  %708 = vmatprep.mubr.bf16.mxu0 (!%p384_p8), %v916_v33  ;;  %v999_v35 = vld [vmem:[%s1234_s9] ss:$8 sps:$4 sm:$0xff] (!%p384_p8)   ;;  %v1000_v36 = vld [vmem:[%s1234_s9 + $0x14] ss:$8 sps:$4 sm:$0xff] (!%p384_p8)  }
  0x29   : > { %676 = vmatprep.subr.bf16.mxu0 (!%p384_p8), %v997_v34  ;;  %v1002_v37 = vld [vmem:[%s1234_s9 + $0x10] ss:$8 sps:$4 sm:$0xff] (!%p384_p8)   ;;  %v1003_v38 = vld [vmem:[%s1234_s9 + $0x24] ss:$8 sps:$4 sm:$0xff] (!%p384_p8)   ;;  %v1005_v39 = vld [vmem:[%s1234_s9 + $0x20] ss:$8 sps:$4 sm:$0xff] (!%p384_p8)  }
  0x2a   : > { %677 = vmatpush1.bf16.msra.mxu0 (!%p384_p8), %v999_v35  ;;  %v1006_v40 = vld [vmem:[%s1234_s9 + $0x34] ss:$8 sps:$4 sm:$0xff] (!%p384_p8)   ;;  %v1008_v41 = vld [vmem:[%s1234_s9 + $0x30] ss:$8 sps:$4 sm:$0xff] (!%p384_p8)   ;;  %v1009_v42 = vld [vmem:[%s1234_s9 + $0x44] ss:$8 sps:$4 sm:$0xff] (!%p384_p8)  }
  0x2b   : > { %678 = vmatprep.subr.bf16.mxu0 (!%p384_p8), %v1000_v36  ;;  %v1011_v43 = vld [vmem:[%s1234_s9 + $0x40] ss:$8 sps:$4 sm:$0xff] (!%p384_p8)   ;;  %v1012_v44 = vld [vmem:[%s1234_s9 + $0x54] ss:$8 sps:$4 sm:$0xff] (!%p384_p8)   ;;  %v1014_v45 = vld [vmem:[%s1234_s9 + $0x50] ss:$8 sps:$4 sm:$0xff] (!%p384_p8)  }
  0x2c   : > { %v1015_v46 = vld [vmem:[%s1234_s9 + $0x64] ss:$8 sps:$4 sm:$0xff] (!%p384_p8)   ;;  %v1017_v47 = vld [vmem:[%s1234_s9 + $0x60] ss:$8 sps:$4 sm:$0xff] (!%p384_p8)   ;;  %v1018_v48 = vld [vmem:[%s1234_s9 + $0x74] ss:$8 sps:$4 sm:$0xff] (!%p384_p8)  }
  0x2d   : > { %v1020_v49 = vld [vmem:[%s1234_s9 + $0x70] ss:$8 sps:$4 sm:$0xff]   ;;  %v1021_v50 = vld [vmem:[%s1234_s9 + $0x84] ss:$8 sps:$4 sm:$0xff]   ;;  %v1023_v51 = vld [vmem:[%s1234_s9 + $0x80] ss:$8 sps:$4 sm:$0xff]  }
  0x2e   : > { %679 = vmatpush1.bf16.msra.mxu0 %v1002_v37  ;;  %v1024_v52 = vld [vmem:[%s1234_s9 + $0x94] ss:$8 sps:$4 sm:$0xff]   ;;  %v1026_v53 = vld [vmem:[%s1234_s9 + $0x90] ss:$8 sps:$4 sm:$0xff]   ;;  %v1027_v54 = vld [vmem:[%s1234_s9 + $0xa4] ss:$8 sps:$4 sm:$0xff]  }
  0x2f   : > { %680 = vmatprep.subr.bf16.mxu0 %v1003_v38  ;;  %v1029_v55 = vld [vmem:[%s1234_s9 + $0xa0] ss:$8 sps:$4 sm:$0xff]   ;;  %v1030_v56 = vld [vmem:[%s1234_s9 + $0xb4] ss:$8 sps:$4 sm:$0xff]   ;;  %v1032_v57 = vld [vmem:[%s1234_s9 + $0xb0] ss:$8 sps:$4 sm:$0xff]  }
  0x30   : > { %v1033_v58 = vld [vmem:[%s1234_s9 + $0xc4] ss:$8 sps:$4 sm:$0xff]   ;;  %v1035_v59 = vld [vmem:[%s1234_s9 + $0xc0] ss:$8 sps:$4 sm:$0xff]   ;;  %v1036_v60 = vld [vmem:[%s1234_s9 + $0xd4] ss:$8 sps:$4 sm:$0xff]  }
  0x31   : > { %v1038_v61 = vld [vmem:[%s1234_s9 + $0xd0] ss:$8 sps:$4 sm:$0xff]   ;;  %v1039_v62 = vld [vmem:[%s1234_s9 + $0xe4] ss:$8 sps:$4 sm:$0xff]   ;;  %v1041_v63 = vld [vmem:[%s1234_s9 + $0xe0] ss:$8 sps:$4 sm:$0xff]  }
  0x32   : > { %681 = vmatpush1.bf16.msra.mxu0 %v1005_v39  ;;  %v1042_v0 = vld [vmem:[%s1234_s9 + $0xf4] ss:$8 sps:$4 sm:$0xff]   ;;  %v1044_v1 = vld [vmem:[%s1234_s9 + $0xf0] ss:$8 sps:$4 sm:$0xff]   ;;  %s1307_s10 = smov (!%p449_p9, %s911_s10), 3  ;;  %v730_v5 = vsub.s32 0, %v729_v4 }
  0x33   : > { %682 = vmatprep.subr.bf16.mxu0 %v1006_v40  ;;  %s451_s13 = scalar_lea.vmem %s1297_s2, %s1307_s10  ;;  %s456_s21 = scalar_lea.vmem %s1298_s3, %s1307_s10  ;;  %v734_v7 = vsub.s32 1, %v729_v4 }
  0x34   : > { %v726_v6 = vld [vmem:[%s451_s13] sm:$0x3]  ;;  %s914_s17 = sshll.u32 %s1307_s10, 2 }
  0x35   : > { %v740_v8 = vld [vmem:[%s456_s21] sm:$0x3]  ;;  %v731_v9 = vrot.slane %v726_v6, %v730_v5  ;;  %v735_v10 = vrot.slane %v726_v6, %v734_v7  ;;  %s466_s25 = scalar_lea.vmem %s1299_s4, %s914_s17 }
  0x36   : > { %683 = vmatpush1.bf16.msra.mxu0 %v1008_v41  ;;  %v745_v11 = vrot.slane %v740_v8, %v730_v5  ;;  %v749_v13 = vrot.slane %v740_v8, %v734_v7 }
  0x37   : > { %684 = vmatprep.subr.bf16.mxu0 %v1009_v42 }
  0x3a   : > { %685 = vmatpush1.bf16.msra.mxu0 %v1011_v43 }
  0x3b   : > { %686 = vmatprep.subr.bf16.mxu0 %v1012_v44 }
  0x3e   : > { %687 = vmatpush1.bf16.msra.mxu0 %v1014_v45 }
  0x3f   : > { %688 = vmatprep.subr.bf16.mxu0 %v1015_v46 }
  0x42   : > { %689 = vmatpush1.bf16.msra.mxu0 %v1017_v47 }
  0x43   : > { %690 = vmatprep.subr.bf16.mxu0 %v1018_v48 }
  0x46   : > { %691 = vmatpush1.bf16.msra.mxu0 %v1020_v49 }
  0x47   : > { %692 = vmatprep.subr.bf16.mxu0 %v1021_v50 }
  0x4a   : > { %693 = vmatpush1.bf16.msra.mxu0 %v1023_v51 }
  0x4b   : > { %694 = vmatprep.subr.bf16.mxu0 %v1024_v52 }
  0x4e   : > { %695 = vmatpush1.bf16.msra.mxu0 %v1026_v53 }
  0x4f   : > { %696 = vmatprep.subr.bf16.mxu0 %v1027_v54 }
  0x52   : > { %697 = vmatpush1.bf16.msra.mxu0 %v1029_v55 }
  0x53   : > { %698 = vmatprep.subr.bf16.mxu0 %v1030_v56 }
  0x56   : > { %699 = vmatpush1.bf16.msra.mxu0 %v1032_v57 }
  0x57   : > { %700 = vmatprep.subr.bf16.mxu0 %v1033_v58 }
  0x5a   : > { %701 = vmatpush1.bf16.msra.mxu0 %v1035_v59 }
  0x5b   : > { %702 = vmatprep.subr.bf16.mxu0 %v1036_v60 }
  0x5e   : > { %703 = vmatpush1.bf16.msra.mxu0 %v1038_v61 }
  0x5f   : > { %704 = vmatprep.subr.bf16.mxu0 %v1039_v62 }
  0x62   : > { %705 = vmatpush1.bf16.msra.mxu0 %v1041_v63 }
  0x63   : > { %706 = vmatprep.subr.bf16.mxu0 %v1042_v0 }
  0x66   : > { %707 = vmatpush1.bf16.msra.mxu0 %v1044_v1 }
  0x69   : > { %709 = vmatmul.mubr.bf16.vlgmr.msra.gmra.mrb[0].mxu0 %v915_v2 }
 0x13c   : > { %v710_v12 = vpop.f32.mrb[0].mxu0 }
 0x13d   : > { %v738_v14 = vmul.f32 %v731_v9, %v710_v12  ;;  %v712_v15 = vpop.f32.mrb[1].mxu0 }
 0x13e   : > { %v739_v16 = vmul.f32 %v735_v10, %v712_v15  ;;  %v714_v17 = vpop.f32.mrb[2].mxu0 }
 0x13f   : > { %v752_v18 = vadd.f32 %v745_v11, %v738_v14  ;;  %v715_v19 = vpop.f32.mrb[3].mxu0 }
 0x140   : > { %v753_v20 = vadd.f32 %v749_v13, %v739_v16 }
 0x141   : > { %vm754_vm0 = vcmp.ge.f32.partialorder %v752_v18, 1.0 }
 0x142   : > { %v949_v22 = vsel %vm754_vm0, 1.0, %v1087_v21  ;;  %vm755_vm1 = vcmp.ge.f32.partialorder %v753_v20, 1.0 }
 0x143   : > { %v950_v23 = vsel %vm755_vm1, 1.0, %v1087_v21 }
 0x144   : > { %v955_v24 = vpack.c.bf16 %v950_v23, %v949_v22 }
 0x146   : > { %768 = vst [vmem:[%s466_s25] sm:$0xff] %v955_v24 }
 0x147 PF: > { %s14_s19 = sadd.s32 1, %s1085_s19   ;;  %s1300_s15 = smov %s1073_s16 }
 0x148   : > { %p11_p10 = scmp.ge.s32.totalorder %s14_s19, 4   ;;  %s1301_s16 = smov %s1148_s23 }
 0x149   : > { %s1302_s17 = smov %s1081_s18  ;;  %s1303_s18 = smov %s1305_s20 }
 0x14a   :  { %13 = sbr.rel (!%p11_p10) target bundleno = 3 (0x3), region = 126 }

// kernel: _lambda_.28
= control target key start
LH: loop header
LB: loop body
LE: loop exit
PB: predicated region body
PF: predicated region fallthrough
CT: control target
= control target key end

     0   :  { %s46_s0 = inlined_call_operand.vmem [shape: f32[2,1,512], index: 0, kind: input, shape index: {}]   ;;  %s47_s1 = inlined_call_operand.vmem [shape: f32[2,512], index: 1, kind: output, shape index: {}]  }
   0x1   :  { %v29_v0 = vld [vmem:[%s46_s0] sm:$0xff]  }
   0x2   :  { %28 = vst.sshfl [vmem:[%s47_s1] sm:$0xff pattern:$0x75316420] %v29_v0 }

// kernel: _lambda_.27
= control target key start
LH: loop header
LB: loop body
LE: loop exit
PB: predicated region body
PF: predicated region fallthrough
CT: control target
= control target key end

     0   :  { %s2921_s0 = inlined_call_operand.vmem [shape: bf16[8,4608], index: 0, kind: input, shape index: {}]   ;;  %s2922_s1 = inlined_call_operand.vmem [shape: bf16[4608,512], index: 1, kind: input, shape index: {}]   ;;  %s2923_s2 = inlined_call_operand.vmem [shape: f32[1,512], index: 2, kind: input, shape index: {}]   ;;  %s2924_s3 = inlined_call_operand.vmem [shape: f32[1,512], index: 3, kind: input, shape index: {}]   ;;  %s2925_s4 = inlined_call_operand.vmem [shape: bf16[8,512], index: 4, kind: input, shape index: {}]   ;;  %s2926_s5 = inlined_call_operand.vmem [shape: f32[8,512], index: 5, kind: output, shape index: {0}]   ;;  %s2927_s6 = inlined_call_operand.vmem [shape: f32[8,512], index: 6, kind: output, shape index: {1}]   ;;  %s2928_s7 = inlined_call_operand.vmem [shape: f32[8,512], index: 7, kind: output, shape index: {2}]   ;;  %s2929_s8 = inlined_call_operand.vmem [shape: f32[8,512], index: 8, kind: output, shape index: {3}]  }
   0x1   :  { %2934 = sst [smem:[#allocation8_spill]] %s2922_s1 }
   0x2   :  { %s2469_s27 = smov 0   ;;  %s2471_s28 = smov 0  }
   0x3   :  { %s2473_s29 = smov 0   ;;  %s2475_s30 = smov 0  }
   0x4   :  { %s2477_s9 = smov 0   ;;  %s2479_s10 = smov 0  }
   0x5   :  { %s2481_s11 = smov 0  }
   0x6 LB: > { %2935 = sst [smem:[#allocation4_spill]] %s2412_s9  ;;  %s31_s12 = sadd.s32 1, %s2412_s9  ;;  %s2420_s11 = sphi %s2481_s11, %s19_s11   ;;  %s2416_s10 = sphi %s2479_s10, %s2944_s10   ;;  %s2412_s9 = sphi %s2477_s9, %s2943_s9   ;;  %s2408_s30 = sphi %s2475_s30, %s2942_s30   ;;  %s2404_s29 = sphi %s2473_s29, %s2941_s29   ;;  %s2400_s28 = sphi %s2471_s28, %s2946_s28   ;;  %s2396_s27 = sphi %s2469_s27, %s2945_s27  }
   0x7   : > { %2936 = sst [smem:[#allocation5_spill]] %s2416_s10  ;;  %p32_p0 = scmp.ge.s32.totalorder %s31_s12, 6 }
   0x8   : > { %s34_s13 = sadd.s32 1, %s2416_s10  ;;  %p82_p1 = scmp.ne.s32.totalorder %s2400_s28, %s2396_s27 }
   0x9   : > { %p83_p2 = scmp.eq.s32.totalorder %s2420_s11, 0  ;;  %s2948_s12 = smov (%p32_p0, %s31_s12), 0 }
   0xa   : > { %2937 = sst [smem:[#allocation6_spill]] %s2948_s12  ;;  %s2950_s13 = smov (!%p32_p0, %s34_s13), %s2416_s10 }
   0xb   : > { %p84_p3 = por %p83_p2, %p82_p1  ;;  %p36_p4 = scmp.ge.s32.totalorder %s2950_s13, 2 }
   0xc   : > { %s70_s14 = ssub.s32 %s2412_s9, %s2948_s12  ;;  %s75_s17 = sadd.s32 1, %s2400_s28 }
   0xd   : > { %s2952_s13 = smov (%p36_p4, %s2950_s13), 0  ;;  %p2029_p6 = scmp.ge.s32.totalorder %s2420_s11, 12 }
   0xe   : > { %2938 = sst [smem:[#allocation7_spill]] %s2952_s13  ;;  %s71_s15 = ssub.s32 %s2416_s10, %s2952_s13 }
   0xf   : > { %s72_s16 = sor.u32 %s71_s15, %s70_s14  ;;  %300 = sbr.rel (%p2029_p6) target bundleno = 80 (0x50), region = 16 }
  0x10   : > { %p73_p5 = scmp.eq.s32.totalorder %s72_s16, 0 }
  0x12   : > { %s2520_s18 = scalar_select %p73_p5, %s2400_s28, %s75_s17  }
  0x16   : > { %316 = sbr.rel (!%p84_p3) target bundleno = 80 (0x50), region = 24  ;;  %s318_s19 = sand.u32 (%p84_p3), 1, %s2400_s28  }
  0x17   : > { %s2156_s20 = smul.u32 (%p84_p3), 768, %s318_s19  ;;  %s2030_s21 = sshll.u32 (%p84_p3), %s2416_s10, 1 }
  0x18   : > { %s2155_s22 = smul.u32 (%p84_p3), 384, %s2412_s9  ;;  %s2939_s1 = sld [smem:[#allocation8_spill]] (%p84_p3) }
  0x19   : > { %s2534_s15 = scalar_lea.vmem (%p84_p3), [#allocation3], %s2156_s20 }
  0x1a   : > { %s324_s23 = sadd.s32 (%p84_p3), %s2155_s22, %s2030_s21 }
  0x1b   : > { %s2032_s24 = sshll.u32 (%p84_p3), %s324_s23, 2 }
  0x1e   : > { %s2529_s14 = scalar_lea.vmem %s2939_s1, %s2032_s24 }
  0x1f   : > { %v544_v0 = vld [vmem:[%s2529_s14] sm:$0xff]  ;;  %v546_v1 = vld [vmem:[%s2529_s14 + $0x10] sm:$0xff] }
  0x20   : > { %v548_v2 = vld [vmem:[%s2529_s14 + $0x20] sm:$0xff]  ;;  %545 = vst [vmem:[%s2534_s15] sm:$0xff] %v544_v0  ;;  %547 = vst [vmem:[%s2534_s15 + $0x8] sm:$0xff] %v546_v1  ;;  %v550_v3 = vld [vmem:[%s2529_s14 + $0x30] sm:$0xff] }
  0x21   : > { %549 = vst [vmem:[%s2534_s15 + $0x10] sm:$0xff] %v548_v2  ;;  %v552_v4 = vld [vmem:[%s2529_s14 + $0x40] sm:$0xff]  ;;  %v554_v5 = vld [vmem:[%s2529_s14 + $0x50] sm:$0xff]  ;;  %551 = vst [vmem:[%s2534_s15 + $0x18] sm:$0xff] %v550_v3 }
  0x22   : > { %553 = vst [vmem:[%s2534_s15 + $0x20] sm:$0xff] %v552_v4  ;;  %555 = vst [vmem:[%s2534_s15 + $0x28] sm:$0xff] %v554_v5  ;;  %v556_v6 = vld [vmem:[%s2529_s14 + $0x60] sm:$0xff]  ;;  %v558_v7 = vld [vmem:[%s2529_s14 + $0x70] sm:$0xff] }
  0x23   : > { %v560_v8 = vld [vmem:[%s2529_s14 + $0x80] sm:$0xff]  ;;  %557 = vst [vmem:[%s2534_s15 + $0x30] sm:$0xff] %v556_v6  ;;  %559 = vst [vmem:[%s2534_s15 + $0x38] sm:$0xff] %v558_v7  ;;  %v562_v9 = vld [vmem:[%s2529_s14 + $0x90] sm:$0xff] }
  0x24   : > { %561 = vst [vmem:[%s2534_s15 + $0x40] sm:$0xff] %v560_v8  ;;  %v564_v10 = vld [vmem:[%s2529_s14 + $0xa0] sm:$0xff]  ;;  %v566_v11 = vld [vmem:[%s2529_s14 + $0xb0] sm:$0xff]  ;;  %563 = vst [vmem:[%s2534_s15 + $0x48] sm:$0xff] %v562_v9 }
  0x25   : > { %565 = vst [vmem:[%s2534_s15 + $0x50] sm:$0xff] %v564_v10  ;;  %567 = vst [vmem:[%s2534_s15 + $0x58] sm:$0xff] %v566_v11  ;;  %v568_v12 = vld [vmem:[%s2529_s14 + $0xc0] sm:$0xff]  ;;  %v570_v13 = vld [vmem:[%s2529_s14 + $0xd0] sm:$0xff] }
  0x26   : > { %v572_v14 = vld [vmem:[%s2529_s14 + $0xe0] sm:$0xff]  ;;  %569 = vst [vmem:[%s2534_s15 + $0x60] sm:$0xff] %v568_v12  ;;  %571 = vst [vmem:[%s2534_s15 + $0x68] sm:$0xff] %v570_v13  ;;  %v574_v15 = vld [vmem:[%s2529_s14 + $0xf0] sm:$0xff] }
  0x27   : > { %573 = vst [vmem:[%s2534_s15 + $0x70] sm:$0xff] %v572_v14  ;;  %v576_v16 = vld [vmem:[%s2529_s14 + $0x100] sm:$0xff]  ;;  %v578_v17 = vld [vmem:[%s2529_s14 + $0x110] sm:$0xff]  ;;  %575 = vst [vmem:[%s2534_s15 + $0x78] sm:$0xff] %v574_v15 }
  0x28   : > { %577 = vst [vmem:[%s2534_s15 + $0x80] sm:$0xff] %v576_v16  ;;  %579 = vst [vmem:[%s2534_s15 + $0x88] sm:$0xff] %v578_v17  ;;  %v580_v18 = vld [vmem:[%s2529_s14 + $0x120] sm:$0xff]  ;;  %v582_v19 = vld [vmem:[%s2529_s14 + $0x130] sm:$0xff] }
  0x29   : > { %v584_v20 = vld [vmem:[%s2529_s14 + $0x140] sm:$0xff]  ;;  %581 = vst [vmem:[%s2534_s15 + $0x90] sm:$0xff] %v580_v18  ;;  %583 = vst [vmem:[%s2534_s15 + $0x98] sm:$0xff] %v582_v19  ;;  %v586_v21 = vld [vmem:[%s2529_s14 + $0x150] sm:$0xff] }
  0x2a   : > { %585 = vst [vmem:[%s2534_s15 + $0xa0] sm:$0xff] %v584_v20  ;;  %v588_v22 = vld [vmem:[%s2529_s14 + $0x160] sm:$0xff]  ;;  %v590_v23 = vld [vmem:[%s2529_s14 + $0x170] sm:$0xff]  ;;  %587 = vst [vmem:[%s2534_s15 + $0xa8] sm:$0xff] %v586_v21 }
  0x2b   : > { %589 = vst [vmem:[%s2534_s15 + $0xb0] sm:$0xff] %v588_v22  ;;  %591 = vst [vmem:[%s2534_s15 + $0xb8] sm:$0xff] %v590_v23  ;;  %v592_v24 = vld [vmem:[%s2529_s14 + $0x180] sm:$0xff]  ;;  %v594_v25 = vld [vmem:[%s2529_s14 + $0x190] sm:$0xff] }
  0x2c   : > { %v596_v26 = vld [vmem:[%s2529_s14 + $0x1a0] sm:$0xff]  ;;  %593 = vst [vmem:[%s2534_s15 + $0xc0] sm:$0xff] %v592_v24  ;;  %595 = vst [vmem:[%s2534_s15 + $0xc8] sm:$0xff] %v594_v25  ;;  %v598_v27 = vld [vmem:[%s2529_s14 + $0x1b0] sm:$0xff] }
  0x2d   : > { %597 = vst [vmem:[%s2534_s15 + $0xd0] sm:$0xff] %v596_v26  ;;  %v600_v28 = vld [vmem:[%s2529_s14 + $0x1c0] sm:$0xff]  ;;  %v602_v29 = vld [vmem:[%s2529_s14 + $0x1d0] sm:$0xff]  ;;  %599 = vst [vmem:[%s2534_s15 + $0xd8] sm:$0xff] %v598_v27 }
  0x2e   : > { %601 = vst [vmem:[%s2534_s15 + $0xe0] sm:$0xff] %v600_v28  ;;  %603 = vst [vmem:[%s2534_s15 + $0xe8] sm:$0xff] %v602_v29  ;;  %v604_v30 = vld [vmem:[%s2529_s14 + $0x1e0] sm:$0xff]  ;;  %v606_v31 = vld [vmem:[%s2529_s14 + $0x1f0] sm:$0xff] }
  0x2f   : > { %v608_v32 = vld [vmem:[%s2529_s14 + $0x200] sm:$0xff]  ;;  %605 = vst [vmem:[%s2534_s15 + $0xf0] sm:$0xff] %v604_v30  ;;  %607 = vst [vmem:[%s2534_s15 + $0xf8] sm:$0xff] %v606_v31  ;;  %v610_v33 = vld [vmem:[%s2529_s14 + $0x210] sm:$0xff] }
  0x30   : > { %609 = vst [vmem:[%s2534_s15 + $0x100] sm:$0xff] %v608_v32  ;;  %v612_v34 = vld [vmem:[%s2529_s14 + $0x220] sm:$0xff]  ;;  %v614_v35 = vld [vmem:[%s2529_s14 + $0x230] sm:$0xff]  ;;  %611 = vst [vmem:[%s2534_s15 + $0x108] sm:$0xff] %v610_v33 }
  0x31   : > { %613 = vst [vmem:[%s2534_s15 + $0x110] sm:$0xff] %v612_v34  ;;  %615 = vst [vmem:[%s2534_s15 + $0x118] sm:$0xff] %v614_v35  ;;  %v616_v36 = vld [vmem:[%s2529_s14 + $0x240] sm:$0xff]  ;;  %v618_v37 = vld [vmem:[%s2529_s14 + $0x250] sm:$0xff] }
  0x32   : > { %v620_v38 = vld [vmem:[%s2529_s14 + $0x260] sm:$0xff]  ;;  %617 = vst [vmem:[%s2534_s15 + $0x120] sm:$0xff] %v616_v36  ;;  %619 = vst [vmem:[%s2534_s15 + $0x128] sm:$0xff] %v618_v37  ;;  %v622_v39 = vld [vmem:[%s2529_s14 + $0x270] sm:$0xff] }
  0x33   : > { %621 = vst [vmem:[%s2534_s15 + $0x130] sm:$0xff] %v620_v38  ;;  %v624_v40 = vld [vmem:[%s2529_s14 + $0x280] sm:$0xff]  ;;  %v626_v41 = vld [vmem:[%s2529_s14 + $0x290] sm:$0xff]  ;;  %623 = vst [vmem:[%s2534_s15 + $0x138] sm:$0xff] %v622_v39 }
  0x34   : > { %625 = vst [vmem:[%s2534_s15 + $0x140] sm:$0xff] %v624_v40  ;;  %627 = vst [vmem:[%s2534_s15 + $0x148] sm:$0xff] %v626_v41  ;;  %v628_v42 = vld [vmem:[%s2529_s14 + $0x2a0] sm:$0xff]  ;;  %v630_v43 = vld [vmem:[%s2529_s14 + $0x2b0] sm:$0xff] }
  0x35   : > { %v632_v44 = vld [vmem:[%s2529_s14 + $0x2c0] sm:$0xff]  ;;  %629 = vst [vmem:[%s2534_s15 + $0x150] sm:$0xff] %v628_v42  ;;  %631 = vst [vmem:[%s2534_s15 + $0x158] sm:$0xff] %v630_v43  ;;  %v634_v45 = vld [vmem:[%s2529_s14 + $0x2d0] sm:$0xff] }
  0x36   : > { %633 = vst [vmem:[%s2534_s15 + $0x160] sm:$0xff] %v632_v44  ;;  %v636_v46 = vld [vmem:[%s2529_s14 + $0x2e0] sm:$0xff]  ;;  %v638_v47 = vld [vmem:[%s2529_s14 + $0x2f0] sm:$0xff]  ;;  %635 = vst [vmem:[%s2534_s15 + $0x168] sm:$0xff] %v634_v45 }
  0x37   : > { %637 = vst [vmem:[%s2534_s15 + $0x170] sm:$0xff] %v636_v46  ;;  %639 = vst [vmem:[%s2534_s15 + $0x178] sm:$0xff] %v638_v47  ;;  %v640_v48 = vld [vmem:[%s2529_s14 + $0x300] sm:$0xff]  ;;  %v642_v49 = vld [vmem:[%s2529_s14 + $0x310] sm:$0xff] }
  0x38   : > { %v644_v50 = vld [vmem:[%s2529_s14 + $0x320] sm:$0xff]  ;;  %641 = vst [vmem:[%s2534_s15 + $0x180] sm:$0xff] %v640_v48  ;;  %643 = vst [vmem:[%s2534_s15 + $0x188] sm:$0xff] %v642_v49  ;;  %v646_v51 = vld [vmem:[%s2529_s14 + $0x330] sm:$0xff] }
  0x39   : > { %645 = vst [vmem:[%s2534_s15 + $0x190] sm:$0xff] %v644_v50  ;;  %v648_v52 = vld [vmem:[%s2529_s14 + $0x340] sm:$0xff]  ;;  %v650_v53 = vld [vmem:[%s2529_s14 + $0x350] sm:$0xff]  ;;  %647 = vst [vmem:[%s2534_s15 + $0x198] sm:$0xff] %v646_v51 }
  0x3a   : > { %649 = vst [vmem:[%s2534_s15 + $0x1a0] sm:$0xff] %v648_v52  ;;  %651 = vst [vmem:[%s2534_s15 + $0x1a8] sm:$0xff] %v650_v53  ;;  %v652_v54 = vld [vmem:[%s2529_s14 + $0x360] sm:$0xff]  ;;  %v654_v55 = vld [vmem:[%s2529_s14 + $0x370] sm:$0xff] }
  0x3b   : > { %v656_v56 = vld [vmem:[%s2529_s14 + $0x380] sm:$0xff]  ;;  %653 = vst [vmem:[%s2534_s15 + $0x1b0] sm:$0xff] %v652_v54  ;;  %655 = vst [vmem:[%s2534_s15 + $0x1b8] sm:$0xff] %v654_v55  ;;  %v658_v57 = vld [vmem:[%s2529_s14 + $0x390] sm:$0xff] }
  0x3c   : > { %657 = vst [vmem:[%s2534_s15 + $0x1c0] sm:$0xff] %v656_v56  ;;  %v660_v58 = vld [vmem:[%s2529_s14 + $0x3a0] sm:$0xff]  ;;  %v662_v59 = vld [vmem:[%s2529_s14 + $0x3b0] sm:$0xff]  ;;  %659 = vst [vmem:[%s2534_s15 + $0x1c8] sm:$0xff] %v658_v57 }
  0x3d   : > { %661 = vst [vmem:[%s2534_s15 + $0x1d0] sm:$0xff] %v660_v58  ;;  %663 = vst [vmem:[%s2534_s15 + $0x1d8] sm:$0xff] %v662_v59  ;;  %v664_v60 = vld [vmem:[%s2529_s14 + $0x3c0] sm:$0xff]  ;;  %v666_v61 = vld [vmem:[%s2529_s14 + $0x3d0] sm:$0xff] }
  0x3e   : > { %v668_v62 = vld [vmem:[%s2529_s14 + $0x3e0] sm:$0xff]  ;;  %665 = vst [vmem:[%s2534_s15 + $0x1e0] sm:$0xff] %v664_v60  ;;  %667 = vst [vmem:[%s2534_s15 + $0x1e8] sm:$0xff] %v666_v61  ;;  %v670_v63 = vld [vmem:[%s2529_s14 + $0x3f0] sm:$0xff] }
  0x3f   : > { %669 = vst [vmem:[%s2534_s15 + $0x1f0] sm:$0xff] %v668_v62  ;;  %v672_v0 = vld [vmem:[%s2529_s14 + $0x400] sm:$0xff]  ;;  %v674_v1 = vld [vmem:[%s2529_s14 + $0x410] sm:$0xff]  ;;  %671 = vst [vmem:[%s2534_s15 + $0x1f8] sm:$0xff] %v670_v63 }
  0x40   : > { %673 = vst [vmem:[%s2534_s15 + $0x200] sm:$0xff] %v672_v0  ;;  %675 = vst [vmem:[%s2534_s15 + $0x208] sm:$0xff] %v674_v1  ;;  %v676_v2 = vld [vmem:[%s2529_s14 + $0x420] sm:$0xff]  ;;  %v678_v3 = vld [vmem:[%s2529_s14 + $0x430] sm:$0xff] }
  0x41   : > { %v680_v4 = vld [vmem:[%s2529_s14 + $0x440] sm:$0xff]  ;;  %677 = vst [vmem:[%s2534_s15 + $0x210] sm:$0xff] %v676_v2  ;;  %679 = vst [vmem:[%s2534_s15 + $0x218] sm:$0xff] %v678_v3  ;;  %v682_v5 = vld [vmem:[%s2529_s14 + $0x450] sm:$0xff] }
  0x42   : > { %681 = vst [vmem:[%s2534_s15 + $0x220] sm:$0xff] %v680_v4  ;;  %v684_v6 = vld [vmem:[%s2529_s14 + $0x460] sm:$0xff]  ;;  %v686_v7 = vld [vmem:[%s2529_s14 + $0x470] sm:$0xff]  ;;  %683 = vst [vmem:[%s2534_s15 + $0x228] sm:$0xff] %v682_v5 }
  0x43   : > { %685 = vst [vmem:[%s2534_s15 + $0x230] sm:$0xff] %v684_v6  ;;  %687 = vst [vmem:[%s2534_s15 + $0x238] sm:$0xff] %v686_v7  ;;  %v688_v8 = vld [vmem:[%s2529_s14 + $0x480] sm:$0xff]  ;;  %v690_v9 = vld [vmem:[%s2529_s14 + $0x490] sm:$0xff] }
  0x44   : > { %v692_v10 = vld [vmem:[%s2529_s14 + $0x4a0] sm:$0xff]  ;;  %689 = vst [vmem:[%s2534_s15 + $0x240] sm:$0xff] %v688_v8  ;;  %691 = vst [vmem:[%s2534_s15 + $0x248] sm:$0xff] %v690_v9  ;;  %v694_v11 = vld [vmem:[%s2529_s14 + $0x4b0] sm:$0xff] }
  0x45   : > { %693 = vst [vmem:[%s2534_s15 + $0x250] sm:$0xff] %v692_v10  ;;  %v696_v12 = vld [vmem:[%s2529_s14 + $0x4c0] sm:$0xff]  ;;  %v698_v13 = vld [vmem:[%s2529_s14 + $0x4d0] sm:$0xff]  ;;  %695 = vst [vmem:[%s2534_s15 + $0x258] sm:$0xff] %v694_v11 }
  0x46   : > { %697 = vst [vmem:[%s2534_s15 + $0x260] sm:$0xff] %v696_v12  ;;  %699 = vst [vmem:[%s2534_s15 + $0x268] sm:$0xff] %v698_v13  ;;  %v700_v14 = vld [vmem:[%s2529_s14 + $0x4e0] sm:$0xff]  ;;  %v702_v15 = vld [vmem:[%s2529_s14 + $0x4f0] sm:$0xff] }
  0x47   : > { %v704_v16 = vld [vmem:[%s2529_s14 + $0x500] sm:$0xff]  ;;  %701 = vst [vmem:[%s2534_s15 + $0x270] sm:$0xff] %v700_v14  ;;  %703 = vst [vmem:[%s2534_s15 + $0x278] sm:$0xff] %v702_v15  ;;  %v706_v17 = vld [vmem:[%s2529_s14 + $0x510] sm:$0xff] }
  0x48   : > { %705 = vst [vmem:[%s2534_s15 + $0x280] sm:$0xff] %v704_v16  ;;  %v708_v18 = vld [vmem:[%s2529_s14 + $0x520] sm:$0xff]  ;;  %v710_v19 = vld [vmem:[%s2529_s14 + $0x530] sm:$0xff]  ;;  %707 = vst [vmem:[%s2534_s15 + $0x288] sm:$0xff] %v706_v17 }
  0x49   : > { %709 = vst [vmem:[%s2534_s15 + $0x290] sm:$0xff] %v708_v18  ;;  %711 = vst [vmem:[%s2534_s15 + $0x298] sm:$0xff] %v710_v19  ;;  %v712_v20 = vld [vmem:[%s2529_s14 + $0x540] sm:$0xff]  ;;  %v714_v21 = vld [vmem:[%s2529_s14 + $0x550] sm:$0xff] }
  0x4a   : > { %v716_v22 = vld [vmem:[%s2529_s14 + $0x560] sm:$0xff]  ;;  %713 = vst [vmem:[%s2534_s15 + $0x2a0] sm:$0xff] %v712_v20  ;;  %715 = vst [vmem:[%s2534_s15 + $0x2a8] sm:$0xff] %v714_v21  ;;  %v718_v23 = vld [vmem:[%s2529_s14 + $0x570] sm:$0xff] }
  0x4b   : > { %717 = vst [vmem:[%s2534_s15 + $0x2b0] sm:$0xff] %v716_v22  ;;  %v720_v24 = vld [vmem:[%s2529_s14 + $0x580] sm:$0xff]  ;;  %v722_v25 = vld [vmem:[%s2529_s14 + $0x590] sm:$0xff]  ;;  %719 = vst [vmem:[%s2534_s15 + $0x2b8] sm:$0xff] %v718_v23 }
  0x4c   : > { %721 = vst [vmem:[%s2534_s15 + $0x2c0] sm:$0xff] %v720_v24  ;;  %723 = vst [vmem:[%s2534_s15 + $0x2c8] sm:$0xff] %v722_v25  ;;  %v724_v26 = vld [vmem:[%s2529_s14 + $0x5a0] sm:$0xff]  ;;  %v726_v27 = vld [vmem:[%s2529_s14 + $0x5b0] sm:$0xff] }
  0x4d   : > { %v728_v28 = vld [vmem:[%s2529_s14 + $0x5c0] sm:$0xff]  ;;  %725 = vst [vmem:[%s2534_s15 + $0x2d0] sm:$0xff] %v724_v26  ;;  %727 = vst [vmem:[%s2534_s15 + $0x2d8] sm:$0xff] %v726_v27  ;;  %v730_v29 = vld [vmem:[%s2529_s14 + $0x5d0] sm:$0xff] }
  0x4e   : > { %729 = vst [vmem:[%s2534_s15 + $0x2e0] sm:$0xff] %v728_v28  ;;  %v732_v30 = vld [vmem:[%s2529_s14 + $0x5e0] sm:$0xff]  ;;  %v734_v31 = vld [vmem:[%s2529_s14 + $0x5f0] sm:$0xff]  ;;  %731 = vst [vmem:[%s2534_s15 + $0x2e8] sm:$0xff] %v730_v29 }
  0x4f   : > { %733 = vst [vmem:[%s2534_s15 + $0x2f0] sm:$0xff] %v732_v30  ;;  %735 = vst [vmem:[%s2534_s15 + $0x2f8] sm:$0xff] %v734_v31 }
  0x50 PF: > { %p2033_p7 = scmp.ge.s32.totalorder %s2420_s11, 1  ;;  %p769_p8 = scmp.lt.s32.totalorder %s2420_s11, 13 }
  0x52   : > { %p770_p9 = pnand %p2033_p7, %p769_p8 }
  0x53   : > { %s776_s16 = sand.u32 (!%p770_p9), 1, %s2396_s27   ;;  %s866_s17 = smul.u32 (!%p770_p9), 6, %s2404_s29 }
  0x54   : > { %773 = sbr.rel (%p770_p9) target bundleno = 467 (0x1d3), region = 74  ;;  %s2035_s20 = sshll.u32 (!%p770_p9), %s2408_s30, 1 }
  0x55   : > { %s2157_s19 = smul.u32 (!%p770_p9), 768, %s776_s16  ;;  %p869_p10 = scmp.lt.s32.totalorder (!%p770_p9), %s866_s17, 35 }
  0x56   : > { %p879_p11 = scmp.lt.s32.totalorder (!%p770_p9), %s2035_s20, 3  ;;  %p2047_p12 = scmp.ne.s32.totalorder (!%p770_p9), %s2404_s29, 0 }
  0x5b   : > { %s2954_s17 = smov (!%p869_p10, %s866_s17), 35  ;;  %s2956_s20 = smov (!%p879_p11, %s2035_s20), 3 }
  0x5c   : > { %s2034_s21 = sshll.u32 %s2954_s17, 2  ;;  %s881_s26 = scalar_lea.vmem %s2923_s2, %s2956_s20  ;;  %v2422_v32 = vmov (!%p2047_p12), 0.0  }
  0x5d   : > { %s2735_s24 = scalar_lea.vmem %s2921_s0, %s2034_s21  ;;  %s2038_s16 = sshll.u32 %s2956_s20, 2  ;;  %942 = vst [vmem:[#allocation2] sm:$0xff] (!%p2047_p12), %v2422_v32  ;;  %943 = vst [vmem:[#allocation2 + $0x8] sm:$0xff] (!%p2047_p12), %v2422_v32 }
  0x5e   : > { %s2749_s12 = scalar_lea.vmem %s2925_s4, %s2038_s16  ;;  %s2040_s17 = sshll.u32 %s2956_s20, 3 }
  0x5f   : > { %s2755_s21 = scalar_lea.vmem %s2926_s5, %s2040_s17  ;;  %s2760_s25 = scalar_lea.vmem %s2927_s6, %s2040_s17 }
  0x60   : > { %s2765_s14 = scalar_lea.vmem %s2928_s7, %s2040_s17  ;;  %s2770_s13 = scalar_lea.vmem %s2929_s8, %s2040_s17 }
  0x61   : > { %s2772_s16 = scalar_lea.vmem [#allocation3], %s2157_s19  ;;  %941 = sbr.rel (%p2047_p12) target bundleno = 104 (0x68), region = 82 }
  0x68 PF: > { %v2216_v33 = vld [vmem:[%s2772_s16 + $0x4] ss:$8 sps:$4 sm:$0xff]   ;;  %v2220_v35 = vld [vmem:[%s2772_s16] ss:$8 sps:$4 sm:$0xff]   ;;  %v2222_v37 = vld [vmem:[%s2772_s16 + $0x14] ss:$8 sps:$4 sm:$0xff]  }
  0x69   : > { %v2218_v34 = vld [vmem:[%s2772_s16 + $0x104] ss:$8 sps:$4 sm:$0xff]   ;;  %1546 = vmatprep.subr.bf16.mxu0 %v2216_v33  ;;  %v2221_v36 = vld [vmem:[%s2772_s16 + $0x100] ss:$8 sps:$4 sm:$0xff]   ;;  %v2224_v38 = vld [vmem:[%s2772_s16 + $0x114] ss:$8 sps:$4 sm:$0xff]  }
  0x6a   : > { %1587 = vmatprep.subr.bf16.mxu1 %v2218_v34  ;;  %1547 = vmatpush1.bf16.msra.mxu0 %v2220_v35  ;;  %v2226_v39 = vld [vmem:[%s2772_s16 + $0x10] ss:$8 sps:$4 sm:$0xff]   ;;  %v2228_v41 = vld [vmem:[%s2772_s16 + $0x24] ss:$8 sps:$4 sm:$0xff]   ;;  %v2232_v43 = vld [vmem:[%s2772_s16 + $0x20] ss:$8 sps:$4 sm:$0xff]  }
  0x6b   : > { %1588 = vmatpush1.bf16.msra.mxu1 %v2221_v36  ;;  %1548 = vmatprep.subr.bf16.mxu0 %v2222_v37  ;;  %v2227_v40 = vld [vmem:[%s2772_s16 + $0x110] ss:$8 sps:$4 sm:$0xff]   ;;  %v2230_v42 = vld [vmem:[%s2772_s16 + $0x124] ss:$8 sps:$4 sm:$0xff]   ;;  %v2233_v44 = vld [vmem:[%s2772_s16 + $0x120] ss:$8 sps:$4 sm:$0xff]  }
  0x6c   : > { %1589 = vmatprep.subr.bf16.mxu1 %v2224_v38  ;;  %v2234_v45 = vld [vmem:[%s2772_s16 + $0x34] ss:$8 sps:$4 sm:$0xff]   ;;  %v2238_v47 = vld [vmem:[%s2772_s16 + $0x30] ss:$8 sps:$4 sm:$0xff]   ;;  %v2240_v49 = vld [vmem:[%s2772_s16 + $0x44] ss:$8 sps:$4 sm:$0xff]  }
  0x6d   : > { %v2236_v46 = vld [vmem:[%s2772_s16 + $0x134] ss:$8 sps:$4 sm:$0xff]   ;;  %v2239_v48 = vld [vmem:[%s2772_s16 + $0x130] ss:$8 sps:$4 sm:$0xff]   ;;  %v2242_v50 = vld [vmem:[%s2772_s16 + $0x144] ss:$8 sps:$4 sm:$0xff]  }
  0x6e   : > { %1549 = vmatpush1.bf16.msra.mxu0 %v2226_v39  ;;  %v2244_v51 = vld [vmem:[%s2772_s16 + $0x40] ss:$8 sps:$4 sm:$0xff]   ;;  %v2246_v53 = vld [vmem:[%s2772_s16 + $0x54] ss:$8 sps:$4 sm:$0xff]   ;;  %v2250_v55 = vld [vmem:[%s2772_s16 + $0x50] ss:$8 sps:$4 sm:$0xff]  }
  0x6f   : > { %1590 = vmatpush1.bf16.msra.mxu1 %v2227_v40  ;;  %1550 = vmatprep.subr.bf16.mxu0 %v2228_v41  ;;  %v2245_v52 = vld [vmem:[%s2772_s16 + $0x140] ss:$8 sps:$4 sm:$0xff]   ;;  %v2248_v54 = vld [vmem:[%s2772_s16 + $0x154] ss:$8 sps:$4 sm:$0xff]   ;;  %v2251_v56 = vld [vmem:[%s2772_s16 + $0x150] ss:$8 sps:$4 sm:$0xff]  }
  0x70   : > { %1591 = vmatprep.subr.bf16.mxu1 %v2230_v42  ;;  %v2252_v57 = vld [vmem:[%s2772_s16 + $0x64] ss:$8 sps:$4 sm:$0xff]   ;;  %v2256_v59 = vld [vmem:[%s2772_s16 + $0x60] ss:$8 sps:$4 sm:$0xff]   ;;  %v2258_v61 = vld [vmem:[%s2772_s16 + $0x74] ss:$8 sps:$4 sm:$0xff]  }
  0x71   : > { %v2254_v58 = vld [vmem:[%s2772_s16 + $0x164] ss:$8 sps:$4 sm:$0xff]   ;;  %v2257_v60 = vld [vmem:[%s2772_s16 + $0x160] ss:$8 sps:$4 sm:$0xff]   ;;  %v2260_v62 = vld [vmem:[%s2772_s16 + $0x174] ss:$8 sps:$4 sm:$0xff]  }
  0x72   : > { %1551 = vmatpush1.bf16.msra.mxu0 %v2232_v43  ;;  %v2262_v63 = vld [vmem:[%s2772_s16 + $0x70] ss:$8 sps:$4 sm:$0xff]   ;;  %v2264_v1 = vld [vmem:[%s2772_s16 + $0x84] ss:$8 sps:$4 sm:$0xff]   ;;  %v2268_v3 = vld [vmem:[%s2772_s16 + $0x80] ss:$8 sps:$4 sm:$0xff]  }
  0x73   : > { %1592 = vmatpush1.bf16.msra.mxu1 %v2233_v44  ;;  %1552 = vmatprep.subr.bf16.mxu0 %v2234_v45  ;;  %v2263_v0 = vld [vmem:[%s2772_s16 + $0x170] ss:$8 sps:$4 sm:$0xff]   ;;  %v2266_v2 = vld [vmem:[%s2772_s16 + $0x184] ss:$8 sps:$4 sm:$0xff]   ;;  %v2269_v4 = vld [vmem:[%s2772_s16 + $0x180] ss:$8 sps:$4 sm:$0xff]  }
  0x74   : > { %1593 = vmatprep.subr.bf16.mxu1 %v2236_v46  ;;  %v2270_v5 = vld [vmem:[%s2772_s16 + $0x94] ss:$8 sps:$4 sm:$0xff]   ;;  %v2274_v7 = vld [vmem:[%s2772_s16 + $0x90] ss:$8 sps:$4 sm:$0xff]   ;;  %v2276_v9 = vld [vmem:[%s2772_s16 + $0xa4] ss:$8 sps:$4 sm:$0xff]  }
  0x75   : > { %v2272_v6 = vld [vmem:[%s2772_s16 + $0x194] ss:$8 sps:$4 sm:$0xff]   ;;  %v2275_v8 = vld [vmem:[%s2772_s16 + $0x190] ss:$8 sps:$4 sm:$0xff]   ;;  %v2278_v10 = vld [vmem:[%s2772_s16 + $0x1a4] ss:$8 sps:$4 sm:$0xff]  }
  0x76   : > { %1553 = vmatpush1.bf16.msra.mxu0 %v2238_v47  ;;  %v2280_v11 = vld [vmem:[%s2772_s16 + $0xa0] ss:$8 sps:$4 sm:$0xff]   ;;  %v2282_v13 = vld [vmem:[%s2772_s16 + $0xb4] ss:$8 sps:$4 sm:$0xff]   ;;  %v2286_v18 = vld [vmem:[%s2772_s16 + $0xb0] ss:$8 sps:$4 sm:$0xff]  }
  0x77   : > { %1594 = vmatpush1.bf16.msra.mxu1 %v2239_v48  ;;  %1554 = vmatprep.subr.bf16.mxu0 %v2240_v49  ;;  %v2281_v12 = vld [vmem:[%s2772_s16 + $0x1a0] ss:$8 sps:$4 sm:$0xff]   ;;  %v2284_v14 = vld [vmem:[%s2772_s16 + $0x1b4] ss:$8 sps:$4 sm:$0xff]   ;;  %v2287_v19 = vld [vmem:[%s2772_s16 + $0x1b0] ss:$8 sps:$4 sm:$0xff]  }
  0x78   : > { %1595 = vmatprep.subr.bf16.mxu1 %v2242_v50  ;;  %v946_v15 = vld [vmem:[%s2735_s24] sm:$0xff]  ;;  %v947_v17 = vld [vmem:[%s2735_s24 + $0x8] sm:$0xff]  ;;  %v2288_v21 = vld [vmem:[%s2772_s16 + $0xc4] ss:$8 sps:$4 sm:$0xff]   ;;  %p2150_p13 = scmp.ne.s32.totalorder %s2404_s29, 5 }
  0x79   : > { %v2049_v16 = vcombine.high %v946_v15, %v946_v15  ;;  %v2051_v20 = vcombine.high %v947_v17, %v947_v17  ;;  %v2290_v22 = vld [vmem:[%s2772_s16 + $0x1c4] ss:$8 sps:$4 sm:$0xff]   ;;  %v2292_v23 = vld [vmem:[%s2772_s16 + $0xc0] ss:$8 sps:$4 sm:$0xff]   ;;  %v2294_v25 = vld [vmem:[%s2772_s16 + $0xd4] ss:$8 sps:$4 sm:$0xff]   ;;  %v2048_v38 = vcombine.low %v946_v15, %v946_v15  ;;  %v2050_v39 = vcombine.low %v947_v17, %v947_v17 }
  0x7a   : > { %1555 = vmatpush1.bf16.msra.mxu0 %v2244_v51  ;;  %v2293_v24 = vld [vmem:[%s2772_s16 + $0x1c0] ss:$8 sps:$4 sm:$0xff]   ;;  %v2296_v26 = vld [vmem:[%s2772_s16 + $0x1d4] ss:$8 sps:$4 sm:$0xff]   ;;  %v2298_v27 = vld [vmem:[%s2772_s16 + $0xd0] ss:$8 sps:$4 sm:$0xff]  }
  0x7b   : > { %1596 = vmatpush1.bf16.msra.mxu1 %v2245_v52  ;;  %1556 = vmatprep.subr.bf16.mxu0 %v2246_v53  ;;  %v2299_v28 = vld [vmem:[%s2772_s16 + $0x1d0] ss:$8 sps:$4 sm:$0xff]   ;;  %v2300_v29 = vld [vmem:[%s2772_s16 + $0xe4] ss:$8 sps:$4 sm:$0xff]   ;;  %v2304_v31 = vld [vmem:[%s2772_s16 + $0xe0] ss:$8 sps:$4 sm:$0xff]  }
  0x7c   : > { %1597 = vmatprep.subr.bf16.mxu1 %v2248_v54  ;;  %1578 = vmatprep.mubr.bf16.mxu0 %v2049_v16  ;;  %v2302_v30 = vld [vmem:[%s2772_s16 + $0x1e4] ss:$8 sps:$4 sm:$0xff]   ;;  %v2305_v32 = vld [vmem:[%s2772_s16 + $0x1e0] ss:$8 sps:$4 sm:$0xff]   ;;  %v2306_v33 = vld [vmem:[%s2772_s16 + $0xf4] ss:$8 sps:$4 sm:$0xff]  }
  0x7d   : > { %1619 = vmatprep.mubr.bf16.mxu1 %v2051_v20  ;;  %v2308_v34 = vld [vmem:[%s2772_s16 + $0x1f4] ss:$8 sps:$4 sm:$0xff]   ;;  %v2310_v35 = vld [vmem:[%s2772_s16 + $0xf0] ss:$8 sps:$4 sm:$0xff]   ;;  %v2318_v37 = vld [vmem:[%s2772_s16 + $0x204] ss:$8 sps:$4 sm:$0xff]  }
  0x7e   : > { %1557 = vmatpush1.bf16.msra.mxu0 %v2250_v55  ;;  %v2311_v36 = vld [vmem:[%s2772_s16 + $0x1f0] ss:$8 sps:$4 sm:$0xff]   ;;  %v2316_v40 = vld [vmem:[%s2772_s16 + $0x200] ss:$8 sps:$4 sm:$0xff]   ;;  %v2321_v42 = vld [vmem:[%s2772_s16 + $0x214] ss:$8 sps:$4 sm:$0xff]  }
  0x7f   : > { %1598 = vmatpush1.bf16.msra.mxu1 %v2251_v56  ;;  %1558 = vmatprep.subr.bf16.mxu0 %v2252_v57  ;;  %v2844_v41 = vld [vmem:[%s2735_s24 + $0x10] sm:$0xff]  ;;  %v2319_v44 = vld [vmem:[%s2772_s16 + $0x210] ss:$8 sps:$4 sm:$0xff]   ;;  %v2327_v47 = vld [vmem:[%s2772_s16 + $0x234] ss:$8 sps:$4 sm:$0xff]   ;;  %s2940_s24 = scalar_lea.vmem (!%p2150_p13), %s2924_s3, %s2956_s20 }
  0x80   : > { %1599 = vmatprep.subr.bf16.mxu1 %v2254_v58  ;;  %v2053_v43 = vcombine.high %v2844_v41, %v2844_v41  ;;  %v2324_v45 = vld [vmem:[%s2772_s16 + $0x224] ss:$8 sps:$4 sm:$0xff]   ;;  %v2322_v46 = vld [vmem:[%s2772_s16 + $0x220] ss:$8 sps:$4 sm:$0xff]   ;;  %v2325_v48 = vld [vmem:[%s2772_s16 + $0x230] ss:$8 sps:$4 sm:$0xff]  }
  0x81   : > { %v2330_v49 = vld [vmem:[%s2772_s16 + $0x244] ss:$8 sps:$4 sm:$0xff]   ;;  %v2328_v50 = vld [vmem:[%s2772_s16 + $0x240] ss:$8 sps:$4 sm:$0xff]   ;;  %v2333_v51 = vld [vmem:[%s2772_s16 + $0x254] ss:$8 sps:$4 sm:$0xff]  }
  0x82   : > { %1559 = vmatpush1.bf16.msra.mxu0 %v2256_v59  ;;  %v2331_v52 = vld [vmem:[%s2772_s16 + $0x250] ss:$8 sps:$4 sm:$0xff]   ;;  %v2336_v53 = vld [vmem:[%s2772_s16 + $0x264] ss:$8 sps:$4 sm:$0xff]   ;;  %v2334_v54 = vld [vmem:[%s2772_s16 + $0x260] ss:$8 sps:$4 sm:$0xff]  }
  0x83   : > { %1600 = vmatpush1.bf16.msra.mxu1 %v2257_v60  ;;  %1560 = vmatprep.subr.bf16.mxu0 %v2258_v61  ;;  %v2339_v55 = vld [vmem:[%s2772_s16 + $0x274] ss:$8 sps:$4 sm:$0xff]   ;;  %v2337_v56 = vld [vmem:[%s2772_s16 + $0x270] ss:$8 sps:$4 sm:$0xff]   ;;  %v2342_v57 = vld [vmem:[%s2772_s16 + $0x284] ss:$8 sps:$4 sm:$0xff]  }
  0x84   : > { %1601 = vmatprep.subr.bf16.mxu1 %v2260_v62  ;;  %v2340_v58 = vld [vmem:[%s2772_s16 + $0x280] ss:$8 sps:$4 sm:$0xff]   ;;  %v2345_v59 = vld [vmem:[%s2772_s16 + $0x294] ss:$8 sps:$4 sm:$0xff]   ;;  %v2343_v60 = vld [vmem:[%s2772_s16 + $0x290] ss:$8 sps:$4 sm:$0xff]  }
  0x85   : > { %v2348_v61 = vld [vmem:[%s2772_s16 + $0x2a4] ss:$8 sps:$4 sm:$0xff]   ;;  %v2346_v62 = vld [vmem:[%s2772_s16 + $0x2a0] ss:$8 sps:$4 sm:$0xff]   ;;  %v944_v20 = vld [vmem:[#allocation2] sm:$0xff] }
  0x86   : > { %1561 = vmatpush1.bf16.msra.mxu0 %v2262_v63  ;;  %v2351_v63 = vld [vmem:[%s2772_s16 + $0x2b4] ss:$8 sps:$4 sm:$0xff]  }
  0x87   : > { %1602 = vmatpush1.bf16.msra.mxu1 %v2263_v0  ;;  %1562 = vmatprep.subr.bf16.mxu0 %v2264_v1  ;;  %v2349_v0 = vld [vmem:[%s2772_s16 + $0x2b0] ss:$8 sps:$4 sm:$0xff]   ;;  %v2354_v1 = vld [vmem:[%s2772_s16 + $0x2c4] ss:$8 sps:$4 sm:$0xff]  }
  0x88   : > { %1603 = vmatprep.subr.bf16.mxu1 %v2266_v2  ;;  %v2352_v2 = vld [vmem:[%s2772_s16 + $0x2c0] ss:$8 sps:$4 sm:$0xff]  }
  0x8a   : > { %1563 = vmatpush1.bf16.msra.mxu0 %v2268_v3  ;;  %v2357_v3 = vld [vmem:[%s2772_s16 + $0x2d4] ss:$8 sps:$4 sm:$0xff]  }
  0x8b   : > { %1604 = vmatpush1.bf16.msra.mxu1 %v2269_v4  ;;  %1564 = vmatprep.subr.bf16.mxu0 %v2270_v5  ;;  %v2355_v4 = vld [vmem:[%s2772_s16 + $0x2d0] ss:$8 sps:$4 sm:$0xff]   ;;  %v2360_v5 = vld [vmem:[%s2772_s16 + $0x2e4] ss:$8 sps:$4 sm:$0xff]  }
  0x8c   : > { %1605 = vmatprep.subr.bf16.mxu1 %v2272_v6  ;;  %v2358_v6 = vld [vmem:[%s2772_s16 + $0x2e0] ss:$8 sps:$4 sm:$0xff]  }
  0x8e   : > { %1565 = vmatpush1.bf16.msra.mxu0 %v2274_v7  ;;  %v2363_v7 = vld [vmem:[%s2772_s16 + $0x2f4] ss:$8 sps:$4 sm:$0xff]  }
  0x8f   : > { %1606 = vmatpush1.bf16.msra.mxu1 %v2275_v8  ;;  %1566 = vmatprep.subr.bf16.mxu0 %v2276_v9  ;;  %v2361_v8 = vld [vmem:[%s2772_s16 + $0x2f0] ss:$8 sps:$4 sm:$0xff]   ;;  %v2052_v9 = vcombine.low %v2844_v41, %v2844_v41 }
  0x90   : > { %1607 = vmatprep.subr.bf16.mxu1 %v2278_v10 }
  0x92   : > { %1567 = vmatpush1.bf16.msra.mxu0 %v2280_v11 }
  0x93   : > { %1608 = vmatpush1.bf16.msra.mxu1 %v2281_v12  ;;  %1568 = vmatprep.subr.bf16.mxu0 %v2282_v13 }
  0x94   : > { %1609 = vmatprep.subr.bf16.mxu1 %v2284_v14 }
  0x96   : > { %1569 = vmatpush1.bf16.msra.mxu0 %v2286_v18 }
  0x97   : > { %1610 = vmatpush1.bf16.msra.mxu1 %v2287_v19  ;;  %1570 = vmatprep.subr.bf16.mxu0 %v2288_v21 }
  0x98   : > { %1611 = vmatprep.subr.bf16.mxu1 %v2290_v22 }
  0x9a   : > { %1571 = vmatpush1.bf16.msra.mxu0 %v2292_v23  ;;  %v945_v23 = vld [vmem:[#allocation2 + $0x8] sm:$0xff] }
  0x9b   : > { %1612 = vmatpush1.bf16.msra.mxu1 %v2293_v24  ;;  %1572 = vmatprep.subr.bf16.mxu0 %v2294_v25 }
  0x9c   : > { %1613 = vmatprep.subr.bf16.mxu1 %v2296_v26 }
  0x9e   : > { %1573 = vmatpush1.bf16.msra.mxu0 %v2298_v27 }
  0x9f   : > { %1614 = vmatpush1.bf16.msra.mxu1 %v2299_v28  ;;  %1574 = vmatprep.subr.bf16.mxu0 %v2300_v29 }
  0xa0   : > { %1615 = vmatprep.subr.bf16.mxu1 %v2302_v30 }
  0xa2   : > { %1575 = vmatpush1.bf16.msra.mxu0 %v2304_v31  ;;  %v1681_v31 = vlaneseq (!%p2150_p13) }
  0xa3   : > { %1616 = vmatpush1.bf16.msra.mxu1 %v2305_v32  ;;  %1576 = vmatprep.subr.bf16.mxu0 %v2306_v33 }
  0xa4   : > { %1617 = vmatprep.subr.bf16.mxu1 %v2308_v34  ;;  %v1682_v33 = vshrl.u32 (!%p2150_p13), %v1681_v31, 7  ;;  %v1679_v34 = vld [vmem:[%s881_s26] sm:$0x3] (!%p2150_p13) }
  0xa6   : > { %1577 = vmatpush1.bf16.msra.mxu0 %v2310_v35  ;;  %v1693_v35 = vld [vmem:[%s2940_s24] sm:$0x3] (!%p2150_p13) }
  0xa7   : > { %1618 = vmatpush1.bf16.msra.mxu1 %v2311_v36  ;;  %1628 = vmatprep.subr.bf16.mxu0 %v2318_v37  ;;  %v1683_v36 = vsub.s32 (!%p2150_p13), 0, %v1682_v33  ;;  %v1687_v37 = vsub.s32 (!%p2150_p13), 1, %v1682_v33 }
  0xa9   : > { %1579 = vmatmul.mubr.bf16.vlgmr.msra.gmra.mrb[0].mxu0 %v2048_v38  ;;  %v1684_v38 = vrot.slane (!%p2150_p13), %v1679_v34, %v1683_v36  ;;  %v1702_v41 = vrot.slane (!%p2150_p13), %v1693_v35, %v1687_v37 }
  0xaa   : > { %1620 = vmatmul.mubr.bf16.vlgmr.msra.gmra.mrb[0].mxu1 %v2050_v39  ;;  %1629 = vmatpush1.bf16.msra.mxu0 %v2316_v40  ;;  %v1698_v39 = vrot.slane (!%p2150_p13), %v1693_v35, %v1683_v36  ;;  %v1688_v40 = vrot.slane (!%p2150_p13), %v1679_v34, %v1687_v37 }
  0xab   : > { %1660 = vmatprep.mubr.bf16.mxu0 %v2053_v43  ;;  %1630 = vmatprep.subr.bf16.mxu0 %v2321_v42  ;;  %v1719_v42 = vld [vmem:[%s2749_s12] sm:$0xff] (!%p2150_p13) }
  0xae   : > { %1631 = vmatpush1.bf16.msra.mxu0 %v2319_v44 }
  0xaf   : > { %1632 = vmatprep.subr.bf16.mxu0 %v2324_v45 }
  0xb2   : > { %1633 = vmatpush1.bf16.msra.mxu0 %v2322_v46  ;;  %v1720_v46 = vunpack.c.l.bf16 (!%p2150_p13), %v1719_v42 }
  0xb3   : > { %1634 = vmatprep.subr.bf16.mxu0 %v2327_v47 }
  0xb6   : > { %1635 = vmatpush1.bf16.msra.mxu0 %v2325_v48  ;;  %v1721_v48 = vunpack.c.h.bf16 (!%p2150_p13), %v1719_v42 }
  0xb7   : > { %1636 = vmatprep.subr.bf16.mxu0 %v2330_v49  ;;  %v2423_v49 = vmov (!%p2150_p13), 0.0  }
  0xba   : > { %1637 = vmatpush1.bf16.msra.mxu0 %v2328_v50 }
  0xbb   : > { %1638 = vmatprep.subr.bf16.mxu0 %v2333_v51 }
  0xbe   : > { %1639 = vmatpush1.bf16.msra.mxu0 %v2331_v52 }
  0xbf   : > { %1640 = vmatprep.subr.bf16.mxu0 %v2336_v53 }
  0xc2   : > { %1641 = vmatpush1.bf16.msra.mxu0 %v2334_v54 }
  0xc3   : > { %1642 = vmatprep.subr.bf16.mxu0 %v2339_v55 }
  0xc6   : > { %1643 = vmatpush1.bf16.msra.mxu0 %v2337_v56 }
  0xc7   : > { %1644 = vmatprep.subr.bf16.mxu0 %v2342_v57 }
  0xca   : > { %1645 = vmatpush1.bf16.msra.mxu0 %v2340_v58 }
  0xcb   : > { %1646 = vmatprep.subr.bf16.mxu0 %v2345_v59 }
  0xce   : > { %1647 = vmatpush1.bf16.msra.mxu0 %v2343_v60 }
  0xcf   : > { %1648 = vmatprep.subr.bf16.mxu0 %v2348_v61 }
  0xd2   : > { %1649 = vmatpush1.bf16.msra.mxu0 %v2346_v62 }
  0xd3   : > { %1650 = vmatprep.subr.bf16.mxu0 %v2351_v63 }
  0xd6   : > { %1651 = vmatpush1.bf16.msra.mxu0 %v2349_v0 }
  0xd7   : > { %1652 = vmatprep.subr.bf16.mxu0 %v2354_v1 }
  0xda   : > { %1653 = vmatpush1.bf16.msra.mxu0 %v2352_v2 }
  0xdb   : > { %1654 = vmatprep.subr.bf16.mxu0 %v2357_v3 }
  0xde   : > { %1655 = vmatpush1.bf16.msra.mxu0 %v2355_v4 }
  0xdf   : > { %1656 = vmatprep.subr.bf16.mxu0 %v2360_v5 }
  0xe2   : > { %1657 = vmatpush1.bf16.msra.mxu0 %v2358_v6 }
  0xe3   : > { %1658 = vmatprep.subr.bf16.mxu0 %v2363_v7 }
  0xe6   : > { %1659 = vmatpush1.bf16.msra.mxu0 %v2361_v8 }
  0xe9   : > { %1661 = vmatmul.mubr.bf16.vlgmr.msra.gmra.mrb[4].mxu0 %v2052_v9 }
 0x17c   : > { %v1580_v10 = vpop.f32.mrb[0].mxu0 }
 0x17d   : > { %v1621_v11 = vpop.f32.mrb[0].mxu1  ;;  %v1582_v13 = vpop.f32.mrb[1].mxu0 }
 0x17e   : > { %v1622_v12 = vadd.f32 %v1621_v11, %v1580_v10  ;;  %v1623_v14 = vpop.f32.mrb[1].mxu1  ;;  %v1584_v16 = vpop.f32.mrb[2].mxu0 }
 0x17f   : > { %v1624_v15 = vadd.f32 %v1623_v14, %v1582_v13  ;;  %v1625_v17 = vpop.f32.mrb[2].mxu1  ;;  %v1585_v18 = vpop.f32.mrb[3].mxu0 }
 0x180   : > { %v1626_v19 = vpop.f32.mrb[3].mxu1 }
 0x1bc   : > { %v1662_v21 = vpop.f32.mrb[4].mxu0  ;;  %1676 = sbr.rel (%p2150_p13) target bundleno = 467 (0x1d3), region = 86 }
 0x1bd   : > { %v1663_v22 = vadd.f32 %v1662_v21, %v1622_v12  ;;  %v1664_v24 = vpop.f32.mrb[5].mxu0 }
 0x1be   : > { %v1665_v25 = vadd.f32 %v1664_v24, %v1624_v15  ;;  %v1666_v26 = vpop.f32.mrb[6].mxu0 }
 0x1bf   : > { %v1669_v27 = vadd.f32 %v1663_v22, %v944_v20  ;;  %v1667_v28 = vpop.f32.mrb[7].mxu0 }
 0x1c0   : > { %v1670_v29 = vadd.f32 %v1665_v25, %v945_v23 }
 0x1c1   : > { %1671 = vst [vmem:[#allocation2] sm:$0xff] %v1669_v27 }
 0x1c2   : > { %1672 = vst [vmem:[#allocation2 + $0x8] sm:$0xff] %v1670_v29 }
 0x1c8   : > { %v1677_v30 = vld [vmem:[#allocation2] sm:$0xff] }
 0x1c9   : > { %1707 = vst [vmem:[%s2755_s21] sm:$0xff] %v1677_v30  ;;  %v1678_v32 = vld [vmem:[#allocation2 + $0x8] sm:$0xff]  ;;  %v1691_v43 = vmul.f32 %v1684_v38, %v1677_v30 }
 0x1ca   : > { %1708 = vst [vmem:[%s2755_s21 + $0x8] sm:$0xff] %v1678_v32  ;;  %v1692_v44 = vmul.f32 %v1688_v40, %v1678_v32 }
 0x1cb   : > { %v1705_v45 = vadd.f32 %v1698_v39, %v1691_v43 }
 0x1cc   : > { %v1706_v47 = vadd.f32 %v1702_v41, %v1692_v44 }
 0x1cd   : > { %1709 = vst [vmem:[%s2760_s25] sm:$0xff] %v1705_v45  ;;  %vm1711_vm0 = vcmp.ge.f32.partialorder %v1705_v45, 1.0 }
 0x1ce   : > { %vm1712_vm1 = vcmp.ge.f32.partialorder %v1706_v47, 1.0  ;;  %v2151_v50 = vsel %vm1711_vm0, 1.0, %v2423_v49  ;;  %1710 = vst [vmem:[%s2760_s25 + $0x8] sm:$0xff] %v1706_v47 }
 0x1cf   : > { %v2152_v51 = vsel %vm1712_vm1, 1.0, %v2423_v49  ;;  %1717 = vst [vmem:[%s2765_s14] sm:$0xff] %v2151_v50  ;;  %v1722_v52 = vadd.f32 %v2151_v50, %v1720_v46 }
 0x1d0   : > { %v1723_v53 = vadd.f32 %v2152_v51, %v1721_v48  ;;  %1718 = vst [vmem:[%s2765_s14 + $0x8] sm:$0xff] %v2152_v51 }
 0x1d1   : > { %1724 = vst [vmem:[%s2770_s13] sm:$0xff] %v1722_v52 }
 0x1d2   : > { %1725 = vst [vmem:[%s2770_s13 + $0x8] sm:$0xff] %v1723_v53 }
 0x1d3 PF: > { %s19_s11 = sadd.s32 1, %s2420_s11   ;;  %s2941_s29 = sld [smem:[#allocation4_spill]] }
 0x1d4   : > { %p16_p0 = scmp.ge.s32.totalorder %s19_s11, 14   ;;  %s2942_s30 = sld [smem:[#allocation5_spill]] }
 0x1d5   : > { %s2943_s9 = sld [smem:[#allocation6_spill]]  ;;  %s2944_s10 = sld [smem:[#allocation7_spill]] }
 0x1d6   : > { %s2945_s27 = smov %s2400_s28  ;;  %s2946_s28 = smov %s2520_s18 }
 0x1d7   :  { %18 = sbr.rel (!%p16_p0) target bundleno = 6 (0x6), region = 169 }

// kernel: _lambda_.29
= control target key start
LH: loop header
LB: loop body
LE: loop exit
PB: predicated region body
PF: predicated region fallthrough
CT: control target
= control target key end

     0   :  { %s905_s1 = inlined_call_operand.vmem [shape: f32[512,256], index: 1, kind: input, shape index: {}]   ;;  %s906_s0 = inlined_call_operand.vmem [shape: f32[8,512], index: 0, kind: input, shape index: {}]   ;;  %s907_s2 = inlined_call_operand.vmem [shape: f32[1,256], index: 2, kind: input, shape index: {}]   ;;  %s908_s3 = inlined_call_operand.vmem [shape: f32[1,256], index: 3, kind: input, shape index: {}]   ;;  %s909_s4 = inlined_call_operand.vmem [shape: f32[8,256], index: 4, kind: output, shape index: {}]  }
   0x1   :  { %v30_v0 = vld [vmem:[%s905_s1 + $0x8] sm:$0xff]  ;;  %v32_v1 = vld [vmem:[%s905_s1 + $0x18] sm:$0xff]  ;;  %v29_v5 = vld [vmem:[%s905_s1] sm:$0xff] }
   0x2   :  { %v94_v2 = vld [vmem:[%s905_s1 + $0x208] sm:$0xff]  ;;  %v342_v3 = vpack.c.bf16 %v32_v1, %v30_v0  ;;  %v96_v4 = vld [vmem:[%s905_s1 + $0x218] sm:$0xff]  ;;  %v31_v6 = vld [vmem:[%s905_s1 + $0x10] sm:$0xff] }
   0x3   :  { %v406_v7 = vpack.c.bf16 %v96_v4, %v94_v2  ;;  %v344_v8 = vpack.c.bf16 %v31_v6, %v29_v5  ;;  %v93_v9 = vld [vmem:[%s905_s1 + $0x200] sm:$0xff]  ;;  %v95_v10 = vld [vmem:[%s905_s1 + $0x210] sm:$0xff]  ;;  %v34_v11 = vld [vmem:[%s905_s1 + $0x28] sm:$0xff] }
   0x4   :  { %343 = vmatprep.subr.bf16.mxu1 %v342_v3  ;;  %v408_v12 = vpack.c.bf16 %v95_v10, %v93_v9  ;;  %v36_v13 = vld [vmem:[%s905_s1 + $0x38] sm:$0xff]  ;;  %v98_v14 = vld [vmem:[%s905_s1 + $0x228] sm:$0xff]  ;;  %v33_v18 = vld [vmem:[%s905_s1 + $0x20] sm:$0xff] }
   0x5   :  { %v100_v15 = vld [vmem:[%s905_s1 + $0x238] sm:$0xff]  ;;  %407 = vmatprep.subr.bf16.mxu0 %v406_v7  ;;  %345 = vmatpush1.bf16.msra.mxu1 %v344_v8  ;;  %v346_v16 = vpack.c.bf16 %v36_v13, %v34_v11  ;;  %v35_v19 = vld [vmem:[%s905_s1 + $0x30] sm:$0xff]  ;;  %v97_v20 = vld [vmem:[%s905_s1 + $0x220] sm:$0xff] }
   0x6   :  { %v410_v17 = vpack.c.bf16 %v100_v15, %v98_v14  ;;  %409 = vmatpush1.bf16.msra.mxu0 %v408_v12  ;;  %v348_v21 = vpack.c.bf16 %v35_v19, %v33_v18  ;;  %v99_v22 = vld [vmem:[%s905_s1 + $0x230] sm:$0xff]  ;;  %v38_v23 = vld [vmem:[%s905_s1 + $0x48] sm:$0xff]  ;;  %v40_v24 = vld [vmem:[%s905_s1 + $0x58] sm:$0xff] }
   0x7   :  { %347 = vmatprep.subr.bf16.mxu1 %v346_v16  ;;  %v412_v25 = vpack.c.bf16 %v99_v22, %v97_v20  ;;  %v350_v26 = vpack.c.bf16 %v40_v24, %v38_v23  ;;  %v102_v27 = vld [vmem:[%s905_s1 + $0x248] sm:$0xff]  ;;  %v104_v28 = vld [vmem:[%s905_s1 + $0x258] sm:$0xff]  ;;  %v37_v29 = vld [vmem:[%s905_s1 + $0x40] sm:$0xff] }
   0x8   :  { %411 = vmatprep.subr.bf16.mxu0 %v410_v17  ;;  %v414_v30 = vpack.c.bf16 %v104_v28, %v102_v27  ;;  %v39_v31 = vld [vmem:[%s905_s1 + $0x50] sm:$0xff]  ;;  %v101_v32 = vld [vmem:[%s905_s1 + $0x240] sm:$0xff]  ;;  %v42_v35 = vld [vmem:[%s905_s1 + $0x68] sm:$0xff] }
   0x9   :  { %v103_v33 = vld [vmem:[%s905_s1 + $0x250] sm:$0xff]  ;;  %349 = vmatpush1.bf16.msra.mxu1 %v348_v21  ;;  %v352_v34 = vpack.c.bf16 %v39_v31, %v37_v29  ;;  %v44_v36 = vld [vmem:[%s905_s1 + $0x78] sm:$0xff]  ;;  %v106_v37 = vld [vmem:[%s905_s1 + $0x268] sm:$0xff] }
   0xa   :  { %413 = vmatpush1.bf16.msra.mxu0 %v412_v25  ;;  %351 = vmatprep.subr.bf16.mxu1 %v350_v26  ;;  %v416_v38 = vpack.c.bf16 %v103_v33, %v101_v32  ;;  %v354_v39 = vpack.c.bf16 %v44_v36, %v42_v35  ;;  %v108_v40 = vld [vmem:[%s905_s1 + $0x278] sm:$0xff]  ;;  %v41_v41 = vld [vmem:[%s905_s1 + $0x60] sm:$0xff]  ;;  %v43_v42 = vld [vmem:[%s905_s1 + $0x70] sm:$0xff] }
   0xb   :  { %415 = vmatprep.subr.bf16.mxu0 %v414_v30  ;;  %v418_v43 = vpack.c.bf16 %v108_v40, %v106_v37  ;;  %v105_v44 = vld [vmem:[%s905_s1 + $0x260] sm:$0xff]  ;;  %v107_v45 = vld [vmem:[%s905_s1 + $0x270] sm:$0xff]  ;;  %v46_v46 = vld [vmem:[%s905_s1 + $0x88] sm:$0xff]  ;;  %v356_v50 = vpack.c.bf16 %v43_v42, %v41_v41 }
   0xc   :  { %v48_v47 = vld [vmem:[%s905_s1 + $0x98] sm:$0xff]  ;;  %v110_v48 = vld [vmem:[%s905_s1 + $0x288] sm:$0xff]  ;;  %v420_v51 = vpack.c.bf16 %v107_v45, %v105_v44  ;;  %v45_v53 = vld [vmem:[%s905_s1 + $0x80] sm:$0xff] }
   0xd   :  { %v112_v49 = vld [vmem:[%s905_s1 + $0x298] sm:$0xff]  ;;  %353 = vmatpush1.bf16.msra.mxu1 %v352_v34  ;;  %v358_v52 = vpack.c.bf16 %v48_v47, %v46_v46  ;;  %v47_v54 = vld [vmem:[%s905_s1 + $0x90] sm:$0xff]  ;;  %v109_v55 = vld [vmem:[%s905_s1 + $0x280] sm:$0xff] }
   0xe   :  { %417 = vmatpush1.bf16.msra.mxu0 %v416_v38  ;;  %355 = vmatprep.subr.bf16.mxu1 %v354_v39  ;;  %v422_v56 = vpack.c.bf16 %v112_v49, %v110_v48  ;;  %v111_v57 = vld [vmem:[%s905_s1 + $0x290] sm:$0xff]  ;;  %v50_v58 = vld [vmem:[%s905_s1 + $0xa8] sm:$0xff]  ;;  %v52_v59 = vld [vmem:[%s905_s1 + $0xb8] sm:$0xff]  ;;  %v360_v62 = vpack.c.bf16 %v47_v54, %v45_v53 }
   0xf   :  { %419 = vmatprep.subr.bf16.mxu0 %v418_v43  ;;  %v114_v60 = vld [vmem:[%s905_s1 + $0x2a8] sm:$0xff]  ;;  %v116_v61 = vld [vmem:[%s905_s1 + $0x2b8] sm:$0xff]  ;;  %v424_v63 = vpack.c.bf16 %v111_v57, %v109_v55  ;;  %v362_v0 = vpack.c.bf16 %v52_v59, %v50_v58  ;;  %v49_v1 = vld [vmem:[%s905_s1 + $0xa0] sm:$0xff] }
  0x10   :  { %v51_v2 = vld [vmem:[%s905_s1 + $0xb0] sm:$0xff]  ;;  %v113_v3 = vld [vmem:[%s905_s1 + $0x2a0] sm:$0xff]  ;;  %v426_v4 = vpack.c.bf16 %v116_v61, %v114_v60  ;;  %v54_v6 = vld [vmem:[%s905_s1 + $0xc8] sm:$0xff] }
  0x11   :  { %357 = vmatpush1.bf16.msra.mxu1 %v356_v50  ;;  %v115_v5 = vld [vmem:[%s905_s1 + $0x2b0] sm:$0xff]  ;;  %v56_v7 = vld [vmem:[%s905_s1 + $0xd8] sm:$0xff]  ;;  %v118_v8 = vld [vmem:[%s905_s1 + $0x2c8] sm:$0xff]  ;;  %v364_v10 = vpack.c.bf16 %v51_v2, %v49_v1 }
  0x12   :  { %421 = vmatpush1.bf16.msra.mxu0 %v420_v51  ;;  %359 = vmatprep.subr.bf16.mxu1 %v358_v52  ;;  %v120_v9 = vld [vmem:[%s905_s1 + $0x2d8] sm:$0xff]  ;;  %v428_v11 = vpack.c.bf16 %v115_v5, %v113_v3  ;;  %v366_v12 = vpack.c.bf16 %v56_v7, %v54_v6  ;;  %v53_v13 = vld [vmem:[%s905_s1 + $0xc0] sm:$0xff]  ;;  %v55_v14 = vld [vmem:[%s905_s1 + $0xd0] sm:$0xff] }
  0x13   :  { %423 = vmatprep.subr.bf16.mxu0 %v422_v56  ;;  %v117_v15 = vld [vmem:[%s905_s1 + $0x2c0] sm:$0xff]  ;;  %v430_v16 = vpack.c.bf16 %v120_v9, %v118_v8  ;;  %v119_v17 = vld [vmem:[%s905_s1 + $0x2d0] sm:$0xff]  ;;  %v58_v18 = vld [vmem:[%s905_s1 + $0xe8] sm:$0xff]  ;;  %v368_v22 = vpack.c.bf16 %v55_v14, %v53_v13 }
  0x14   :  { %v60_v19 = vld [vmem:[%s905_s1 + $0xf8] sm:$0xff]  ;;  %v122_v20 = vld [vmem:[%s905_s1 + $0x2e8] sm:$0xff]  ;;  %v432_v23 = vpack.c.bf16 %v119_v17, %v117_v15  ;;  %v57_v25 = vld [vmem:[%s905_s1 + $0xe0] sm:$0xff] }
  0x15   :  { %361 = vmatpush1.bf16.msra.mxu1 %v360_v62  ;;  %v124_v21 = vld [vmem:[%s905_s1 + $0x2f8] sm:$0xff]  ;;  %v370_v24 = vpack.c.bf16 %v60_v19, %v58_v18  ;;  %v59_v26 = vld [vmem:[%s905_s1 + $0xf0] sm:$0xff]  ;;  %v121_v27 = vld [vmem:[%s905_s1 + $0x2e0] sm:$0xff] }
  0x16   :  { %425 = vmatpush1.bf16.msra.mxu0 %v424_v63  ;;  %363 = vmatprep.subr.bf16.mxu1 %v362_v0  ;;  %v434_v28 = vpack.c.bf16 %v124_v21, %v122_v20  ;;  %v123_v29 = vld [vmem:[%s905_s1 + $0x2f0] sm:$0xff]  ;;  %v62_v30 = vld [vmem:[%s905_s1 + $0x108] sm:$0xff]  ;;  %v64_v31 = vld [vmem:[%s905_s1 + $0x118] sm:$0xff]  ;;  %v372_v34 = vpack.c.bf16 %v59_v26, %v57_v25 }
  0x17   :  { %427 = vmatprep.subr.bf16.mxu0 %v426_v4  ;;  %v126_v32 = vld [vmem:[%s905_s1 + $0x308] sm:$0xff]  ;;  %v128_v33 = vld [vmem:[%s905_s1 + $0x318] sm:$0xff]  ;;  %v436_v35 = vpack.c.bf16 %v123_v29, %v121_v27  ;;  %v374_v36 = vpack.c.bf16 %v64_v31, %v62_v30  ;;  %v61_v37 = vld [vmem:[%s905_s1 + $0x100] sm:$0xff] }
  0x18   :  { %v63_v38 = vld [vmem:[%s905_s1 + $0x110] sm:$0xff]  ;;  %v125_v39 = vld [vmem:[%s905_s1 + $0x300] sm:$0xff]  ;;  %v438_v40 = vpack.c.bf16 %v128_v33, %v126_v32  ;;  %v66_v42 = vld [vmem:[%s905_s1 + $0x128] sm:$0xff] }
  0x19   :  { %365 = vmatpush1.bf16.msra.mxu1 %v364_v10  ;;  %v127_v41 = vld [vmem:[%s905_s1 + $0x310] sm:$0xff]  ;;  %v68_v43 = vld [vmem:[%s905_s1 + $0x138] sm:$0xff]  ;;  %v130_v44 = vld [vmem:[%s905_s1 + $0x328] sm:$0xff]  ;;  %v376_v46 = vpack.c.bf16 %v63_v38, %v61_v37 }
  0x1a   :  { %429 = vmatpush1.bf16.msra.mxu0 %v428_v11  ;;  %367 = vmatprep.subr.bf16.mxu1 %v366_v12  ;;  %v132_v45 = vld [vmem:[%s905_s1 + $0x338] sm:$0xff]  ;;  %v440_v47 = vpack.c.bf16 %v127_v41, %v125_v39  ;;  %v378_v48 = vpack.c.bf16 %v68_v43, %v66_v42  ;;  %v65_v49 = vld [vmem:[%s905_s1 + $0x120] sm:$0xff]  ;;  %v67_v50 = vld [vmem:[%s905_s1 + $0x130] sm:$0xff] }
  0x1b   :  { %431 = vmatprep.subr.bf16.mxu0 %v430_v16  ;;  %v129_v51 = vld [vmem:[%s905_s1 + $0x320] sm:$0xff]  ;;  %v442_v52 = vpack.c.bf16 %v132_v45, %v130_v44  ;;  %v131_v53 = vld [vmem:[%s905_s1 + $0x330] sm:$0xff]  ;;  %v70_v54 = vld [vmem:[%s905_s1 + $0x148] sm:$0xff]  ;;  %v380_v58 = vpack.c.bf16 %v67_v50, %v65_v49 }
  0x1c   :  { %v72_v55 = vld [vmem:[%s905_s1 + $0x158] sm:$0xff]  ;;  %v134_v56 = vld [vmem:[%s905_s1 + $0x348] sm:$0xff]  ;;  %v444_v59 = vpack.c.bf16 %v131_v53, %v129_v51  ;;  %v69_v61 = vld [vmem:[%s905_s1 + $0x140] sm:$0xff] }
  0x1d   :  { %369 = vmatpush1.bf16.msra.mxu1 %v368_v22  ;;  %v136_v57 = vld [vmem:[%s905_s1 + $0x358] sm:$0xff]  ;;  %v382_v60 = vpack.c.bf16 %v72_v55, %v70_v54  ;;  %v71_v62 = vld [vmem:[%s905_s1 + $0x150] sm:$0xff]  ;;  %v133_v63 = vld [vmem:[%s905_s1 + $0x340] sm:$0xff] }
  0x1e   :  { %433 = vmatpush1.bf16.msra.mxu0 %v432_v23  ;;  %371 = vmatprep.subr.bf16.mxu1 %v370_v24  ;;  %v446_v0 = vpack.c.bf16 %v136_v57, %v134_v56  ;;  %v135_v1 = vld [vmem:[%s905_s1 + $0x350] sm:$0xff]  ;;  %v74_v2 = vld [vmem:[%s905_s1 + $0x168] sm:$0xff]  ;;  %v76_v3 = vld [vmem:[%s905_s1 + $0x178] sm:$0xff]  ;;  %v384_v6 = vpack.c.bf16 %v71_v62, %v69_v61 }
  0x1f   :  { %435 = vmatprep.subr.bf16.mxu0 %v434_v28  ;;  %v138_v4 = vld [vmem:[%s905_s1 + $0x368] sm:$0xff]  ;;  %v140_v5 = vld [vmem:[%s905_s1 + $0x378] sm:$0xff]  ;;  %v73_v7 = vld [vmem:[%s905_s1 + $0x160] sm:$0xff]  ;;  %v448_v8 = vpack.c.bf16 %v135_v1, %v133_v63  ;;  %v386_v9 = vpack.c.bf16 %v76_v3, %v74_v2 }
  0x20   :  { %v75_v10 = vld [vmem:[%s905_s1 + $0x170] sm:$0xff]  ;;  %v137_v11 = vld [vmem:[%s905_s1 + $0x360] sm:$0xff]  ;;  %v450_v13 = vpack.c.bf16 %v140_v5, %v138_v4  ;;  %v78_v14 = vld [vmem:[%s905_s1 + $0x188] sm:$0xff]  ;;  %v310_v4 = vlaneseq }
  0x21   :  { %373 = vmatpush1.bf16.msra.mxu1 %v372_v34  ;;  %v139_v12 = vld [vmem:[%s905_s1 + $0x370] sm:$0xff]  ;;  %v80_v15 = vld [vmem:[%s905_s1 + $0x198] sm:$0xff]  ;;  %v26_v16 = vld [vmem:[%s906_s0 + $0x8] sm:$0xff]  ;;  %v388_v20 = vpack.c.bf16 %v75_v10, %v73_v7 }
  0x22   :  { %437 = vmatpush1.bf16.msra.mxu0 %v436_v35  ;;  %375 = vmatprep.subr.bf16.mxu1 %v374_v36  ;;  %v142_v17 = vld [vmem:[%s905_s1 + $0x388] sm:$0xff]  ;;  %v144_v18 = vld [vmem:[%s905_s1 + $0x398] sm:$0xff]  ;;  %v452_v21 = vpack.c.bf16 %v139_v12, %v137_v11  ;;  %v390_v22 = vpack.c.bf16 %v80_v15, %v78_v14  ;;  %v77_v23 = vld [vmem:[%s905_s1 + $0x180] sm:$0xff]  ;;  %v311_v5 = vshrl.u32 %v310_v4, 7 }
  0x23   :  { %439 = vmatprep.subr.bf16.mxu0 %v438_v40  ;;  %221 = vmatprep.mubr.f32.mxu1 %v26_v16  ;;  %v28_v19 = vld [vmem:[%s906_s0 + $0x18] sm:$0xff]  ;;  %v79_v24 = vld [vmem:[%s905_s1 + $0x190] sm:$0xff]  ;;  %v141_v25 = vld [vmem:[%s905_s1 + $0x380] sm:$0xff]  ;;  %v454_v26 = vpack.c.bf16 %v144_v18, %v142_v17 }
  0x24   :  { %292 = vmatprep.mubr.f32.mxu0 %v28_v19  ;;  %v143_v27 = vld [vmem:[%s905_s1 + $0x390] sm:$0xff]  ;;  %v82_v28 = vld [vmem:[%s905_s1 + $0x1a8] sm:$0xff]  ;;  %v84_v29 = vld [vmem:[%s905_s1 + $0x1b8] sm:$0xff]  ;;  %v392_v32 = vpack.c.bf16 %v79_v24, %v77_v23 }
  0x25   :  { %377 = vmatpush1.bf16.msra.mxu1 %v376_v46  ;;  %v146_v30 = vld [vmem:[%s905_s1 + $0x3a8] sm:$0xff]  ;;  %v148_v31 = vld [vmem:[%s905_s1 + $0x3b8] sm:$0xff]  ;;  %v456_v33 = vpack.c.bf16 %v143_v27, %v141_v25  ;;  %v394_v34 = vpack.c.bf16 %v84_v29, %v82_v28  ;;  %v81_v35 = vld [vmem:[%s905_s1 + $0x1a0] sm:$0xff] }
  0x26   :  { %441 = vmatpush1.bf16.msra.mxu0 %v440_v47  ;;  %379 = vmatprep.subr.bf16.mxu1 %v378_v48  ;;  %v83_v36 = vld [vmem:[%s905_s1 + $0x1b0] sm:$0xff]  ;;  %v145_v37 = vld [vmem:[%s905_s1 + $0x3a0] sm:$0xff]  ;;  %v458_v38 = vpack.c.bf16 %v148_v31, %v146_v30  ;;  %v86_v40 = vld [vmem:[%s905_s1 + $0x1c8] sm:$0xff] }
  0x27   :  { %443 = vmatprep.subr.bf16.mxu0 %v442_v52  ;;  %v147_v39 = vld [vmem:[%s905_s1 + $0x3b0] sm:$0xff]  ;;  %v88_v41 = vld [vmem:[%s905_s1 + $0x1d8] sm:$0xff]  ;;  %v150_v42 = vld [vmem:[%s905_s1 + $0x3c8] sm:$0xff]  ;;  %v396_v44 = vpack.c.bf16 %v83_v36, %v81_v35 }
  0x28   :  { %v152_v43 = vld [vmem:[%s905_s1 + $0x3d8] sm:$0xff]  ;;  %v460_v45 = vpack.c.bf16 %v147_v39, %v145_v37  ;;  %v398_v46 = vpack.c.bf16 %v88_v41, %v86_v40  ;;  %v85_v47 = vld [vmem:[%s905_s1 + $0x1c0] sm:$0xff]  ;;  %v87_v48 = vld [vmem:[%s905_s1 + $0x1d0] sm:$0xff] }
  0x29   :  { %381 = vmatpush1.bf16.msra.mxu1 %v380_v58  ;;  %v149_v49 = vld [vmem:[%s905_s1 + $0x3c0] sm:$0xff]  ;;  %v462_v50 = vpack.c.bf16 %v152_v43, %v150_v42  ;;  %v151_v51 = vld [vmem:[%s905_s1 + $0x3d0] sm:$0xff]  ;;  %v90_v52 = vld [vmem:[%s905_s1 + $0x1e8] sm:$0xff]  ;;  %v400_v56 = vpack.c.bf16 %v87_v48, %v85_v47 }
  0x2a   :  { %445 = vmatpush1.bf16.msra.mxu0 %v444_v59  ;;  %383 = vmatprep.subr.bf16.mxu1 %v382_v60  ;;  %v92_v53 = vld [vmem:[%s905_s1 + $0x1f8] sm:$0xff]  ;;  %v154_v54 = vld [vmem:[%s905_s1 + $0x3e8] sm:$0xff]  ;;  %v464_v57 = vpack.c.bf16 %v151_v51, %v149_v49  ;;  %v89_v59 = vld [vmem:[%s905_s1 + $0x1e0] sm:$0xff] }
  0x2b   :  { %447 = vmatprep.subr.bf16.mxu0 %v446_v0  ;;  %v156_v55 = vld [vmem:[%s905_s1 + $0x3f8] sm:$0xff]  ;;  %v402_v58 = vpack.c.bf16 %v92_v53, %v90_v52  ;;  %v91_v60 = vld [vmem:[%s905_s1 + $0x1f0] sm:$0xff]  ;;  %v153_v62 = vld [vmem:[%s905_s1 + $0x3e0] sm:$0xff] }
  0x2c   :  { %v466_v61 = vpack.c.bf16 %v156_v55, %v154_v54  ;;  %v155_v63 = vld [vmem:[%s905_s1 + $0x3f0] sm:$0xff]  ;;  %v404_v0 = vpack.c.bf16 %v91_v60, %v89_v59  ;;  %v25_v2 = vld [vmem:[%s906_s0] sm:$0xff] }
  0x2d   :  { %385 = vmatpush1.bf16.msra.mxu1 %v384_v6  ;;  %v468_v1 = vpack.c.bf16 %v155_v63, %v153_v62  ;;  %v27_v3 = vld [vmem:[%s906_s0 + $0x10] sm:$0xff]  ;;  %v312_v6 = vsub.s32 0, %v311_v5  ;;  %v308_v7 = vld [vmem:[%s907_s2] sm:$0x3] }
  0x2e   :  { %449 = vmatpush1.bf16.msra.mxu0 %v448_v8  ;;  %387 = vmatprep.subr.bf16.mxu1 %v386_v9  ;;  %v316_v8 = vsub.s32 1, %v311_v5  ;;  %v322_v9 = vld [vmem:[%s908_s3] sm:$0x3] }
  0x2f   :  { %451 = vmatprep.subr.bf16.mxu0 %v450_v13  ;;  %v313_v11 = vrot.slane %v308_v7, %v312_v6  ;;  %v327_v16 = vrot.slane %v322_v9, %v312_v6 }
  0x30   :  { %v317_v14 = vrot.slane %v308_v7, %v316_v8  ;;  %v331_v19 = vrot.slane %v322_v9, %v316_v8 }
  0x31   :  { %389 = vmatpush1.bf16.msra.mxu1 %v388_v20 }
  0x32   :  { %453 = vmatpush1.bf16.msra.mxu0 %v452_v21  ;;  %391 = vmatprep.subr.bf16.mxu1 %v390_v22 }
  0x33   :  { %455 = vmatprep.subr.bf16.mxu0 %v454_v26 }
  0x35   :  { %393 = vmatpush1.bf16.msra.mxu1 %v392_v32 }
  0x36   :  { %457 = vmatpush1.bf16.msra.mxu0 %v456_v33  ;;  %395 = vmatprep.subr.bf16.mxu1 %v394_v34 }
  0x37   :  { %459 = vmatprep.subr.bf16.mxu0 %v458_v38 }
  0x39   :  { %397 = vmatpush1.bf16.msra.mxu1 %v396_v44 }
  0x3a   :  { %461 = vmatpush1.bf16.msra.mxu0 %v460_v45  ;;  %399 = vmatprep.subr.bf16.mxu1 %v398_v46 }
  0x3b   :  { %463 = vmatprep.subr.bf16.mxu0 %v462_v50 }
  0x3d   :  { %401 = vmatpush1.bf16.msra.mxu1 %v400_v56 }
  0x3e   :  { %465 = vmatpush1.bf16.msra.mxu0 %v464_v57  ;;  %403 = vmatprep.subr.bf16.mxu1 %v402_v58 }
  0x3f   :  { %467 = vmatprep.subr.bf16.mxu0 %v466_v61 }
  0x41   :  { %405 = vmatpush1.bf16.msra.mxu1 %v404_v0 }
  0x42   :  { %469 = vmatpush1.bf16.msra.mxu0 %v468_v1 }
  0x44   :  { %222 = vmatmul.mubr.f32.vlgmr.msra.gmra.mrb[0].mxu1 %v25_v2 }
  0x45   :  { %293 = vmatmul.mubr.f32.vlgmr.msra.gmra.mrb[0].mxu0 %v27_v3 }
 0x117   :  { %v223_v10 = vpop.f32.mrb[0].mxu1 }
 0x118   :  { %v294_v12 = vpop.f32.mrb[0].mxu0  ;;  %v225_v13 = vpop.f32.mrb[1].mxu1 }
 0x119   :  { %v295_v15 = vadd.f32 %v294_v12, %v223_v10  ;;  %v296_v17 = vpop.f32.mrb[1].mxu0 }
 0x11a   :  { %v297_v18 = vadd.f32 %v296_v17, %v225_v13 }
 0x11b   :  { %v320_v20 = vmul.f32 %v313_v11, %v295_v15 }
 0x11c   :  { %v321_v21 = vmul.f32 %v317_v14, %v297_v18 }
 0x11d   :  { %v334_v22 = vadd.f32 %v327_v16, %v320_v20 }
 0x11e   :  { %v335_v23 = vadd.f32 %v331_v19, %v321_v21 }
 0x11f   :  { %336 = vst [vmem:[%s909_s4] sm:$0xff] %v334_v22 }
 0x120   :  { %337 = vst [vmem:[%s909_s4 + $0x8] sm:$0xff] %v335_v23 }

</bundles_post_ra>
